<compile_context>
chip_gen: v5e
topology: v5e:2x2
jax: 0.10.0
libtpu: 0.0.40
codegen_flags: <defaults>
</compile_context>

<pallas_src>
import functools

import jax
import jax.numpy as jnp
from jax.experimental import pallas as pl
from jax.experimental.pallas import tpu as pltpu

LANE = 128  # TPU lane width; channel dims are padded to a multiple of this.


def _round_up(x, m):
    return (x + m - 1) // m * m


# ---------------------------------------------------------------------------
# Pallas kernel: residual block for one (image, Cout tile).
# ---------------------------------------------------------------------------
def _residual_block_kernel(*refs, stride, Ho, Wo, has_projection, need_xid, pack):
    """Refs (static layout):
      xph  : (s*s, Hq, Wq, Cpi) bf16   phase-split, spatially padded input
      w1   : (9*Cpi, Cpo) bf16         BN-folded conv1 weight (taps along K)
      b1   : (1, Cpo) f32
      w2   : (9*Cpo, co_tile) bf16     BN-folded conv2 weight, Cout-tiled
      b2   : (1, co_tile) f32
      [ws  : (Cpi, co_tile) bf16, bs: (1, co_tile) f32]      projection skip
      [xid : (1, Ho, Wo, co_tile) bf16]                       identity skip, n_co>1
      o    : (1, M, co_tile) bf16
      out1 : (Ho+2, Wo+2, Cpo) bf16    scratch: zero-haloed conv1 output
      [lhs1: (M, 9*Cpi) bf16, lhs2: (M, 9*Cpo) bf16]          packed-tap scratches
    """
    xph_ref, w1_ref, b1_ref, w2_ref, b2_ref = refs[:5]
    i = 5
    ws_ref = bs_ref = xid_ref = None
    lhs1_ref = lhs2_ref = None
    if has_projection:
        ws_ref, bs_ref = refs[i:i + 2]
        i += 2
    elif need_xid:
        xid_ref = refs[i]
        i += 1
    o_ref = refs[i]
    out1_ref = refs[i + 1]
    if pack:
        lhs1_ref, lhs2_ref = refs[i + 2:i + 4]

    s = stride
    M = Ho * Wo
    cin_p = xph_ref.shape[-1]
    cout_p = out1_ref.shape[-1]
    co = pl.program_id(1)

    def x_tap(dh, dw):
        ph = (dh % s) * s + (dw % s)
        return xph_ref[ph, dh // s:dh // s + Ho,
                       dw // s:dw // s + Wo, :].reshape(M, cin_p)

    def o1_tap(dh, dw):
        return out1_ref[dh:dh + Ho, dw:dw + Wo, :].reshape(M, cout_p)

    # --- per-image work (co == 0): conv1 + bn1 + relu, staged in VMEM --------
    @pl.when(co == 0)
    def _():
        # Zero only the 1-wide halo; the interior is fully overwritten below.
        zrow = jnp.zeros((1, Wo + 2, cout_p), out1_ref.dtype)
        zcol = jnp.zeros((Ho + 2, 1, cout_p), out1_ref.dtype)
        out1_ref[0:1, :, :] = zrow
        out1_ref[Ho + 1:Ho + 2, :, :] = zrow
        out1_ref[:, 0:1, :] = zcol
        out1_ref[:, Wo + 1:Wo + 2, :] = zcol

        if pack:
            # Pack 9 taps along K -> single long-K MXU matmul (no VPU adds).
            for dh in range(3):
                for dw in range(3):
                    t = dh * 3 + dw
                    lhs1_ref[:, t * cin_p:(t + 1) * cin_p] = x_tap(dh, dw)
            acc1 = jnp.dot(lhs1_ref[...], w1_ref[...],
                           preferred_element_type=jnp.float32)
        else:
            acc1 = None
            for dh in range(3):
                for dw in range(3):
                    t = dh * 3 + dw
                    part = jnp.dot(x_tap(dh, dw),
                                   w1_ref[t * cin_p:(t + 1) * cin_p, :],
                                   preferred_element_type=jnp.float32)
                    acc1 = part if acc1 is None else acc1 + part

        out1 = jnp.maximum(acc1 + b1_ref[...], 0.0)
        # TODO(synk): the offset-1 interior store is sublane-unaligned; an
        # aligned staging layout would shave a bit more on v5e (1 vst slot).
        out1_ref[1:1 + Ho, 1:1 + Wo, :] = (
            out1.astype(out1_ref.dtype).reshape(Ho, Wo, cout_p))

        if pack:
            # Pre-pack conv2's lhs once per image; reused by every Cout tile.
            for dh in range(3):
                for dw in range(3):
                    t = dh * 3 + dw
                    lhs2_ref[:, t * cout_p:(t + 1) * cout_p] = o1_tap(dh, dw)

    # --- per-(image, Cout tile): conv2 + bn2 + skip + relu --------------------
    if pack:
        acc2 = jnp.dot(lhs2_ref[...], w2_ref[...],
                       preferred_element_type=jnp.float32)
    else:
        acc2 = None
        for dh in range(3):
            for dw in range(3):
                t = dh * 3 + dw
                part = jnp.dot(o1_tap(dh, dw),
                               w2_ref[t * cout_p:(t + 1) * cout_p, :],
                               preferred_element_type=jnp.float32)
                acc2 = part if acc2 is None else acc2 + part
    acc2 = acc2 + b2_ref[...]

    # Skip path (fused; no separate pallas_call / HBM residual stream).
    phs = (1 % s) * s + (1 % s)
    if has_projection:
        if pack:
            xs = lhs1_ref[:, 4 * cin_p:5 * cin_p]   # center tap == strided 1x1 input
        else:
            xs = xph_ref[phs, 1 // s:1 // s + Ho,
                         1 // s:1 // s + Wo, :].reshape(M, cin_p)
        identity = jnp.dot(xs, ws_ref[...],
                           preferred_element_type=jnp.float32) + bs_ref[...]
    elif need_xid:
        identity = xid_ref[0].reshape(M, xid_ref.shape[-1]).astype(jnp.float32)
    elif pack:
        identity = lhs1_ref[:, 4 * cin_p:5 * cin_p].astype(jnp.float32)
    else:
        identity = xph_ref[phs, 1 // s:1 // s + Ho,
                           1 // s:1 // s + Wo, :].reshape(M, cin_p).astype(jnp.float32)

    o_ref[0] = jnp.maximum(acc2 + identity, 0.0).astype(o_ref.dtype)


# ---------------------------------------------------------------------------
# Host-side preparation: BN folding, channel padding, phase split.
# ---------------------------------------------------------------------------
def _fold_bn(gamma, beta, mean, var, eps=1e-5):
    scale = gamma / jnp.sqrt(var + eps)
    return scale, beta - mean * scale


def _prep_conv_w(w_oihw, scale, cin_p, cout_p):
    """OIHW weight -> HWIO, BN scale folded in, channel-padded, bf16."""
    o, i, kh, kw = w_oihw.shape
    w = jnp.transpose(w_oihw, (2, 3, 1, 0)) * scale[None, None, None, :]
    w = jnp.pad(w, ((0, 0), (0, 0), (0, cin_p - i), (0, cout_p - o)))
    return w.astype(jnp.bfloat16)


def _prepare_params(params):
    """Folds BN into conv weights/biases and pads channels to lane multiples."""
    cout, cin = params["w1_oihw"].shape[:2]
    cin_p, cout_p = _round_up(cin, LANE), _round_up(cout, LANE)
    s1, b1 = _fold_bn(*params["bn1"])
    s2, b2 = _fold_bn(*params["bn2"])
    w1 = _prep_conv_w(params["w1_oihw"], s1, cin_p, cout_p)    # (3,3,Cpi,Cpo)
    w2 = _prep_conv_w(params["w2_oihw"], s2, cout_p, cout_p)   # (3,3,Cpo,Cpo)

    def pad_bias(b):
        return jnp.pad(b, (0, cout_p - cout)).reshape(1, cout_p).astype(jnp.float32)

    prep = dict(
        cin=cin, cout=cout, cin_p=cin_p, cout_p=cout_p,
        w1_hwio=w1, w1_mat=w1.reshape(9 * cin_p, cout_p), b1=pad_bias(b1),
        w2_hwio=w2, w2_mat=w2.reshape(9 * cout_p, cout_p), b2=pad_bias(b2),
    )
    if "w_skip_oihw" in params:
        ss, bs = _fold_bn(*params["bn_skip"])
        ws = _prep_conv_w(params["w_skip_oihw"], ss, cin_p, cout_p)  # (1,1,Cpi,Cpo)
        prep.update(ws_hwio=ws, ws_mat=ws.reshape(cin_p, cout_p), bs=pad_bias(bs))
    return prep


def _prep_x(x_nchw, cin_p):
    """NCHW f32 -> NHWC, channel-padded to cin_p, bf16."""
    x = jnp.transpose(x_nchw, (0, 2, 3, 1)).astype(jnp.float32)
    x = jnp.pad(x, ((0, 0), (0, 0), (0, 0), (0, cin_p - x.shape[-1])))
    return x.astype(jnp.bfloat16)


def _phase_split(x_nhwc, stride, Ho, Wo):
    """Pad spatially by 1 and split H/W into `stride` phases so every 3x3 tap
    (and the strided 1x1 skip) is a unit-stride window in the kernel."""
    N, H, W, C = x_nhwc.shape
    s = stride
    Hq = max(dh // s + Ho for dh in range(3))
    Wq = max(dw // s + Wo for dw in range(3))
    xp = jnp.pad(x_nhwc, ((0, 0), (1, 1), (1, 1), (0, 0)))
    tH, tW = s * Hq, s * Wq
    xp = xp[:, :min(tH, xp.shape[1]), :min(tW, xp.shape[2]), :]
    xp = jnp.pad(xp, ((0, 0), (0, tH - xp.shape[1]), (0, tW - xp.shape[2]), (0, 0)))
    xph = xp.reshape(N, Hq, s, Wq, s, C).transpose(0, 2, 4, 1, 3, 5)
    return xph.reshape(N * s * s, Hq, Wq, C), Hq, Wq


def _vmem_budget_bytes():
    """Generation-aware VMEM budget (64 MiB/TC on v7x, 128 MiB on v5e/v6e)."""
    try:
        cap = int(pltpu.get_tpu_info().vmem_capacity_bytes)
    except Exception:
        cap = 64 << 20   # conservative fallback
    return int(cap * 0.8)


def residual_block_forward(x_nchw, params, stride, *, to_nchw=True):
    prep = _prepare_params(params)
    N, cin, H, W = x_nchw.shape
    cout, cin_p, cout_p = prep["cout"], prep["cin_p"], prep["cout_p"]
    has_proj = "ws_mat" in prep
    s = stride
    Ho = (H + 2 - 3) // s + 1
    Wo = (W + 2 - 3) // s + 1
    M = Ho * Wo

    x_nhwc = _prep_x(x_nchw, cin_p)                      # bf16 (N, H, W, Cpi)
    # TODO(synk): for stride>1 the phase split is an extra XLA pass over x; in a
    # full network, fuse it into the producing layer (or keep x pre-split).
    xph, Hq, Wq = _phase_split(x_nhwc, s, Ho, Wo)        # (N*s*s, Hq, Wq, Cpi)

    budget = _vmem_budget_bytes()

    # Pack the 9 taps along K (one long-K matmul) when the packed-lhs scratches
    # stay a small fraction of VMEM; otherwise fall back to 9 short-K dots.
    pack = (M * 9 * (cin_p + cout_p) * 2) <= max(budget // 4, 2 << 20)

    def vmem_estimate(co_t):
        n_co_ = cout_p // co_t
        nbuf = 1 if n_co_ == 1 else 2
        est = (s * s * Hq * Wq * cin_p * 2 * 2              # xph (double-buffered)
               + 9 * cin_p * cout_p * 2 + cout_p * 4        # w1 / b1 (single-buffered)
               + (9 * cout_p * co_t * 2 + co_t * 4) * nbuf  # w2 / b2
               + M * co_t * 2 * 2                           # bf16 output block
               + (Ho + 2) * (Wo + 2) * cout_p * 2)          # conv1 staging scratch
        if has_proj:
            est += (cin_p * co_t * 2 + co_t * 4) * nbuf
        elif n_co_ > 1:
            est += Ho * Wo * co_t * 2 * 2                   # identity-slice input
        if pack:
            est += M * 9 * (cin_p + cout_p) * 2             # packed-lhs scratches
        return est + (4 << 20)

    # Cout tile: full width when it fits the budget, otherwise 256/128-wide
    # tiles so weight/output blocks stay small (mandatory on v7x's 64 MiB VMEM)
    # and the co axis gives the pipeline depth.
    co_tile = 128
    for c in (cout_p, 512, 384, 256, 128):
        if c <= cout_p and cout_p % c == 0 and vmem_estimate(c) <= budget:
            co_tile = c
            break
    n_co = cout_p // co_tile
    need_xid = (not has_proj) and n_co > 1
    vmem_limit = int(min(max(vmem_estimate(co_tile), 32 << 20), budget))

    args = [xph, prep["w1_mat"], prep["b1"], prep["w2_mat"], prep["b2"]]
    if has_proj:
        args += [prep["ws_mat"], prep["bs"]]
    elif need_xid:
        args += [x_nhwc]

    def make_specs(use_buffered):
        def const_spec(shape, index_map):
            # Constant-index blocks: single-buffer to halve their VMEM cost.
            if use_buffered:
                return pl.BlockSpec(shape, index_map, pipeline_mode=pl.Buffered(1))
            return pl.BlockSpec(shape, index_map)

        co_spec = const_spec if n_co == 1 else pl.BlockSpec
        in_specs = [
            pl.BlockSpec((s * s, Hq, Wq, cin_p), lambda n, co: (n, 0, 0, 0)),
            const_spec((9 * cin_p, cout_p), lambda n, co: (0, 0)),
            const_spec((1, cout_p), lambda n, co: (0, 0)),
            co_spec((9 * cout_p, co_tile), lambda n, co: (0, co)),
            co_spec((1, co_tile), lambda n, co: (0, co)),
        ]
        if has_proj:
            in_specs += [co_spec((cin_p, co_tile), lambda n, co: (0, co)),
                         co_spec((1, co_tile), lambda n, co: (0, co))]
        elif need_xid:
            in_specs += [pl.BlockSpec((1, Ho, Wo, co_tile),
                                      lambda n, co: (n, 0, 0, co))]
        out_specs = pl.BlockSpec((1, M, co_tile), lambda n, co: (n, 0, co))
        return in_specs, out_specs

    scratch_shapes = [pltpu.VMEM((Ho + 2, Wo + 2, cout_p), jnp.bfloat16)]
    if pack:
        scratch_shapes += [pltpu.VMEM((M, 9 * cin_p), jnp.bfloat16),
                           pltpu.VMEM((M, 9 * cout_p), jnp.bfloat16)]

    kernel = functools.partial(_residual_block_kernel, stride=s, Ho=Ho, Wo=Wo,
                               has_projection=has_proj, need_xid=need_xid,
                               pack=pack)

    flops = int(N * (2 * M * 9 * cin_p * cout_p + 2 * M * 9 * cout_p * cout_p
                     + (2 * M * cin_p * cout_p if has_proj else 0)))
    bytes_accessed = int(
        xph.size * 2 + 9 * cin_p * cout_p * 2 + 9 * cout_p * cout_p * 2
        + 2 * cout_p * 4
        + (cin_p * cout_p * 2 + cout_p * 4 if has_proj else 0)
        + (N * M * cout_p * 2 if need_xid else 0)
        + N * M * cout_p * 2)                               # bf16 output

    def run(use_buffered):
        in_specs, out_specs = make_specs(use_buffered)
        return pl.pallas_call(
            kernel,
            out_shape=jax.ShapeDtypeStruct((N, M, cout_p), jnp.bfloat16),
            grid=(N, n_co),
            in_specs=in_specs,
            out_specs=out_specs,
            scratch_shapes=scratch_shapes,
            compiler_params=pltpu.CompilerParams(
                dimension_semantics=("parallel", "arbitrary"),
                vmem_limit_bytes=vmem_limit),
            cost_estimate=pl.CostEstimate(flops=flops, transcendentals=0,
                                          bytes_accessed=bytes_accessed),
        )(*args)

    try:
        out = run(use_buffered=True)
    except Exception:
        # pipeline_mode=pl.Buffered(1) unsupported by this jax version; fall
        # back to default double-buffering (numerics are identical).
        out = run(use_buffered=False)

    out = out.reshape(N, Ho, Wo, cout_p)
    if not to_nchw:
        # Kernel-native padded-NHWC bf16: preferred format when chaining blocks
        # (avoids an extra HBM pass for slicing/transposing between blocks).
        return out
    return jnp.transpose(out[..., :cout].astype(jnp.float32), (0, 3, 1, 2))


# ---------------------------------------------------------------------------
# References (used only for verification in __main__).
# ---------------------------------------------------------------------------
def _conv_nhwc(x, w_hwio, stride, padding):
    return jax.lax.conv_general_dilated(
        x, w_hwio, (stride, stride), padding,
        dimension_numbers=("NHWC", "HWIO", "NHWC"),
        preferred_element_type=jnp.float32)


def _ref_quantized(x_nchw, params, stride):
    """Reference with the SAME bf16 quantization points as the kernel."""
    prep = _prepare_params(params)
    x = _prep_x(x_nchw, prep["cin_p"])
    pad1 = [(1, 1), (1, 1)]
    out1 = jnp.maximum(_conv_nhwc(x, prep["w1_hwio"], stride, pad1) + prep["b1"], 0.0)
    out1 = out1.astype(jnp.bfloat16)
    out2 = _conv_nhwc(out1, prep["w2_hwio"], 1, pad1) + prep["b2"]
    if "ws_hwio" in prep:
        identity = _conv_nhwc(x, prep["ws_hwio"], stride, [(0, 0), (0, 0)]) + prep["bs"]
    else:
        identity = x.astype(jnp.float32)
    y = jnp.maximum(out2 + identity, 0.0)
    return jnp.transpose(y[..., :prep["cout"]], (0, 3, 1, 2))


def _ref_f32(x_nchw, params, stride):
    """Pure-f32 eval-mode reference matching the PyTorch module semantics."""
    def conv(x, w, s, pad):
        return jax.lax.conv_general_dilated(
            x, w, (s, s), [(pad, pad), (pad, pad)],
            dimension_numbers=("NCHW", "OIHW", "NCHW"))

    def bn(x, p):
        g, b, m, v = p
        sc = g / jnp.sqrt(v + 1e-5)
        return x * sc[None, :, None, None] + (b - m * sc)[None, :, None, None]

    same = "w_skip_oihw" not in params
    identity = x_nchw if same else bn(
        conv(x_nchw, params["w_skip_oihw"], stride, 0), params["bn_skip"])
    out = jax.nn.relu(bn(conv(x_nchw, params["w1_oihw"], stride, 1), params["bn1"]))
    out = bn(conv(out, params["w2_oihw"], 1, 1), params["bn2"])
    return jax.nn.relu(out + identity)


def init_params(key, in_channels, out_channels, same_shape):
    keys = jax.random.split(key, 6)

    def bn_params(k):
        k1, k2, k3, k4 = jax.random.split(k, 4)
        gamma = jax.random.normal(k1, (out_channels,)) * 0.1 + 1.0
        beta = jax.random.normal(k2, (out_channels,)) * 0.1
        mean = jax.random.normal(k3, (out_channels,)) * 0.1
        var = jnp.abs(jax.random.normal(k4, (out_channels,))) * 0.1 + 0.9
        return (gamma, beta, mean, var)

    params = {
        "w1_oihw": jax.random.normal(keys[0], (out_channels, in_channels, 3, 3)) * 0.1,
        "w2_oihw": jax.random.normal(keys[1], (out_channels, out_channels, 3, 3)) * 0.1,
        "bn1": bn_params(keys[2]),
        "bn2": bn_params(keys[3]),
    }
    if not same_shape:
        params["w_skip_oihw"] = (
            jax.random.normal(keys[4], (out_channels, in_channels, 1, 1)) * 0.1)
        params["bn_skip"] = bn_params(keys[5])
    return params


if __name__ == "__main__":
    key = jax.random.PRNGKey(0)

    configs = [
        # (N, Cin, H, W, Cout, stride)
        (2, 4, 16, 16, 8, 2),   # projection skip (1x1 conv + BN), strided
        (2, 8, 16, 16, 8, 1),   # identity skip
    ]
    for idx, (N, Cin, H, W, Cout, stride) in enumerate(configs):
        kx, kp, key = jax.random.split(key, 3)
        x = jax.random.normal(kx, (N, Cin, H, W), dtype=jnp.float32)
        same = (Cin == Cout) and (stride == 1)
        params = init_params(kp, Cin, Cout, same_shape=same)

        out = residual_block_forward(x, params, stride)
        out = jax.block_until_ready(out)

        Ho = (H + 2 - 3) // stride + 1
        Wo = (W + 2 - 3) // stride + 1
        assert out.shape == (N, Cout, Ho, Wo), out.shape

        # Strict check against a reference with matching bf16 quantization
        # (tolerance includes the bf16 rounding of the kernel's output).
        ref_q = _ref_quantized(x, params, stride)
        err_q = float(jnp.max(jnp.abs(out - ref_q)))
        tol_q = 0.01 * float(jnp.max(jnp.abs(ref_q))) + 0.01
        assert err_q < tol_q, f"config {idx}: quantized-ref err {err_q} (tol {tol_q})"

        # Loose check against the pure-f32 eval-mode reference.
        ref_f = _ref_f32(x, params, stride)
        err_f = float(jnp.max(jnp.abs(out - ref_f)))
        tol_f = 0.03 * float(jnp.max(jnp.abs(ref_f))) + 0.03
        assert err_f < tol_f, f"config {idx}: f32-ref err {err_f} (tol {tol_f})"

    print("KERNEL_OK")
</pallas_src>

<mosaic_0001>
module attributes {stable_mosaic.version = 11 : i64} {
  func.func @_residual_block_kernel(%arg0: i32, %arg1: i32, %arg2: memref<4x9x9x128xbf16, #tpu.memory_space<vmem>>, %arg3: memref<1152x128xbf16, #tpu.memory_space<vmem>>, %arg4: memref<1x128xf32, #tpu.memory_space<vmem>>, %arg5: memref<1152x128xbf16, #tpu.memory_space<vmem>>, %arg6: memref<1x128xf32, #tpu.memory_space<vmem>>, %arg7: memref<128x128xbf16, #tpu.memory_space<vmem>>, %arg8: memref<1x128xf32, #tpu.memory_space<vmem>>, %arg9: memref<1x64x128xbf16, #tpu.memory_space<vmem>>, %arg10: memref<10x10x128xbf16, #tpu.memory_space<vmem>>, %arg11: memref<64x1152xbf16, #tpu.memory_space<vmem>>, %arg12: memref<64x1152xbf16, #tpu.memory_space<vmem>>) attributes {dimension_semantics = [#tpu.dimension_semantics<parallel>, #tpu.dimension_semantics<arbitrary>], iteration_bounds = array<i64: 2, 1>, scalar_prefetch = 0 : i64, scratch_operands = 3 : i64, tpu.core_type = #tpu.core_type<tc>, window_params = [{transform_indices = @transform_0, window_bounds = array<i64: 4, 9, 9, 128>}, {pipeline_mode = #tpu.pipeline_mode<synchronous>, transform_indices = @transform_1, window_bounds = array<i64: 1152, 128>}, {pipeline_mode = #tpu.pipeline_mode<synchronous>, transform_indices = @transform_2, window_bounds = array<i64: 1, 128>}, {pipeline_mode = #tpu.pipeline_mode<synchronous>, transform_indices = @transform_3, window_bounds = array<i64: 1152, 128>}, {pipeline_mode = #tpu.pipeline_mode<synchronous>, transform_indices = @transform_4, window_bounds = array<i64: 1, 128>}, {pipeline_mode = #tpu.pipeline_mode<synchronous>, transform_indices = @transform_5, window_bounds = array<i64: 128, 128>}, {pipeline_mode = #tpu.pipeline_mode<synchronous>, transform_indices = @transform_6, window_bounds = array<i64: 1, 128>}, {transform_indices = @transform_7, window_bounds = array<i64: 1, 64, 128>}]} {
    %c0_i32 = arith.constant 0 : i32
    %0 = arith.cmpi eq, %arg1, %c0_i32 : i32
    %1 = arith.extui %0 : i1 to i32
    %c0_i32_0 = arith.constant 0 : i32
    %2 = arith.cmpi ne, %1, %c0_i32_0 : i32
    scf.if %2 {
      %cst_16 = arith.constant 0.000000e+00 : bf16
      %22 = vector.broadcast %cst_16 : bf16 to vector<1x10x128xbf16>
      %cst_17 = arith.constant 0.000000e+00 : bf16
      %23 = vector.broadcast %cst_17 : bf16 to vector<10x1x128xbf16>
      %c0_18 = arith.constant 0 : index
      %c0_19 = arith.constant 0 : index
      %c0_20 = arith.constant 0 : index
      %24 = vector.load %arg10[%c0_18, %c0_19, %c0_20] : memref<10x10x128xbf16, #tpu.memory_space<vmem>>, vector<1x10x128xbf16>
      tpu.vector_store %arg10[%c0_18, %c0_19, %c0_20], %22 {strides = array<i32>} : memref<10x10x128xbf16, #tpu.memory_space<vmem>>, vector<1x10x128xbf16>,
      %c9 = arith.constant 9 : index
      %c0_21 = arith.constant 0 : index
      %c0_22 = arith.constant 0 : index
      %25 = vector.load %arg10[%c9, %c0_21, %c0_22] : memref<10x10x128xbf16, #tpu.memory_space<vmem>>, vector<1x10x128xbf16>
      tpu.vector_store %arg10[%c9, %c0_21, %c0_22], %22 {strides = array<i32>} : memref<10x10x128xbf16, #tpu.memory_space<vmem>>, vector<1x10x128xbf16>,
      %c0_23 = arith.constant 0 : index
      %c0_24 = arith.constant 0 : index
      %c0_25 = arith.constant 0 : index
      %26 = vector.load %arg10[%c0_23, %c0_24, %c0_25] : memref<10x10x128xbf16, #tpu.memory_space<vmem>>, vector<10x1x128xbf16>
      tpu.vector_store %arg10[%c0_23, %c0_24, %c0_25], %23 {strides = array<i32>} : memref<10x10x128xbf16, #tpu.memory_space<vmem>>, vector<10x1x128xbf16>,
      %c0_26 = arith.constant 0 : index
      %c9_27 = arith.constant 9 : index
      %c0_28 = arith.constant 0 : index
      %27 = vector.load %arg10[%c0_26, %c9_27, %c0_28] : memref<10x10x128xbf16, #tpu.memory_space<vmem>>, vector<10x1x128xbf16>
      tpu.vector_store %arg10[%c0_26, %c9_27, %c0_28], %23 {strides = array<i32>} : memref<10x10x128xbf16, #tpu.memory_space<vmem>>, vector<10x1x128xbf16>,
      %c0_29 = arith.constant 0 : index
      %c0_30 = arith.constant 0 : index
      %c0_31 = arith.constant 0 : index
      %c0_32 = arith.constant 0 : index
      %28 = vector.load %arg2[%c0_29, %c0_30, %c0_31, %c0_32] : memref<4x9x9x128xbf16, #tpu.memory_space<vmem>>, vector<1x8x8x128xbf16>
      %29 = vector.shape_cast %28 : vector<1x8x8x128xbf16> to vector<8x8x128xbf16>
      %30 = vector.shape_cast %29 : vector<8x8x128xbf16> to vector<64x128xbf16>
      %c0_33 = arith.constant 0 : index
      %c0_34 = arith.constant 0 : index
      %31 = vector.load %arg11[%c0_33, %c0_34] : memref<64x1152xbf16, #tpu.memory_space<vmem>>, vector<64x128xbf16>
      tpu.vector_store %arg11[%c0_33, %c0_34], %30 {strides = array<i32>} : memref<64x1152xbf16, #tpu.memory_space<vmem>>, vector<64x128xbf16>,
      %c1 = arith.constant 1 : index
      %c0_35 = arith.constant 0 : index
      %c0_36 = arith.constant 0 : index
      %c0_37 = arith.constant 0 : index
      %32 = vector.load %arg2[%c1, %c0_35, %c0_36, %c0_37] : memref<4x9x9x128xbf16, #tpu.memory_space<vmem>>, vector<1x8x8x128xbf16>
      %33 = vector.shape_cast %32 : vector<1x8x8x128xbf16> to vector<8x8x128xbf16>
      %34 = vector.shape_cast %33 : vector<8x8x128xbf16> to vector<64x128xbf16>
      %c0_38 = arith.constant 0 : index
      %c128 = arith.constant 128 : index
      %35 = vector.load %arg11[%c0_38, %c128] : memref<64x1152xbf16, #tpu.memory_space<vmem>>, vector<64x128xbf16>
      tpu.vector_store %arg11[%c0_38, %c128], %34 {strides = array<i32>} : memref<64x1152xbf16, #tpu.memory_space<vmem>>, vector<64x128xbf16>,
      %c0_39 = arith.constant 0 : index
      %c0_40 = arith.constant 0 : index
      %c1_41 = arith.constant 1 : index
      %c0_42 = arith.constant 0 : index
      %36 = vector.load %arg2[%c0_39, %c0_40, %c1_41, %c0_42] : memref<4x9x9x128xbf16, #tpu.memory_space<vmem>>, vector<1x8x8x128xbf16>
      %37 = vector.shape_cast %36 : vector<1x8x8x128xbf16> to vector<8x8x128xbf16>
      %38 = vector.shape_cast %37 : vector<8x8x128xbf16> to vector<64x128xbf16>
      %c0_43 = arith.constant 0 : index
      %c256 = arith.constant 256 : index
      %39 = vector.load %arg11[%c0_43, %c256] : memref<64x1152xbf16, #tpu.memory_space<vmem>>, vector<64x128xbf16>
      tpu.vector_store %arg11[%c0_43, %c256], %38 {strides = array<i32>} : memref<64x1152xbf16, #tpu.memory_space<vmem>>, vector<64x128xbf16>,
      %c2 = arith.constant 2 : index
      %c0_44 = arith.constant 0 : index
      %c0_45 = arith.constant 0 : index
      %c0_46 = arith.constant 0 : index
      %40 = vector.load %arg2[%c2, %c0_44, %c0_45, %c0_46] : memref<4x9x9x128xbf16, #tpu.memory_space<vmem>>, vector<1x8x8x128xbf16>
      %41 = vector.shape_cast %40 : vector<1x8x8x128xbf16> to vector<8x8x128xbf16>
      %42 = vector.shape_cast %41 : vector<8x8x128xbf16> to vector<64x128xbf16>
      %c0_47 = arith.constant 0 : index
      %c384 = arith.constant 384 : index
      %43 = vector.load %arg11[%c0_47, %c384] : memref<64x1152xbf16, #tpu.memory_space<vmem>>, vector<64x128xbf16>
      tpu.vector_store %arg11[%c0_47, %c384], %42 {strides = array<i32>} : memref<64x1152xbf16, #tpu.memory_space<vmem>>, vector<64x128xbf16>,
      %c3 = arith.constant 3 : index
      %c0_48 = arith.constant 0 : index
      %c0_49 = arith.constant 0 : index
      %c0_50 = arith.constant 0 : index
      %44 = vector.load %arg2[%c3, %c0_48, %c0_49, %c0_50] : memref<4x9x9x128xbf16, #tpu.memory_space<vmem>>, vector<1x8x8x128xbf16>
      %45 = vector.shape_cast %44 : vector<1x8x8x128xbf16> to vector<8x8x128xbf16>
      %46 = vector.shape_cast %45 : vector<8x8x128xbf16> to vector<64x128xbf16>
      %c0_51 = arith.constant 0 : index
      %c512_52 = arith.constant 512 : index
      %47 = vector.load %arg11[%c0_51, %c512_52] : memref<64x1152xbf16, #tpu.memory_space<vmem>>, vector<64x128xbf16>
      tpu.vector_store %arg11[%c0_51, %c512_52], %46 {strides = array<i32>} : memref<64x1152xbf16, #tpu.memory_space<vmem>>, vector<64x128xbf16>,
      %c2_53 = arith.constant 2 : index
      %c0_54 = arith.constant 0 : index
      %c1_55 = arith.constant 1 : index
      %c0_56 = arith.constant 0 : index
      %48 = vector.load %arg2[%c2_53, %c0_54, %c1_55, %c0_56] : memref<4x9x9x128xbf16, #tpu.memory_space<vmem>>, vector<1x8x8x128xbf16>
      %49 = vector.shape_cast %48 : vector<1x8x8x128xbf16> to vector<8x8x128xbf16>
      %50 = vector.shape_cast %49 : vector<8x8x128xbf16> to vector<64x128xbf16>
      %c0_57 = arith.constant 0 : index
      %c640 = arith.constant 640 : index
      %51 = vector.load %arg11[%c0_57, %c640] : memref<64x1152xbf16, #tpu.memory_space<vmem>>, vector<64x128xbf16>
      tpu.vector_store %arg11[%c0_57, %c640], %50 {strides = array<i32>} : memref<64x1152xbf16, #tpu.memory_space<vmem>>, vector<64x128xbf16>,
      %c0_58 = arith.constant 0 : index
      %c1_59 = arith.constant 1 : index
      %c0_60 = arith.constant 0 : index
      %c0_61 = arith.constant 0 : index
      %52 = vector.load %arg2[%c0_58, %c1_59, %c0_60, %c0_61] : memref<4x9x9x128xbf16, #tpu.memory_space<vmem>>, vector<1x8x8x128xbf16>
      %53 = vector.shape_cast %52 : vector<1x8x8x128xbf16> to vector<8x8x128xbf16>
      %54 = vector.shape_cast %53 : vector<8x8x128xbf16> to vector<64x128xbf16>
      %c0_62 = arith.constant 0 : index
      %c768 = arith.constant 768 : index
      %55 = vector.load %arg11[%c0_62, %c768] : memref<64x1152xbf16, #tpu.memory_space<vmem>>, vector<64x128xbf16>
      tpu.vector_store %arg11[%c0_62, %c768], %54 {strides = array<i32>} : memref<64x1152xbf16, #tpu.memory_space<vmem>>, vector<64x128xbf16>,
      %c1_63 = arith.constant 1 : index
      %c1_64 = arith.constant 1 : index
      %c0_65 = arith.constant 0 : index
      %c0_66 = arith.constant 0 : index
      %56 = vector.load %arg2[%c1_63, %c1_64, %c0_65, %c0_66] : memref<4x9x9x128xbf16, #tpu.memory_space<vmem>>, vector<1x8x8x128xbf16>
      %57 = vector.shape_cast %56 : vector<1x8x8x128xbf16> to vector<8x8x128xbf16>
      %58 = vector.shape_cast %57 : vector<8x8x128xbf16> to vector<64x128xbf16>
      %c0_67 = arith.constant 0 : index
      %c896 = arith.constant 896 : index
      %59 = vector.load %arg11[%c0_67, %c896] : memref<64x1152xbf16, #tpu.memory_space<vmem>>, vector<64x128xbf16>
      tpu.vector_store %arg11[%c0_67, %c896], %58 {strides = array<i32>} : memref<64x1152xbf16, #tpu.memory_space<vmem>>, vector<64x128xbf16>,
      %c0_68 = arith.constant 0 : index
      %c1_69 = arith.constant 1 : index
      %c1_70 = arith.constant 1 : index
      %c0_71 = arith.constant 0 : index
      %60 = vector.load %arg2[%c0_68, %c1_69, %c1_70, %c0_71] : memref<4x9x9x128xbf16, #tpu.memory_space<vmem>>, vector<1x8x8x128xbf16>
      %61 = vector.shape_cast %60 : vector<1x8x8x128xbf16> to vector<8x8x128xbf16>
      %62 = vector.shape_cast %61 : vector<8x8x128xbf16> to vector<64x128xbf16>
      %c0_72 = arith.constant 0 : index
      %c1024 = arith.constant 1024 : index
      %63 = vector.load %arg11[%c0_72, %c1024] : memref<64x1152xbf16, #tpu.memory_space<vmem>>, vector<64x128xbf16>
      tpu.vector_store %arg11[%c0_72, %c1024], %62 {strides = array<i32>} : memref<64x1152xbf16, #tpu.memory_space<vmem>>, vector<64x128xbf16>,
      %c0_73 = arith.constant 0 : index
      %c0_74 = arith.constant 0 : index
      %64 = vector.load %arg11[%c0_73, %c0_74] : memref<64x1152xbf16, #tpu.memory_space<vmem>>, vector<64x1152xbf16>
      %c0_75 = arith.constant 0 : index
      %c0_76 = arith.constant 0 : index
      %65 = vector.load %arg3[%c0_75, %c0_76] : memref<1152x128xbf16, #tpu.memory_space<vmem>>, vector<1152x128xbf16>
      %cst_77 = arith.constant dense<0.000000e+00> : vector<64x128xf32>
      %66 = tpu.matmul %64, %65, %cst_77 {dimension_numbers = #tpu.dot_dimension_numbers<[1], [0], [0], [1], [0, 0, 1, 1], [], []>} : vector<64x1152xbf16>, vector<1152x128xbf16>, vector<64x128xf32> -> vector<64x128xf32>
      %c0_78 = arith.constant 0 : index
      %c0_79 = arith.constant 0 : index
      %67 = vector.load %arg4[%c0_78, %c0_79] : memref<1x128xf32, #tpu.memory_space<vmem>>, vector<1x128xf32>
      %68 = vector.broadcast %67 : vector<1x128xf32> to vector<64x128xf32>
      %69 = arith.addf %66, %68 : vector<64x128xf32>
      %cst_80 = arith.constant 0.000000e+00 : f32
      %70 = vector.broadcast %cst_80 : f32 to vector<64x128xf32>
      %71 = arith.maximumf %69, %70 : vector<64x128xf32>
      %72 = arith.truncf %71 : vector<64x128xf32> to vector<64x128xbf16>
      %73 = vector.shape_cast %72 : vector<64x128xbf16> to vector<8x8x128xbf16>
      %c1_81 = arith.constant 1 : index
      %c1_82 = arith.constant 1 : index
      %c0_83 = arith.constant 0 : index
      %74 = vector.load %arg10[%c1_81, %c1_82, %c0_83] : memref<10x10x128xbf16, #tpu.memory_space<vmem>>, vector<8x8x128xbf16>
      tpu.vector_store %arg10[%c1_81, %c1_82, %c0_83], %73 {strides = array<i32>} : memref<10x10x128xbf16, #tpu.memory_space<vmem>>, vector<8x8x128xbf16>,
      %c0_84 = arith.constant 0 : index
      %c0_85 = arith.constant 0 : index
      %c0_86 = arith.constant 0 : index
      %75 = vector.load %arg10[%c0_84, %c0_85, %c0_86] : memref<10x10x128xbf16, #tpu.memory_space<vmem>>, vector<8x8x128xbf16>
      %76 = vector.shape_cast %75 : vector<8x8x128xbf16> to vector<64x128xbf16>
      %c0_87 = arith.constant 0 : index
      %c0_88 = arith.constant 0 : index
      %77 = vector.load %arg12[%c0_87, %c0_88] : memref<64x1152xbf16, #tpu.memory_space<vmem>>, vector<64x128xbf16>
      tpu.vector_store %arg12[%c0_87, %c0_88], %76 {strides = array<i32>} : memref<64x1152xbf16, #tpu.memory_space<vmem>>, vector<64x128xbf16>,
      %c0_89 = arith.constant 0 : index
      %c1_90 = arith.constant 1 : index
      %c0_91 = arith.constant 0 : index
      %78 = vector.load %arg10[%c0_89, %c1_90, %c0_91] : memref<10x10x128xbf16, #tpu.memory_space<vmem>>, vector<8x8x128xbf16>
      %79 = vector.shape_cast %78 : vector<8x8x128xbf16> to vector<64x128xbf16>
      %c0_92 = arith.constant 0 : index
      %c128_93 = arith.constant 128 : index
      %80 = vector.load %arg12[%c0_92, %c128_93] : memref<64x1152xbf16, #tpu.memory_space<vmem>>, vector<64x128xbf16>
      tpu.vector_store %arg12[%c0_92, %c128_93], %79 {strides = array<i32>} : memref<64x1152xbf16, #tpu.memory_space<vmem>>, vector<64x128xbf16>,
      %c0_94 = arith.constant 0 : index
      %c2_95 = arith.constant 2 : index
      %c0_96 = arith.constant 0 : index
      %81 = vector.load %arg10[%c0_94, %c2_95, %c0_96] : memref<10x10x128xbf16, #tpu.memory_space<vmem>>, vector<8x8x128xbf16>
      %82 = vector.shape_cast %81 : vector<8x8x128xbf16> to vector<64x128xbf16>
      %c0_97 = arith.constant 0 : index
      %c256_98 = arith.constant 256 : index
      %83 = vector.load %arg12[%c0_97, %c256_98] : memref<64x1152xbf16, #tpu.memory_space<vmem>>, vector<64x128xbf16>
      tpu.vector_store %arg12[%c0_97, %c256_98], %82 {strides = array<i32>} : memref<64x1152xbf16, #tpu.memory_space<vmem>>, vector<64x128xbf16>,
      %c1_99 = arith.constant 1 : index
      %c0_100 = arith.constant 0 : index
      %c0_101 = arith.constant 0 : index
      %84 = vector.load %arg10[%c1_99, %c0_100, %c0_101] : memref<10x10x128xbf16, #tpu.memory_space<vmem>>, vector<8x8x128xbf16>
      %85 = vector.shape_cast %84 : vector<8x8x128xbf16> to vector<64x128xbf16>
      %c0_102 = arith.constant 0 : index
      %c384_103 = arith.constant 384 : index
      %86 = vector.load %arg12[%c0_102, %c384_103] : memref<64x1152xbf16, #tpu.memory_space<vmem>>, vector<64x128xbf16>
      tpu.vector_store %arg12[%c0_102, %c384_103], %85 {strides = array<i32>} : memref<64x1152xbf16, #tpu.memory_space<vmem>>, vector<64x128xbf16>,
      %c1_104 = arith.constant 1 : index
      %c1_105 = arith.constant 1 : index
      %c0_106 = arith.constant 0 : index
      %87 = vector.load %arg10[%c1_104, %c1_105, %c0_106] : memref<10x10x128xbf16, #tpu.memory_space<vmem>>, vector<8x8x128xbf16>
      %88 = vector.shape_cast %87 : vector<8x8x128xbf16> to vector<64x128xbf16>
      %c0_107 = arith.constant 0 : index
      %c512_108 = arith.constant 512 : index
      %89 = vector.load %arg12[%c0_107, %c512_108] : memref<64x1152xbf16, #tpu.memory_space<vmem>>, vector<64x128xbf16>
      tpu.vector_store %arg12[%c0_107, %c512_108], %88 {strides = array<i32>} : memref<64x1152xbf16, #tpu.memory_space<vmem>>, vector<64x128xbf16>,
      %c1_109 = arith.constant 1 : index
      %c2_110 = arith.constant 2 : index
      %c0_111 = arith.constant 0 : index
      %90 = vector.load %arg10[%c1_109, %c2_110, %c0_111] : memref<10x10x128xbf16, #tpu.memory_space<vmem>>, vector<8x8x128xbf16>
      %91 = vector.shape_cast %90 : vector<8x8x128xbf16> to vector<64x128xbf16>
      %c0_112 = arith.constant 0 : index
      %c640_113 = arith.constant 640 : index
      %92 = vector.load %arg12[%c0_112, %c640_113] : memref<64x1152xbf16, #tpu.memory_space<vmem>>, vector<64x128xbf16>
      tpu.vector_store %arg12[%c0_112, %c640_113], %91 {strides = array<i32>} : memref<64x1152xbf16, #tpu.memory_space<vmem>>, vector<64x128xbf16>,
      %c2_114 = arith.constant 2 : index
      %c0_115 = arith.constant 0 : index
      %c0_116 = arith.constant 0 : index
      %93 = vector.load %arg10[%c2_114, %c0_115, %c0_116] : memref<10x10x128xbf16, #tpu.memory_space<vmem>>, vector<8x8x128xbf16>
      %94 = vector.shape_cast %93 : vector<8x8x128xbf16> to vector<64x128xbf16>
      %c0_117 = arith.constant 0 : index
      %c768_118 = arith.constant 768 : index
      %95 = vector.load %arg12[%c0_117, %c768_118] : memref<64x1152xbf16, #tpu.memory_space<vmem>>, vector<64x128xbf16>
      tpu.vector_store %arg12[%c0_117, %c768_118], %94 {strides = array<i32>} : memref<64x1152xbf16, #tpu.memory_space<vmem>>, vector<64x128xbf16>,
      %c2_119 = arith.constant 2 : index
      %c1_120 = arith.constant 1 : index
      %c0_121 = arith.constant 0 : index
      %96 = vector.load %arg10[%c2_119, %c1_120, %c0_121] : memref<10x10x128xbf16, #tpu.memory_space<vmem>>, vector<8x8x128xbf16>
      %97 = vector.shape_cast %96 : vector<8x8x128xbf16> to vector<64x128xbf16>
      %c0_122 = arith.constant 0 : index
      %c896_123 = arith.constant 896 : index
      %98 = vector.load %arg12[%c0_122, %c896_123] : memref<64x1152xbf16, #tpu.memory_space<vmem>>, vector<64x128xbf16>
      tpu.vector_store %arg12[%c0_122, %c896_123], %97 {strides = array<i32>} : memref<64x1152xbf16, #tpu.memory_space<vmem>>, vector<64x128xbf16>,
      %c2_124 = arith.constant 2 : index
      %c2_125 = arith.constant 2 : index
      %c0_126 = arith.constant 0 : index
      %99 = vector.load %arg10[%c2_124, %c2_125, %c0_126] : memref<10x10x128xbf16, #tpu.memory_space<vmem>>, vector<8x8x128xbf16>
      %100 = vector.shape_cast %99 : vector<8x8x128xbf16> to vector<64x128xbf16>
      %c0_127 = arith.constant 0 : index
      %c1024_128 = arith.constant 1024 : index
      %101 = vector.load %arg12[%c0_127, %c1024_128] : memref<64x1152xbf16, #tpu.memory_space<vmem>>, vector<64x128xbf16>
      tpu.vector_store %arg12[%c0_127, %c1024_128], %100 {strides = array<i32>} : memref<64x1152xbf16, #tpu.memory_space<vmem>>, vector<64x128xbf16>,
    } else {
    }
    %c0 = arith.constant 0 : index
    %c0_1 = arith.constant 0 : index
    %3 = vector.load %arg12[%c0, %c0_1] : memref<64x1152xbf16, #tpu.memory_space<vmem>>, vector<64x1152xbf16>
    %c0_2 = arith.constant 0 : index
    %c0_3 = arith.constant 0 : index
    %4 = vector.load %arg5[%c0_2, %c0_3] : memref<1152x128xbf16, #tpu.memory_space<vmem>>, vector<1152x128xbf16>
    %cst = arith.constant dense<0.000000e+00> : vector<64x128xf32>
    %5 = tpu.matmul %3, %4, %cst {dimension_numbers = #tpu.dot_dimension_numbers<[1], [0], [0], [1], [0, 0, 1, 1], [], []>} : vector<64x1152xbf16>, vector<1152x128xbf16>, vector<64x128xf32> -> vector<64x128xf32>
    %c0_4 = arith.constant 0 : index
    %c0_5 = arith.constant 0 : index
    %6 = vector.load %arg6[%c0_4, %c0_5] : memref<1x128xf32, #tpu.memory_space<vmem>>, vector<1x128xf32>
    %7 = vector.broadcast %6 : vector<1x128xf32> to vector<64x128xf32>
    %8 = arith.addf %5, %7 : vector<64x128xf32>
    %c0_6 = arith.constant 0 : index
    %c512 = arith.constant 512 : index
    %9 = vector.load %arg11[%c0_6, %c512] : memref<64x1152xbf16, #tpu.memory_space<vmem>>, vector<64x128xbf16>
    %c0_7 = arith.constant 0 : index
    %c0_8 = arith.constant 0 : index
    %10 = vector.load %arg7[%c0_7, %c0_8] : memref<128x128xbf16, #tpu.memory_space<vmem>>, vector<128x128xbf16>
    %cst_9 = arith.constant dense<0.000000e+00> : vector<64x128xf32>
    %11 = tpu.matmul %9, %10, %cst_9 {dimension_numbers = #tpu.dot_dimension_numbers<[1], [0], [0], [1], [0, 0, 1, 1], [], []>} : vector<64x128xbf16>, vector<128x128xbf16>, vector<64x128xf32> -> vector<64x128xf32>
    %c0_10 = arith.constant 0 : index
    %c0_11 = arith.constant 0 : index
    %12 = vector.load %arg8[%c0_10, %c0_11] : memref<1x128xf32, #tpu.memory_space<vmem>>, vector<1x128xf32>
    %13 = vector.broadcast %12 : vector<1x128xf32> to vector<64x128xf32>
    %14 = arith.addf %11, %13 : vector<64x128xf32>
    %15 = arith.addf %8, %14 : vector<64x128xf32>
    %cst_12 = arith.constant 0.000000e+00 : f32
    %16 = vector.broadcast %cst_12 : f32 to vector<64x128xf32>
    %17 = arith.maximumf %15, %16 : vector<64x128xf32>
    %18 = arith.truncf %17 : vector<64x128xf32> to vector<64x128xbf16>
    %c0_13 = arith.constant 0 : index
    %c0_14 = arith.constant 0 : index
    %c0_15 = arith.constant 0 : index
    %19 = vector.load %arg9[%c0_13, %c0_14, %c0_15] : memref<1x64x128xbf16, #tpu.memory_space<vmem>>, vector<1x64x128xbf16>
    %20 = vector.shape_cast %19 : vector<1x64x128xbf16> to vector<64x128xbf16>
    %21 = vector.shape_cast %18 : vector<64x128xbf16> to vector<1x64x128xbf16>
    tpu.vector_store %arg9[%c0_13, %c0_14, %c0_15], %21 {strides = array<i32>} : memref<1x64x128xbf16, #tpu.memory_space<vmem>>, vector<1x64x128xbf16>,
    return
  }
  func.func @transform_0(%arg0: i32, %arg1: i32) -> (i32, i32, i32, i32) {
    %c0_i32 = arith.constant 0 : i32
    %c0_i32_0 = arith.constant 0 : i32
    %c0_i32_1 = arith.constant 0 : i32
    %c0_i32_2 = arith.constant 0 : i32
    return %arg0, %c0_i32, %c0_i32_0, %c0_i32_1 : i32, i32, i32, i32
  }
  func.func @transform_1(%arg0: i32, %arg1: i32) -> (i32, i32) {
    %c0_i32 = arith.constant 0 : i32
    %c0_i32_0 = arith.constant 0 : i32
    %c0_i32_1 = arith.constant 0 : i32
    return %c0_i32, %c0_i32_0 : i32, i32
  }
  func.func @transform_2(%arg0: i32, %arg1: i32) -> (i32, i32) {
    %c0_i32 = arith.constant 0 : i32
    %c0_i32_0 = arith.constant 0 : i32
    %c0_i32_1 = arith.constant 0 : i32
    return %c0_i32, %c0_i32_0 : i32, i32
  }
  func.func @transform_3(%arg0: i32, %arg1: i32) -> (i32, i32) {
    %c0_i32 = arith.constant 0 : i32
    %c0_i32_0 = arith.constant 0 : i32
    return %c0_i32, %arg1 : i32, i32
  }
  func.func @transform_4(%arg0: i32, %arg1: i32) -> (i32, i32) {
    %c0_i32 = arith.constant 0 : i32
    %c0_i32_0 = arith.constant 0 : i32
    return %c0_i32, %arg1 : i32, i32
  }
  func.func @transform_5(%arg0: i32, %arg1: i32) -> (i32, i32) {
    %c0_i32 = arith.constant 0 : i32
    %c0_i32_0 = arith.constant 0 : i32
    return %c0_i32, %arg1 : i32, i32
  }
  func.func @transform_6(%arg0: i32, %arg1: i32) -> (i32, i32) {
    %c0_i32 = arith.constant 0 : i32
    %c0_i32_0 = arith.constant 0 : i32
    return %c0_i32, %arg1 : i32, i32
  }
  func.func @transform_7(%arg0: i32, %arg1: i32) -> (i32, i32, i32) {
    %c0_i32 = arith.constant 0 : i32
    %c0_i32_0 = arith.constant 0 : i32
    return %arg0, %c0_i32, %arg1 : i32, i32, i32
  }
}

module attributes {stable_mosaic.version = 11 : i64} {
  func.func @_residual_block_kernel(%arg0: i32, %arg1: i32, %arg2: memref<4x9x9x128xbf16, #tpu.memory_space<vmem>>, %arg3: memref<1152x128xbf16, #tpu.memory_space<vmem>>, %arg4: memref<1x128xf32, #tpu.memory_space<vmem>>, %arg5: memref<1152x128xbf16, #tpu.memory_space<vmem>>, %arg6: memref<1x128xf32, #tpu.memory_space<vmem>>, %arg7: memref<128x128xbf16, #tpu.memory_space<vmem>>, %arg8: memref<1x128xf32, #tpu.memory_space<vmem>>, %arg9: memref<1x64x128xbf16, #tpu.memory_space<vmem>>, %arg10: memref<10x10x128xbf16, #tpu.memory_space<vmem>>, %arg11: memref<64x1152xbf16, #tpu.memory_space<vmem>>, %arg12: memref<64x1152xbf16, #tpu.memory_space<vmem>>) attributes {dimension_semantics = [#tpu.dimension_semantics<parallel>, #tpu.dimension_semantics<arbitrary>], iteration_bounds = array<i64: 2, 1>, scalar_prefetch = 0 : i64, scratch_operands = 3 : i64, tpu.core_type = #tpu.core_type<tc>, window_params = [{transform_indices = @transform_0, window_bounds = array<i64: 4, 9, 9, 128>}, {pipeline_mode = #tpu.pipeline_mode<synchronous>, transform_indices = @transform_1, window_bounds = array<i64: 1152, 128>}, {pipeline_mode = #tpu.pipeline_mode<synchronous>, transform_indices = @transform_2, window_bounds = array<i64: 1, 128>}, {transform_indices = @transform_3, window_bounds = array<i64: 1152, 128>}, {transform_indices = @transform_4, window_bounds = array<i64: 1, 128>}, {transform_indices = @transform_5, window_bounds = array<i64: 128, 128>}, {transform_indices = @transform_6, window_bounds = array<i64: 1, 128>}, {transform_indices = @transform_7, window_bounds = array<i64: 1, 64, 128>}]} {
    %c0_i32 = arith.constant 0 : i32
    %0 = arith.cmpi eq, %arg1, %c0_i32 : i32
    %1 = arith.extui %0 : i1 to i32
    %c0_i32_0 = arith.constant 0 : i32
    %2 = arith.cmpi ne, %1, %c0_i32_0 : i32
    scf.if %2 {
      %cst_16 = arith.constant 0.000000e+00 : bf16
      %22 = vector.broadcast %cst_16 : bf16 to vector<1x10x128xbf16>
      %cst_17 = arith.constant 0.000000e+00 : bf16
      %23 = vector.broadcast %cst_17 : bf16 to vector<10x1x128xbf16>
      %c0_18 = arith.constant 0 : index
      %c0_19 = arith.constant 0 : index
      %c0_20 = arith.constant 0 : index
      %24 = vector.load %arg10[%c0_18, %c0_19, %c0_20] : memref<10x10x128xbf16, #tpu.memory_space<vmem>>, vector<1x10x128xbf16>
      tpu.vector_store %arg10[%c0_18, %c0_19, %c0_20], %22 {strides = array<i32>} : memref<10x10x128xbf16, #tpu.memory_space<vmem>>, vector<1x10x128xbf16>,
      %c9 = arith.constant 9 : index
      %c0_21 = arith.constant 0 : index
      %c0_22 = arith.constant 0 : index
      %25 = vector.load %arg10[%c9, %c0_21, %c0_22] : memref<10x10x128xbf16, #tpu.memory_space<vmem>>, vector<1x10x128xbf16>
      tpu.vector_store %arg10[%c9, %c0_21, %c0_22], %22 {strides = array<i32>} : memref<10x10x128xbf16, #tpu.memory_space<vmem>>, vector<1x10x128xbf16>,
      %c0_23 = arith.constant 0 : index
      %c0_24 = arith.constant 0 : index
      %c0_25 = arith.constant 0 : index
      %26 = vector.load %arg10[%c0_23, %c0_24, %c0_25] : memref<10x10x128xbf16, #tpu.memory_space<vmem>>, vector<10x1x128xbf16>
      tpu.vector_store %arg10[%c0_23, %c0_24, %c0_25], %23 {strides = array<i32>} : memref<10x10x128xbf16, #tpu.memory_space<vmem>>, vector<10x1x128xbf16>,
      %c0_26 = arith.constant 0 : index
      %c9_27 = arith.constant 9 : index
      %c0_28 = arith.constant 0 : index
      %27 = vector.load %arg10[%c0_26, %c9_27, %c0_28] : memref<10x10x128xbf16, #tpu.memory_space<vmem>>, vector<10x1x128xbf16>
      tpu.vector_store %arg10[%c0_26, %c9_27, %c0_28], %23 {strides = array<i32>} : memref<10x10x128xbf16, #tpu.memory_space<vmem>>, vector<10x1x128xbf16>,
      %c0_29 = arith.constant 0 : index
      %c0_30 = arith.constant 0 : index
      %c0_31 = arith.constant 0 : index
      %c0_32 = arith.constant 0 : index
      %28 = vector.load %arg2[%c0_29, %c0_30, %c0_31, %c0_32] : memref<4x9x9x128xbf16, #tpu.memory_space<vmem>>, vector<1x8x8x128xbf16>
      %29 = vector.shape_cast %28 : vector<1x8x8x128xbf16> to vector<8x8x128xbf16>
      %30 = vector.shape_cast %29 : vector<8x8x128xbf16> to vector<64x128xbf16>
      %c0_33 = arith.constant 0 : index
      %c0_34 = arith.constant 0 : index
      %31 = vector.load %arg11[%c0_33, %c0_34] : memref<64x1152xbf16, #tpu.memory_space<vmem>>, vector<64x128xbf16>
      tpu.vector_store %arg11[%c0_33, %c0_34], %30 {strides = array<i32>} : memref<64x1152xbf16, #tpu.memory_space<vmem>>, vector<64x128xbf16>,
      %c1 = arith.constant 1 : index
      %c0_35 = arith.constant 0 : index
      %c0_36 = arith.constant 0 : index
      %c0_37 = arith.constant 0 : index
      %32 = vector.load %arg2[%c1, %c0_35, %c0_36, %c0_37] : memref<4x9x9x128xbf16, #tpu.memory_space<vmem>>, vector<1x8x8x128xbf16>
      %33 = vector.shape_cast %32 : vector<1x8x8x128xbf16> to vector<8x8x128xbf16>
      %34 = vector.shape_cast %33 : vector<8x8x128xbf16> to vector<64x128xbf16>
      %c0_38 = arith.constant 0 : index
      %c128 = arith.constant 128 : index
      %35 = vector.load %arg11[%c0_38, %c128] : memref<64x1152xbf16, #tpu.memory_space<vmem>>, vector<64x128xbf16>
      tpu.vector_store %arg11[%c0_38, %c128], %34 {strides = array<i32>} : memref<64x1152xbf16, #tpu.memory_space<vmem>>, vector<64x128xbf16>,
      %c0_39 = arith.constant 0 : index
      %c0_40 = arith.constant 0 : index
      %c1_41 = arith.constant 1 : index
      %c0_42 = arith.constant 0 : index
      %36 = vector.load %arg2[%c0_39, %c0_40, %c1_41, %c0_42] : memref<4x9x9x128xbf16, #tpu.memory_space<vmem>>, vector<1x8x8x128xbf16>
      %37 = vector.shape_cast %36 : vector<1x8x8x128xbf16> to vector<8x8x128xbf16>
      %38 = vector.shape_cast %37 : vector<8x8x128xbf16> to vector<64x128xbf16>
      %c0_43 = arith.constant 0 : index
      %c256 = arith.constant 256 : index
      %39 = vector.load %arg11[%c0_43, %c256] : memref<64x1152xbf16, #tpu.memory_space<vmem>>, vector<64x128xbf16>
      tpu.vector_store %arg11[%c0_43, %c256], %38 {strides = array<i32>} : memref<64x1152xbf16, #tpu.memory_space<vmem>>, vector<64x128xbf16>,
      %c2 = arith.constant 2 : index
      %c0_44 = arith.constant 0 : index
      %c0_45 = arith.constant 0 : index
      %c0_46 = arith.constant 0 : index
      %40 = vector.load %arg2[%c2, %c0_44, %c0_45, %c0_46] : memref<4x9x9x128xbf16, #tpu.memory_space<vmem>>, vector<1x8x8x128xbf16>
      %41 = vector.shape_cast %40 : vector<1x8x8x128xbf16> to vector<8x8x128xbf16>
      %42 = vector.shape_cast %41 : vector<8x8x128xbf16> to vector<64x128xbf16>
      %c0_47 = arith.constant 0 : index
      %c384 = arith.constant 384 : index
      %43 = vector.load %arg11[%c0_47, %c384] : memref<64x1152xbf16, #tpu.memory_space<vmem>>, vector<64x128xbf16>
      tpu.vector_store %arg11[%c0_47, %c384], %42 {strides = array<i32>} : memref<64x1152xbf16, #tpu.memory_space<vmem>>, vector<64x128xbf16>,
      %c3 = arith.constant 3 : index
      %c0_48 = arith.constant 0 : index
      %c0_49 = arith.constant 0 : index
      %c0_50 = arith.constant 0 : index
      %44 = vector.load %arg2[%c3, %c0_48, %c0_49, %c0_50] : memref<4x9x9x128xbf16, #tpu.memory_space<vmem>>, vector<1x8x8x128xbf16>
      %45 = vector.shape_cast %44 : vector<1x8x8x128xbf16> to vector<8x8x128xbf16>
      %46 = vector.shape_cast %45 : vector<8x8x128xbf16> to vector<64x128xbf16>
      %c0_51 = arith.constant 0 : index
      %c512_52 = arith.constant 512 : index
      %47 = vector.load %arg11[%c0_51, %c512_52] : memref<64x1152xbf16, #tpu.memory_space<vmem>>, vector<64x128xbf16>
      tpu.vector_store %arg11[%c0_51, %c512_52], %46 {strides = array<i32>} : memref<64x1152xbf16, #tpu.memory_space<vmem>>, vector<64x128xbf16>,
      %c2_53 = arith.constant 2 : index
      %c0_54 = arith.constant 0 : index
      %c1_55 = arith.constant 1 : index
      %c0_56 = arith.constant 0 : index
      %48 = vector.load %arg2[%c2_53, %c0_54, %c1_55, %c0_56] : memref<4x9x9x128xbf16, #tpu.memory_space<vmem>>, vector<1x8x8x128xbf16>
      %49 = vector.shape_cast %48 : vector<1x8x8x128xbf16> to vector<8x8x128xbf16>
      %50 = vector.shape_cast %49 : vector<8x8x128xbf16> to vector<64x128xbf16>
      %c0_57 = arith.constant 0 : index
      %c640 = arith.constant 640 : index
      %51 = vector.load %arg11[%c0_57, %c640] : memref<64x1152xbf16, #tpu.memory_space<vmem>>, vector<64x128xbf16>
      tpu.vector_store %arg11[%c0_57, %c640], %50 {strides = array<i32>} : memref<64x1152xbf16, #tpu.memory_space<vmem>>, vector<64x128xbf16>,
      %c0_58 = arith.constant 0 : index
      %c1_59 = arith.constant 1 : index
      %c0_60 = arith.constant 0 : index
      %c0_61 = arith.constant 0 : index
      %52 = vector.load %arg2[%c0_58, %c1_59, %c0_60, %c0_61] : memref<4x9x9x128xbf16, #tpu.memory_space<vmem>>, vector<1x8x8x128xbf16>
      %53 = vector.shape_cast %52 : vector<1x8x8x128xbf16> to vector<8x8x128xbf16>
      %54 = vector.shape_cast %53 : vector<8x8x128xbf16> to vector<64x128xbf16>
      %c0_62 = arith.constant 0 : index
      %c768 = arith.constant 768 : index
      %55 = vector.load %arg11[%c0_62, %c768] : memref<64x1152xbf16, #tpu.memory_space<vmem>>, vector<64x128xbf16>
      tpu.vector_store %arg11[%c0_62, %c768], %54 {strides = array<i32>} : memref<64x1152xbf16, #tpu.memory_space<vmem>>, vector<64x128xbf16>,
      %c1_63 = arith.constant 1 : index
      %c1_64 = arith.constant 1 : index
      %c0_65 = arith.constant 0 : index
      %c0_66 = arith.constant 0 : index
      %56 = vector.load %arg2[%c1_63, %c1_64, %c0_65, %c0_66] : memref<4x9x9x128xbf16, #tpu.memory_space<vmem>>, vector<1x8x8x128xbf16>
      %57 = vector.shape_cast %56 : vector<1x8x8x128xbf16> to vector<8x8x128xbf16>
      %58 = vector.shape_cast %57 : vector<8x8x128xbf16> to vector<64x128xbf16>
      %c0_67 = arith.constant 0 : index
      %c896 = arith.constant 896 : index
      %59 = vector.load %arg11[%c0_67, %c896] : memref<64x1152xbf16, #tpu.memory_space<vmem>>, vector<64x128xbf16>
      tpu.vector_store %arg11[%c0_67, %c896], %58 {strides = array<i32>} : memref<64x1152xbf16, #tpu.memory_space<vmem>>, vector<64x128xbf16>,
      %c0_68 = arith.constant 0 : index
      %c1_69 = arith.constant 1 : index
      %c1_70 = arith.constant 1 : index
      %c0_71 = arith.constant 0 : index
      %60 = vector.load %arg2[%c0_68, %c1_69, %c1_70, %c0_71] : memref<4x9x9x128xbf16, #tpu.memory_space<vmem>>, vector<1x8x8x128xbf16>
      %61 = vector.shape_cast %60 : vector<1x8x8x128xbf16> to vector<8x8x128xbf16>
      %62 = vector.shape_cast %61 : vector<8x8x128xbf16> to vector<64x128xbf16>
      %c0_72 = arith.constant 0 : index
      %c1024 = arith.constant 1024 : index
      %63 = vector.load %arg11[%c0_72, %c1024] : memref<64x1152xbf16, #tpu.memory_space<vmem>>, vector<64x128xbf16>
      tpu.vector_store %arg11[%c0_72, %c1024], %62 {strides = array<i32>} : memref<64x1152xbf16, #tpu.memory_space<vmem>>, vector<64x128xbf16>,
      %c0_73 = arith.constant 0 : index
      %c0_74 = arith.constant 0 : index
      %64 = vector.load %arg11[%c0_73, %c0_74] : memref<64x1152xbf16, #tpu.memory_space<vmem>>, vector<64x1152xbf16>
      %c0_75 = arith.constant 0 : index
      %c0_76 = arith.constant 0 : index
      %65 = vector.load %arg3[%c0_75, %c0_76] : memref<1152x128xbf16, #tpu.memory_space<vmem>>, vector<1152x128xbf16>
      %cst_77 = arith.constant dense<0.000000e+00> : vector<64x128xf32>
      %66 = tpu.matmul %64, %65, %cst_77 {dimension_numbers = #tpu.dot_dimension_numbers<[1], [0], [0], [1], [0, 0, 1, 1], [], []>} : vector<64x1152xbf16>, vector<1152x128xbf16>, vector<64x128xf32> -> vector<64x128xf32>
      %c0_78 = arith.constant 0 : index
      %c0_79 = arith.constant 0 : index
      %67 = vector.load %arg4[%c0_78, %c0_79] : memref<1x128xf32, #tpu.memory_space<vmem>>, vector<1x128xf32>
      %68 = vector.broadcast %67 : vector<1x128xf32> to vector<64x128xf32>
      %69 = arith.addf %66, %68 : vector<64x128xf32>
      %cst_80 = arith.constant 0.000000e+00 : f32
      %70 = vector.broadcast %cst_80 : f32 to vector<64x128xf32>
      %71 = arith.maximumf %69, %70 : vector<64x128xf32>
      %72 = arith.truncf %71 : vector<64x128xf32> to vector<64x128xbf16>
      %73 = vector.shape_cast %72 : vector<64x128xbf16> to vector<8x8x128xbf16>
      %c1_81 = arith.constant 1 : index
      %c1_82 = arith.constant 1 : index
      %c0_83 = arith.constant 0 : index
      %74 = vector.load %arg10[%c1_81, %c1_82, %c0_83] : memref<10x10x128xbf16, #tpu.memory_space<vmem>>, vector<8x8x128xbf16>
      tpu.vector_store %arg10[%c1_81, %c1_82, %c0_83], %73 {strides = array<i32>} : memref<10x10x128xbf16, #tpu.memory_space<vmem>>, vector<8x8x128xbf16>,
      %c0_84 = arith.constant 0 : index
      %c0_85 = arith.constant 0 : index
      %c0_86 = arith.constant 0 : index
      %75 = vector.load %arg10[%c0_84, %c0_85, %c0_86] : memref<10x10x128xbf16, #tpu.memory_space<vmem>>, vector<8x8x128xbf16>
      %76 = vector.shape_cast %75 : vector<8x8x128xbf16> to vector<64x128xbf16>
      %c0_87 = arith.constant 0 : index
      %c0_88 = arith.constant 0 : index
      %77 = vector.load %arg12[%c0_87, %c0_88] : memref<64x1152xbf16, #tpu.memory_space<vmem>>, vector<64x128xbf16>
      tpu.vector_store %arg12[%c0_87, %c0_88], %76 {strides = array<i32>} : memref<64x1152xbf16, #tpu.memory_space<vmem>>, vector<64x128xbf16>,
      %c0_89 = arith.constant 0 : index
      %c1_90 = arith.constant 1 : index
      %c0_91 = arith.constant 0 : index
      %78 = vector.load %arg10[%c0_89, %c1_90, %c0_91] : memref<10x10x128xbf16, #tpu.memory_space<vmem>>, vector<8x8x128xbf16>
      %79 = vector.shape_cast %78 : vector<8x8x128xbf16> to vector<64x128xbf16>
      %c0_92 = arith.constant 0 : index
      %c128_93 = arith.constant 128 : index
      %80 = vector.load %arg12[%c0_92, %c128_93] : memref<64x1152xbf16, #tpu.memory_space<vmem>>, vector<64x128xbf16>
      tpu.vector_store %arg12[%c0_92, %c128_93], %79 {strides = array<i32>} : memref<64x1152xbf16, #tpu.memory_space<vmem>>, vector<64x128xbf16>,
      %c0_94 = arith.constant 0 : index
      %c2_95 = arith.constant 2 : index
      %c0_96 = arith.constant 0 : index
      %81 = vector.load %arg10[%c0_94, %c2_95, %c0_96] : memref<10x10x128xbf16, #tpu.memory_space<vmem>>, vector<8x8x128xbf16>
      %82 = vector.shape_cast %81 : vector<8x8x128xbf16> to vector<64x128xbf16>
      %c0_97 = arith.constant 0 : index
      %c256_98 = arith.constant 256 : index
      %83 = vector.load %arg12[%c0_97, %c256_98] : memref<64x1152xbf16, #tpu.memory_space<vmem>>, vector<64x128xbf16>
      tpu.vector_store %arg12[%c0_97, %c256_98], %82 {strides = array<i32>} : memref<64x1152xbf16, #tpu.memory_space<vmem>>, vector<64x128xbf16>,
      %c1_99 = arith.constant 1 : index
      %c0_100 = arith.constant 0 : index
      %c0_101 = arith.constant 0 : index
      %84 = vector.load %arg10[%c1_99, %c0_100, %c0_101] : memref<10x10x128xbf16, #tpu.memory_space<vmem>>, vector<8x8x128xbf16>
      %85 = vector.shape_cast %84 : vector<8x8x128xbf16> to vector<64x128xbf16>
      %c0_102 = arith.constant 0 : index
      %c384_103 = arith.constant 384 : index
      %86 = vector.load %arg12[%c0_102, %c384_103] : memref<64x1152xbf16, #tpu.memory_space<vmem>>, vector<64x128xbf16>
      tpu.vector_store %arg12[%c0_102, %c384_103], %85 {strides = array<i32>} : memref<64x1152xbf16, #tpu.memory_space<vmem>>, vector<64x128xbf16>,
      %c1_104 = arith.constant 1 : index
      %c1_105 = arith.constant 1 : index
      %c0_106 = arith.constant 0 : index
      %87 = vector.load %arg10[%c1_104, %c1_105, %c0_106] : memref<10x10x128xbf16, #tpu.memory_space<vmem>>, vector<8x8x128xbf16>
      %88 = vector.shape_cast %87 : vector<8x8x128xbf16> to vector<64x128xbf16>
      %c0_107 = arith.constant 0 : index
      %c512_108 = arith.constant 512 : index
      %89 = vector.load %arg12[%c0_107, %c512_108] : memref<64x1152xbf16, #tpu.memory_space<vmem>>, vector<64x128xbf16>
      tpu.vector_store %arg12[%c0_107, %c512_108], %88 {strides = array<i32>} : memref<64x1152xbf16, #tpu.memory_space<vmem>>, vector<64x128xbf16>,
      %c1_109 = arith.constant 1 : index
      %c2_110 = arith.constant 2 : index
      %c0_111 = arith.constant 0 : index
      %90 = vector.load %arg10[%c1_109, %c2_110, %c0_111] : memref<10x10x128xbf16, #tpu.memory_space<vmem>>, vector<8x8x128xbf16>
      %91 = vector.shape_cast %90 : vector<8x8x128xbf16> to vector<64x128xbf16>
      %c0_112 = arith.constant 0 : index
      %c640_113 = arith.constant 640 : index
      %92 = vector.load %arg12[%c0_112, %c640_113] : memref<64x1152xbf16, #tpu.memory_space<vmem>>, vector<64x128xbf16>
      tpu.vector_store %arg12[%c0_112, %c640_113], %91 {strides = array<i32>} : memref<64x1152xbf16, #tpu.memory_space<vmem>>, vector<64x128xbf16>,
      %c2_114 = arith.constant 2 : index
      %c0_115 = arith.constant 0 : index
      %c0_116 = arith.constant 0 : index
      %93 = vector.load %arg10[%c2_114, %c0_115, %c0_116] : memref<10x10x128xbf16, #tpu.memory_space<vmem>>, vector<8x8x128xbf16>
      %94 = vector.shape_cast %93 : vector<8x8x128xbf16> to vector<64x128xbf16>
      %c0_117 = arith.constant 0 : index
      %c768_118 = arith.constant 768 : index
      %95 = vector.load %arg12[%c0_117, %c768_118] : memref<64x1152xbf16, #tpu.memory_space<vmem>>, vector<64x128xbf16>
      tpu.vector_store %arg12[%c0_117, %c768_118], %94 {strides = array<i32>} : memref<64x1152xbf16, #tpu.memory_space<vmem>>, vector<64x128xbf16>,
      %c2_119 = arith.constant 2 : index
      %c1_120 = arith.constant 1 : index
      %c0_121 = arith.constant 0 : index
      %96 = vector.load %arg10[%c2_119, %c1_120, %c0_121] : memref<10x10x128xbf16, #tpu.memory_space<vmem>>, vector<8x8x128xbf16>
      %97 = vector.shape_cast %96 : vector<8x8x128xbf16> to vector<64x128xbf16>
      %c0_122 = arith.constant 0 : index
      %c896_123 = arith.constant 896 : index
      %98 = vector.load %arg12[%c0_122, %c896_123] : memref<64x1152xbf16, #tpu.memory_space<vmem>>, vector<64x128xbf16>
      tpu.vector_store %arg12[%c0_122, %c896_123], %97 {strides = array<i32>} : memref<64x1152xbf16, #tpu.memory_space<vmem>>, vector<64x128xbf16>,
      %c2_124 = arith.constant 2 : index
      %c2_125 = arith.constant 2 : index
      %c0_126 = arith.constant 0 : index
      %99 = vector.load %arg10[%c2_124, %c2_125, %c0_126] : memref<10x10x128xbf16, #tpu.memory_space<vmem>>, vector<8x8x128xbf16>
      %100 = vector.shape_cast %99 : vector<8x8x128xbf16> to vector<64x128xbf16>
      %c0_127 = arith.constant 0 : index
      %c1024_128 = arith.constant 1024 : index
      %101 = vector.load %arg12[%c0_127, %c1024_128] : memref<64x1152xbf16, #tpu.memory_space<vmem>>, vector<64x128xbf16>
      tpu.vector_store %arg12[%c0_127, %c1024_128], %100 {strides = array<i32>} : memref<64x1152xbf16, #tpu.memory_space<vmem>>, vector<64x128xbf16>,
    } else {
    }
    %c0 = arith.constant 0 : index
    %c0_1 = arith.constant 0 : index
    %3 = vector.load %arg12[%c0, %c0_1] : memref<64x1152xbf16, #tpu.memory_space<vmem>>, vector<64x1152xbf16>
    %c0_2 = arith.constant 0 : index
    %c0_3 = arith.constant 0 : index
    %4 = vector.load %arg5[%c0_2, %c0_3] : memref<1152x128xbf16, #tpu.memory_space<vmem>>, vector<1152x128xbf16>
    %cst = arith.constant dense<0.000000e+00> : vector<64x128xf32>
    %5 = tpu.matmul %3, %4, %cst {dimension_numbers = #tpu.dot_dimension_numbers<[1], [0], [0], [1], [0, 0, 1, 1], [], []>} : vector<64x1152xbf16>, vector<1152x128xbf16>, vector<64x128xf32> -> vector<64x128xf32>
    %c0_4 = arith.constant 0 : index
    %c0_5 = arith.constant 0 : index
    %6 = vector.load %arg6[%c0_4, %c0_5] : memref<1x128xf32, #tpu.memory_space<vmem>>, vector<1x128xf32>
    %7 = vector.broadcast %6 : vector<1x128xf32> to vector<64x128xf32>
    %8 = arith.addf %5, %7 : vector<64x128xf32>
    %c0_6 = arith.constant 0 : index
    %c512 = arith.constant 512 : index
    %9 = vector.load %arg11[%c0_6, %c512] : memref<64x1152xbf16, #tpu.memory_space<vmem>>, vector<64x128xbf16>
    %c0_7 = arith.constant 0 : index
    %c0_8 = arith.constant 0 : index
    %10 = vector.load %arg7[%c0_7, %c0_8] : memref<128x128xbf16, #tpu.memory_space<vmem>>, vector<128x128xbf16>
    %cst_9 = arith.constant dense<0.000000e+00> : vector<64x128xf32>
    %11 = tpu.matmul %9, %10, %cst_9 {dimension_numbers = #tpu.dot_dimension_numbers<[1], [0], [0], [1], [0, 0, 1, 1], [], []>} : vector<64x128xbf16>, vector<128x128xbf16>, vector<64x128xf32> -> vector<64x128xf32>
    %c0_10 = arith.constant 0 : index
    %c0_11 = arith.constant 0 : index
    %12 = vector.load %arg8[%c0_10, %c0_11] : memref<1x128xf32, #tpu.memory_space<vmem>>, vector<1x128xf32>
    %13 = vector.broadcast %12 : vector<1x128xf32> to vector<64x128xf32>
    %14 = arith.addf %11, %13 : vector<64x128xf32>
    %15 = arith.addf %8, %14 : vector<64x128xf32>
    %cst_12 = arith.constant 0.000000e+00 : f32
    %16 = vector.broadcast %cst_12 : f32 to vector<64x128xf32>
    %17 = arith.maximumf %15, %16 : vector<64x128xf32>
    %18 = arith.truncf %17 : vector<64x128xf32> to vector<64x128xbf16>
    %c0_13 = arith.constant 0 : index
    %c0_14 = arith.constant 0 : index
    %c0_15 = arith.constant 0 : index
    %19 = vector.load %arg9[%c0_13, %c0_14, %c0_15] : memref<1x64x128xbf16, #tpu.memory_space<vmem>>, vector<1x64x128xbf16>
    %20 = vector.shape_cast %19 : vector<1x64x128xbf16> to vector<64x128xbf16>
    %21 = vector.shape_cast %18 : vector<64x128xbf16> to vector<1x64x128xbf16>
    tpu.vector_store %arg9[%c0_13, %c0_14, %c0_15], %21 {strides = array<i32>} : memref<1x64x128xbf16, #tpu.memory_space<vmem>>, vector<1x64x128xbf16>,
    return
  }
  func.func @transform_0(%arg0: i32, %arg1: i32) -> (i32, i32, i32, i32) {
    %c0_i32 = arith.constant 0 : i32
    %c0_i32_0 = arith.constant 0 : i32
    %c0_i32_1 = arith.constant 0 : i32
    %c0_i32_2 = arith.constant 0 : i32
    return %arg0, %c0_i32, %c0_i32_0, %c0_i32_1 : i32, i32, i32, i32
  }
  func.func @transform_1(%arg0: i32, %arg1: i32) -> (i32, i32) {
    %c0_i32 = arith.constant 0 : i32
    %c0_i32_0 = arith.constant 0 : i32
    %c0_i32_1 = arith.constant 0 : i32
    return %c0_i32, %c0_i32_0 : i32, i32
  }
  func.func @transform_2(%arg0: i32, %arg1: i32) -> (i32, i32) {
    %c0_i32 = arith.constant 0 : i32
    %c0_i32_0 = arith.constant 0 : i32
    %c0_i32_1 = arith.constant 0 : i32
    return %c0_i32, %c0_i32_0 : i32, i32
  }
  func.func @transform_3(%arg0: i32, %arg1: i32) -> (i32, i32) {
    %c0_i32 = arith.constant 0 : i32
    %c0_i32_0 = arith.constant 0 : i32
    return %c0_i32, %arg1 : i32, i32
  }
  func.func @transform_4(%arg0: i32, %arg1: i32) -> (i32, i32) {
    %c0_i32 = arith.constant 0 : i32
    %c0_i32_0 = arith.constant 0 : i32
    return %c0_i32, %arg1 : i32, i32
  }
  func.func @transform_5(%arg0: i32, %arg1: i32) -> (i32, i32) {
    %c0_i32 = arith.constant 0 : i32
    %c0_i32_0 = arith.constant 0 : i32
    return %c0_i32, %arg1 : i32, i32
  }
  func.func @transform_6(%arg0: i32, %arg1: i32) -> (i32, i32) {
    %c0_i32 = arith.constant 0 : i32
    %c0_i32_0 = arith.constant 0 : i32
    return %c0_i32, %arg1 : i32, i32
  }
  func.func @transform_7(%arg0: i32, %arg1: i32) -> (i32, i32, i32) {
    %c0_i32 = arith.constant 0 : i32
    %c0_i32_0 = arith.constant 0 : i32
    return %arg0, %c0_i32, %arg1 : i32, i32, i32
  }
}

</mosaic_0001>

<bundles_post_ra>
// kernel: tpu_custom_call.1
= control target key start
LH: loop header
LB: loop body
LE: loop exit
PB: predicated region body
PF: predicated region fallthrough
CT: control target
= control target key end

     0   :  { %12 = vsyncpa [#allocation6], 0  ;;  %s6770_s0 = inlined_call_operand.vmem [shape: bf16[8,9,9,128], index: 0, kind: input, shape index: {}]   ;;  %s6771_s1 = inlined_call_operand.vmem [shape: bf16[1152,128], index: 1, kind: input, shape index: {}]   ;;  %s6772_s2 = inlined_call_operand.vmem [shape: f32[1,128], index: 2, kind: input, shape index: {}]   ;;  %s6773_s3 = inlined_call_operand.hbm [shape: bf16[1152,128], index: 3, kind: input, shape index: {}]   ;;  %s6774_s4 = inlined_call_operand.vmem [shape: f32[1,128], index: 4, kind: input, shape index: {}]   ;;  %s6775_s5 = inlined_call_operand.vmem [shape: bf16[128,128], index: 5, kind: input, shape index: {}]   ;;  %s6776_s6 = inlined_call_operand.vmem [shape: f32[1,128], index: 6, kind: input, shape index: {}]   ;;  %s6777_s7 = inlined_call_operand.hbm [shape: bf16[2,64,128], index: 7, kind: output, shape index: {}]  }
   0x1   :  { %13 = vsyncpa [#allocation7], 0 }
   0x2   :  { %15 = vsyncpa [#allocation7 + $0x1], 0  ;;  %s5817_s24 = smov 0   ;;  %s5819_s25 = smov 0  }
   0x3   :  { %s5821_s26 = smov 0   ;;  %s5823_s27 = smov 0  }
   0x4   :  { %s5825_s28 = smov 0   ;;  %s5827_s29 = smov 0  }
   0x5 LB: > { %s4280_s30 = sadd.s32 4294967295, %s5769_s29   ;;  %s4281_s8 = sadd.s32 4294967294, %s5769_s29   ;;  %s5769_s29 = sphi %s5827_s29, %s21_s29   ;;  %s5765_s28 = sphi %s5825_s28, %s6794_s28   ;;  %s5761_s27 = sphi %s5823_s27, %s6793_s27   ;;  %s5757_s26 = sphi %s5821_s26, %s6792_s26   ;;  %s5753_s25 = sphi %s5819_s25, %s6791_s25   ;;  %s5749_s24 = sphi %s5817_s24, %s6790_s24  }
   0x6   : > { %s33_s9 = sadd.s32 1, %s5765_s28  ;;  %s214_s10 = sadd.s32 1, %s5757_s26 }
   0x7   : > { %p35_p0 = scmp.ge.s32.totalorder %s33_s9, 2  ;;  %p224_p1 = scmp.ne.s32.totalorder %s5757_s26, %s5753_s25 }
   0x8   : > { %p225_p2 = scmp.eq.s32.totalorder %s4280_s30, 1  ;;  %p230_p3 = scmp.ne.s32.totalorder %s5753_s25, %s5749_s24 }
   0x9   : > { %s6796_s9 = smov (%p35_p0, %s33_s9), 0  ;;  %p231_p5 = scmp.eq.s32.totalorder %s4281_s8, 1 }
   0xa   : > { %p5857_p4 = por %p225_p2, %p224_p1  ;;  %s209_s12 = ssub.s32 %s5765_s28, %s6796_s9 }
   0xb   : > { %p4282_p6 = scmp.ge.s32.totalorder %s5769_s29, 1  ;;  %p212_p7 = scmp.eq.s32.totalorder %s209_s12, 0 }
   0xc   : > { %p5864_p8 = por %p231_p5, %p230_p3  ;;  %p238_p9 = scmp.lt.s32.totalorder %s5769_s29, 3 }
   0xd   : > { %s5870_s14 = scalar_select %p212_p7, %s5757_s26, %s214_s10  }
   0xe   : > { %p239_p10 = pnand %p4282_p6, %p238_p9  ;;  %p5597_p11 = scmp.eq.s32.totalorder %s4280_s30, 0 }
   0xf   : > { %s257_s17 = sshll.u32 %s6773_s3, 4  ;;  %s5771_s18 = smov [#allocation5]   ;;  %s258_s17 = int_to_ptr.hbm [resolvable:$true] %s257_s17 }
  0x10   : > { %p5589_p12 = pneg %p239_p10  ;;  %s259_s19 = sshll.u32 %s5771_s18, 4  ;;  %s260_s19 = int_to_ptr.vmem [resolvable:$true] %s259_s19 }
  0x11   : > { %s5772_s20 = smov 64   ;;  %s5773_s21 = smov 4  }
  0x12   : > { %p5590_p13 = pnand %p5597_p11, %p5589_p12  ;;  %304 = sbr.rel (%p239_p10) target bundleno = 655 (0x28f), region = 48 }
  0x14   : > { %5592 = dma.hbm_to_vmem [thread:$0]  (!%p5590_p13), %s258_s17, 9216, %s260_s19, [#allocation6], %s5772_s20, %s5772_s20, %s5773_s21  }
  0x17   : > { %5740 = dma.done.wait (%p5597_p11), [#allocation6], 9216  }
  0x18   : > { %5742 = vsyncadd (%p5597_p11), [#allocation6], 4294958080  ;;  %s4291_s22 = sshll.u32 %s5761_s27, 2  ;;  %v5349_v0 = vld [vmem:[%s6771_s1 + $0x38] sm:$0xff]  ;;  %v5348_v3 = vld [vmem:[%s6771_s1 + $0x30] sm:$0xff]  ;;  %vm375_vm3 = vcmask 1040384  }
  0x19   : > { %p349_p0 = scmp.lt.s32.totalorder %s4291_s22, 7  ;;  %v5357_v1 = vld [vmem:[%s6771_s1 + $0x78] sm:$0xff]  ;;  %1780 = vmatpush.bf16.msra.mxu0 %v5349_v0  ;;  %5558 = vmatpush.bf16.msra.mxu3 %v5349_v0  ;;  %v5356_v4 = vld [vmem:[%s6771_s1 + $0x70] sm:$0xff]  ;;  %v5347_v6 = vld [vmem:[%s6771_s1 + $0x28] sm:$0xff]  ;;  %vm489_vm0 = vsmask.f32 3328 }
  0x1a   : > { %v5365_v2 = vld [vmem:[%s6771_s1 + $0xb8] sm:$0xff]  ;;  %1809 = vmatpush.bf16.msra.mxu1 %v5357_v1  ;;  %v5364_v5 = vld [vmem:[%s6771_s1 + $0xb0] sm:$0xff]  ;;  %v5355_v7 = vld [vmem:[%s6771_s1 + $0x68] sm:$0xff]  ;;  %vm490_vm1 = vsmask.f32 7440  ;;  %vm2380_vm8 = vcmask 1042432  }
  0x1b   : > { %s6798_s22 = smov (!%p349_p0, %s4291_s22), 7  ;;  %1838 = vmatpush.bf16.msra.mxu2 %v5365_v2  ;;  %v5363_v8 = vld [vmem:[%s6771_s1 + $0xa8] sm:$0xff]  ;;  %v5346_v9 = vld [vmem:[%s6771_s1 + $0x20] sm:$0xff]  ;;  %v5345_v28 = vld [vmem:[%s6771_s1 + $0x18] sm:$0xff]  ;;  %vm376_vm4 = vsmask.f32 256 }
  0x1c   : > { %s5582_s23 = smul.u32 72, %s6798_s22  ;;  %v5354_v13 = vld [vmem:[%s6771_s1 + $0x60] sm:$0xff]  ;;  %v5353_v31 = vld [vmem:[%s6771_s1 + $0x58] sm:$0xff]  ;;  %vm5938_vm2 = vmor %vm489_vm0, %vm490_vm1  ;;  %vm408_vm6 = vsmask.f32 7938  ;;  %vm2381_vm9 = vcmask 1046532  }
  0x1d   : > { %1781 = vmatpush.bf16.msra.mxu0 %v5348_v3  ;;  %5559 = vmatpush.bf16.msra.mxu3 %v5348_v3  ;;  %v5362_v14 = vld [vmem:[%s6771_s1 + $0xa0] sm:$0xff]  ;;  %v5361_v32 = vld [vmem:[%s6771_s1 + $0x98] sm:$0xff]  ;;  %v5344_v40 = vld [vmem:[%s6771_s1 + $0x10] sm:$0xff]  ;;  %vm2138_vm11 = vcmask 1043456   ;;  %s345_s21 = sand.u32 1, %s5753_s25   ;;  %s5534_s8 = sshll.u32 %s5761_s27, 5 }
  0x1e   : > { %1810 = vmatpush.bf16.msra.mxu1 %v5356_v4  ;;  %s5906_s22 = scalar_lea.vmem %s6770_s0, %s5582_s23  ;;  %v5352_v43 = vld [vmem:[%s6771_s1 + $0x50] sm:$0xff]  ;;  %v5343_v46 = vld [vmem:[%s6771_s1 + $0x8] sm:$0xff]  ;;  %v5342_v58 = vld [vmem:[%s6771_s1] sm:$0xff]  ;;  %s4290_s23 = sshll.u32 %s345_s21, 5 }
  0x1f   : > { %1839 = vmatpush.bf16.msra.mxu2 %v5364_v5  ;;  %v440_v10 = vld [vmem:[%s5906_s22] sm:$0xf]  ;;  %v441_v11 = vld [vmem:[%s5906_s22 + $0x8] sm:$0xf]  ;;  %v4294_v17 = vld [vmem:[%s5906_s22 + $0x50] sm:$0xf]  ;;  %s4151_s12 = scalar_lea.hbm %s6777_s7, %s5534_s8 }
  0x20   : > { %v444_v12 = vld [vmem:[%s5906_s22 + $0x20] sm:$0xf]  ;;  %448 = vst [vmem:[#allocation3] sm:$0xf] %v440_v10  ;;  %v445_v15 = vld [vmem:[%s5906_s22 + $0x28] sm:$0xf]  ;;  %vm6317_vm5 = vmand %vm375_vm3, %vm376_vm4 }
  0x21   : > { %v4293_v16 = vld [vmem:[%s5906_s22 + $0x48] sm:$0xf]  ;;  %1782 = vmatpush.bf16.msra.mxu0 %v5347_v6  ;;  %5560 = vmatpush.bf16.msra.mxu3 %v5347_v6  ;;  %449 = vst [vmem:[#allocation3 + $0x24] sm:$0xf] %v441_v11  ;;  %v473_v18 = vld [vmem:[%s5906_s22] sm:$0xf]  ;;  %vm6324_vm7 = vmand %vm375_vm3, %vm408_vm6 }
  0x22   : > { %1811 = vmatpush.bf16.msra.mxu1 %v5355_v7  ;;  %452 = vst [vmem:[#allocation3 + $0x90] sm:$0xf] %v444_v12  ;;  %v474_v19 = vld [vmem:[%s5906_s22 + $0x4] sm:$0x1]  ;;  %v475_v20 = vld [vmem:[%s5906_s22 + $0x8] sm:$0xf]  ;;  %vm6379_vm10 = vmor %vm2380_vm8, %vm2381_vm9 }
  0x23   : > { %1840 = vmatpush.bf16.msra.mxu2 %v5363_v8  ;;  %453 = vst [vmem:[#allocation3 + $0xb4] sm:$0xf] %v445_v15  ;;  %v476_v21 = vld [vmem:[%s5906_s22 + $0xc] sm:$0x1]  ;;  %v493_v22 = vshrl.u32 %v473_v18, 16  ;;  %v496_v23 = vshll.u32 %v473_v18, 16  ;;  %vm6414_vm12 = vmand %vm2138_vm11, %vm408_vm6 }
  0x24   : > { %465 = vst [vmem:[#allocation3 + $0x4] sm:$0xf] %v4293_v16  ;;  %v502_v24 = vshll.u32 %v474_v19, 16  ;;  %v507_v25 = vshrl.u32 %v475_v20, 16  ;;  %v510_v26 = vshll.u32 %v475_v20, 16  ;;  %v516_v27 = vshll.u32 %v476_v21, 16 }
  0x25   : > { %1783 = vmatpush.bf16.msra.mxu0 %v5346_v9  ;;  %5561 = vmatpush.bf16.msra.mxu3 %v5346_v9  ;;  %466 = vst [vmem:[#allocation3 + $0x28] sm:$0xf] %v4294_v17  ;;  %v495_v29 = vrot.slane %v493_v22, 4  ;;  %v498_v30 = vrot.slane %v496_v23, 5  ;;  %v442_v42 = vld [vmem:[%s5906_s22 + $0x10] sm:$0xf] }
  0x26   : > { %1812 = vmatpush.bf16.msra.mxu1 %v5354_v13  ;;  %v509_v33 = vrot.slane %v507_v25, 4  ;;  %v512_v34 = vrot.slane %v510_v26, 5  ;;  %v504_v36 = vrot.slane %v502_v24, 5  ;;  %v518_v39 = vrot.slane %v516_v27, 5  ;;  %v5360_v44 = vld [vmem:[%s6771_s1 + $0x90] sm:$0xff]  ;;  %v5351_v49 = vld [vmem:[%s6771_s1 + $0x48] sm:$0xff] }
  0x27   : > { %1841 = vmatpush.bf16.msra.mxu2 %v5362_v14  ;;  %v499_v35 = vor.u32 %v498_v30, %v495_v29  ;;  %v443_v48 = vld [vmem:[%s5906_s22 + $0x18] sm:$0xf]  ;;  %450 = vst [vmem:[#allocation3 + $0x48] sm:$0xf] %v442_v42  ;;  %v5359_v50 = vld [vmem:[%s6771_s1 + $0x88] sm:$0xff]  ;;  %v5350_v1 = vld [vmem:[%s6771_s1 + $0x40] sm:$0xff] }
  0x28   : > { %v513_v38 = vor.u32 %v512_v34, %v509_v33  ;;  %v446_v52 = vld [vmem:[%s5906_s22 + $0x30] sm:$0xf]  ;;  %v447_v53 = vld [vmem:[%s5906_s22 + $0x38] sm:$0xf]  ;;  %v4296_v55 = vld [vmem:[%s5906_s22 + $0x60] sm:$0xf] }
  0x29   : > { %1784 = vmatpush.bf16.msra.mxu0 %v5345_v28  ;;  %5562 = vmatpush.bf16.msra.mxu3 %v5345_v28  ;;  %v500_v41 = vrot.slane %v499_v35, 4  ;;  %v4295_v54 = vld [vmem:[%s5906_s22 + $0x58] sm:$0xf]  ;;  %451 = vst [vmem:[#allocation3 + $0x6c] sm:$0xf] %v443_v48  ;;  %v5358_v2 = vld [vmem:[%s6771_s1 + $0x80] sm:$0xff] }
  0x2a   : > { %1813 = vmatpush.bf16.msra.mxu1 %v5353_v31  ;;  %v514_v45 = vrot.slane %v513_v38, 4  ;;  %v477_v56 = vld [vmem:[%s5906_s22 + $0x10] sm:$0xf]  ;;  %v478_v57 = vld [vmem:[%s5906_s22 + $0x14] sm:$0x1]  ;;  %v5373_v14 = vld [vmem:[%s6771_s1 + $0xf8] sm:$0xff] }
  0x2b   : > { %1842 = vmatpush.bf16.msra.mxu2 %v5361_v32  ;;  %v505_v47 = vsel %vm5938_vm2, %v500_v41, %v504_v36  ;;  %v4367_v59 = vld [vmem:[#allocation3] sm:$0xf]  ;;  %v5310_v60 = vld [vmem:[#allocation3 + $0x20] sm:$0xf0]  ;;  %v4439_v61 = vld [vmem:[#allocation3 + $0x90] sm:$0xf] }
  0x2c   : > { %v519_v51 = vsel %vm5938_vm2, %v514_v45, %v518_v39  ;;  %612 = vst [vmem:[#allocation3 + $0x8] sm:$0xf] %v505_v47  ;;  %v5328_v62 = vld [vmem:[#allocation3 + $0xb0] sm:$0xf0]  ;;  %v479_v63 = vld [vmem:[%s5906_s22 + $0x18] sm:$0xf]  ;;  %v4368_v18 = vor.u32 %v5310_v60, %v4367_v59 }
  0x2d   : > { %1785 = vmatpush.bf16.msra.mxu0 %v5344_v40  ;;  %5563 = vmatpush.bf16.msra.mxu3 %v5344_v40  ;;  %613 = vst [vmem:[#allocation3 + $0x2c] sm:$0xf] %v519_v51  ;;  %v480_v0 = vld [vmem:[%s5906_s22 + $0x1c] sm:$0x1]  ;;  %v521_v3 = vshrl.u32 %v477_v56, 16  ;;  %v524_v4 = vshll.u32 %v477_v56, 16  ;;  %v4440_v19 = vor.u32 %v5328_v62, %v4439_v61 }
  0x2e   : > { %1814 = vmatpush.bf16.msra.mxu1 %v5352_v43  ;;  %454 = vst [vmem:[#allocation3 + $0xd8] sm:$0xf] %v446_v52  ;;  %v530_v5 = vshll.u32 %v478_v57, 16  ;;  %v535_v6 = vshrl.u32 %v479_v63, 16  ;;  %v5306_v7 = vld [vmem:[#allocation3 + $0x4] sm:$0xf] }
  0x2f   : > { %1843 = vmatpush.bf16.msra.mxu2 %v5360_v44  ;;  %455 = vst [vmem:[#allocation3 + $0xfc] sm:$0xf] %v447_v53  ;;  %v538_v8 = vshll.u32 %v479_v63, 16  ;;  %v544_v9 = vshll.u32 %v480_v0, 16  ;;  %v4369_v10 = vld [vmem:[#allocation3 + $0x24] sm:$0xf0] }
  0x30   : > { %467 = vst [vmem:[#allocation3 + $0x4c] sm:$0xf] %v4295_v54  ;;  %v523_v11 = vrot.slane %v521_v3, 4  ;;  %v526_v12 = vrot.slane %v524_v4, 5  ;;  %v5381_v15 = vld [vmem:[%s6771_s1 + $0x138] sm:$0xff]  ;;  %v537_v16 = vrot.slane %v535_v6, 4  ;;  %v4372_v23 = vor.u32 %v5306_v7, %v4369_v10 }
  0x31   : > { %1786 = vmatpush.bf16.msra.mxu0 %v5343_v46  ;;  %5564 = vmatpush.bf16.msra.mxu3 %v5343_v46  ;;  %468 = vst [vmem:[#allocation3 + $0x70] sm:$0xf] %v4296_v55  ;;  %v540_v17 = vrot.slane %v538_v8, 5  ;;  %v532_v22 = vrot.slane %v530_v5, 5  ;;  %v546_v26 = vrot.slane %v544_v9, 5  ;;  %v5397_v28 = vld [vmem:[%s6771_s1 + $0x1b8] sm:$0xff] }
  0x32   : > { %1815 = vmatpush.bf16.msra.mxu1 %v5351_v49  ;;  %v527_v21 = vor.u32 %v526_v12, %v523_v11  ;;  %v4297_v29 = vld [vmem:[%s5906_s22 + $0x68] sm:$0xf]  ;;  %v5372_v30 = vld [vmem:[%s6771_s1 + $0xf0] sm:$0xff]  ;;  %v481_v35 = vld [vmem:[%s5906_s22 + $0x20] sm:$0xf]  ;;  %s6711_s30 = scalar_lea.vmem [#allocation8], %s4290_s23 }
  0x33   : > { %1844 = vmatpush.bf16.msra.mxu2 %v5359_v50  ;;  %v4375_v13 = vld [vmem:[#allocation3 + $0x8] sm:$0xf]  ;;  %v541_v25 = vor.u32 %v540_v17, %v537_v16  ;;  %v5380_v31 = vld [vmem:[%s6771_s1 + $0x130] sm:$0xff]  ;;  %469 = vst [vmem:[#allocation3 + $0x94] sm:$0xf] %v4297_v29  ;;  %v5371_v36 = vld [vmem:[%s6771_s1 + $0xe8] sm:$0xff] }
  0x34   : > { %v5311_v20 = vld [vmem:[#allocation3 + $0x28] sm:$0xf0]  ;;  %v528_v27 = vrot.slane %v527_v21, 4  ;;  %v4298_v34 = vld [vmem:[%s5906_s22 + $0x70] sm:$0xf]  ;;  %v5379_v38 = vld [vmem:[%s6771_s1 + $0x128] sm:$0xff] }
  0x35   : > { %1787 = vmatpush.bf16.msra.mxu0 %v5342_v58  ;;  %5565 = vmatpush.bf16.msra.mxu3 %v5342_v58  ;;  %v4376_v24 = vor.u32 %v5311_v20, %v4375_v13  ;;  %v542_v32 = vrot.slane %v541_v25, 4  ;;  %v482_v40 = vld [vmem:[%s5906_s22 + $0x24] sm:$0x1]  ;;  %v483_v41 = vld [vmem:[%s5906_s22 + $0x28] sm:$0xf]  ;;  %v549_v43 = vshrl.u32 %v481_v35, 16 }
  0x36   : > { %1816 = vmatpush.bf16.msra.mxu1 %v5350_v1  ;;  %v533_v33 = vsel %vm5938_vm2, %v528_v27, %v532_v22  ;;  %v484_v42 = vld [vmem:[%s5906_s22 + $0x2c] sm:$0x1]  ;;  %470 = vst [vmem:[#allocation3 + $0xb8] sm:$0xf] %v4298_v34  ;;  %v552_v44 = vshll.u32 %v481_v35, 16  ;;  %v558_v45 = vshll.u32 %v482_v40, 16 }
  0x37   : > { %1845 = vmatpush.bf16.msra.mxu2 %v5358_v2  ;;  %v547_v39 = vsel %vm5938_vm2, %v542_v32, %v546_v26  ;;  %614 = vst [vmem:[#allocation3 + $0x50] sm:$0xf] %v533_v33  ;;  %v563_v46 = vshrl.u32 %v483_v41, 16  ;;  %v566_v47 = vshll.u32 %v483_v41, 16  ;;  %v572_v48 = vshll.u32 %v484_v42, 16  ;;  %v5370_v54 = vld [vmem:[%s6771_s1 + $0xe0] sm:$0xff] }
  0x38   : > { %1788 = vmatmul.bf16.vlgmr.msra.gmra.mxu0 %v4368_v18  ;;  %1798 = vmatmul.bf16.vlgmr.msra.gmra.mxu3 %v4440_v19  ;;  %615 = vst [vmem:[#allocation3 + $0x74] sm:$0xf] %v547_v39  ;;  %v4301_v49 = vld [vmem:[%s5906_s22 + $0x90] sm:$0xf]  ;;  %v4302_v50 = vld [vmem:[%s5906_s22 + $0x98] sm:$0xf] }
  0x39   : > { %1867 = vmatpush.bf16.msrb.mxu3 %v5373_v14  ;;  %1896 = vmatpush.bf16.msrb.mxu0 %v5381_v15  ;;  %v551_v51 = vrot.slane %v549_v43, 4  ;;  %v554_v52 = vrot.slane %v552_v44, 5  ;;  %v565_v53 = vrot.slane %v563_v46, 4  ;;  %629 = vst [vmem:[#allocation3 + $0xc] sm:$0xf] %v4301_v49  ;;  %v568_v55 = vrot.slane %v566_v47, 5 }
  0x3a   : > { %1817 = vmatmul.bf16.vlgmr.msra.gmra.mxu1 %v4372_v23  ;;  %1846 = vmatmul.bf16.vlgmr.msra.gmra.mxu2 %v4376_v24  ;;  %630 = vst [vmem:[#allocation3 + $0x30] sm:$0xf] %v4302_v50  ;;  %v4309_v56 = vld [vmem:[%s5906_s22 + $0xd8] sm:$0xf]  ;;  %v5378_v57 = vld [vmem:[%s6771_s1 + $0x120] sm:$0xff]  ;;  %v560_v62 = vrot.slane %v558_v45, 5 }
  0x3b   : > { %1954 = vmatpush.bf16.msrb.mxu2 %v5397_v28  ;;  %v4403_v58 = vld [vmem:[#allocation3 + $0x48] sm:$0xf]  ;;  %v5319_v59 = vld [vmem:[#allocation3 + $0x68] sm:$0xf0]  ;;  %v4475_v60 = vld [vmem:[#allocation3 + $0xd8] sm:$0xf]  ;;  %v555_v61 = vor.u32 %v554_v52, %v551_v51  ;;  %v569_v1 = vor.u32 %v568_v55, %v565_v53 }
  0x3c   : > { %v4310_v63 = vld [vmem:[%s5906_s22 + $0xe0] sm:$0xf]  ;;  %646 = vst [vmem:[#allocation3 + $0x10] sm:$0xf] %v4309_v56  ;;  %v5337_v0 = vld [vmem:[#allocation3 + $0xf8] sm:$0xf0]  ;;  %v4404_v15 = vor.u32 %v5319_v59, %v4403_v58 }
  0x3d   : > { %1868 = vmatpush.bf16.msrb.mxu3 %v5372_v30  ;;  %1897 = vmatpush.bf16.msrb.mxu0 %v5380_v31  ;;  %v574_v2 = vrot.slane %v572_v48, 5  ;;  %647 = vst [vmem:[#allocation3 + $0x34] sm:$0xf] %v4310_v63  ;;  %v5389_v3 = vld [vmem:[%s6771_s1 + $0x178] sm:$0xff]  ;;  %v4405_v5 = vld [vmem:[#allocation3 + $0x6c] sm:$0xf0]  ;;  %v4476_v16 = vor.u32 %v5337_v0, %v4475_v60 }
  0x3e   : > { %v5315_v4 = vld [vmem:[#allocation3 + $0x4c] sm:$0xf]  ;;  %v556_v6 = vrot.slane %v555_v61, 4  ;;  %v5396_v7 = vld [vmem:[%s6771_s1 + $0x1b0] sm:$0xff]  ;;  %v4411_v8 = vld [vmem:[#allocation3 + $0x50] sm:$0xf]  ;;  %1925 = vmatpush.bf16.msrb.mxu1 %v5389_v3 }
  0x3f   : > { %v5320_v9 = vld [vmem:[#allocation3 + $0x70] sm:$0xf0]  ;;  %v570_v10 = vrot.slane %v569_v1, 4  ;;  %v5388_v11 = vld [vmem:[%s6771_s1 + $0x170] sm:$0xff]  ;;  %v5369_v12 = vld [vmem:[%s6771_s1 + $0xd8] sm:$0xff]  ;;  %1955 = vmatpush.bf16.msrb.mxu2 %v5396_v7  ;;  %v4408_v18 = vor.u32 %v5315_v4, %v4405_v5  ;;  %s4152_s15 = sshll.u32 %s6711_s30, 4  ;;  %s4153_s15 = int_to_ptr.vmem [resolvable:$true] %s4152_s15 }
  0x40   : > { %v5377_v13 = vld [vmem:[%s6771_s1 + $0x118] sm:$0xff]  ;;  %v561_v14 = vsel %vm5938_vm2, %v556_v6, %v560_v62  ;;  %v4412_v19 = vor.u32 %v5320_v9, %v4411_v8  ;;  %v5387_v21 = vld [vmem:[%s6771_s1 + $0x168] sm:$0xff]  ;;  %v4300_v23 = vld [vmem:[%s5906_s22 + $0x80] sm:$0xf]  ;;  %s4154_s27 = sshll.u32 %s4151_s12, 4  ;;  %s4139_s16 = scalar_lea.sflag [#allocation7], %s345_s21  ;;  %s4155_s27 = int_to_ptr.hbm [resolvable:$true] %s4154_s27 }
  0x41   : > { %1869 = vmatpush.bf16.msrb.mxu3 %v5371_v36  ;;  %1898 = vmatpush.bf16.msrb.mxu0 %v5379_v38  ;;  %v575_v17 = vsel %vm5938_vm2, %v570_v10, %v574_v2  ;;  %616 = vst [vmem:[#allocation3 + $0x98] sm:$0xf] %v561_v14  ;;  %v4299_v20 = vld [vmem:[%s5906_s22 + $0x78] sm:$0xf]  ;;  %v5395_v22 = vld [vmem:[%s6771_s1 + $0x1a8] sm:$0xff]  ;;  %v5368_v24 = vld [vmem:[%s6771_s1 + $0xd0] sm:$0xff] }
  0x42   : > { %617 = vst [vmem:[#allocation3 + $0xbc] sm:$0xf] %v575_v17  ;;  %1926 = vmatpush.bf16.msrb.mxu1 %v5388_v11  ;;  %v5376_v25 = vld [vmem:[%s6771_s1 + $0x110] sm:$0xff]  ;;  %v5386_v27 = vld [vmem:[%s6771_s1 + $0x160] sm:$0xff]  ;;  %v487_v30 = vld [vmem:[%s5906_s22 + $0x38] sm:$0xf] }
  0x43   : > { %471 = vst [vmem:[#allocation3 + $0xdc] sm:$0xf] %v4299_v20  ;;  %v485_v26 = vld [vmem:[%s5906_s22 + $0x30] sm:$0xf]  ;;  %v5394_v28 = vld [vmem:[%s6771_s1 + $0x1a0] sm:$0xff]  ;;  %v591_v35 = vshrl.u32 %v487_v30, 16  ;;  %1956 = vmatpush.bf16.msrb.mxu2 %v5395_v22 }
  0x44   : > { %472 = vst [vmem:[#allocation3 + $0x100] sm:$0xf] %v4300_v23  ;;  %v486_v29 = vld [vmem:[%s5906_s22 + $0x34] sm:$0x1]  ;;  %v488_v31 = vld [vmem:[%s5906_s22 + $0x3c] sm:$0x1] }
  0x45   : > { %1870 = vmatpush.bf16.msrb.mxu3 %v5370_v54  ;;  %1899 = vmatpush.bf16.msrb.mxu0 %v5378_v57  ;;  %v577_v32 = vshrl.u32 %v485_v26, 16  ;;  %v580_v33 = vshll.u32 %v485_v26, 16  ;;  %v586_v34 = vshll.u32 %v486_v29, 16  ;;  %v4303_v36 = vld [vmem:[%s5906_s22 + $0xa0] sm:$0xf]  ;;  %v594_v38 = vshll.u32 %v487_v30, 16 }
  0x46   : > { %1927 = vmatpush.bf16.msrb.mxu1 %v5387_v21  ;;  %v600_v39 = vshll.u32 %v488_v31, 16  ;;  %v4304_v40 = vld [vmem:[%s5906_s22 + $0xa8] sm:$0xf]  ;;  %631 = vst [vmem:[#allocation3 + $0x54] sm:$0xf] %v4303_v36  ;;  %v593_v45 = vrot.slane %v591_v35, 4 }
  0x47   : > { %v5367_v41 = vld [vmem:[%s6771_s1 + $0xc8] sm:$0xff]  ;;  %v579_v43 = vrot.slane %v577_v32, 4  ;;  %v582_v44 = vrot.slane %v580_v33, 5  ;;  %v596_v46 = vrot.slane %v594_v38, 5  ;;  %632 = vst [vmem:[#allocation3 + $0x78] sm:$0xf] %v4304_v40  ;;  %1957 = vmatpush.bf16.msrb.mxu2 %v5394_v28 }
  0x48   : > { %1793 = vmatmul.bf16.gmra.mxu0 %v4404_v15  ;;  %1803 = vmatmul.bf16.gmra.mxu3 %v4476_v16  ;;  %v5375_v42 = vld [vmem:[%s6771_s1 + $0x108] sm:$0xff]  ;;  %v588_v48 = vrot.slane %v586_v34, 5  ;;  %v4312_v50 = vld [vmem:[%s5906_s22 + $0xf0] sm:$0xf]  ;;  %v5366_v51 = vld [vmem:[%s6771_s1 + $0xc0] sm:$0xff]  ;;  %v602_v54 = vrot.slane %v600_v39, 5 }
  0x49   : > { %1871 = vmatpush.bf16.msrb.mxu3 %v5369_v12  ;;  %1900 = vmatpush.bf16.msrb.mxu0 %v5377_v13  ;;  %v583_v47 = vor.u32 %v582_v44, %v579_v43  ;;  %v4311_v49 = vld [vmem:[%s5906_s22 + $0xe8] sm:$0xf]  ;;  %v5374_v52 = vld [vmem:[%s6771_s1 + $0x100] sm:$0xff]  ;;  %v597_v53 = vor.u32 %v596_v46, %v593_v45  ;;  %v5307_v55 = vld [vmem:[#allocation3 + $0xc] sm:$0xf]  ;;  %s5701_s17 = sshra.s32 %s4155_s27, 4  ;;  %s5702_s17 = int_to_ptr.hbm [resolvable:$true] %s5701_s17 }
  0x4a   : > { %1822 = vmatmul.bf16.gmra.mxu1 %v4408_v18  ;;  %1851 = vmatmul.bf16.gmra.mxu2 %v4412_v19  ;;  %648 = vst [vmem:[#allocation3 + $0x58] sm:$0xf] %v4311_v49  ;;  %v5405_v56 = vld [vmem:[%s6771_s1 + $0x1f8] sm:$0xff]  ;;  %v5324_v60 = vld [vmem:[#allocation3 + $0x94] sm:$0xf]  ;;  %v5384_v7 = vld [vmem:[%s6771_s1 + $0x150] sm:$0xff]  ;;  %p5708_p5 = scmp.lt.s32.totalorder %s5702_s17, %s6777_s7 }
  0x4b   : > { %1928 = vmatpush.bf16.msrb.mxu1 %v5386_v27  ;;  %v584_v57 = vrot.slane %v583_v47, 4  ;;  %649 = vst [vmem:[#allocation3 + $0x7c] sm:$0xf] %v4312_v50  ;;  %v5385_v58 = vld [vmem:[%s6771_s1 + $0x158] sm:$0xff]  ;;  %v4441_v61 = vld [vmem:[#allocation3 + $0xb4] sm:$0xf0] }
  0x4c   : > { %v5393_v59 = vld [vmem:[%s6771_s1 + $0x198] sm:$0xff]  ;;  %v4377_v62 = vld [vmem:[#allocation3 + $0x2c] sm:$0xf0]  ;;  %v598_v1 = vrot.slane %v597_v53, 4  ;;  %v4447_v2 = vld [vmem:[#allocation3 + $0x98] sm:$0xf]  ;;  %v4444_v15 = vor.u32 %v5324_v60, %v4441_v61 }
  0x4d   : > { %1872 = vmatpush.bf16.msrb.mxu3 %v5368_v24  ;;  %1901 = vmatpush.bf16.msrb.mxu0 %v5376_v25  ;;  %v4383_v63 = vld [vmem:[#allocation3 + $0x10] sm:$0xf]  ;;  %v5413_v0 = vld [vmem:[%s6771_s1 + $0x238] sm:$0xff]  ;;  %v5329_v3 = vld [vmem:[#allocation3 + $0xb8] sm:$0xf0]  ;;  %v589_v5 = vsel %vm5938_vm2, %v584_v57, %v588_v48  ;;  %v4380_v11 = vor.u32 %v5307_v55, %v4377_v62  ;;  %s5703_s18 = scalar_lea.hbm %s5702_s17, 32 }
  0x4e   : > { %v5312_v4 = vld [vmem:[#allocation3 + $0x30] sm:$0xf0]  ;;  %v603_v6 = vsel %vm5938_vm2, %v598_v1, %v602_v54  ;;  %618 = vst [vmem:[#allocation3 + $0xe0] sm:$0xf] %v589_v5  ;;  %1958 = vmatpush.bf16.msrb.mxu2 %v5393_v59  ;;  %v5392_v8 = vld [vmem:[%s6771_s1 + $0x190] sm:$0xff]  ;;  %v4448_v16 = vor.u32 %v5329_v3, %v4447_v2  ;;  %v5383_v20 = vld [vmem:[%s6771_s1 + $0x148] sm:$0xff]  ;;  %p5704_p1 = scmp.ne.s32.totalorder %s5702_s17, %s5703_s18 }
  0x4f   : > { %1929 = vmatpush.bf16.msrb.mxu1 %v5385_v58  ;;  %v4305_v9 = vld [vmem:[%s5906_s22 + $0xb0] sm:$0xf]  ;;  %619 = vst [vmem:[#allocation3 + $0x104] sm:$0xf] %v603_v6  ;;  %v4306_v10 = vld [vmem:[%s5906_s22 + $0xb8] sm:$0xf]  ;;  %v4384_v12 = vor.u32 %v5312_v4, %v4383_v63 }
  0x50   : > { %633 = vst [vmem:[#allocation3 + $0x9c] sm:$0xf] %v4305_v9  ;;  %v4313_v13 = vld [vmem:[%s5906_s22 + $0xf8] sm:$0xf]  ;;  %v4314_v14 = vld [vmem:[%s5906_s22 + $0x100] sm:$0xf]  ;;  %p5705_p2 = pnand %p5704_p1, %p5857_p4 }
  0x51   : > { %1873 = vmatpush.bf16.msrb.mxu3 %v5367_v41  ;;  %1902 = vmatpush.bf16.msrb.mxu0 %v5375_v42  ;;  %v5404_v17 = vld [vmem:[%s6771_s1 + $0x1f0] sm:$0xff]  ;;  %634 = vst [vmem:[#allocation3 + $0xc0] sm:$0xf] %v4306_v10  ;;  %v5391_v21 = vld [vmem:[%s6771_s1 + $0x188] sm:$0xff]  ;;  %v4319_v23 = vld [vmem:[%s5906_s22 + $0x98] sm:$0xf] }
  0x52   : > { %v5412_v18 = vld [vmem:[%s6771_s1 + $0x230] sm:$0xff]  ;;  %1959 = vmatpush.bf16.msrb.mxu2 %v5392_v8  ;;  %650 = vst [vmem:[#allocation3 + $0xa0] sm:$0xf] %v4313_v13  ;;  %v4320_v24 = vld [vmem:[%s5906_s22 + $0x9c] sm:$0x1]  ;;  %v685_v28 = vshrl.u32 %v4319_v23, 16  ;;  %p5706_p3 = pneg %p5705_p2 }
  0x53   : > { %v4317_v19 = vld [vmem:[%s5906_s22 + $0x90] sm:$0xf]  ;;  %1930 = vmatpush.bf16.msrb.mxu1 %v5384_v7  ;;  %v4318_v22 = vld [vmem:[%s5906_s22 + $0x94] sm:$0x1]  ;;  %651 = vst [vmem:[#allocation3 + $0xc4] sm:$0xf] %v4314_v14 }
  0x54   : > { %v671_v25 = vshrl.u32 %v4317_v19, 16  ;;  %v674_v26 = vshll.u32 %v4317_v19, 16  ;;  %v680_v27 = vshll.u32 %v4318_v22, 16  ;;  %v4333_v29 = vld [vmem:[%s5906_s22 + $0x8] sm:$0xf]  ;;  %v688_v30 = vshll.u32 %v4319_v23, 16 }
  0x55   : > { %1874 = vmatpush.bf16.msrb.mxu3 %v5366_v51  ;;  %1903 = vmatpush.bf16.msrb.mxu0 %v5374_v52  ;;  %v694_v31 = vshll.u32 %v4320_v24, 16  ;;  %v4334_v32 = vld [vmem:[%s5906_s22 + $0x10] sm:$0xf]  ;;  %v5403_v33 = vld [vmem:[%s6771_s1 + $0x1e8] sm:$0xff]  ;;  %v687_v38 = vrot.slane %v685_v28, 4  ;;  %v5382_v39 = vld [vmem:[%s6771_s1 + $0x140] sm:$0xff] }
  0x56   : > { %v5411_v34 = vld [vmem:[%s6771_s1 + $0x228] sm:$0xff]  ;;  %v673_v35 = vrot.slane %v671_v25, 4  ;;  %v676_v36 = vrot.slane %v674_v26, 5  ;;  %1960 = vmatpush.bf16.msrb.mxu2 %v5391_v21  ;;  %v5390_v40 = vld [vmem:[%s6771_s1 + $0x180] sm:$0xff]  ;;  %v690_v41 = vrot.slane %v688_v30, 5  ;;  %v682_v43 = vrot.slane %v680_v27, 5 }
  0x57   : > { %1931 = vmatpush.bf16.msrb.mxu1 %v5383_v20  ;;  %807 = vst [vmem:[#allocation3 + $0x18] sm:$0xf] %v4333_v29  ;;  %v5402_v44 = vld [vmem:[%s6771_s1 + $0x1e0] sm:$0xff]  ;;  %v696_v46 = vrot.slane %v694_v31, 5  ;;  %v5333_v47 = vld [vmem:[#allocation3 + $0xdc] sm:$0xf] }
  0x58   : > { %1875 = vmatmul.bf16.vlgmr.msrb.gmra.mxu3 %v4380_v11  ;;  %1904 = vmatmul.bf16.vlgmr.msrb.gmra.mxu0 %v4384_v12  ;;  %v677_v42 = vor.u32 %v676_v36, %v673_v35  ;;  %808 = vst [vmem:[#allocation3 + $0x3c] sm:$0xf] %v4334_v32  ;;  %v691_v45 = vor.u32 %v690_v41, %v687_v38  ;;  %v4477_v48 = vld [vmem:[#allocation3 + $0xfc] sm:$0xf0]  ;;  %v5316_v49 = vld [vmem:[#allocation3 + $0x54] sm:$0xf] }
  0x59   : > { %1983 = vmatpush.bf16.msra.mxu3 %v5405_v56  ;;  %2012 = vmatpush.bf16.msra.mxu0 %v5413_v0  ;;  %v4413_v50 = vld [vmem:[#allocation3 + $0x74] sm:$0xf0]  ;;  %v5410_v52 = vld [vmem:[%s6771_s1 + $0x220] sm:$0xff]  ;;  %v5321_v55 = vld [vmem:[#allocation3 + $0x78] sm:$0xf0]  ;;  %v4480_v5 = vor.u32 %v5333_v47, %v4477_v48  ;;  %s5707_s23 = scalar_lea.hbm %s6777_s7, 64 }
  0x5a   : > { %1827 = vmatmul.bf16.gmra.mxu1 %v4444_v15  ;;  %1856 = vmatmul.bf16.gmra.mxu2 %v4448_v16  ;;  %v678_v51 = vrot.slane %v677_v42, 4  ;;  %v4307_v53 = vld [vmem:[%s5906_s22 + $0xc0] sm:$0xf]  ;;  %v4419_v54 = vld [vmem:[#allocation3 + $0x58] sm:$0xf]  ;;  %v692_v56 = vrot.slane %v691_v45, 4  ;;  %v4416_v6 = vor.u32 %v5316_v49, %v4413_v50  ;;  %p5709_p6 = scmp.lt.s32.totalorder %s5707_s23, %s5703_s18 }
  0x5b   : > { %1932 = vmatpush.bf16.msrb.mxu1 %v5382_v39  ;;  %1961 = vmatpush.bf16.msrb.mxu2 %v5390_v40  ;;  %v4308_v57 = vld [vmem:[%s5906_s22 + $0xc8] sm:$0xf]  ;;  %635 = vst [vmem:[#allocation3 + $0xe4] sm:$0xf] %v4307_v53  ;;  %v4483_v58 = vld [vmem:[#allocation3 + $0xe0] sm:$0xf]  ;;  %v4420_v8 = vor.u32 %v5321_v55, %v4419_v54 }
  0x5c   : > { %v5338_v59 = vld [vmem:[#allocation3 + $0x100] sm:$0xf0]  ;;  %v683_v60 = vsel %vm5938_vm2, %v678_v51, %v682_v43  ;;  %636 = vst [vmem:[#allocation3 + $0x108] sm:$0xf] %v4308_v57  ;;  %v4315_v61 = vld [vmem:[%s5906_s22 + $0x108] sm:$0xf]  ;;  %v697_v63 = vsel %vm5938_vm2, %v692_v56, %v696_v46  ;;  %p5710_p7 = por %p5709_p6, %p5708_p5 }
  0x5d   : > { %1984 = vmatpush.bf16.msra.mxu3 %v5404_v17  ;;  %2013 = vmatpush.bf16.msra.mxu0 %v5412_v18  ;;  %v4316_v62 = vld [vmem:[%s5906_s22 + $0x110] sm:$0xf]  ;;  %790 = vst [vmem:[#allocation3 + $0x14] sm:$0xf] %v683_v60  ;;  %v4321_v0 = vld [vmem:[%s5906_s22 + $0xa0] sm:$0xf]  ;;  %v4484_v12 = vor.u32 %v5338_v59, %v4483_v58 }
  0x5e   : > { %v4322_v1 = vld [vmem:[%s5906_s22 + $0xa4] sm:$0x1]  ;;  %791 = vst [vmem:[#allocation3 + $0x38] sm:$0xf] %v697_v63  ;;  %v5401_v2 = vld [vmem:[%s6771_s1 + $0x1d8] sm:$0xff]  ;;  %v699_v9 = vshrl.u32 %v4321_v0, 16  ;;  %p5711_p9 = pnand %p5710_p7, %p5706_p3 }
  0x5f   : > { %v5409_v3 = vld [vmem:[%s6771_s1 + $0x218] sm:$0xff]  ;;  %v4323_v4 = vld [vmem:[%s5906_s22 + $0xa8] sm:$0xf]  ;;  %652 = vst [vmem:[#allocation3 + $0xe8] sm:$0xf] %v4315_v61  ;;  %v702_v10 = vshll.u32 %v4321_v0, 16 }
  0x60   : > { %v4324_v7 = vld [vmem:[%s5906_s22 + $0xac] sm:$0x1]  ;;  %653 = vst [vmem:[#allocation3 + $0x10c] sm:$0xf] %v4316_v62  ;;  %v708_v11 = vshll.u32 %v4322_v1, 16  ;;  %v713_v13 = vshrl.u32 %v4323_v4, 16 }
  0x61   : > { %1985 = vmatpush.bf16.msra.mxu3 %v5403_v33  ;;  %2014 = vmatpush.bf16.msra.mxu0 %v5411_v34  ;;  %v716_v14 = vshll.u32 %v4323_v4, 16  ;;  %v722_v15 = vshll.u32 %v4324_v7, 16  ;;  %v4335_v16 = vld [vmem:[%s5906_s22 + $0x18] sm:$0xf]  ;;  %v5400_v17 = vld [vmem:[%s6771_s1 + $0x1d0] sm:$0xff]  ;;  %v701_v18 = vrot.slane %v699_v9, 4 }
  0x62   : > { %v704_v19 = vrot.slane %v702_v10, 5  ;;  %v715_v20 = vrot.slane %v713_v13, 4  ;;  %v710_v23 = vrot.slane %v708_v11, 5  ;;  %v4336_v24 = vld [vmem:[%s5906_s22 + $0x20] sm:$0xf]  ;;  %v5408_v27 = vld [vmem:[%s6771_s1 + $0x210] sm:$0xff] }
  0x63   : > { %v718_v21 = vrot.slane %v716_v14, 5  ;;  %809 = vst [vmem:[#allocation3 + $0x60] sm:$0xf] %v4335_v16  ;;  %v724_v26 = vrot.slane %v722_v15, 5  ;;  %v5399_v29 = vld [vmem:[%s6771_s1 + $0x1c8] sm:$0xff]  ;;  %v5398_v42 = vld [vmem:[%s6771_s1 + $0x1c0] sm:$0xff] }
  0x64   : > { %v705_v22 = vor.u32 %v704_v19, %v701_v18  ;;  %810 = vst [vmem:[#allocation3 + $0x84] sm:$0xf] %v4336_v24  ;;  %v5407_v31 = vld [vmem:[%s6771_s1 + $0x208] sm:$0xff]  ;;  %v4325_v32 = vld [vmem:[%s5906_s22 + $0xb0] sm:$0xf]  ;;  %v5406_v50 = vld [vmem:[%s6771_s1 + $0x200] sm:$0xff] }
  0x65   : > { %1986 = vmatpush.bf16.msra.mxu3 %v5402_v44  ;;  %2015 = vmatpush.bf16.msra.mxu0 %v5410_v52  ;;  %v719_v25 = vor.u32 %v718_v21, %v715_v20  ;;  %v4326_v34 = vld [vmem:[%s5906_s22 + $0xb4] sm:$0x1]  ;;  %v4327_v35 = vld [vmem:[%s5906_s22 + $0xb8] sm:$0xf]  ;;  %v4328_v36 = vld [vmem:[%s5906_s22 + $0xbc] sm:$0x1] }
  0x66   : > { %v706_v28 = vrot.slane %v705_v22, 4  ;;  %v727_v39 = vshrl.u32 %v4325_v32, 16  ;;  %v730_v40 = vshll.u32 %v4325_v32, 16  ;;  %v736_v41 = vshll.u32 %v4326_v34, 16  ;;  %v5325_v46 = vld [vmem:[#allocation3 + $0x9c] sm:$0xf] }
  0x67   : > { %v720_v30 = vrot.slane %v719_v25, 4  ;;  %v741_v43 = vshrl.u32 %v4327_v35, 16  ;;  %v744_v44 = vshll.u32 %v4327_v35, 16  ;;  %v750_v45 = vshll.u32 %v4328_v36, 16  ;;  %v4449_v47 = vld [vmem:[#allocation3 + $0xbc] sm:$0xf0] }
  0x68   : > { %1880 = vmatmul.bf16.gmra.mxu3 %v4416_v6  ;;  %1909 = vmatmul.bf16.gmra.mxu0 %v4420_v8  ;;  %v711_v33 = vsel %vm5938_vm2, %v706_v28, %v710_v23  ;;  %v4455_v48 = vld [vmem:[#allocation3 + $0xa0] sm:$0xf]  ;;  %v5330_v49 = vld [vmem:[#allocation3 + $0xc0] sm:$0xf0]  ;;  %v729_v51 = vrot.slane %v727_v39, 4  ;;  %v732_v52 = vrot.slane %v730_v40, 5  ;;  %v4452_v6 = vor.u32 %v5325_v46, %v4449_v47 }
  0x69   : > { %1987 = vmatpush.bf16.msra.mxu3 %v5401_v2  ;;  %2016 = vmatpush.bf16.msra.mxu0 %v5409_v3  ;;  %v725_v38 = vsel %vm5938_vm2, %v720_v30, %v724_v26  ;;  %792 = vst [vmem:[#allocation3 + $0x5c] sm:$0xf] %v711_v33  ;;  %v5308_v53 = vld [vmem:[#allocation3 + $0x14] sm:$0xf]  ;;  %v4385_v54 = vld [vmem:[#allocation3 + $0x34] sm:$0xf0]  ;;  %v4456_v7 = vor.u32 %v5330_v49, %v4455_v48 }
  0x6a   : > { %1832 = vmatmul.bf16.gmra.mxu1 %v4480_v5  ;;  %1861 = vmatmul.bf16.gmra.mxu2 %v4484_v12  ;;  %793 = vst [vmem:[#allocation3 + $0x80] sm:$0xf] %v725_v38  ;;  %v4391_v55 = vld [vmem:[#allocation3 + $0x18] sm:$0xf]  ;;  %v5313_v56 = vld [vmem:[#allocation3 + $0x38] sm:$0xf0]  ;;  %v733_v61 = vor.u32 %v732_v52, %v729_v51  ;;  %v4388_v11 = vor.u32 %v5308_v53, %v4385_v54 }
  0x6b   : > { %v738_v57 = vrot.slane %v736_v41, 5  ;;  %v743_v58 = vrot.slane %v741_v43, 4  ;;  %v746_v59 = vrot.slane %v744_v44, 5  ;;  %v752_v60 = vrot.slane %v750_v45, 5  ;;  %v4337_v62 = vld [vmem:[%s5906_s22 + $0x28] sm:$0xf] }
  0x6c   : > { %v4338_v63 = vld [vmem:[%s5906_s22 + $0x30] sm:$0xf]  ;;  %811 = vst [vmem:[#allocation3 + $0xa8] sm:$0xf] %v4337_v62  ;;  %v4342_v2 = vld [vmem:[%s5906_s22 + $0x58] sm:$0xf]  ;;  %v4392_v12 = vor.u32 %v5313_v56, %v4391_v55 }
  0x6d   : > { %1988 = vmatpush.bf16.msra.mxu3 %v5400_v17  ;;  %2017 = vmatpush.bf16.msra.mxu0 %v5408_v27  ;;  %v4341_v0 = vld [vmem:[%s5906_s22 + $0x50] sm:$0xf]  ;;  %v747_v1 = vor.u32 %v746_v59, %v743_v58  ;;  %v4349_v3 = vld [vmem:[%s5906_s22 + $0x8] sm:$0xf]  ;;  %v734_v4 = vrot.slane %v733_v61, 4 }
  0x6e   : > { %812 = vst [vmem:[#allocation3 + $0xcc] sm:$0xf] %v4338_v63  ;;  %v849_v5 = vshrl.u32 %v4349_v3, 16  ;;  %v4350_v9 = vld [vmem:[%s5906_s22 + $0xc] sm:$0x1]  ;;  %v852_v10 = vshll.u32 %v4349_v3, 16 }
  0x6f   : > { %v748_v8 = vrot.slane %v747_v1, 4  ;;  %824 = vst [vmem:[#allocation3 + $0x1c] sm:$0xf] %v4341_v0  ;;  %v739_v13 = vsel %vm5938_vm2, %v734_v4, %v738_v57  ;;  %v4351_v14 = vld [vmem:[%s5906_s22 + $0x10] sm:$0xf]  ;;  %v858_v19 = vshll.u32 %v4350_v9, 16 }
  0x70   : > { %825 = vst [vmem:[#allocation3 + $0x40] sm:$0xf] %v4342_v2  ;;  %v4352_v16 = vld [vmem:[%s5906_s22 + $0x14] sm:$0x1]  ;;  %v851_v17 = vrot.slane %v849_v5, 4  ;;  %v854_v18 = vrot.slane %v852_v10, 5 }
  0x71   : > { %1989 = vmatpush.bf16.msra.mxu3 %v5399_v29  ;;  %2018 = vmatpush.bf16.msra.mxu0 %v5407_v31  ;;  %v753_v15 = vsel %vm5938_vm2, %v748_v8, %v752_v60  ;;  %794 = vst [vmem:[#allocation3 + $0xa4] sm:$0xf] %v739_v13  ;;  %v863_v20 = vshrl.u32 %v4351_v14, 16  ;;  %v866_v21 = vshll.u32 %v4351_v14, 16  ;;  %v872_v22 = vshll.u32 %v4352_v16, 16 }
  0x72   : > { %795 = vst [vmem:[#allocation3 + $0xc8] sm:$0xf] %v753_v15  ;;  %v855_v23 = vor.u32 %v854_v18, %v851_v17  ;;  %v4329_v24 = vld [vmem:[%s5906_s22 + $0xc0] sm:$0xf]  ;;  %v860_v25 = vrot.slane %v858_v19, 5 }
  0x73   : > { %v865_v26 = vrot.slane %v863_v20, 4  ;;  %v868_v27 = vrot.slane %v866_v21, 5  ;;  %v4331_v28 = vld [vmem:[%s5906_s22 + $0xc8] sm:$0xf]  ;;  %v4330_v30 = vld [vmem:[%s5906_s22 + $0xc4] sm:$0x1] }
  0x74   : > { %v856_v29 = vrot.slane %v855_v23, 4  ;;  %v755_v31 = vshrl.u32 %v4329_v24, 16  ;;  %v874_v33 = vrot.slane %v872_v22, 5  ;;  %v4332_v34 = vld [vmem:[%s5906_s22 + $0xcc] sm:$0x1]  ;;  %v758_v35 = vshll.u32 %v4329_v24, 16 }
  0x75   : > { %1990 = vmatpush.bf16.msra.mxu3 %v5398_v42  ;;  %2019 = vmatpush.bf16.msra.mxu0 %v5406_v50  ;;  %v869_v32 = vor.u32 %v868_v27, %v865_v26  ;;  %v764_v36 = vshll.u32 %v4330_v30, 16  ;;  %v769_v40 = vshrl.u32 %v4331_v28, 16  ;;  %v772_v41 = vshll.u32 %v4331_v28, 16  ;;  %v5334_v42 = vld [vmem:[#allocation3 + $0xe4] sm:$0xf] }
  0x76   : > { %v861_v38 = vsel %vm5938_vm2, %v856_v29, %v860_v25  ;;  %v757_v39 = vrot.slane %v755_v31, 4  ;;  %v4485_v43 = vld [vmem:[#allocation3 + $0x104] sm:$0xf0]  ;;  %v760_v45 = vrot.slane %v758_v35, 5  ;;  %v5339_v48 = vld [vmem:[#allocation3 + $0x108] sm:$0xf0] }
  0x77   : > { %v870_v44 = vrot.slane %v869_v32, 4  ;;  %968 = vst [vmem:[#allocation3 + $0x20] sm:$0xf] %v861_v38  ;;  %v4353_v46 = vld [vmem:[%s5906_s22 + $0x18] sm:$0xf]  ;;  %v771_v49 = vrot.slane %v769_v40, 4  ;;  %v4488_v5 = vor.u32 %v5334_v42, %v4485_v43 }
  0x78   : > { %1885 = vmatmul.bf16.gmra.mxu3 %v4452_v6  ;;  %1914 = vmatmul.bf16.gmra.mxu0 %v4456_v7  ;;  %v4491_v47 = vld [vmem:[#allocation3 + $0xe8] sm:$0xf]  ;;  %v774_v50 = vrot.slane %v772_v41, 5  ;;  %v778_v51 = vshll.u32 %v4332_v34, 16  ;;  %v4427_v52 = vld [vmem:[#allocation3 + $0x60] sm:$0xf]  ;;  %v761_v55 = vor.u32 %v760_v45, %v757_v39 }
  0x79   : > { %v5322_v53 = vld [vmem:[#allocation3 + $0x80] sm:$0xf0]  ;;  %v875_v54 = vsel %vm5938_vm2, %v870_v44, %v874_v33  ;;  %v766_v56 = vrot.slane %v764_v36, 5  ;;  %v4339_v57 = vld [vmem:[%s5906_s22 + $0x38] sm:$0xf]  ;;  %v877_v0 = vshrl.u32 %v4353_v46, 16  ;;  %v4492_v9 = vor.u32 %v5339_v48, %v4491_v47 }
  0x7a   : > { %1933 = vmatmul.bf16.vlgmr.msrb.gmra.mxu1 %v4388_v11  ;;  %1962 = vmatmul.bf16.vlgmr.msrb.gmra.mxu2 %v4392_v12  ;;  %v4340_v58 = vld [vmem:[%s5906_s22 + $0x40] sm:$0xf]  ;;  %v5317_v59 = vld [vmem:[#allocation3 + $0x5c] sm:$0xf]  ;;  %v4421_v60 = vld [vmem:[#allocation3 + $0x7c] sm:$0xf0]  ;;  %v775_v61 = vor.u32 %v774_v50, %v771_v49  ;;  %v4428_v14 = vor.u32 %v5322_v53, %v4427_v52 }
  0x7b   : > { %969 = vst [vmem:[#allocation3 + $0x44] sm:$0xf] %v875_v54  ;;  %v780_v62 = vrot.slane %v778_v51, 5  ;;  %v4343_v63 = vld [vmem:[%s5906_s22 + $0x60] sm:$0xf]  ;;  %v762_v1 = vrot.slane %v761_v55, 4  ;;  %v4424_v18 = vor.u32 %v5317_v59, %v4421_v60 }
  0x7c   : > { %813 = vst [vmem:[#allocation3 + $0xf0] sm:$0xf] %v4339_v57  ;;  %v4344_v2 = vld [vmem:[%s5906_s22 + $0x68] sm:$0xf]  ;;  %v4354_v3 = vld [vmem:[%s5906_s22 + $0x1c] sm:$0x1] }
  0x7d   : > { %v880_v4 = vshll.u32 %v4353_v46, 16  ;;  %v776_v6 = vrot.slane %v775_v61, 4  ;;  %814 = vst [vmem:[#allocation3 + $0x114] sm:$0xf] %v4340_v58  ;;  %v4355_v7 = vld [vmem:[%s5906_s22 + $0x20] sm:$0xf]  ;;  %v767_v10 = vsel %vm5938_vm2, %v762_v1, %v766_v56 }
  0x7e   : > { %v879_v8 = vrot.slane %v877_v0, 4  ;;  %826 = vst [vmem:[#allocation3 + $0x64] sm:$0xf] %v4343_v63  ;;  %v4356_v11 = vld [vmem:[%s5906_s22 + $0x24] sm:$0x1]  ;;  %v886_v13 = vshll.u32 %v4354_v3, 16 }
  0x7f   : > { %v882_v12 = vrot.slane %v880_v4, 5  ;;  %v781_v15 = vsel %vm5938_vm2, %v776_v6, %v780_v62  ;;  %796 = vst [vmem:[#allocation3 + $0xec] sm:$0xf] %v767_v10  ;;  %v891_v16 = vshrl.u32 %v4355_v7, 16  ;;  %v894_v17 = vshll.u32 %v4355_v7, 16 }
  0x80   : > { %797 = vst [vmem:[#allocation3 + $0x110] sm:$0xf] %v781_v15  ;;  %v888_v20 = vrot.slane %v886_v13, 5  ;;  %v900_v21 = vshll.u32 %v4356_v11, 16  ;;  %v4357_v24 = vld [vmem:[%s5906_s22 + $0x28] sm:$0xf] }
  0x81   : > { %v883_v19 = vor.u32 %v882_v12, %v879_v8  ;;  %827 = vst [vmem:[#allocation3 + $0x88] sm:$0xf] %v4344_v2  ;;  %v893_v22 = vrot.slane %v891_v16, 4  ;;  %v896_v23 = vrot.slane %v894_v17, 5  ;;  %v905_v28 = vshrl.u32 %v4357_v24, 16 }
  0x82   : > { %v902_v27 = vrot.slane %v900_v21, 5  ;;  %v908_v29 = vshll.u32 %v4357_v24, 16  ;;  %v4358_v31 = vld [vmem:[%s5906_s22 + $0x2c] sm:$0x1]  ;;  %v4359_v32 = vld [vmem:[%s5906_s22 + $0x30] sm:$0xf] }
  0x83   : > { %v884_v25 = vrot.slane %v883_v19, 4  ;;  %v897_v26 = vor.u32 %v896_v23, %v893_v22  ;;  %v907_v34 = vrot.slane %v905_v28, 4  ;;  %v4360_v35 = vld [vmem:[%s5906_s22 + $0x34] sm:$0x1]  ;;  %v914_v38 = vshll.u32 %v4358_v31, 16 }
  0x84   : > { %v910_v36 = vrot.slane %v908_v29, 5  ;;  %v919_v40 = vshrl.u32 %v4359_v32, 16  ;;  %v922_v41 = vshll.u32 %v4359_v32, 16  ;;  %v928_v42 = vshll.u32 %v4360_v35, 16  ;;  %v4345_v45 = vld [vmem:[%s5906_s22 + $0x70] sm:$0xf] }
  0x85   : > { %v889_v30 = vsel %vm5938_vm2, %v884_v25, %v888_v20  ;;  %v898_v33 = vrot.slane %v897_v26, 4  ;;  %v916_v44 = vrot.slane %v914_v38, 5  ;;  %v4346_v46 = vld [vmem:[%s5906_s22 + $0x78] sm:$0xf]  ;;  %v5309_v49 = vld [vmem:[#allocation3 + $0x1c] sm:$0xf] }
  0x86   : > { %970 = vst [vmem:[#allocation3 + $0x68] sm:$0xf] %v889_v30  ;;  %v911_v43 = vor.u32 %v910_v36, %v907_v34  ;;  %v921_v47 = vrot.slane %v919_v40, 4  ;;  %v924_v48 = vrot.slane %v922_v41, 5  ;;  %v4463_v51 = vld [vmem:[#allocation3 + $0xa8] sm:$0xf] }
  0x87   : > { %v903_v39 = vsel %vm5938_vm2, %v898_v33, %v902_v27  ;;  %828 = vst [vmem:[#allocation3 + $0xac] sm:$0xf] %v4345_v45  ;;  %v5331_v52 = vld [vmem:[#allocation3 + $0xc8] sm:$0xf0]  ;;  %v4393_v53 = vld [vmem:[#allocation3 + $0x3c] sm:$0xf0] }
  0x88   : > { %1890 = vmatmul.bf16.gmra.mxu3 %v4488_v5  ;;  %1919 = vmatmul.bf16.gmra.mxu0 %v4492_v9  ;;  %971 = vst [vmem:[#allocation3 + $0x8c] sm:$0xf] %v903_v39  ;;  %v912_v50 = vrot.slane %v911_v43, 4  ;;  %v925_v54 = vor.u32 %v924_v48, %v921_v47  ;;  %v930_v55 = vrot.slane %v928_v42, 5  ;;  %v5326_v56 = vld [vmem:[#allocation3 + $0xa4] sm:$0xf]  ;;  %v4396_v62 = vor.u32 %v5309_v49, %v4393_v53 }
  0x89   : > { %829 = vst [vmem:[#allocation3 + $0xd0] sm:$0xf] %v4346_v46  ;;  %v4399_v57 = vld [vmem:[#allocation3 + $0x20] sm:$0xf]  ;;  %v5314_v58 = vld [vmem:[#allocation3 + $0x40] sm:$0xf0]  ;;  %v4464_v2 = vor.u32 %v5331_v52, %v4463_v51 }
  0x8a   : > { %1938 = vmatmul.bf16.gmra.mxu1 %v4424_v18  ;;  %1967 = vmatmul.bf16.gmra.mxu2 %v4428_v14  ;;  %v917_v59 = vsel %vm5938_vm2, %v912_v50, %v916_v44  ;;  %v4457_v60 = vld [vmem:[#allocation3 + $0xc4] sm:$0xf0]  ;;  %v926_v61 = vrot.slane %v925_v54, 4  ;;  %v4400_v63 = vor.u32 %v5314_v58, %v4399_v57  ;;  %v4363_v4 = vld [vmem:[%s5906_s22 + $0x40] sm:$0xf] }
  0x8b   : > { %972 = vst [vmem:[#allocation3 + $0xb0] sm:$0xf] %v917_v59  ;;  %v4460_v1 = vor.u32 %v5326_v56, %v4457_v60  ;;  %v4361_v3 = vld [vmem:[%s5906_s22 + $0x38] sm:$0xf]  ;;  %v947_v7 = vshrl.u32 %v4363_v4, 16  ;;  %v950_v8 = vshll.u32 %v4363_v4, 16 }
  0x8c   : > { %v931_v0 = vsel %vm5938_vm2, %v926_v61, %v930_v55  ;;  %v933_v5 = vshrl.u32 %v4361_v3, 16  ;;  %v936_v6 = vshll.u32 %v4361_v3, 16  ;;  %v4362_v12 = vld [vmem:[%s5906_s22 + $0x3c] sm:$0x1]  ;;  %v4364_v13 = vld [vmem:[%s5906_s22 + $0x44] sm:$0x1] }
  0x8d   : > { %973 = vst [vmem:[#allocation3 + $0xd4] sm:$0xf] %v931_v0  ;;  %v949_v11 = vrot.slane %v947_v7, 4  ;;  %v942_v15 = vshll.u32 %v4362_v12, 16  ;;  %v952_v16 = vrot.slane %v950_v8, 5  ;;  %v956_v17 = vshll.u32 %v4364_v13, 16 }
  0x8e   : > { %v935_v9 = vrot.slane %v933_v5, 4  ;;  %v938_v10 = vrot.slane %v936_v6, 5  ;;  %v4347_v22 = vld [vmem:[%s5906_s22 + $0x80] sm:$0xf]  ;;  %v4348_v23 = vld [vmem:[%s5906_s22 + $0x88] sm:$0xf] }
  0x8f   : > { %v944_v19 = vrot.slane %v942_v15, 5  ;;  %v953_v20 = vor.u32 %v952_v16, %v949_v11  ;;  %v958_v21 = vrot.slane %v956_v17, 5  ;;  %830 = vst [vmem:[#allocation3 + $0xf4] sm:$0xf] %v4347_v22  ;;  %v4499_v26 = vld [vmem:[#allocation3 + $0xf0] sm:$0xf] }
  0x90   : > { %v939_v14 = vor.u32 %v938_v10, %v935_v9  ;;  %v5340_v27 = vld [vmem:[#allocation3 + $0x110] sm:$0xf0]  ;;  %v5318_v28 = vld [vmem:[#allocation3 + $0x64] sm:$0xf]  ;;  %v4429_v29 = vld [vmem:[#allocation3 + $0x84] sm:$0xf0] }
  0x91   : > { %v954_v25 = vrot.slane %v953_v20, 4  ;;  %831 = vst [vmem:[#allocation3 + $0x118] sm:$0xf] %v4348_v23  ;;  %v4435_v31 = vld [vmem:[#allocation3 + $0x68] sm:$0xf]  ;;  %v4432_v35 = vor.u32 %v5318_v28, %v4429_v29  ;;  %v4500_v39 = vor.u32 %v5340_v27, %v4499_v26  ;;  %v5465_v12 = vld [vmem:[#allocation5 + $0x78] sm:$0xff] }
  0x92   : > { %v940_v18 = vrot.slane %v939_v14, 4  ;;  %v5323_v32 = vld [vmem:[#allocation3 + $0x88] sm:$0xf0]  ;;  %v4493_v34 = vld [vmem:[#allocation3 + $0x10c] sm:$0xf0]  ;;  %3745 = vmatpush.bf16.msra.mxu2 %v5465_v12  ;;  %v5457_v16 = vld [vmem:[#allocation5 + $0x38] sm:$0xff] }
  0x93   : > { %v959_v30 = vsel %vm5938_vm2, %v954_v25, %v958_v21  ;;  %v5335_v33 = vld [vmem:[#allocation3 + $0xec] sm:$0xf]  ;;  %v4436_v36 = vor.u32 %v5323_v32, %v4435_v31  ;;  %v4465_v41 = vld [vmem:[#allocation3 + $0xcc] sm:$0xf0]  ;;  %3716 = vmatpush.bf16.msra.mxu1 %v5457_v16  ;;  %v381_v28 = vld [vmem:[#allocation2 + $0x8] sm:$0x1] }
  0x94   : > { %v945_v24 = vsel %vm5938_vm2, %v940_v18, %v944_v19  ;;  %975 = vst [vmem:[#allocation3 + $0x11c] sm:$0xf] %v959_v30  ;;  %v4496_v38 = vor.u32 %v5335_v33, %v4493_v34  ;;  %v5327_v40 = vld [vmem:[#allocation3 + $0xac] sm:$0xf]  ;;  %v4471_v42 = vld [vmem:[#allocation3 + $0xb0] sm:$0xf] }
  0x95   : > { %974 = vst [vmem:[#allocation3 + $0xf8] sm:$0xf] %v945_v24  ;;  %v5332_v43 = vld [vmem:[#allocation3 + $0xd0] sm:$0xf0]  ;;  %v4468_v44 = vor.u32 %v5327_v40, %v4465_v41  ;;  %v5463_v23 = vld [vmem:[#allocation5 + $0x68] sm:$0xff]  ;;  %v5774_v29 = vmov 0  }
  0x96   : > { %v4472_v45 = vor.u32 %v5332_v43, %v4471_v42  ;;  %v5336_v52 = vld [vmem:[#allocation3 + $0xf4] sm:$0xf]  ;;  %370 = vst [vmem:[#allocation2] sm:$0xf] %v5774_v29  ;;  %v413_v31 = vld [vmem:[#allocation2 + $0xc] sm:$0x1] }
  0x97   : > { %v5464_v17 = vld [vmem:[#allocation5 + $0x70] sm:$0xff]  ;;  %371 = vst [vmem:[#allocation2 + $0x4] sm:$0x1] %v5774_v29  ;;  %v382_v32 = vsel %vm6317_vm5, 0, %v381_v28  ;;  %v414_v34 = vsel %vm6324_vm7, 0, %v413_v31  ;;  %v5455_v41 = vld [vmem:[#allocation5 + $0x28] sm:$0xff] }
  0x98   : > { %1991 = vmatmul.bf16.vlgmr.msra.gmra.mxu3 %v4396_v62  ;;  %2020 = vmatmul.bf16.vlgmr.msra.gmra.mxu0 %v4400_v63  ;;  %v4501_v53 = vld [vmem:[#allocation3 + $0x114] sm:$0xf0]  ;;  %v5456_v22 = vld [vmem:[#allocation5 + $0x30] sm:$0xff]  ;;  %374 = vst [vmem:[#allocation2 + $0x4c] sm:$0x1] %v5774_v29  ;;  %v5470_v31 = vld [vmem:[#allocation5 + $0xa0] sm:$0xff] }
  0x99   : > { %v4504_v58 = vor.u32 %v5336_v52, %v4501_v53  ;;  %3746 = vmatpush.bf16.msra.mxu2 %v5464_v17  ;;  %3717 = vmatpush.bf16.msra.mxu1 %v5456_v22  ;;  %383 = vst [vmem:[#allocation2 + $0x8] sm:$0x1] %v382_v32  ;;  %v5481_v42 = vld [vmem:[#allocation5 + $0xf8] sm:$0xff]  ;;  %v6339_v43 = vld [vmem:[%s6772_s2] ss:$0 sm:$0xff]  ;;  %v5454_v17 = vld [vmem:[#allocation5 + $0x20] sm:$0xff] }
  0x9a   : > { %1943 = vmatmul.bf16.gmra.mxu1 %v4460_v1  ;;  %1972 = vmatmul.bf16.gmra.mxu2 %v4464_v2  ;;  %415 = vst [vmem:[#allocation2 + $0xc] sm:$0x1] %v414_v34  ;;  %v5471_v22 = vld [vmem:[#allocation5 + $0xa8] sm:$0xff]  ;;  %v5480_v28 = vld [vmem:[#allocation5 + $0xf0] sm:$0xff] }
  0x9b   : > { %v5341_v55 = vld [vmem:[#allocation3 + $0x118] sm:$0xf0]  ;;  %373 = vst [vmem:[#allocation2 + $0x48] sm:$0xf] %v5774_v29  ;;  %3803 = vmatpush.bf16.msrb.mxu0 %v5481_v42 }
  0x9c   : > { %v4507_v54 = vld [vmem:[#allocation3 + $0xf8] sm:$0xf] }
  0x9d   : > { %v4508_v59 = vor.u32 %v5341_v55, %v4507_v54  ;;  %3747 = vmatpush.bf16.msra.mxu2 %v5463_v23  ;;  %3718 = vmatpush.bf16.msra.mxu1 %v5455_v41 }
  0x9f   : > { %v437_v53 = vld [vmem:[#allocation2 + $0x4c] sm:$0x1]  ;;  %3804 = vmatpush.bf16.msrb.mxu0 %v5480_v28 }
  0xa0   : > { %v438_v55 = vsel %vm6324_vm7, 0, %v437_v53  ;;  %v387_v53 = vld [vmem:[#allocation2 + $0x18] sm:$0x1] }
  0xa1   : > { %439 = vst [vmem:[#allocation2 + $0x4c] sm:$0x1] %v438_v55  ;;  %3719 = vmatpush.bf16.msra.mxu1 %v5454_v17  ;;  %v5452_v55 = vld [vmem:[#allocation5 + $0x10] sm:$0xff] }
  0xa8   : > { %1996 = vmatmul.bf16.gmra.mxu3 %v4432_v35  ;;  %2025 = vmatmul.bf16.gmra.mxu0 %v4436_v36  ;;  %v5473_v35 = vld [vmem:[#allocation5 + $0xb8] sm:$0xff] }
  0xa9   : > { %3774 = vmatpush.bf16.msrb.mxu3 %v5473_v35  ;;  %v5453_v35 = vld [vmem:[#allocation5 + $0x18] sm:$0xff] }
  0xaa   : > { %1948 = vmatmul.bf16.gmra.mxu1 %v4496_v38  ;;  %1977 = vmatmul.bf16.gmra.mxu2 %v4500_v39  ;;  %v5472_v39 = vld [vmem:[#allocation5 + $0xb0] sm:$0xff] }
  0xab   : > { %3720 = vmatpush.bf16.msra.mxu1 %v5453_v35  ;;  %v5461_v35 = vld [vmem:[#allocation5 + $0x58] sm:$0xff] }
  0xad   : > { %3775 = vmatpush.bf16.msrb.mxu3 %v5472_v39  ;;  %v5479_v39 = vld [vmem:[#allocation5 + $0xe8] sm:$0xff] }
  0xae   : > { %3805 = vmatpush.bf16.msrb.mxu0 %v5479_v39 }
  0xaf   : > { %3721 = vmatpush.bf16.msra.mxu1 %v5452_v55 }
  0xb1   : > { %3776 = vmatpush.bf16.msrb.mxu3 %v5471_v22 }
  0xb5   : > { %v6247_v46 = vpop.f32.mrf.mxu0  ;;  %3777 = vmatpush.bf16.msrb.mxu3 %v5470_v31  ;;  %v2348_v31 = vld [vmem:[#allocation2] sm:$0xe] }
  0xb6   : > { %v1790_v54 = vadd.f32 %v6339_v43, %v6247_v46  ;;  %v378_v46 = vld [vmem:[#allocation2] sm:$0x1] }
  0xb7   : > { %v6249_v47 = vpop.f32.mrf.mxu1  ;;  %v379_v32 = vsel %vm6317_vm5, 0, %v378_v46 }
  0xb8   : > { %2001 = vmatmul.bf16.gmra.mxu3 %v4468_v44  ;;  %2030 = vmatmul.bf16.gmra.mxu0 %v4472_v45  ;;  %v410_v45 = vld [vmem:[#allocation2 + $0x4] sm:$0x1]  ;;  %v1819_v29 = vadd.f32 %v6249_v47, %v1790_v54  ;;  %380 = vst [vmem:[#allocation2] sm:$0x1] %v379_v32  ;;  %v5469_v47 = vld [vmem:[#allocation5 + $0x98] sm:$0xff] }
  0xb9   : > { %v411_v52 = vsel %vm6324_vm7, 0, %v410_v45  ;;  %v419_v54 = vld [vmem:[#allocation2 + $0x1c] sm:$0x1]  ;;  %3778 = vmatpush.bf16.msrb.mxu3 %v5469_v47 }
  0xba   : > { %412 = vst [vmem:[#allocation2 + $0x4] sm:$0x1] %v411_v52 }
  0xbb   : > { %v6251_v48 = vpop.f32.mrf.mxu3 }
  0xbd   : > { %v6253_v49 = vpop.f32.mrf.mxu2  ;;  %v6255_v50 = vpop.f32.mrf.mxu0 }
  0xbe   : > { %v1848_v42 = vadd.f32 %v6253_v49, %v1819_v29  ;;  %v1792_v52 = vadd.f32 %v6339_v43, %v6255_v50  ;;  %v420_v49 = vsel %vm6324_vm7, 0, %v419_v54  ;;  %v5468_v50 = vld [vmem:[#allocation5 + $0x90] sm:$0xff]  ;;  %v5477_v29 = vld [vmem:[#allocation5 + $0xd8] sm:$0xff] }
  0xbf   : > { %v6257_v51 = vpop.f32.mrf.mxu1  ;;  %421 = vst [vmem:[#allocation2 + $0x1c] sm:$0x1] %v420_v49  ;;  %v2188_v22 = vld [vmem:[#allocation2] sm:$0xf]  ;;  %3779 = vmatpush.bf16.msrb.mxu3 %v5468_v50 }
  0xc0   : > { %v1821_v28 = vadd.f32 %v6257_v51, %v1792_v52  ;;  %2196 = vst [vmem:[#allocation4] sm:$0xf] %v2188_v22  ;;  %v2204_v54 = vld [vmem:[#allocation2] sm:$0xf] }
  0xc1   : > { %v2349_v39 = vld [vmem:[#allocation2 + $0x4] sm:$0x1]  ;;  %v2221_v49 = vshrl.u32 %v2204_v54, 16 }
  0xc2   : > { %v2385_v52 = vrot.slane %v2349_v39, 5  ;;  %v2224_v39 = vshll.u32 %v2204_v54, 16 }
  0xc3   : > { %v6259_v56 = vpop.f32.mrf.mxu3 }
  0xc5   : > { %v6261_v57 = vpop.f32.mrf.mxu2  ;;  %v6263_v60 = vpop.f32.mrf.mxu0 }
  0xc6   : > { %v1850_v47 = vadd.f32 %v6261_v57, %v1821_v28  ;;  %v422_v57 = vld [vmem:[#allocation2 + $0x24] sm:$0x1] }
  0xc7   : > { %v6265_v61 = vpop.f32.mrf.mxu1  ;;  %v5460_v28 = vld [vmem:[#allocation5 + $0x50] sm:$0xff]  ;;  %v423_v50 = vsel %vm6324_vm7, 0, %v422_v57 }
  0xc8   : > { %2006 = vmatmul.bf16.gmra.mxu3 %v4504_v58  ;;  %2035 = vmatmul.bf16.gmra.mxu0 %v4508_v59  ;;  %v384_v58 = vld [vmem:[#allocation2 + $0x10] sm:$0x1]  ;;  %v416_v59 = vld [vmem:[#allocation2 + $0x14] sm:$0x1]  ;;  %424 = vst [vmem:[#allocation2 + $0x24] sm:$0x1] %v423_v50 }
  0xc9   : > { %v385_v12 = vsel %vm6317_vm5, 0, %v384_v58  ;;  %v417_v16 = vsel %vm6324_vm7, 0, %v416_v59  ;;  %v5462_v59 = vld [vmem:[#allocation5 + $0x60] sm:$0xff] }
  0xca   : > { %386 = vst [vmem:[#allocation2 + $0x10] sm:$0x1] %v385_v12  ;;  %v388_v12 = vsel %vm6317_vm5, 0, %v387_v53  ;;  %3748 = vmatpush.bf16.msra.mxu2 %v5462_v59  ;;  %v1795_v53 = vadd.f32 %v6339_v43, %v6263_v60  ;;  %v5450_v60 = vld [vmem:[#allocation5] sm:$0xff] }
  0xcb   : > { %v6267_v62 = vpop.f32.mrf.mxu3  ;;  %418 = vst [vmem:[#allocation2 + $0x14] sm:$0x1] %v417_v16  ;;  %v5478_v16 = vld [vmem:[#allocation5 + $0xe0] sm:$0xff] }
  0xcc   : > { %389 = vst [vmem:[#allocation2 + $0x18] sm:$0x1] %v388_v12  ;;  %3806 = vmatpush.bf16.msrb.mxu0 %v5478_v16  ;;  %v390_v12 = vld [vmem:[#allocation2 + $0x20] sm:$0x1] }
  0xcd   : > { %v6269_v63 = vpop.f32.mrf.mxu2  ;;  %v6271_v0 = vpop.f32.mrf.mxu0 }
  0xce   : > { %3749 = vmatpush.bf16.msra.mxu2 %v5461_v35 }
  0xcf   : > { %v6273_v1 = vpop.f32.mrf.mxu1 }
  0xd0   : > { %3807 = vmatpush.bf16.msrb.mxu0 %v5477_v29 }
  0xd2   : > { %3750 = vmatpush.bf16.msra.mxu2 %v5460_v28 }
  0xd3   : > { %v6275_v2 = vpop.f32.mrf.mxu3 }
  0xd5   : > { %v6277_v3 = vpop.f32.mrf.mxu2  ;;  %v6279_v4 = vpop.f32.mrf.mxu0 }
  0xd7   : > { %v6283_v6 = vpop.f32.mrf.mxu1 }
  0xdb   : > { %v6281_v5 = vpop.f32.mrf.mxu3 }
  0xdc   : > { %v1877_v58 = vadd.f32 %v6281_v5, %v1848_v42  ;;  %v5451_v5 = vld [vmem:[#allocation5 + $0x8] sm:$0xff]  ;;  %v4797_v42 = vrot.slane %v2348_v31, 9  ;;  %v5476_v31 = vld [vmem:[#allocation5 + $0xd0] sm:$0xff] }
  0xdd   : > { %v6285_v7 = vpop.f32.mrf.mxu0  ;;  %v6287_v8 = vpop.f32.mrf.mxu2  ;;  %3722 = vmatpush.bf16.msra.mxu1 %v5451_v5  ;;  %v1824_v5 = vadd.f32 %v6265_v61, %v1795_v53  ;;  %3808 = vmatpush.bf16.msrb.mxu0 %v5476_v31  ;;  %v5475_v61 = vld [vmem:[#allocation5 + $0xc8] sm:$0xff]  ;;  %v2226_v53 = vrot.slane %v2224_v39, 5 }
  0xde   : > { %v1906_v32 = vadd.f32 %v6279_v4, %v1877_v58  ;;  %v5467_v4 = vld [vmem:[#allocation5 + $0x88] sm:$0xff] }
  0xdf   : > { %v6293_v11 = vpop.f32.mrf.mxu1  ;;  %3780 = vmatpush.bf16.msrb.mxu3 %v5467_v4 }
  0xe1   : > { %3723 = vmatpush.bf16.msra.mxu1 %v5450_v60  ;;  %3809 = vmatpush.bf16.msrb.mxu0 %v5475_v61  ;;  %v5512_v61 = vld [vmem:[#allocation5 + $0x1f0] sm:$0xff] }
  0xe3   : > { %v6289_v9 = vpop.f32.mrf.mxu3 }
  0xe4   : > { %v1879_v58 = vadd.f32 %v6289_v9, %v1850_v47  ;;  %v2386_v9 = vsel %vm6379_vm10, %v4797_v42, %v2385_v52  ;;  %v5459_v52 = vld [vmem:[#allocation5 + $0x48] sm:$0xff] }
  0xe5   : > { %v6291_v10 = vpop.f32.mrf.mxu0  ;;  %v6295_v13 = vpop.f32.mrf.mxu2  ;;  %2423 = vst [vmem:[#allocation4 + $0x8] sm:$0xf] %v2386_v9  ;;  %3751 = vmatpush.bf16.msra.mxu2 %v5459_v52 }
  0xe6   : > { %v1908_v47 = vadd.f32 %v6285_v7, %v1879_v58  ;;  %v1797_v7 = vadd.f32 %v6339_v43, %v6271_v0  ;;  %v5474_v0 = vld [vmem:[#allocation5 + $0xc0] sm:$0xff] }
  0xe7   : > { %v6301_v18 = vpop.f32.mrf.mxu1  ;;  %3810 = vmatpush.bf16.msrb.mxu0 %v5474_v0 }
  0xeb   : > { %v6297_v14 = vpop.f32.mrf.mxu3 }
  0xed   : > { %v6299_v15 = vpop.f32.mrf.mxu0  ;;  %v6303_v19 = vpop.f32.mrf.mxu2 }
  0xef   : > { %v6309_v24 = vpop.f32.mrf.mxu1 }
  0xf3   : > { %v6305_v20 = vpop.f32.mrf.mxu3 }
  0xf5   : > { %v6307_v21 = vpop.f32.mrf.mxu0  ;;  %v6313_v26 = vpop.f32.mrf.mxu2 }
  0xf7   : > { %v6332_v38 = vpop.f32.mrf.mxu1 }
  0xf8   : > { %v1935_v55 = vadd.f32 %v6332_v38, %v1906_v32  ;;  %v391_v38 = vsel %vm6317_vm5, 0, %v390_v12  ;;  %v2205_v32 = vld [vmem:[#allocation2 + $0x4] sm:$0x1]  ;;  %v5466_v12 = vld [vmem:[#allocation5 + $0x80] sm:$0xff] }
  0xf9   : > { %392 = vst [vmem:[#allocation2 + $0x20] sm:$0x1] %v391_v38  ;;  %v2230_v57 = vshll.u32 %v2205_v32, 16  ;;  %v1853_v38 = vadd.f32 %v6269_v63, %v1824_v5  ;;  %3781 = vmatpush.bf16.msrb.mxu3 %v5466_v12 }
  0xfb   : > { %v6311_v25 = vpop.f32.mrf.mxu3  ;;  %v2232_v4 = vrot.slane %v2230_v57, 5  ;;  %v1882_v58 = vadd.f32 %v6297_v14, %v1853_v38  ;;  %v2143_v38 = vld [vmem:[#allocation2 + $0xc] sm:$0x1] }
  0xfd   : > { %v6315_v27 = vpop.f32.mrf.mxu0  ;;  %v6341_v44 = vpop.f32.mrf.mxu2 }
  0xfe   : > { %v1964_v16 = vadd.f32 %v6341_v44, %v1935_v55  ;;  %v2223_v44 = vrot.slane %v2221_v49, 4  ;;  %v425_v49 = vld [vmem:[#allocation2 + $0x2c] sm:$0x1] }
  0xff   : > { %v6360_v41 = vpop.f32.mrf.mxu1 }
 0x100   : > { %v2227_v54 = vor.u32 %v2226_v53, %v2223_v44  ;;  %v1826_v44 = vadd.f32 %v6273_v1, %v1797_v7  ;;  %v2140_v53 = vld [vmem:[#allocation2 + $0x8] sm:$0xf] }
 0x102   : > { %v2228_v9 = vrot.slane %v2227_v54, 4  ;;  %v1855_v52 = vadd.f32 %v6277_v3, %v1826_v44  ;;  %v2149_v44 = vld [vmem:[#allocation2 + $0x14] sm:$0x1] }
 0x103   : > { %v6330_v36 = vpop.f32.mrf.mxu3 }
 0x105   : > { %v6334_v40 = vpop.f32.mrf.mxu0  ;;  %v6363_v45 = vpop.f32.mrf.mxu2 }
 0x107   : > { %v6384_v59 = vpop.f32.mrf.mxu1 }
 0x10b   : > { %v6353_v23 = vpop.f32.mrf.mxu3 }
 0x10d   : > { %v6358_v34 = vpop.f32.mrf.mxu0  ;;  %v6388_v22 = vpop.f32.mrf.mxu2 }
 0x10f   : > { %v1941_v50 = vpop.f32.mrf.mxu1 }
 0x113   : > { %v6372_v17 = vpop.f32.mrf.mxu3 }
 0x115   : > { %v2021_v46 = vpop.f32.mrf.mxu0  ;;  %v1970_v32 = vpop.f32.mrf.mxu2 }
 0x11b   : > { %v1992_v29 = vpop.f32.mrf.mxu3 }
 0x11c   : > { %v1993_v35 = vadd.f32 %v1992_v29, %v1964_v16  ;;  %v1937_v16 = vadd.f32 %v6360_v41, %v1908_v47  ;;  %v426_v41 = vsel %vm6324_vm7, 0, %v425_v49  ;;  %v5458_v29 = vld [vmem:[#allocation5 + $0x40] sm:$0xff]  ;;  %v1911_v47 = vadd.f32 %v6291_v10, %v1882_v58 }
 0x11d   : > { %v2023_v55 = vpop.f32.mrf.mxu0  ;;  %427 = vst [vmem:[#allocation2 + $0x2c] sm:$0x1] %v426_v41  ;;  %3752 = vmatpush.bf16.msra.mxu2 %v5458_v29  ;;  %v1800_v58 = vadd.f32 %v6339_v43, %v6251_v48 }
 0x11e   : > { %v2022_v42 = vadd.f32 %v2021_v46, %v1993_v35  ;;  %v1966_v60 = vadd.f32 %v6363_v45, %v1937_v16  ;;  %v393_v46 = vld [vmem:[#allocation2 + $0x28] sm:$0x1]  ;;  %v2233_v35 = vsel %vm5938_vm2, %v2228_v9, %v2232_v4  ;;  %v1940_v1 = vadd.f32 %v6384_v59, %v1911_v47  ;;  %v396_v59 = vld [vmem:[#allocation2 + $0x30] sm:$0x1]  ;;  %v428_v9 = vld [vmem:[#allocation2 + $0x34] sm:$0x1] }
 0x11f   : > { %v394_v63 = vsel %vm6317_vm5, 0, %v393_v46  ;;  %2340 = vst [vmem:[#allocation4 + $0x4] sm:$0xf] %v2233_v35  ;;  %v1884_v4 = vadd.f32 %v6305_v20, %v1855_v52  ;;  %v1944_v46 = vpop.f32.mrf.mxu1  ;;  %v397_v20 = vsel %vm6317_vm5, 0, %v396_v59  ;;  %v2146_v35 = vld [vmem:[#allocation2 + $0x10] sm:$0xf]  ;;  %v1805_v59 = vadd.f32 %v6339_v43, %v6267_v62 }
 0x120   : > { %v2041_v28 = vmax.f32 %v2022_v42, 0.0  ;;  %395 = vst [vmem:[#allocation2 + $0x28] sm:$0x1] %v394_v63  ;;  %v1969_v10 = vadd.f32 %v6388_v22, %v1940_v1  ;;  %v1829_v22 = vadd.f32 %v6283_v6, %v1800_v58 }
 0x121   : > { %v1913_v63 = vadd.f32 %v6299_v15, %v1884_v4  ;;  %398 = vst [vmem:[#allocation2 + $0x30] sm:$0x1] %v397_v20  ;;  %v1834_v62 = vadd.f32 %v6301_v18, %v1805_v59 }
 0x122   : > { %v2049_v31 = vpack.c.bf16 %v2041_v28, %v2041_v28 }
 0x123   : > { %v1994_v5 = vpop.f32.mrf.mxu3  ;;  %v1942_v47 = vadd.f32 %v1941_v50, %v1913_v63 }
 0x124   : > { %v2058_v14 = vshrl.u32 %v2049_v31, 16  ;;  %v1995_v45 = vadd.f32 %v1994_v5, %v1966_v60  ;;  %v2061_v57 = vshll.u32 %v2049_v31, 16  ;;  %v1973_v5 = vpop.f32.mrf.mxu2 }
 0x125   : > { %v2026_v39 = vpop.f32.mrf.mxu0 }
 0x126   : > { %v2060_v12 = vrot.slane %v2058_v14, 7  ;;  %v2024_v42 = vadd.f32 %v2023_v55, %v1995_v45  ;;  %v429_v14 = vsel %vm6324_vm7, 0, %v428_v9  ;;  %v1858_v45 = vadd.f32 %v6287_v8, %v1829_v22 }
 0x127   : > { %430 = vst [vmem:[#allocation2 + $0x34] sm:$0x1] %v429_v14  ;;  %v1802_v8 = vadd.f32 %v6339_v43, %v6259_v56 }
 0x128   : > { %v2063_v16 = vor.u32 %v2061_v57, %v2060_v12  ;;  %v2064_v28 = vrot.slane %v2060_v12, 4  ;;  %v2042_v54 = vmax.f32 %v2024_v42, 0.0  ;;  %v1887_v15 = vadd.f32 %v6311_v25, %v1858_v45 }
 0x129   : > { %v1971_v42 = vadd.f32 %v1970_v32, %v1942_v47  ;;  %v1831_v25 = vadd.f32 %v6293_v11, %v1802_v8  ;;  %v4823_v47 = vld [vmem:[#allocation4] sm:$0xf] }
 0x12a   : > { %v2141_v55 = vsel %vm6414_vm12, %v2063_v16, %v2140_v53  ;;  %v2144_v3 = vsel %vm6317_vm5, %v2064_v28, %v2143_v38  ;;  %v2050_v7 = vpack.c.bf16 %v2042_v54, %v2042_v54  ;;  %v1916_v32 = vadd.f32 %v6307_v21, %v1887_v15 }
 0x12b   : > { %2142 = vst [vmem:[#allocation2 + $0x8] sm:$0xf] %v2141_v55  ;;  %v1997_v60 = vpop.f32.mrf.mxu3  ;;  %v1860_v11 = vadd.f32 %v6295_v13, %v1831_v25 }
 0x12c   : > { %2145 = vst [vmem:[#allocation2 + $0xc] sm:$0x1] %v2144_v3  ;;  %v2066_v49 = vshrl.u32 %v2050_v7, 16  ;;  %v1998_v31 = vadd.f32 %v1997_v60, %v1969_v10  ;;  %v2069_v48 = vshll.u32 %v2050_v7, 16  ;;  %v6443_v10 = vpop.f32.mrf.mxu1  ;;  %v2152_v3 = vld [vmem:[#allocation2 + $0x18] sm:$0xf]  ;;  %v1945_v21 = vadd.f32 %v1944_v46, %v1916_v32  ;;  %v6450_v9 = vpop.f32.mrf.mxu2 }
 0x12d   : > { %v2028_v41 = vpop.f32.mrf.mxu0  ;;  %v5497_v60 = vld [vmem:[#allocation5 + $0x178] sm:$0xff] }
 0x12e   : > { %v2068_v29 = vrot.slane %v2066_v49, 7  ;;  %v2027_v0 = vadd.f32 %v2026_v39, %v1998_v31  ;;  %v1807_v49 = vadd.f32 %v6339_v43, %v6275_v2  ;;  %v2155_v31 = vld [vmem:[#allocation2 + $0x1c] sm:$0x1]  ;;  %3861 = vmatpush.bf16.msrb.mxu2 %v5497_v60  ;;  %v1889_v2 = vadd.f32 %v6330_v36, %v1860_v11 }
 0x12f   : > { %v1974_v14 = vadd.f32 %v1973_v5, %v1945_v21 }
 0x130   : > { %v2071_v12 = vor.u32 %v2069_v48, %v2068_v29  ;;  %v2072_v6 = vrot.slane %v2068_v29, 4  ;;  %v2043_v57 = vmax.f32 %v2027_v0, 0.0  ;;  %v1836_v36 = vadd.f32 %v6309_v24, %v1807_v49  ;;  %v399_v24 = vld [vmem:[#allocation2 + $0x38] sm:$0x1] }
 0x132   : > { %v2147_v52 = vsel %vm6414_vm12, %v2071_v12, %v2146_v35  ;;  %v2150_v39 = vsel %vm6317_vm5, %v2072_v6, %v2149_v44  ;;  %v2051_v53 = vpack.c.bf16 %v2043_v57, %v2043_v57  ;;  %v2189_v38 = vld [vmem:[#allocation2 + $0x8] sm:$0xf]  ;;  %v1863_v6 = vadd.f32 %v6303_v19, %v1834_v62 }
 0x133   : > { %2148 = vst [vmem:[#allocation2 + $0x10] sm:$0xf] %v2147_v52  ;;  %v1999_v1 = vpop.f32.mrf.mxu3  ;;  %v2350_v28 = vld [vmem:[#allocation2 + $0x8] sm:$0xe]  ;;  %v2351_v4 = vld [vmem:[#allocation2 + $0xc] sm:$0x1] }
 0x134   : > { %2151 = vst [vmem:[#allocation2 + $0x14] sm:$0x1] %v2150_v39  ;;  %v2074_v50 = vshrl.u32 %v2051_v53, 16  ;;  %v2000_v16 = vadd.f32 %v1999_v1, %v1971_v42  ;;  %v2077_v54 = vshll.u32 %v2051_v53, 16  ;;  %v4798_v58 = vrot.slane %v2350_v28, 9  ;;  %v1949_v60 = vpop.f32.mrf.mxu1 }
 0x135   : > { %2197 = vst [vmem:[#allocation4 + $0x24] sm:$0xf] %v2189_v38  ;;  %v2389_v56 = vrot.slane %v2351_v4, 5  ;;  %v2031_v20 = vpop.f32.mrf.mxu0  ;;  %v2431_v22 = vld [vmem:[#allocation2 + $0x8] sm:$0xf]  ;;  %v1892_v19 = vadd.f32 %v6353_v23, %v1863_v6  ;;  %v1918_v28 = vadd.f32 %v6315_v27, %v1889_v2  ;;  %v5496_v4 = vld [vmem:[#allocation5 + $0x170] sm:$0xff] }
 0x136   : > { %v2076_v55 = vrot.slane %v2074_v50, 7  ;;  %v2029_v7 = vadd.f32 %v2028_v41, %v2000_v16  ;;  %v2206_v63 = vld [vmem:[#allocation2 + $0x8] sm:$0xf]  ;;  %2439 = vst [vmem:[#allocation4 + $0xc] sm:$0xf] %v2431_v22  ;;  %3862 = vmatpush.bf16.msrb.mxu2 %v5496_v4 }
 0x137   : > { %v2390_v0 = vsel %vm6379_vm10, %v4798_v58, %v2389_v56  ;;  %v2207_v13 = vld [vmem:[#allocation2 + $0xc] sm:$0x1]  ;;  %v2235_v43 = vshrl.u32 %v2206_v63, 16  ;;  %v2238_v46 = vshll.u32 %v2206_v63, 16  ;;  %v6461_v57 = vld [vmem:[#allocation2 + $0x8] sm:$0xf]  ;;  %v1947_v23 = vadd.f32 %v6443_v10, %v1918_v28  ;;  %v1978_v10 = vpop.f32.mrf.mxu2 }
 0x138   : > { %v2079_v29 = vor.u32 %v2077_v54, %v2076_v55  ;;  %v2080_v41 = vrot.slane %v2076_v55, 4  ;;  %v2044_v48 = vmax.f32 %v2029_v7, 0.0  ;;  %2424 = vst [vmem:[#allocation4 + $0x2c] sm:$0xf] %v2390_v0  ;;  %v4831_v52 = vld [vmem:[#allocation4 + $0x8] sm:$0xf] }
 0x139   : > { %v2244_v39 = vshll.u32 %v2207_v13, 16  ;;  %v2158_v38 = vld [vmem:[#allocation2 + $0x20] sm:$0xf]  ;;  %v2237_v1 = vrot.slane %v2235_v43, 4  ;;  %v2240_v50 = vrot.slane %v2238_v46, 5  ;;  %v5489_v16 = vld [vmem:[#allocation5 + $0x138] sm:$0xff] }
 0x13a   : > { %v2153_v45 = vsel %vm6414_vm12, %v2079_v29, %v2152_v3  ;;  %v2156_v35 = vsel %vm6317_vm5, %v2080_v41, %v2155_v31  ;;  %v2052_v44 = vpack.c.bf16 %v2044_v48, %v2044_v48  ;;  %v2432_v12 = vld [vmem:[#allocation2 + $0x10] sm:$0xf]  ;;  %v431_v54 = vld [vmem:[#allocation2 + $0x3c] sm:$0x1]  ;;  %v2464_v55 = vshrl.u32 %v6461_v57, 16  ;;  %3832 = vmatpush.bf16.msrb.mxu1 %v5489_v16 }
 0x13b   : > { %2154 = vst [vmem:[#allocation2 + $0x18] sm:$0xf] %v2153_v45  ;;  %v2002_v18 = vpop.f32.mrf.mxu3  ;;  %v2161_v3 = vld [vmem:[#allocation2 + $0x24] sm:$0x1]  ;;  %v2241_v7 = vor.u32 %v2240_v50, %v2237_v1  ;;  %v400_v58 = vsel %vm6317_vm5, 0, %v399_v24  ;;  %v432_v56 = vsel %vm6324_vm7, 0, %v431_v54  ;;  %v1976_v29 = vadd.f32 %v6450_v9, %v1947_v23 }
 0x13c   : > { %2157 = vst [vmem:[#allocation2 + $0x1c] sm:$0x1] %v2156_v35  ;;  %v2082_v15 = vshrl.u32 %v2052_v44, 16  ;;  %v2003_v5 = vadd.f32 %v2002_v18, %v1974_v14  ;;  %v5418_v42 = vld [vmem:[#allocation4 + $0x20] sm:$0xf0]  ;;  %v2085_v53 = vshll.u32 %v2052_v44, 16  ;;  %v1865_v45 = vadd.f32 %v6313_v26, %v1836_v36 }
 0x13d   : > { %v4824_v8 = vor.u32 %v5418_v42, %v4823_v47  ;;  %2440 = vst [vmem:[#allocation4 + $0x30] sm:$0xf] %v2432_v12  ;;  %v2467_v21 = vshll.u32 %v6461_v57, 16  ;;  %v2033_v31 = vpop.f32.mrf.mxu0  ;;  %v2242_v22 = vrot.slane %v2241_v7, 4  ;;  %v2246_v63 = vrot.slane %v2244_v39, 5  ;;  %v1951_v7 = vpop.f32.mrf.mxu1 }
 0x13e   : > { %v2084_v25 = vrot.slane %v2082_v15, 7  ;;  %v2032_v32 = vadd.f32 %v2031_v20, %v2003_v5  ;;  %401 = vst [vmem:[#allocation2 + $0x38] sm:$0x1] %v400_v58  ;;  %v6474_v41 = vld [vmem:[#allocation2 + $0x10] sm:$0xf]  ;;  %v6483_v35 = vrot.slane %v2464_v55, 4  ;;  %v1921_v57 = vadd.f32 %v6334_v40, %v1892_v19 }
 0x13f   : > { %3724 = vmatmul.bf16.vlgmr.msra.gmra.mxu1 %v4824_v8  ;;  %v5419_v11 = vld [vmem:[#allocation4 + $0x28] sm:$0xf0]  ;;  %433 = vst [vmem:[#allocation2 + $0x3c] sm:$0x1] %v432_v56  ;;  %v2190_v13 = vld [vmem:[#allocation2 + $0x10] sm:$0xf]  ;;  %v2247_v46 = vsel %vm5938_vm2, %v2242_v22, %v2246_v63  ;;  %v1980_v63 = vpop.f32.mrf.mxu2 }
 0x140   : > { %v2087_v27 = vor.u32 %v2085_v53, %v2084_v25  ;;  %v2088_v59 = vrot.slane %v2084_v25, 4  ;;  %v2045_v49 = vmax.f32 %v2032_v32, 0.0  ;;  %v4832_v20 = vor.u32 %v5419_v11, %v4831_v52  ;;  %v5415_v2 = vld [vmem:[#allocation4 + $0xc] sm:$0xf]  ;;  %v2352_v9 = vld [vmem:[#allocation2 + $0x10] sm:$0xe] }
 0x141   : > { %v6485_v6 = vrot.slane %v2467_v21, 5  ;;  %v2164_v15 = vld [vmem:[#allocation2 + $0x28] sm:$0xf]  ;;  %v2167_v5 = vld [vmem:[#allocation2 + $0x2c] sm:$0x1]  ;;  %v4799_v36 = vrot.slane %v2352_v9, 9  ;;  %v1950_v50 = vadd.f32 %v1949_v60, %v1921_v57 }
 0x142   : > { %v2159_v48 = vsel %vm6414_vm12, %v2087_v27, %v2158_v38  ;;  %v2162_v0 = vsel %vm6317_vm5, %v2088_v59, %v2161_v3  ;;  %v2053_v62 = vpack.c.bf16 %v2045_v49, %v2045_v49  ;;  %3782 = vmatmul.bf16.vlgmr.msrb.gmra.mxu3 %v4832_v20  ;;  %v2191_v14 = vld [vmem:[#allocation2 + $0x18] sm:$0xf]  ;;  %2341 = vst [vmem:[#allocation4 + $0x28] sm:$0xf] %v2247_v46  ;;  %v2353_v52 = vld [vmem:[#allocation2 + $0x14] sm:$0x1] }
 0x143   : > { %2160 = vst [vmem:[#allocation2 + $0x20] sm:$0xf] %v2159_v48  ;;  %v2004_v43 = vpop.f32.mrf.mxu3  ;;  %v2354_v26 = vld [vmem:[#allocation2 + $0x18] sm:$0xe]  ;;  %v1894_v38 = vadd.f32 %v6372_v17, %v1865_v45  ;;  %v2478_v8 = vshrl.u32 %v6474_v41, 16  ;;  %v2481_v1 = vshll.u32 %v6474_v41, 16  ;;  %v1979_v24 = vadd.f32 %v1978_v10, %v1950_v50 }
 0x144   : > { %2163 = vst [vmem:[#allocation2 + $0x24] sm:$0x1] %v2162_v0  ;;  %v2090_v44 = vshrl.u32 %v2053_v62, 16  ;;  %v2005_v47 = vadd.f32 %v2004_v43, %v1976_v29  ;;  %v4833_v12 = vld [vmem:[#allocation4 + $0x2c] sm:$0xf0]  ;;  %v2093_v18 = vshll.u32 %v2053_v62, 16 }
 0x145   : > { %v4836_v42 = vor.u32 %v5415_v2, %v4833_v12  ;;  %2198 = vst [vmem:[#allocation4 + $0x48] sm:$0xf] %v2190_v13  ;;  %v2355_v40 = vld [vmem:[#allocation2 + $0x1c] sm:$0x1]  ;;  %v2393_v25 = vrot.slane %v2353_v52, 5  ;;  %v5488_v32 = vld [vmem:[#allocation5 + $0x130] sm:$0xff]  ;;  %v1923_v59 = vadd.f32 %v6358_v34, %v1894_v38  ;;  %v2036_v49 = vpop.f32.mrf.mxu0 }
 0x146   : > { %v2092_v39 = vrot.slane %v2090_v44, 7  ;;  %v2034_v53 = vadd.f32 %v2033_v31, %v2005_v47  ;;  %2199 = vst [vmem:[#allocation4 + $0x6c] sm:$0xf] %v2191_v14  ;;  %v4800_v54 = vrot.slane %v2354_v26, 9  ;;  %v2397_v4 = vrot.slane %v2355_v40, 5  ;;  %3833 = vmatpush.bf16.msrb.mxu1 %v5488_v32  ;;  %v5487_v32 = vld [vmem:[#allocation5 + $0x128] sm:$0xff] }
 0x147   : > { %3811 = vmatmul.bf16.vlgmr.msrb.gmra.mxu0 %v4836_v42  ;;  %v402_v55 = vld [vmem:[#allocation2 + $0x40] sm:$0x1]  ;;  %v434_v3 = vld [vmem:[#allocation2 + $0x44] sm:$0x1]  ;;  %v5414_v23 = vld [vmem:[#allocation4 + $0x4] sm:$0xf]  ;;  %v2394_v60 = vsel %vm6379_vm10, %v4799_v36, %v2393_v25  ;;  %v1952_v62 = vadd.f32 %v1951_v7, %v1923_v59 }
 0x148   : > { %v2095_v16 = vor.u32 %v2093_v18, %v2092_v39  ;;  %v2096_v19 = vrot.slane %v2092_v39, 4  ;;  %v2046_v28 = vmax.f32 %v2034_v53, 0.0  ;;  %v6497_v27 = vld [vmem:[#allocation2 + $0x10] sm:$0xf]  ;;  %v2398_v21 = vsel %vm6379_vm10, %v4800_v54, %v2397_v4  ;;  %v2433_v34 = vld [vmem:[#allocation2 + $0x18] sm:$0xf] }
 0x149   : > { %v403_v31 = vsel %vm6317_vm5, 0, %v402_v55  ;;  %v435_v20 = vsel %vm6324_vm7, 0, %v434_v3  ;;  %v2208_v22 = vld [vmem:[#allocation2 + $0x10] sm:$0xf]  ;;  %v4825_v48 = vld [vmem:[#allocation4 + $0x24] sm:$0xf0]  ;;  %v1981_v12 = vadd.f32 %v1980_v63, %v1952_v62 }
 0x14a   : > { %v2165_v17 = vsel %vm6414_vm12, %v2095_v16, %v2164_v15  ;;  %v2168_v58 = vsel %vm6317_vm5, %v2096_v19, %v2167_v5  ;;  %v2054_v56 = vpack.c.bf16 %v2046_v28, %v2046_v28  ;;  %v2170_v2 = vld [vmem:[#allocation2 + $0x30] sm:$0xf]  ;;  %v2173_v13 = vld [vmem:[#allocation2 + $0x34] sm:$0x1]  ;;  %v4828_v43 = vor.u32 %v5414_v23, %v4825_v48  ;;  %2425 = vst [vmem:[#allocation4 + $0x50] sm:$0xf] %v2394_v60 }
 0x14b   : > { %2166 = vst [vmem:[#allocation2 + $0x28] sm:$0xf] %v2165_v17  ;;  %v2007_v11 = vpop.f32.mrf.mxu3  ;;  %v2434_v14 = vld [vmem:[#allocation2 + $0x20] sm:$0xf]  ;;  %v2209_v9 = vld [vmem:[#allocation2 + $0x14] sm:$0x1]  ;;  %3834 = vmatpush.bf16.msrb.mxu1 %v5487_v32 }
 0x14c   : > { %2169 = vst [vmem:[#allocation2 + $0x2c] sm:$0x1] %v2168_v58  ;;  %v2098_v29 = vshrl.u32 %v2054_v56, 16  ;;  %v2101_v10 = vshll.u32 %v2054_v56, 16  ;;  %v2008_v0 = vadd.f32 %v2007_v11, %v1979_v24  ;;  %v4859_v46 = vld [vmem:[#allocation4 + $0x48] sm:$0xf]  ;;  %3753 = vmatmul.bf16.vlgmr.msra.gmra.mxu2 %v4828_v43 }
 0x14d   : > { %v5427_v33 = vld [vmem:[#allocation4 + $0x68] sm:$0xf0]  ;;  %2426 = vst [vmem:[#allocation4 + $0x74] sm:$0xf] %v2398_v21  ;;  %v2249_v47 = vshrl.u32 %v2208_v22, 16  ;;  %v2705_v5 = vshrl.u32 %v6497_v27, 16 }
 0x14e   : > { %v2100_v45 = vrot.slane %v2098_v29, 7  ;;  %v2037_v44 = vadd.f32 %v2036_v49, %v2008_v0  ;;  %v4860_v57 = vor.u32 %v5427_v33, %v4859_v46  ;;  %404 = vst [vmem:[#allocation2 + $0x40] sm:$0x1] %v403_v31  ;;  %v2210_v18 = vld [vmem:[#allocation2 + $0x18] sm:$0xf]  ;;  %v2252_v36 = vshll.u32 %v2208_v22, 16  ;;  %v2038_v49 = vpop.f32.mrf.mxu0 }
 0x14f   : > { %v2211_v15 = vld [vmem:[#allocation2 + $0x1c] sm:$0x1]  ;;  %436 = vst [vmem:[#allocation2 + $0x44] sm:$0x1] %v435_v20  ;;  %v2251_v26 = vrot.slane %v2249_v47, 4  ;;  %v2263_v38 = vshrl.u32 %v2210_v18, 16 }
 0x150   : > { %v2103_v42 = vor.u32 %v2101_v10, %v2100_v45  ;;  %v2104_v52 = vrot.slane %v2100_v45, 4  ;;  %v2047_v39 = vmax.f32 %v2037_v44, 0.0  ;;  %v5495_v53 = vld [vmem:[#allocation5 + $0x168] sm:$0xff]  ;;  %3729 = vmatmul.bf16.gmra.mxu1 %v4860_v57  ;;  %2441 = vst [vmem:[#allocation4 + $0x54] sm:$0xf] %v2433_v34  ;;  %v2266_v50 = vshll.u32 %v2210_v18, 16 }
 0x151   : > { %v6507_v40 = vld [vmem:[#allocation2 + $0x18] sm:$0xf]  ;;  %2442 = vst [vmem:[#allocation4 + $0x78] sm:$0xf] %v2434_v14  ;;  %v2258_v25 = vshll.u32 %v2209_v9, 16  ;;  %3863 = vmatpush.bf16.msrb.mxu2 %v5495_v53  ;;  %v2254_v54 = vrot.slane %v2252_v36, 5 }
 0x152   : > { %v2171_v16 = vsel %vm6414_vm12, %v2103_v42, %v2170_v2  ;;  %v2174_v19 = vsel %vm6317_vm5, %v2104_v52, %v2173_v13  ;;  %v2055_v28 = vpack.c.bf16 %v2047_v39, %v2047_v39  ;;  %v2265_v4 = vrot.slane %v2263_v38, 4  ;;  %v4867_v58 = vld [vmem:[#allocation4 + $0x50] sm:$0xf]  ;;  %v2176_v60 = vld [vmem:[#allocation2 + $0x38] sm:$0xf]  ;;  %v5494_v22 = vld [vmem:[#allocation5 + $0x160] sm:$0xff] }
 0x153   : > { %2172 = vst [vmem:[#allocation2 + $0x30] sm:$0xf] %v2171_v16  ;;  %v2009_v24 = vpop.f32.mrf.mxu3  ;;  %v2268_v55 = vrot.slane %v2266_v50, 5  ;;  %v2272_v3 = vshll.u32 %v2211_v15, 16  ;;  %v2708_v7 = vshll.u32 %v6497_v27, 16  ;;  %v2719_v23 = vshrl.u32 %v6507_v40, 16 }
 0x154   : > { %2175 = vst [vmem:[#allocation2 + $0x34] sm:$0x1] %v2174_v19  ;;  %v2106_v17 = vshrl.u32 %v2055_v28, 16  ;;  %v2010_v56 = vadd.f32 %v2009_v24, %v1981_v12  ;;  %v2179_v59 = vld [vmem:[#allocation2 + $0x3c] sm:$0x1]  ;;  %v2255_v21 = vor.u32 %v2254_v54, %v2251_v26  ;;  %v2109_v29 = vshll.u32 %v2055_v28, 16 }
 0x155   : > { %v5428_v11 = vld [vmem:[#allocation4 + $0x70] sm:$0xf0]  ;;  %v2269_v31 = vor.u32 %v2268_v55, %v2265_v4  ;;  %v2192_v20 = vld [vmem:[#allocation2 + $0x20] sm:$0xf]  ;;  %v2193_v0 = vld [vmem:[#allocation2 + $0x28] sm:$0xf]  ;;  %3864 = vmatpush.bf16.msrb.mxu2 %v5494_v22 }
 0x156   : > { %v2108_v63 = vrot.slane %v2106_v17, 7  ;;  %v4868_v10 = vor.u32 %v5428_v11, %v4867_v58  ;;  %v2039_v48 = vadd.f32 %v2038_v49, %v2010_v56  ;;  %v5505_v34 = vld [vmem:[#allocation5 + $0x1b8] sm:$0xff]  ;;  %v2256_v62 = vrot.slane %v2255_v21, 4  ;;  %2200 = vst [vmem:[#allocation4 + $0x90] sm:$0xf] %v2192_v20  ;;  %v5486_v28 = vld [vmem:[#allocation5 + $0x120] sm:$0xff] }
 0x157   : > { %v2260_v2 = vrot.slane %v2258_v25, 5  ;;  %v2270_v13 = vrot.slane %v2269_v31, 4  ;;  %v2274_v43 = vrot.slane %v2272_v3, 5  ;;  %v5424_v45 = vld [vmem:[#allocation4 + $0x54] sm:$0xf]  ;;  %3890 = vmatpush.bf16.msra.mxu3 %v5505_v34  ;;  %3835 = vmatpush.bf16.msrb.mxu1 %v5486_v28  ;;  %v5493_v56 = vld [vmem:[#allocation5 + $0x158] sm:$0xff] }
 0x158   : > { %v2111_v46 = vor.u32 %v2109_v29, %v2108_v63  ;;  %v2112_v14 = vrot.slane %v2108_v63, 4  ;;  %3787 = vmatmul.bf16.gmra.mxu3 %v4868_v10  ;;  %v2048_v9 = vmax.f32 %v2039_v48, 0.0  ;;  %2201 = vst [vmem:[#allocation4 + $0xb4] sm:$0xf] %v2193_v0  ;;  %v4869_v44 = vld [vmem:[#allocation4 + $0x74] sm:$0xf0] }
 0x159   : > { %v2261_v33 = vsel %vm5938_vm2, %v2256_v62, %v2260_v2  ;;  %v2275_v47 = vsel %vm5938_vm2, %v2270_v13, %v2274_v43  ;;  %v2356_v12 = vld [vmem:[#allocation2 + $0x20] sm:$0xe]  ;;  %v2357_v57 = vld [vmem:[#allocation2 + $0x24] sm:$0x1]  ;;  %v4872_v52 = vor.u32 %v5424_v45, %v4869_v44  ;;  %v2358_v39 = vld [vmem:[#allocation2 + $0x28] sm:$0xe]  ;;  %3865 = vmatpush.bf16.msrb.mxu2 %v5493_v56 }
 0x15a   : > { %v2177_v18 = vsel %vm6414_vm12, %v2111_v46, %v2176_v60  ;;  %v2180_v15 = vsel %vm6317_vm5, %v2112_v14, %v2179_v59  ;;  %v2056_v42 = vpack.c.bf16 %v2048_v9, %v2048_v9  ;;  %2342 = vst [vmem:[#allocation4 + $0x4c] sm:$0xf] %v2261_v33  ;;  %v2359_v53 = vld [vmem:[#allocation2 + $0x2c] sm:$0x1]  ;;  %v4801_v26 = vrot.slane %v2356_v12, 9  ;;  %v5504_v25 = vld [vmem:[#allocation5 + $0x1b0] sm:$0xff] }
 0x15b   : > { %2178 = vst [vmem:[#allocation2 + $0x38] sm:$0xf] %v2177_v18  ;;  %v2401_v36 = vrot.slane %v2357_v57, 5  ;;  %v4802_v38 = vrot.slane %v2358_v39, 9  ;;  %v2405_v50 = vrot.slane %v2359_v53, 5  ;;  %3816 = vmatmul.bf16.gmra.mxu0 %v4872_v52  ;;  %3891 = vmatpush.bf16.msra.mxu3 %v5504_v25  ;;  %v6529_v22 = vrot.slane %v2719_v23, 4 }
 0x15c   : > { %2181 = vst [vmem:[#allocation2 + $0x3c] sm:$0x1] %v2180_v15  ;;  %v2114_v16 = vshrl.u32 %v2056_v42, 16  ;;  %v2117_v19 = vshll.u32 %v2056_v42, 16  ;;  %v2182_v32 = vld [vmem:[#allocation2 + $0x40] sm:$0xf] }
 0x15d   : > { %v2185_v24 = vld [vmem:[#allocation2 + $0x44] sm:$0x1]  ;;  %2343 = vst [vmem:[#allocation4 + $0x70] sm:$0xf] %v2275_v47  ;;  %v2402_v54 = vsel %vm6379_vm10, %v4801_v26, %v2401_v36  ;;  %v2406_v4 = vsel %vm6379_vm10, %v4802_v38, %v2405_v50  ;;  %v2435_v55 = vld [vmem:[#allocation2 + $0x28] sm:$0xf] }
 0x15e   : > { %v2436_v3 = vld [vmem:[#allocation2 + $0x30] sm:$0xf]  ;;  %v2116_v17 = vrot.slane %v2114_v16, 7  ;;  %v4895_v58 = vld [vmem:[#allocation4 + $0x90] sm:$0xf]  ;;  %v2722_v63 = vshll.u32 %v6507_v40, 16 }
 0x15f   : > { %2427 = vst [vmem:[#allocation4 + $0x98] sm:$0xf] %v2402_v54  ;;  %v5436_v60 = vld [vmem:[#allocation4 + $0xb0] sm:$0xf0]  ;;  %v2212_v59 = vld [vmem:[#allocation2 + $0x20] sm:$0xf] }
 0x160   : > { %2428 = vst [vmem:[#allocation4 + $0xbc] sm:$0xf] %v2406_v4  ;;  %v2119_v49 = vor.u32 %v2117_v19, %v2116_v17  ;;  %v2120_v11 = vrot.slane %v2116_v17, 4  ;;  %v4896_v21 = vor.u32 %v5436_v60, %v4895_v58  ;;  %v2213_v31 = vld [vmem:[#allocation2 + $0x24] sm:$0x1]  ;;  %v2277_v20 = vshrl.u32 %v2212_v59, 16 }
 0x161   : > { %2443 = vst [vmem:[#allocation4 + $0x9c] sm:$0xf] %v2435_v55  ;;  %v2214_v29 = vld [vmem:[#allocation2 + $0x28] sm:$0xf]  ;;  %v5423_v0 = vld [vmem:[#allocation4 + $0x4c] sm:$0xf] }
 0x162   : > { %2444 = vst [vmem:[#allocation4 + $0xc0] sm:$0xf] %v2436_v3  ;;  %v2183_v10 = vsel %vm6414_vm12, %v2119_v49, %v2182_v32  ;;  %v2186_v48 = vsel %vm6317_vm5, %v2120_v11, %v2185_v24  ;;  %3734 = vmatmul.bf16.gmra.mxu1 %v4896_v21  ;;  %v2215_v34 = vld [vmem:[#allocation2 + $0x2c] sm:$0x1]  ;;  %v2279_v62 = vrot.slane %v2277_v20, 4  ;;  %v2280_v2 = vshll.u32 %v2212_v59, 16 }
 0x163   : > { %v5513_v13 = vld [vmem:[#allocation5 + $0x1f8] sm:$0xff]  ;;  %v5503_v43 = vld [vmem:[#allocation5 + $0x1a8] sm:$0xff]  ;;  %2184 = vst [vmem:[#allocation2 + $0x40] sm:$0xf] %v2183_v10  ;;  %v2286_v23 = vshll.u32 %v2213_v31, 16  ;;  %v2291_v46 = vshrl.u32 %v2214_v29, 16 }
 0x164   : > { %v2294_v14 = vshll.u32 %v2214_v29, 16  ;;  %v2300_v9 = vshll.u32 %v2215_v34, 16  ;;  %2187 = vst [vmem:[#allocation2 + $0x44] sm:$0x1] %v2186_v48  ;;  %v4861_v45 = vld [vmem:[#allocation4 + $0x6c] sm:$0xf0]  ;;  %3919 = vmatpush.bf16.msra.mxu0 %v5513_v13  ;;  %3892 = vmatpush.bf16.msra.mxu3 %v5503_v43 }
 0x165   : > { %v2282_v44 = vrot.slane %v2280_v2, 5  ;;  %v4864_v33 = vor.u32 %v5423_v0, %v4861_v45  ;;  %v2288_v12 = vrot.slane %v2286_v23, 5  ;;  %v2293_v57 = vrot.slane %v2291_v46, 4  ;;  %v5485_v15 = vld [vmem:[#allocation5 + $0x118] sm:$0xff]  ;;  %v2194_v53 = vld [vmem:[#allocation2 + $0x30] sm:$0xf] }
 0x166   : > { %v4903_v47 = vld [vmem:[#allocation4 + $0x98] sm:$0xf]  ;;  %v2296_v18 = vrot.slane %v2294_v14, 5  ;;  %v2302_v39 = vrot.slane %v2300_v9, 5  ;;  %v5502_v26 = vld [vmem:[#allocation5 + $0x1a0] sm:$0xff]  ;;  %3836 = vmatpush.bf16.msrb.mxu1 %v5485_v15  ;;  %v5492_v25 = vld [vmem:[#allocation5 + $0x150] sm:$0xff] }
 0x167   : > { %v5437_v42 = vld [vmem:[#allocation4 + $0xb8] sm:$0xf0]  ;;  %v2283_v52 = vor.u32 %v2282_v44, %v2279_v62  ;;  %3758 = vmatmul.bf16.gmra.mxu2 %v4864_v33  ;;  %v2195_v16 = vld [vmem:[#allocation2 + $0x38] sm:$0xf]  ;;  %2202 = vst [vmem:[#allocation4 + $0xd8] sm:$0xf] %v2194_v53 }
 0x168   : > { %v4904_v36 = vor.u32 %v5437_v42, %v4903_v47  ;;  %v5433_v38 = vld [vmem:[#allocation4 + $0x9c] sm:$0xf]  ;;  %v2297_v50 = vor.u32 %v2296_v18, %v2293_v57  ;;  %3920 = vmatpush.bf16.msra.mxu0 %v5512_v61  ;;  %2203 = vst [vmem:[#allocation4 + $0xfc] sm:$0xf] %v2195_v16  ;;  %3893 = vmatpush.bf16.msra.mxu3 %v5502_v26  ;;  %v5511_v54 = vld [vmem:[#allocation5 + $0x1e8] sm:$0xff]  ;;  %v5484_v31 = vld [vmem:[#allocation5 + $0x110] sm:$0xff] }
 0x169   : > { %v4905_v19 = vld [vmem:[#allocation4 + $0xbc] sm:$0xf0]  ;;  %v2284_v28 = vrot.slane %v2283_v52, 4  ;;  %v2361_v55 = vld [vmem:[#allocation2 + $0x34] sm:$0x1]  ;;  %3866 = vmatpush.bf16.msrb.mxu2 %v5492_v25  ;;  %v5501_v21 = vld [vmem:[#allocation5 + $0x198] sm:$0xff]  ;;  %v2470_v61 = vor.u32 %v6485_v6, %v6483_v35 }
 0x16a   : > { %3792 = vmatmul.bf16.gmra.mxu3 %v4904_v36  ;;  %v4908_v32 = vor.u32 %v5433_v38, %v4905_v19  ;;  %v2298_v24 = vrot.slane %v2297_v50, 4  ;;  %v2360_v4 = vld [vmem:[#allocation2 + $0x30] sm:$0xe]  ;;  %v2362_v17 = vld [vmem:[#allocation2 + $0x38] sm:$0xe]  ;;  %v2409_v60 = vrot.slane %v2361_v55, 5  ;;  %3837 = vmatpush.bf16.msrb.mxu1 %v5484_v31 }
 0x16b   : > { %v2289_v3 = vsel %vm5938_vm2, %v2284_v28, %v2288_v12  ;;  %v2363_v58 = vld [vmem:[#allocation2 + $0x3c] sm:$0x1]  ;;  %v4803_v56 = vrot.slane %v2360_v4, 9  ;;  %v4804_v49 = vrot.slane %v2362_v17, 9  ;;  %v5510_v29 = vld [vmem:[#allocation5 + $0x1e0] sm:$0xff]  ;;  %v5500_v48 = vld [vmem:[#allocation5 + $0x190] sm:$0xff] }
 0x16c   : > { %v2303_v59 = vsel %vm5938_vm2, %v2298_v24, %v2302_v39  ;;  %2344 = vst [vmem:[#allocation4 + $0x94] sm:$0xf] %v2289_v3  ;;  %v2413_v11 = vrot.slane %v2363_v58, 5  ;;  %3821 = vmatmul.bf16.gmra.mxu0 %v4908_v32  ;;  %v2437_v10 = vld [vmem:[#allocation2 + $0x38] sm:$0xf]  ;;  %3894 = vmatpush.bf16.msra.mxu3 %v5501_v21  ;;  %v6548_v33 = vrot.slane %v2722_v63, 5 }
 0x16d   : > { %2345 = vst [vmem:[#allocation4 + $0xb8] sm:$0xf] %v2303_v59  ;;  %v2410_v20 = vsel %vm6379_vm10, %v4803_v56, %v2409_v60  ;;  %3921 = vmatpush.bf16.msra.mxu0 %v5511_v54  ;;  %v2438_v34 = vld [vmem:[#allocation2 + $0x40] sm:$0xf]  ;;  %v2216_v62 = vld [vmem:[#allocation2 + $0x30] sm:$0xf] }
 0x16e   : > { %v2414_v0 = vsel %vm6379_vm10, %v4804_v49, %v2413_v11  ;;  %2429 = vst [vmem:[#allocation4 + $0xe0] sm:$0xf] %v2410_v20  ;;  %v4931_v2 = vld [vmem:[#allocation4 + $0xd8] sm:$0xf]  ;;  %v2217_v13 = vld [vmem:[#allocation2 + $0x34] sm:$0x1]  ;;  %v2725_v56 = vor.u32 %v6548_v33, %v6529_v22 }
 0x16f   : > { %2430 = vst [vmem:[#allocation4 + $0x104] sm:$0xf] %v2414_v0  ;;  %v2448_v43 = vld [vmem:[#allocation2 + $0xc] sm:$0x1]  ;;  %v2218_v46 = vld [vmem:[#allocation2 + $0x38] sm:$0xf] }
 0x170   : > { %v5445_v23 = vld [vmem:[#allocation4 + $0xf8] sm:$0xf0]  ;;  %2445 = vst [vmem:[#allocation4 + $0xe4] sm:$0xf] %v2437_v10  ;;  %v2219_v9 = vld [vmem:[#allocation2 + $0x3c] sm:$0x1]  ;;  %3895 = vmatpush.bf16.msra.mxu3 %v5500_v48 }
 0x171   : > { %v4932_v14 = vor.u32 %v5445_v23, %v4931_v2  ;;  %2446 = vst [vmem:[#allocation4 + $0x108] sm:$0xf] %v2438_v34  ;;  %v2305_v45 = vshrl.u32 %v2216_v62, 16  ;;  %v2308_v44 = vshll.u32 %v2216_v62, 16  ;;  %3922 = vmatpush.bf16.msra.mxu0 %v5510_v29  ;;  %v2314_v47 = vshll.u32 %v2217_v13, 16  ;;  %v5483_v18 = vld [vmem:[#allocation5 + $0x108] sm:$0xff] }
 0x172   : > { %v2319_v12 = vshrl.u32 %v2218_v46, 16  ;;  %v2322_v57 = vshll.u32 %v2218_v46, 16  ;;  %v5491_v15 = vld [vmem:[#allocation5 + $0x148] sm:$0xff]  ;;  %v5509_v53 = vld [vmem:[#allocation5 + $0x1d8] sm:$0xff]  ;;  %v2328_v40 = vshll.u32 %v2219_v9, 16  ;;  %3838 = vmatpush.bf16.msrb.mxu1 %v5483_v18  ;;  %v5482_v19 = vld [vmem:[#allocation5 + $0x100] sm:$0xff] }
 0x173   : > { %v5432_v42 = vld [vmem:[#allocation4 + $0x94] sm:$0xf]  ;;  %3739 = vmatmul.bf16.gmra.mxu1 %v4932_v14  ;;  %v2307_v52 = vrot.slane %v2305_v45, 4  ;;  %v2310_v39 = vrot.slane %v2308_v44, 5  ;;  %v5499_v26 = vld [vmem:[#allocation5 + $0x188] sm:$0xff]  ;;  %v2316_v38 = vrot.slane %v2314_v47, 5  ;;  %3867 = vmatpush.bf16.msrb.mxu2 %v5491_v15 }
 0x174   : > { %v4897_v36 = vld [vmem:[#allocation4 + $0xb4] sm:$0xf0]  ;;  %v2321_v35 = vrot.slane %v2319_v12, 4  ;;  %v2324_v6 = vrot.slane %v2322_v57, 5  ;;  %v5508_v28 = vld [vmem:[#allocation5 + $0x1d0] sm:$0xff]  ;;  %v2471_v25 = vrot.slane %v2470_v61, 4  ;;  %3896 = vmatpush.bf16.msra.mxu3 %v5499_v26 }
 0x175   : > { %v4900_v63 = vor.u32 %v5432_v42, %v4897_v36  ;;  %v4939_v50 = vld [vmem:[#allocation4 + $0xe0] sm:$0xf]  ;;  %v2311_v16 = vor.u32 %v2310_v39, %v2307_v52  ;;  %v2473_v32 = vshll.u32 %v2448_v43, 16  ;;  %v6550_v24 = vld [vmem:[#allocation2 + $0x8] sm:$0xe]  ;;  %3923 = vmatpush.bf16.msra.mxu0 %v5509_v53  ;;  %v2480_v17 = vrot.slane %v2478_v8, 4 }
 0x176   : > { %v2691_v54 = vld [vmem:[#allocation2 + $0x1c] sm:$0x1]  ;;  %v5446_v4 = vld [vmem:[#allocation4 + $0x100] sm:$0xf0]  ;;  %v2325_v55 = vor.u32 %v2324_v6, %v2321_v35  ;;  %v2483_v58 = vrot.slane %v2481_v1, 5  ;;  %v2330_v10 = vrot.slane %v2328_v40, 5  ;;  %3839 = vmatpush.bf16.msrb.mxu1 %v5482_v19 }
 0x177   : > { %v2450_v3 = vld [vmem:[#allocation2 + $0x14] sm:$0x1]  ;;  %v4940_v60 = vor.u32 %v5446_v4, %v4939_v50  ;;  %v2312_v49 = vrot.slane %v2311_v16, 4  ;;  %v2475_v11 = vrot.slane %v2473_v32, 5  ;;  %3763 = vmatmul.bf16.gmra.mxu2 %v4900_v63  ;;  %v2707_v41 = vrot.slane %v2705_v5, 4  ;;  %v5507_v62 = vld [vmem:[#allocation5 + $0x1c8] sm:$0xff] }
 0x178   : > { %v5442_v59 = vld [vmem:[#allocation4 + $0xe4] sm:$0xf]  ;;  %v2487_v21 = vshll.u32 %v2450_v3, 16  ;;  %v4941_v20 = vld [vmem:[#allocation4 + $0x104] sm:$0xf0]  ;;  %v2326_v29 = vrot.slane %v2325_v55, 4  ;;  %v2484_v48 = vor.u32 %v2483_v58, %v2480_v17 }
 0x179   : > { %v5498_v31 = vld [vmem:[#allocation5 + $0x180] sm:$0xff]  ;;  %v4944_v8 = vor.u32 %v5442_v59, %v4941_v20  ;;  %v2317_v1 = vsel %vm5938_vm2, %v2312_v49, %v2316_v38  ;;  %v2476_v22 = vsel %vm5938_vm2, %v2471_v25, %v2475_v11  ;;  %3924 = vmatpush.bf16.msra.mxu0 %v5508_v28  ;;  %v2673_v23 = vld [vmem:[#allocation2 + $0x18] sm:$0xf]  ;;  %v2710_v5 = vrot.slane %v2708_v7, 5  ;;  %v2592_v12 = vld [vmem:[#allocation2 + $0xc] sm:$0x1] }
 0x17a   : > { %v5490_v0 = vld [vmem:[#allocation5 + $0x140] sm:$0xff]  ;;  %v2489_v34 = vrot.slane %v2487_v21, 5  ;;  %3797 = vmatmul.bf16.gmra.mxu3 %v4940_v60  ;;  %v2331_v13 = vsel %vm5938_vm2, %v2326_v29, %v2330_v10  ;;  %2346 = vst [vmem:[#allocation4 + $0xdc] sm:$0xf] %v2317_v1  ;;  %v2485_v43 = vrot.slane %v2484_v48, 4  ;;  %v2726_v9 = vrot.slane %v2725_v56, 4 }
 0x17b   : > { %v2672_v2 = vld [vmem:[#allocation2 + $0x10] sm:$0xf]  ;;  %v2689_v46 = vld [vmem:[#allocation2 + $0x14] sm:$0x1]  ;;  %2347 = vst [vmem:[#allocation4 + $0x100] sm:$0xf] %v2331_v13  ;;  %3897 = vmatpush.bf16.msra.mxu3 %v5498_v31  ;;  %3868 = vmatpush.bf16.msrb.mxu2 %v5490_v0  ;;  %v2711_v47 = vor.u32 %v2710_v5, %v2707_v41 }
 0x17c   : > { %v2714_v14 = vshll.u32 %v2689_v46, 16  ;;  %v2728_v45 = vshll.u32 %v2691_v54, 16  ;;  %v4805_v44 = vrot.slane %v6550_v24, 9  ;;  %v2490_v61 = vsel %vm5938_vm2, %v2485_v43, %v2489_v34  ;;  %2583 = vst [vmem:[#allocation4 + $0x10] sm:$0xf] %v2476_v22  ;;  %v5506_v33 = vld [vmem:[#allocation5 + $0x1c0] sm:$0xff]  ;;  %3826 = vmatmul.bf16.gmra.mxu0 %v4944_v8 }
 0x17d   : > { %v2593_v57 = vld [vmem:[#allocation2 + $0x10] sm:$0xe]  ;;  %2584 = vst [vmem:[#allocation4 + $0x34] sm:$0xf] %v2490_v61  ;;  %v2594_v18 = vld [vmem:[#allocation2 + $0x14] sm:$0x1]  ;;  %3925 = vmatpush.bf16.msra.mxu0 %v5507_v62 }
 0x17e   : > { %v2716_v27 = vrot.slane %v2714_v14, 5  ;;  %v2730_v7 = vrot.slane %v2728_v45, 5  ;;  %2680 = vst [vmem:[#allocation4 + $0x18] sm:$0xf] %v2672_v2  ;;  %v2712_v15 = vrot.slane %v2711_v47, 4  ;;  %v2625_v42 = vrot.slane %v2592_v12, 5 }
 0x17f   : > { %v4806_v52 = vrot.slane %v2593_v57, 9  ;;  %v2629_v39 = vrot.slane %v2594_v18, 5  ;;  %2681 = vst [vmem:[#allocation4 + $0x3c] sm:$0xf] %v2673_v23  ;;  %v5533_v26 = vld [vmem:[%s6775_s5 + $0x38] sm:$0xff]  ;;  %v5521_v36 = vld [vmem:[#allocation5 + $0x238] sm:$0xff] }
 0x180   : > { %v2731_v53 = vsel %vm5938_vm2, %v2726_v9, %v2730_v7  ;;  %v2451_v38 = vld [vmem:[#allocation2 + $0x18] sm:$0xf]  ;;  %v2717_v35 = vsel %vm5938_vm2, %v2712_v15, %v2716_v27  ;;  %v2626_v6 = vsel %vm6379_vm10, %v4805_v44, %v2625_v42  ;;  %v2452_v63 = vld [vmem:[#allocation2 + $0x1c] sm:$0x1]  ;;  %v2453_v50 = vld [vmem:[#allocation2 + $0x20] sm:$0xf]  ;;  %4077 = vmatpush.bf16.msra.mxu2 %v5533_v26  ;;  %5566 = vmatpush.bf16.msra.mxu1 %v5521_v36 }
 0x181   : > { %2825 = vst [vmem:[#allocation4 + $0x40] sm:$0xf] %v2731_v53  ;;  %v2630_v40 = vsel %vm6379_vm10, %v4806_v52, %v2629_v39  ;;  %v5441_v16 = vld [vmem:[#allocation4 + $0xdc] sm:$0xf]  ;;  %v2454_v19 = vld [vmem:[#allocation2 + $0x24] sm:$0x1]  ;;  %3926 = vmatpush.bf16.msra.mxu0 %v5506_v33  ;;  %5574 = vmatpush.bf16.msrb.mxu3 %v5533_v26 }
 0x182   : > { %2824 = vst [vmem:[#allocation4 + $0x1c] sm:$0xf] %v2717_v35  ;;  %v4933_v28 = vld [vmem:[#allocation4 + $0xfc] sm:$0xf0]  ;;  %v2492_v25 = vshrl.u32 %v2451_v38, 16  ;;  %v2495_v32 = vshll.u32 %v2451_v38, 16 }
 0x183   : > { %2663 = vst [vmem:[#allocation4 + $0x14] sm:$0xf] %v2626_v6  ;;  %v4839_v24 = vld [vmem:[#allocation4 + $0x10] sm:$0xf]  ;;  %v2501_v54 = vshll.u32 %v2452_v63, 16  ;;  %v2506_v4 = vshrl.u32 %v2453_v50, 16  ;;  %v4936_v55 = vor.u32 %v5441_v16, %v4933_v28 }
 0x184   : > { %2664 = vst [vmem:[#allocation4 + $0x38] sm:$0xf] %v2630_v40  ;;  %v5420_v3 = vld [vmem:[#allocation4 + $0x30] sm:$0xf0]  ;;  %v2494_v17 = vrot.slane %v2492_v25, 4  ;;  %v2497_v58 = vrot.slane %v2495_v32, 5 }
 0x185   : > { %3948 = vmatpush.bf16.msrb.mxu0 %v5521_v36  ;;  %v2509_v56 = vshll.u32 %v2453_v50, 16  ;;  %v4840_v60 = vor.u32 %v5420_v3, %v4839_v24  ;;  %v4847_v59 = vld [vmem:[#allocation4 + $0x18] sm:$0xf]  ;;  %v2508_v49 = vrot.slane %v2506_v4, 4  ;;  %v2515_v11 = vshll.u32 %v2454_v19, 16  ;;  %v5532_v21 = vld [vmem:[%s6775_s5 + $0x30] sm:$0xff] }
 0x186   : > { %v5520_v31 = vld [vmem:[#allocation5 + $0x230] sm:$0xff]  ;;  %v5421_v20 = vld [vmem:[#allocation4 + $0x38] sm:$0xf0]  ;;  %v2498_v29 = vor.u32 %v2497_v58, %v2494_v17  ;;  %v2503_v0 = vrot.slane %v2501_v54, 5  ;;  %4078 = vmatpush.bf16.msra.mxu2 %v5532_v21  ;;  %v2675_v41 = vld [vmem:[#allocation2 + $0x28] sm:$0xf]  ;;  %5575 = vmatpush.bf16.msrb.mxu3 %v5532_v21 }
 0x187   : > { %v2511_v10 = vrot.slane %v2509_v56, 5  ;;  %v2674_v48 = vld [vmem:[#allocation2 + $0x20] sm:$0xf]  ;;  %3840 = vmatmul.bf16.vlgmr.msrb.gmra.mxu1 %v4840_v60  ;;  %3768 = vmatmul.bf16.gmra.mxu2 %v4936_v55  ;;  %v4848_v8 = vor.u32 %v5421_v20, %v4847_v59  ;;  %2683 = vst [vmem:[#allocation4 + $0x84] sm:$0xf] %v2675_v41  ;;  %v5531_v62 = vld [vmem:[%s6775_s5 + $0x28] sm:$0xff] }
 0x188   : > { %2682 = vst [vmem:[#allocation4 + $0x60] sm:$0xf] %v2674_v48  ;;  %v4849_v1 = vld [vmem:[#allocation4 + $0x3c] sm:$0xf0]  ;;  %v2499_v22 = vrot.slane %v2498_v29, 4  ;;  %5567 = vmatpush.bf16.msra.mxu1 %v5520_v31  ;;  %v2517_v2 = vrot.slane %v2515_v11, 5 }
 0x189   : > { %v2512_v34 = vor.u32 %v2511_v10, %v2508_v49  ;;  %v2692_v13 = vld [vmem:[#allocation2 + $0x20] sm:$0xf]  ;;  %v2693_v43 = vld [vmem:[#allocation2 + $0x24] sm:$0x1]  ;;  %3949 = vmatpush.bf16.msrb.mxu0 %v5520_v31  ;;  %v5417_v23 = vld [vmem:[#allocation4 + $0x1c] sm:$0xf] }
 0x18a   : > { %3898 = vmatmul.bf16.vlgmr.msra.gmra.mxu3 %v4848_v8  ;;  %v2504_v46 = vsel %vm5938_vm2, %v2499_v22, %v2503_v0  ;;  %v2694_v14 = vld [vmem:[#allocation2 + $0x28] sm:$0xf]  ;;  %v2733_v9 = vshrl.u32 %v2692_v13, 16  ;;  %v4852_v45 = vor.u32 %v5417_v23, %v4849_v1  ;;  %v2695_v44 = vld [vmem:[#allocation2 + $0x2c] sm:$0x1]  ;;  %v2736_v61 = vshll.u32 %v2692_v13, 16  ;;  %4079 = vmatpush.bf16.msra.mxu2 %v5531_v62 }
 0x18b   : > { %v2513_v5 = vrot.slane %v2512_v34, 4  ;;  %2585 = vst [vmem:[#allocation4 + $0x58] sm:$0xf] %v2504_v46  ;;  %v2742_v33 = vshll.u32 %v2693_v43, 16  ;;  %v2747_v57 = vshrl.u32 %v2694_v14, 16  ;;  %v2750_v27 = vshll.u32 %v2694_v14, 16  ;;  %5576 = vmatpush.bf16.msrb.mxu3 %v5531_v62 }
 0x18c   : > { %v2735_v12 = vrot.slane %v2733_v9, 4  ;;  %v2595_v7 = vld [vmem:[#allocation2 + $0x18] sm:$0xe]  ;;  %3927 = vmatmul.bf16.vlgmr.msra.gmra.mxu0 %v4852_v45  ;;  %v2738_v15 = vrot.slane %v2736_v61, 5  ;;  %v2756_v42 = vshll.u32 %v2695_v44, 16  ;;  %v5530_v28 = vld [vmem:[%s6775_s5 + $0x20] sm:$0xff] }
 0x18d   : > { %v2518_v47 = vsel %vm5938_vm2, %v2513_v5, %v2517_v2  ;;  %v5519_v18 = vld [vmem:[#allocation5 + $0x228] sm:$0xff]  ;;  %v4807_v52 = vrot.slane %v2595_v7, 9  ;;  %v2749_v39 = vrot.slane %v2747_v57, 4  ;;  %v2752_v53 = vrot.slane %v2750_v27, 5  ;;  %v2597_v6 = vld [vmem:[#allocation2 + $0x20] sm:$0xe] }
 0x18e   : > { %2586 = vst [vmem:[#allocation4 + $0x7c] sm:$0xf] %v2518_v47  ;;  %v2596_v26 = vld [vmem:[#allocation2 + $0x1c] sm:$0x1]  ;;  %5568 = vmatpush.bf16.msra.mxu1 %v5519_v18  ;;  %3950 = vmatpush.bf16.msrb.mxu0 %v5519_v18  ;;  %v2739_v36 = vor.u32 %v2738_v15, %v2735_v12  ;;  %v2744_v38 = vrot.slane %v2742_v33, 5  ;;  %v2758_v35 = vrot.slane %v2756_v42, 5 }
 0x18f   : > { %v2633_v40 = vrot.slane %v2596_v26, 5  ;;  %v2753_v63 = vor.u32 %v2752_v53, %v2749_v39  ;;  %v2598_v50 = vld [vmem:[#allocation2 + $0x24] sm:$0x1]  ;;  %v4808_v16 = vrot.slane %v2597_v6, 9  ;;  %v2455_v19 = vld [vmem:[#allocation2 + $0x28] sm:$0xf]  ;;  %4080 = vmatpush.bf16.msra.mxu2 %v5530_v28  ;;  %5577 = vmatpush.bf16.msrb.mxu3 %v5530_v28 }
 0x190   : > { %v4841_v25 = vld [vmem:[#allocation4 + $0x34] sm:$0xf0]  ;;  %v2740_v32 = vrot.slane %v2739_v36, 4  ;;  %v2637_v54 = vrot.slane %v2598_v50, 5  ;;  %v2456_v4 = vld [vmem:[#allocation2 + $0x2c] sm:$0x1] }
 0x191   : > { %v2634_v24 = vsel %vm6379_vm10, %v4807_v52, %v2633_v40  ;;  %v2457_v55 = vld [vmem:[#allocation2 + $0x30] sm:$0xf]  ;;  %v2754_v17 = vrot.slane %v2753_v63, 4  ;;  %v2520_v58 = vshrl.u32 %v2455_v19, 16  ;;  %v5416_v56 = vld [vmem:[#allocation4 + $0x14] sm:$0xf] }
 0x192   : > { %v4875_v3 = vld [vmem:[#allocation4 + $0x58] sm:$0xf]  ;;  %2665 = vst [vmem:[#allocation4 + $0x5c] sm:$0xf] %v2634_v24  ;;  %v5430_v60 = vld [vmem:[#allocation4 + $0x80] sm:$0xf0]  ;;  %v2745_v59 = vsel %vm5938_vm2, %v2740_v32, %v2744_v38  ;;  %v2638_v49 = vsel %vm6379_vm10, %v4808_v16, %v2637_v54  ;;  %v4844_v62 = vor.u32 %v5416_v56, %v4841_v25 }
 0x193   : > { %v2458_v11 = vld [vmem:[#allocation2 + $0x34] sm:$0x1]  ;;  %v2523_v21 = vshll.u32 %v2455_v19, 16  ;;  %v2529_v31 = vshll.u32 %v2456_v4, 16  ;;  %v2676_v20 = vld [vmem:[#allocation2 + $0x30] sm:$0xf]  ;;  %v2759_v10 = vsel %vm5938_vm2, %v2754_v17, %v2758_v35 }
 0x194   : > { %2826 = vst [vmem:[#allocation4 + $0x64] sm:$0xf] %v2745_v59  ;;  %v2522_v48 = vrot.slane %v2520_v58, 4  ;;  %v2534_v0 = vshrl.u32 %v2457_v55, 16  ;;  %v4883_v8 = vld [vmem:[#allocation4 + $0x60] sm:$0xf] }
 0x195   : > { %v5429_v29 = vld [vmem:[#allocation4 + $0x78] sm:$0xf0]  ;;  %2827 = vst [vmem:[#allocation4 + $0x88] sm:$0xf] %v2759_v10  ;;  %v2525_v1 = vrot.slane %v2523_v21, 5  ;;  %v2537_v22 = vshll.u32 %v2457_v55, 16  ;;  %v4884_v14 = vor.u32 %v5430_v60, %v4883_v8 }
 0x196   : > { %v4876_v41 = vor.u32 %v5429_v29, %v4875_v3  ;;  %v5518_v34 = vld [vmem:[#allocation5 + $0x220] sm:$0xff]  ;;  %2666 = vst [vmem:[#allocation4 + $0x80] sm:$0xf] %v2638_v49  ;;  %v2536_v2 = vrot.slane %v2534_v0, 4  ;;  %v2543_v13 = vshll.u32 %v2458_v11, 16  ;;  %v2531_v9 = vrot.slane %v2529_v31, 5 }
 0x197   : > { %v2677_v43 = vld [vmem:[#allocation2 + $0x38] sm:$0xf]  ;;  %v2526_v23 = vor.u32 %v2525_v1, %v2522_v48  ;;  %v2539_v46 = vrot.slane %v2537_v22, 5  ;;  %2684 = vst [vmem:[#allocation4 + $0xa8] sm:$0xf] %v2676_v20  ;;  %3951 = vmatpush.bf16.msrb.mxu0 %v5518_v34  ;;  %3869 = vmatmul.bf16.vlgmr.msrb.gmra.mxu2 %v4844_v62  ;;  %v5517_v28 = vld [vmem:[#allocation5 + $0x218] sm:$0xff] }
 0x198   : > { %3845 = vmatmul.bf16.gmra.mxu1 %v4876_v41  ;;  %v2696_v5 = vld [vmem:[#allocation2 + $0x30] sm:$0xf]  ;;  %2685 = vst [vmem:[#allocation4 + $0xcc] sm:$0xf] %v2677_v43  ;;  %v2697_v45 = vld [vmem:[#allocation2 + $0x34] sm:$0x1] }
 0x199   : > { %5569 = vmatpush.bf16.msra.mxu1 %v5518_v34  ;;  %v2761_v44 = vshrl.u32 %v2696_v5, 16  ;;  %v2527_v61 = vrot.slane %v2526_v23, 4  ;;  %v2540_v33 = vor.u32 %v2539_v46, %v2536_v2  ;;  %v2545_v47 = vrot.slane %v2543_v13, 5  ;;  %v2698_v12 = vld [vmem:[#allocation2 + $0x38] sm:$0xf]  ;;  %v5528_v3 = vld [vmem:[%s6775_s5 + $0x10] sm:$0xff] }
 0x19a   : > { %v2764_v57 = vshll.u32 %v2696_v5, 16  ;;  %3903 = vmatmul.bf16.gmra.mxu3 %v4884_v14  ;;  %v2699_v27 = vld [vmem:[#allocation2 + $0x3c] sm:$0x1]  ;;  %v2770_v18 = vshll.u32 %v2697_v45, 16  ;;  %v2775_v15 = vshrl.u32 %v2698_v12, 16  ;;  %v2778_v42 = vshll.u32 %v2698_v12, 16 }
 0x19b   : > { %v2763_v7 = vrot.slane %v2761_v44, 4  ;;  %v5426_v52 = vld [vmem:[#allocation4 + $0x64] sm:$0xf]  ;;  %v2532_v39 = vsel %vm5938_vm2, %v2527_v61, %v2531_v9  ;;  %v2541_v53 = vrot.slane %v2540_v33, 4  ;;  %v2784_v36 = vshll.u32 %v2699_v27, 16  ;;  %v5529_v38 = vld [vmem:[%s6775_s5 + $0x18] sm:$0xff]  ;;  %3952 = vmatpush.bf16.msrb.mxu0 %v5517_v28 }
 0x19c   : > { %v2766_v26 = vrot.slane %v2764_v57, 5  ;;  %v4885_v35 = vld [vmem:[#allocation4 + $0x84] sm:$0xf0]  ;;  %2587 = vst [vmem:[#allocation4 + $0xa0] sm:$0xf] %v2532_v39  ;;  %v2777_v6 = vrot.slane %v2775_v15, 4  ;;  %4081 = vmatpush.bf16.msra.mxu2 %v5529_v38  ;;  %5578 = vmatpush.bf16.msrb.mxu3 %v5529_v38 }
 0x19d   : > { %v4888_v40 = vor.u32 %v5426_v52, %v4885_v35  ;;  %v2546_v63 = vsel %vm5938_vm2, %v2541_v53, %v2545_v47  ;;  %v2780_v16 = vrot.slane %v2778_v42, 5  ;;  %v2599_v19 = vld [vmem:[#allocation2 + $0x28] sm:$0xe]  ;;  %v2772_v24 = vrot.slane %v2770_v18, 5  ;;  %v2600_v55 = vld [vmem:[#allocation2 + $0x2c] sm:$0x1]  ;;  %5570 = vmatpush.bf16.msra.mxu1 %v5517_v28 }
 0x19e   : > { %v2767_v50 = vor.u32 %v2766_v26, %v2763_v7  ;;  %2588 = vst [vmem:[#allocation4 + $0xc4] sm:$0xf] %v2546_v63  ;;  %v4809_v25 = vrot.slane %v2599_v19, 9  ;;  %v2786_v4 = vrot.slane %v2784_v36, 5  ;;  %v4877_v17 = vld [vmem:[#allocation4 + $0x7c] sm:$0xf0] }
 0x19f   : > { %3932 = vmatmul.bf16.gmra.mxu0 %v4888_v40  ;;  %v2781_v54 = vor.u32 %v2780_v16, %v2777_v6  ;;  %v2601_v58 = vld [vmem:[#allocation2 + $0x30] sm:$0xe]  ;;  %v2602_v56 = vld [vmem:[#allocation2 + $0x34] sm:$0x1]  ;;  %v2641_v60 = vrot.slane %v2600_v55, 5  ;;  %v5516_v59 = vld [vmem:[#allocation5 + $0x210] sm:$0xff] }
 0x1a0   : > { %v2768_v32 = vrot.slane %v2767_v50, 4  ;;  %v4810_v21 = vrot.slane %v2601_v58, 9  ;;  %v2645_v31 = vrot.slane %v2602_v56, 5  ;;  %v2459_v20 = vld [vmem:[#allocation2 + $0x38] sm:$0xf]  ;;  %4082 = vmatpush.bf16.msra.mxu2 %v5528_v3  ;;  %5579 = vmatpush.bf16.msrb.mxu3 %v5528_v3 }
 0x1a1   : > { %v2782_v11 = vrot.slane %v2781_v54, 4  ;;  %v5425_v29 = vld [vmem:[#allocation4 + $0x5c] sm:$0xf]  ;;  %v2642_v10 = vsel %vm6379_vm10, %v4809_v25, %v2641_v60  ;;  %v2460_v48 = vld [vmem:[#allocation2 + $0x3c] sm:$0x1]  ;;  %5571 = vmatpush.bf16.msra.mxu1 %v5516_v59  ;;  %v2548_v62 = vshrl.u32 %v2459_v20, 16  ;;  %3953 = vmatpush.bf16.msrb.mxu0 %v5516_v59 }
 0x1a2   : > { %v2773_v49 = vsel %vm5938_vm2, %v2768_v32, %v2772_v24  ;;  %v2461_v0 = vld [vmem:[#allocation2 + $0x40] sm:$0xf]  ;;  %v5439_v8 = vld [vmem:[#allocation4 + $0xc8] sm:$0xf0]  ;;  %v2646_v22 = vsel %vm6379_vm10, %v4810_v21, %v2645_v31  ;;  %2667 = vst [vmem:[#allocation4 + $0xa4] sm:$0xf] %v2642_v10  ;;  %v4880_v43 = vor.u32 %v5425_v29, %v4877_v17 }
 0x1a3   : > { %2828 = vst [vmem:[#allocation4 + $0xac] sm:$0xf] %v2773_v49  ;;  %v4911_v41 = vld [vmem:[#allocation4 + $0xa0] sm:$0xf]  ;;  %v2787_v1 = vsel %vm5938_vm2, %v2782_v11, %v2786_v4  ;;  %v2462_v34 = vld [vmem:[#allocation2 + $0x44] sm:$0x1] }
 0x1a4   : > { %2829 = vst [vmem:[#allocation4 + $0xd0] sm:$0xf] %v2787_v1  ;;  %v2551_v2 = vshll.u32 %v2459_v20, 16  ;;  %v2562_v13 = vshrl.u32 %v2461_v0, 16  ;;  %v4919_v46 = vld [vmem:[#allocation4 + $0xa8] sm:$0xf] }
 0x1a5   : > { %v5438_v23 = vld [vmem:[#allocation4 + $0xc0] sm:$0xf0]  ;;  %2668 = vst [vmem:[#allocation4 + $0xc8] sm:$0xf] %v2646_v22  ;;  %v2565_v5 = vshll.u32 %v2461_v0, 16  ;;  %v2550_v9 = vrot.slane %v2548_v62, 4  ;;  %v4920_v7 = vor.u32 %v5439_v8, %v4919_v46 }
 0x1a6   : > { %v4912_v14 = vor.u32 %v5438_v23, %v4911_v41  ;;  %v2553_v45 = vrot.slane %v2551_v2, 5  ;;  %v2557_v44 = vshll.u32 %v2460_v48, 16  ;;  %v405_v61 = vld [vmem:[#allocation2 + $0x48] sm:$0x1]  ;;  %v2564_v33 = vrot.slane %v2562_v13, 4  ;;  %v5515_v1 = vld [vmem:[#allocation5 + $0x208] sm:$0xff] }
 0x1a7   : > { %v2567_v47 = vrot.slane %v2565_v5, 5  ;;  %v2571_v12 = vshll.u32 %v2462_v34, 16  ;;  %v406_v57 = vsel %vm6317_vm5, 0, %v405_v61  ;;  %v2678_v27 = vld [vmem:[#allocation2 + $0x40] sm:$0xf]  ;;  %3874 = vmatmul.bf16.gmra.mxu2 %v4880_v43  ;;  %v5527_v22 = vld [vmem:[%s6775_s5 + $0x8] sm:$0xff]  ;;  %5572 = vmatpush.bf16.msra.mxu1 %v5515_v1 }
 0x1a8   : > { %3850 = vmatmul.bf16.gmra.mxu1 %v4912_v14  ;;  %v2554_v18 = vor.u32 %v2553_v45, %v2550_v9  ;;  %407 = vst [vmem:[#allocation2 + $0x48] sm:$0x1] %v406_v57  ;;  %v2700_v15 = vld [vmem:[#allocation2 + $0x40] sm:$0xf]  ;;  %v2701_v52 = vld [vmem:[#allocation2 + $0x44] sm:$0x1]  ;;  %4083 = vmatpush.bf16.msra.mxu2 %v5527_v22 }
 0x1a9   : > { %v2568_v42 = vor.u32 %v2567_v47, %v2564_v33  ;;  %2686 = vst [vmem:[#allocation4 + $0xf0] sm:$0xf] %v2678_v27  ;;  %v2559_v26 = vrot.slane %v2557_v44, 5  ;;  %v2789_v36 = vshrl.u32 %v2700_v15, 16  ;;  %v2792_v38 = vshll.u32 %v2700_v15, 16  ;;  %v5514_v13 = vld [vmem:[#allocation5 + $0x200] sm:$0xff]  ;;  %3954 = vmatpush.bf16.msrb.mxu0 %v5515_v1  ;;  %5580 = vmatpush.bf16.msrb.mxu3 %v5527_v22 }
 0x1aa   : > { %3908 = vmatmul.bf16.gmra.mxu3 %v4920_v7  ;;  %v5435_v39 = vld [vmem:[#allocation4 + $0xac] sm:$0xf]  ;;  %v2555_v53 = vrot.slane %v2554_v18, 4  ;;  %v2573_v30 = vrot.slane %v2571_v12, 5  ;;  %v2603_v40 = vld [vmem:[#allocation2 + $0x38] sm:$0xe] }
 0x1ab   : > { %v4921_v35 = vld [vmem:[#allocation4 + $0xcc] sm:$0xf0]  ;;  %v2569_v6 = vrot.slane %v2568_v42, 4  ;;  %v2791_v50 = vrot.slane %v2789_v36, 4  ;;  %v2794_v16 = vrot.slane %v2792_v38, 5  ;;  %v2798_v19 = vshll.u32 %v2701_v52, 16  ;;  %5573 = vmatpush.bf16.msra.mxu1 %v5514_v13 }
 0x1ac   : > { %v2560_v63 = vsel %vm5938_vm2, %v2555_v53, %v2559_v26  ;;  %v2604_v28 = vld [vmem:[#allocation2 + $0x3c] sm:$0x1]  ;;  %v2836_v25 = vld [vmem:[#allocation2 + $0x20] sm:$0xe]  ;;  %v6625_v32 = vld [vmem:[#allocation2 + $0x28] sm:$0xe]  ;;  %v4924_v24 = vor.u32 %v5435_v39, %v4921_v35 }
 0x1ad   : > { %v2574_v54 = vsel %vm5938_vm2, %v2569_v6, %v2573_v30  ;;  %2589 = vst [vmem:[#allocation4 + $0xe8] sm:$0xf] %v2560_v63  ;;  %v2703_v4 = vld [vmem:[#allocation2 + $0x4c] sm:$0x1]  ;;  %v2605_v55 = vld [vmem:[#allocation2 + $0x40] sm:$0xe]  ;;  %v2795_v3 = vor.u32 %v2794_v16, %v2791_v50  ;;  %3955 = vmatpush.bf16.msrb.mxu0 %v5514_v13 }
 0x1ae   : > { %2590 = vst [vmem:[#allocation4 + $0x10c] sm:$0xf] %v2574_v54  ;;  %v2606_v17 = vld [vmem:[#allocation2 + $0x44] sm:$0x1]  ;;  %v4811_v58 = vrot.slane %v2603_v40, 9  ;;  %v2649_v56 = vrot.slane %v2604_v28, 5 }
 0x1af   : > { %3937 = vmatmul.bf16.gmra.mxu0 %v4924_v24  ;;  %v2679_v60 = vld [vmem:[#allocation2 + $0x48] sm:$0xf]  ;;  %v4812_v49 = vrot.slane %v2605_v55, 9  ;;  %v2653_v11 = vrot.slane %v2606_v17, 5  ;;  %v4913_v21 = vld [vmem:[#allocation4 + $0xc4] sm:$0xf0] }
 0x1b0   : > { %v2702_v59 = vld [vmem:[#allocation2 + $0x48] sm:$0xf]  ;;  %2687 = vst [vmem:[#allocation4 + $0x114] sm:$0xf] %v2679_v60  ;;  %v2796_v31 = vrot.slane %v2795_v3, 4  ;;  %v2800_v20 = vrot.slane %v2798_v19, 5  ;;  %v2650_v10 = vsel %vm6379_vm10, %v4811_v58, %v2649_v56 }
 0x1b1   : > { %v2803_v29 = vshrl.u32 %v2702_v59, 16  ;;  %v2834_v48 = vld [vmem:[#allocation2 + $0x18] sm:$0xe]  ;;  %v2806_v0 = vshll.u32 %v2702_v59, 16  ;;  %v2812_v41 = vshll.u32 %v2703_v4, 16  ;;  %v2654_v8 = vsel %vm6379_vm10, %v4812_v49, %v2653_v11  ;;  %v5526_v9 = vld [vmem:[%s6775_s5] sm:$0xff] }
 0x1b2   : > { %2669 = vst [vmem:[#allocation4 + $0xec] sm:$0xf] %v2650_v10  ;;  %v5434_v34 = vld [vmem:[#allocation4 + $0xa4] sm:$0xf]  ;;  %v2801_v62 = vsel %vm5938_vm2, %v2796_v31, %v2800_v20  ;;  %v4815_v43 = vrot.slane %v2836_v25, 9  ;;  %v4816_v23 = vrot.slane %v6625_v32, 9  ;;  %4084 = vmatpush.bf16.msra.mxu2 %v5526_v9  ;;  %5581 = vmatpush.bf16.msrb.mxu3 %v5526_v9 }
 0x1b3   : > { %v2805_v2 = vrot.slane %v2803_v29, 4  ;;  %2670 = vst [vmem:[#allocation4 + $0x110] sm:$0xf] %v2654_v8  ;;  %v4955_v46 = vld [vmem:[#allocation4 + $0xf0] sm:$0xf]  ;;  %v2808_v5 = vrot.slane %v2806_v0, 5  ;;  %v4916_v33 = vor.u32 %v5434_v34, %v4913_v21 }
 0x1b4   : > { %2830 = vst [vmem:[#allocation4 + $0xf4] sm:$0xf] %v2801_v62  ;;  %v2837_v14 = vld [vmem:[#allocation2 + $0x24] sm:$0x1]  ;;  %v4947_v45 = vld [vmem:[#allocation4 + $0xe8] sm:$0xf] }
 0x1b5   : > { %v2839_v44 = vld [vmem:[#allocation2 + $0x2c] sm:$0x1]  ;;  %v2874_v61 = vrot.slane %v2837_v14, 5  ;;  %v5447_v47 = vld [vmem:[#allocation4 + $0x108] sm:$0xf0]  ;;  %v2809_v12 = vor.u32 %v2808_v5, %v2805_v2  ;;  %v2814_v57 = vrot.slane %v2812_v41, 5 }
 0x1b6   : > { %v2878_v27 = vrot.slane %v2839_v44, 5  ;;  %v2832_v7 = vld [vmem:[#allocation2 + $0x10] sm:$0xe]  ;;  %v4948_v18 = vor.u32 %v5447_v47, %v4947_v45  ;;  %v2833_v42 = vld [vmem:[#allocation2 + $0x14] sm:$0x1]  ;;  %v4814_v53 = vrot.slane %v2834_v48, 9 }
 0x1b7   : > { %v2875_v15 = vsel %vm6379_vm10, %v4815_v43, %v2874_v61  ;;  %v2835_v52 = vld [vmem:[#allocation2 + $0x1c] sm:$0x1]  ;;  %v4813_v39 = vrot.slane %v2832_v7, 9  ;;  %v5448_v26 = vld [vmem:[#allocation4 + $0x110] sm:$0xf0]  ;;  %v2810_v36 = vrot.slane %v2809_v12, 4  ;;  %3879 = vmatmul.bf16.gmra.mxu2 %v4916_v33 }
 0x1b8   : > { %v2879_v38 = vsel %vm6379_vm10, %v4816_v23, %v2878_v27  ;;  %2906 = vst [vmem:[#allocation4 + $0x68] sm:$0xf] %v2875_v15  ;;  %v2866_v35 = vrot.slane %v2833_v42, 5  ;;  %3855 = vmatmul.bf16.gmra.mxu1 %v4948_v18  ;;  %v4956_v6 = vor.u32 %v5448_v26, %v4955_v46  ;;  %v2870_v30 = vrot.slane %v2835_v52, 5  ;;  %v2840_v16 = vld [vmem:[#allocation2 + $0x30] sm:$0xe] }
 0x1b9   : > { %2907 = vst [vmem:[#allocation4 + $0x8c] sm:$0xf] %v2879_v38  ;;  %v2815_v40 = vsel %vm5938_vm2, %v2810_v36, %v2814_v57  ;;  %v2841_v19 = vld [vmem:[#allocation2 + $0x34] sm:$0x1]  ;;  %v2842_v28 = vld [vmem:[#allocation2 + $0x38] sm:$0xe] }
 0x1ba   : > { %v2867_v63 = vsel %vm6379_vm10, %v4813_v39, %v2866_v35  ;;  %3913 = vmatmul.bf16.gmra.mxu3 %v4956_v6  ;;  %2831 = vst [vmem:[#allocation4 + $0x118] sm:$0xf] %v2815_v40  ;;  %v2871_v50 = vsel %vm6379_vm10, %v4814_v53, %v2870_v30  ;;  %v2843_v25 = vld [vmem:[#allocation2 + $0x3c] sm:$0x1]  ;;  %v4817_v32 = vrot.slane %v2840_v16, 9  ;;  %v2882_v24 = vrot.slane %v2841_v19, 5 }
 0x1bb   : > { %2904 = vst [vmem:[#allocation4 + $0x20] sm:$0xf] %v2867_v63  ;;  %v4818_v54 = vrot.slane %v2842_v28, 9  ;;  %v2886_v4 = vrot.slane %v2843_v25, 5  ;;  %v5444_v3 = vld [vmem:[#allocation4 + $0xf4] sm:$0xf] }
 0x1bc   : > { %2905 = vst [vmem:[#allocation4 + $0x44] sm:$0xf] %v2871_v50  ;;  %v3725_v37 = vpop.f32.mrf.mxu1  ;;  %v2883_v55 = vsel %vm6379_vm10, %v4817_v32, %v2882_v24  ;;  %v4949_v60 = vld [vmem:[#allocation4 + $0x10c] sm:$0xf0]  ;;  %v5443_v49 = vld [vmem:[#allocation4 + $0xec] sm:$0xf] }
 0x1bd   : > { %v2887_v17 = vsel %vm6379_vm10, %v4818_v54, %v2886_v4  ;;  %2908 = vst [vmem:[#allocation4 + $0xb0] sm:$0xf] %v2883_v55  ;;  %v4952_v31 = vor.u32 %v5443_v49, %v4949_v60  ;;  %v2844_v10 = vld [vmem:[#allocation2 + $0x40] sm:$0xe]  ;;  %v2845_v48 = vld [vmem:[#allocation2 + $0x44] sm:$0x1] }
 0x1be   : > { %2909 = vst [vmem:[#allocation4 + $0xd4] sm:$0xf] %v2887_v17  ;;  %v5267_v41 = vld [vmem:[#allocation3 + $0xe8] sm:$0xf]  ;;  %v5525_v8 = vld [vmem:[#allocation3 + $0x108] sm:$0xf0] }
 0x1bf   : > { %v4891_v11 = vld [vmem:[#allocation4 + $0x68] sm:$0xf]  ;;  %v2846_v1 = vld [vmem:[#allocation2 + $0x48] sm:$0xe]  ;;  %v5268_v22 = vor.u32 %v5525_v8, %v5267_v41  ;;  %v2847_v34 = vld [vmem:[#allocation2 + $0x4c] sm:$0x1] }
 0x1c0   : > { %v5431_v59 = vld [vmem:[#allocation4 + $0x88] sm:$0xf0]  ;;  %v4819_v62 = vrot.slane %v2844_v10, 9  ;;  %v2890_v2 = vrot.slane %v2845_v48, 5  ;;  %v4820_v13 = vrot.slane %v2846_v1, 9  ;;  %v2894_v43 = vrot.slane %v2847_v34, 5 }
 0x1c1   : > { %v4957_v58 = vld [vmem:[#allocation4 + $0x114] sm:$0xf0]  ;;  %v4892_v20 = vor.u32 %v5431_v59, %v4891_v11  ;;  %v6665_v5 = vld [vmem:[%s6774_s4] ss:$0 sm:$0xff]  ;;  %v5522_v33 = vld [vmem:[#allocation3 + $0x30] sm:$0xf0] }
 0x1c2   : > { %v4960_v56 = vor.u32 %v5444_v3, %v4957_v58  ;;  %v2891_v23 = vsel %vm6379_vm10, %v4819_v62, %v2890_v2  ;;  %v2895_v46 = vsel %vm6379_vm10, %v4820_v13, %v2894_v43  ;;  %v4855_v44 = vld [vmem:[#allocation4 + $0x20] sm:$0xf]  ;;  %v5255_v61 = vld [vmem:[#allocation3 + $0x10] sm:$0xf]  ;;  %v3726_v47 = vadd.f32 %v6665_v5, %v3725_v37  ;;  %v5259_v40 = vld [vmem:[#allocation3 + $0x58] sm:$0xf] }
 0x1c3   : > { %2910 = vst [vmem:[#allocation4 + $0xf8] sm:$0xf] %v2891_v23  ;;  %v5422_v14 = vld [vmem:[#allocation4 + $0x40] sm:$0xf0]  ;;  %v5256_v7 = vor.u32 %v5522_v33, %v5255_v61  ;;  %v5523_v63 = vld [vmem:[#allocation3 + $0x78] sm:$0xf0] }
 0x1c4   : > { %3942 = vmatmul.bf16.gmra.mxu0 %v4960_v56  ;;  %v3727_v21 = vpop.f32.mrf.mxu1  ;;  %v6656_v29 = vpop.f32.mrf.mxu0  ;;  %2911 = vst [vmem:[#allocation4 + $0x11c] sm:$0xf] %v2895_v46  ;;  %v4856_v12 = vor.u32 %v5422_v14, %v4855_v44  ;;  %v4927_v15 = vld [vmem:[#allocation4 + $0xb0] sm:$0xf]  ;;  %v5260_v28 = vor.u32 %v5523_v63, %v5259_v40  ;;  %v5263_v60 = vld [vmem:[#allocation3 + $0xa0] sm:$0xf] }
 0x1c5   : > { %v3783_v0 = vpop.f32.mrf.mxu3  ;;  %v5440_v51 = vld [vmem:[#allocation4 + $0xd0] sm:$0xf0]  ;;  %v3728_v53 = vadd.f32 %v6665_v5, %v3727_v21  ;;  %v5524_v59 = vld [vmem:[#allocation3 + $0xc0] sm:$0xf0] }
 0x1c6   : > { %v4928_v52 = vor.u32 %v5440_v51, %v4927_v15 }
 0x1c7   : > { %3884 = vmatmul.bf16.gmra.mxu2 %v4952_v31 }
 0x1c8   : > { %3961 = vmatmul.bf16.vlgmr.msra.gmra.mxu1 %v4892_v20  ;;  %v5264_v20 = vor.u32 %v5524_v59, %v5263_v60 }
 0x1ca   : > { %4100 = vmatmul.bf16.vlgmr.msrb.gmra.mxu3 %v5268_v22  ;;  %v4963_v16 = vld [vmem:[#allocation4 + $0xf8] sm:$0xf] }
 0x1cb   : > { %v5449_v19 = vld [vmem:[#allocation4 + $0x118] sm:$0xf0] }
 0x1cc   : > { %v3814_v45 = vpop.f32.mrf.mxu0  ;;  %v4964_v32 = vor.u32 %v5449_v19, %v4963_v16 }
 0x1cd   : > { %v3730_v9 = vpop.f32.mrf.mxu1  ;;  %v3785_v57 = vpop.f32.mrf.mxu3 }
 0x1ce   : > { %v3731_v37 = vadd.f32 %v6665_v5, %v3730_v9 }
 0x1cf   : > { %v3754_v27 = vpop.f32.mrf.mxu2 }
 0x1d0   : > { %v3755_v18 = vadd.f32 %v3754_v27, %v3726_v47 }
 0x1d2   : > { %v3784_v42 = vadd.f32 %v3783_v0, %v3755_v18 }
 0x1d4   : > { %3956 = vmatmul.bf16.vlgmr.msrb.gmra.mxu0 %v4856_v12  ;;  %v3813_v58 = vadd.f32 %v6656_v29, %v3784_v42 }
 0x1d5   : > { %v3732_v39 = vpop.f32.mrf.mxu1 }
 0x1d6   : > { %v3733_v49 = vadd.f32 %v6665_v5, %v3732_v39 }
 0x1d7   : > { %4085 = vmatmul.bf16.vlgmr.msra.gmra.mxu2 %v5256_v7  ;;  %v3756_v36 = vpop.f32.mrf.mxu2 }
 0x1d8   : > { %3966 = vmatmul.bf16.gmra.mxu1 %v4928_v52  ;;  %v3817_v26 = vpop.f32.mrf.mxu0  ;;  %v3757_v38 = vadd.f32 %v3756_v36, %v3728_v53 }
 0x1da   : > { %v3786_v6 = vadd.f32 %v3785_v57, %v3757_v38 }
 0x1db   : > { %v3788_v35 = vpop.f32.mrf.mxu3 }
 0x1dc   : > { %v3815_v0 = vadd.f32 %v3814_v45, %v3786_v6 }
 0x1df   : > { %v3735_v30 = vpop.f32.mrf.mxu1 }
 0x1e0   : > { %v3819_v50 = vpop.f32.mrf.mxu0  ;;  %v3736_v41 = vadd.f32 %v6665_v5, %v3735_v30 }
 0x1e3   : > { %v3790_v25 = vpop.f32.mrf.mxu3 }
 0x1e7   : > { %4090 = vmatmul.bf16.gmra.mxu2 %v5260_v28  ;;  %v3737_v24 = vpop.f32.mrf.mxu1 }
 0x1e8   : > { %3971 = vmatmul.bf16.gmra.mxu1 %v4964_v32  ;;  %v3738_v13 = vadd.f32 %v6665_v5, %v3737_v24 }
 0x1e9   : > { %v3822_v54 = vpop.f32.mrf.mxu0 }
 0x1ea   : > { %v3759_v4 = vpop.f32.mrf.mxu2 }
 0x1eb   : > { %v3760_v55 = vadd.f32 %v3759_v4, %v3731_v37 }
 0x1ed   : > { %v3793_v3 = vpop.f32.mrf.mxu3  ;;  %v3789_v17 = vadd.f32 %v3788_v35, %v3760_v55 }
 0x1ef   : > { %v3818_v2 = vadd.f32 %v3817_v26, %v3789_v17 }
 0x1f0   : > { %v3740_v56 = vpop.f32.mrf.mxu1 }
 0x1f1   : > { %v3824_v11 = vpop.f32.mrf.mxu0  ;;  %v3741_v33 = vadd.f32 %v6665_v5, %v3740_v56 }
 0x1f2   : > { %v3761_v21 = vpop.f32.mrf.mxu2 }
 0x1f3   : > { %v3762_v31 = vadd.f32 %v3761_v21, %v3733_v49 }
 0x1f5   : > { %v3795_v10 = vpop.f32.mrf.mxu3  ;;  %v3791_v48 = vadd.f32 %v3790_v25, %v3762_v31 }
 0x1f7   : > { %4095 = vmatmul.bf16.gmra.mxu2 %v5264_v20  ;;  %v3820_v45 = vadd.f32 %v3819_v50, %v3791_v48 }
 0x1f8   : > { %v3742_v8 = vpop.f32.mrf.mxu1 }
 0x1f9   : > { %v3827_v1 = vpop.f32.mrf.mxu0  ;;  %v3743_v42 = vadd.f32 %v6665_v5, %v3742_v8 }
 0x1fa   : > { %v3764_v22 = vpop.f32.mrf.mxu2 }
 0x1fb   : > { %v3765_v34 = vadd.f32 %v3764_v22, %v3736_v41 }
 0x1fd   : > { %v3798_v29 = vpop.f32.mrf.mxu3  ;;  %v3794_v62 = vadd.f32 %v3793_v3, %v3765_v34 }
 0x1ff   : > { %v3823_v18 = vadd.f32 %v3822_v54, %v3794_v62 }
 0x201   : > { %v3829_v43 = vpop.f32.mrf.mxu0 }
 0x202   : > { %v3766_v23 = vpop.f32.mrf.mxu2 }
 0x203   : > { %v3767_v46 = vadd.f32 %v3766_v23, %v3738_v13 }
 0x204   : > { %v3841_v14 = vpop.f32.mrf.mxu1 }
 0x205   : > { %v3842_v9 = vadd.f32 %v3841_v14, %v3813_v58  ;;  %v3796_v44 = vadd.f32 %v3795_v10, %v3767_v46  ;;  %v3800_v61 = vpop.f32.mrf.mxu3 }
 0x207   : > { %v3825_v35 = vadd.f32 %v3824_v11, %v3796_v44 }
 0x209   : > { %v3928_v47 = vpop.f32.mrf.mxu0 }
 0x20a   : > { %v3769_v12 = vpop.f32.mrf.mxu2 }
 0x20b   : > { %v3770_v57 = vadd.f32 %v3769_v12, %v3741_v33 }
 0x20c   : > { %v3843_v27 = vpop.f32.mrf.mxu1 }
 0x20d   : > { %v3844_v51 = vadd.f32 %v3843_v27, %v3815_v0  ;;  %v3799_v7 = vadd.f32 %v3798_v29, %v3770_v57  ;;  %v3899_v15 = vpop.f32.mrf.mxu3 }
 0x20f   : > { %v3828_v19 = vadd.f32 %v3827_v1, %v3799_v7 }
 0x211   : > { %v6676_v52 = vpop.f32.mrf.mxu0 }
 0x212   : > { %v3771_v39 = vpop.f32.mrf.mxu2 }
 0x213   : > { %v3772_v53 = vadd.f32 %v3771_v39, %v3743_v42 }
 0x215   : > { %v3846_v26 = vpop.f32.mrf.mxu1  ;;  %v3801_v38 = vadd.f32 %v3800_v61, %v3772_v53  ;;  %v3901_v6 = vpop.f32.mrf.mxu3 }
 0x216   : > { %v3847_v36 = vadd.f32 %v3846_v26, %v3818_v2 }
 0x217   : > { %v3830_v37 = vadd.f32 %v3829_v43, %v3801_v38 }
 0x21a   : > { %v3870_v30 = vpop.f32.mrf.mxu2 }
 0x21b   : > { %v3871_v40 = vadd.f32 %v3870_v30, %v3842_v9 }
 0x21c   : > { %v3933_v50 = vpop.f32.mrf.mxu0 }
 0x21d   : > { %v3848_v63 = vpop.f32.mrf.mxu1  ;;  %v3904_v25 = vpop.f32.mrf.mxu3  ;;  %v3900_v59 = vadd.f32 %v3899_v15, %v3871_v40 }
 0x21e   : > { %v6678_v16 = vadd.f32 %v3848_v63, %v3820_v45  ;;  %v6701_v45 = vld [vmem:[%s6776_s6] ss:$0 sm:$0xff] }
 0x21f   : > { %v3929_v21 = vadd.f32 %v3928_v47, %v3900_v59 }
 0x222   : > { %v3872_v28 = vpop.f32.mrf.mxu2 }
 0x223   : > { %v3873_v44 = vadd.f32 %v3872_v28, %v3844_v51 }
 0x224   : > { %v6680_v5 = vpop.f32.mrf.mxu0 }
 0x225   : > { %v3851_v32 = vpop.f32.mrf.mxu1  ;;  %v6682_v17 = vpop.f32.mrf.mxu3  ;;  %v3902_v12 = vadd.f32 %v3901_v6, %v3873_v44 }
 0x226   : > { %v3852_v24 = vadd.f32 %v3851_v32, %v3823_v18 }
 0x227   : > { %v3931_v39 = vadd.f32 %v6676_v52, %v3902_v12 }
 0x22a   : > { %v3875_v54 = vpop.f32.mrf.mxu2 }
 0x22b   : > { %v3876_v4 = vadd.f32 %v3875_v54, %v3847_v36 }
 0x22c   : > { %v3938_v56 = vpop.f32.mrf.mxu0 }
 0x22d   : > { %v3853_v55 = vpop.f32.mrf.mxu1  ;;  %v3905_v3 = vadd.f32 %v3904_v25, %v3876_v4  ;;  %v3909_v31 = vpop.f32.mrf.mxu3 }
 0x22e   : > { %v6684_v58 = vadd.f32 %v3853_v55, %v3825_v35 }
 0x22f   : > { %v6686_v60 = vadd.f32 %v3933_v50, %v3905_v3 }
 0x232   : > { %v3877_v49 = vpop.f32.mrf.mxu2 }
 0x233   : > { %v3878_v25 = vadd.f32 %v3877_v49, %v6678_v16 }
 0x234   : > { %v6688_v20 = vpop.f32.mrf.mxu0 }
 0x235   : > { %v3856_v11 = vpop.f32.mrf.mxu1  ;;  %v6692_v1 = vpop.f32.mrf.mxu3  ;;  %v3907_v3 = vadd.f32 %v6682_v17, %v3878_v25 }
 0x236   : > { %v3857_v33 = vadd.f32 %v3856_v11, %v3828_v19 }
 0x23a   : > { %v3880_v10 = vpop.f32.mrf.mxu2 }
 0x23b   : > { %v3881_v48 = vadd.f32 %v3880_v10, %v3852_v24 }
 0x23d   : > { %v3858_v0 = vpop.f32.mrf.mxu1  ;;  %v3910_v41 = vadd.f32 %v3909_v31, %v3881_v48  ;;  %v3914_v2 = vpop.f32.mrf.mxu3 }
 0x23e   : > { %v3859_v15 = vadd.f32 %v3858_v0, %v3830_v37 }
 0x23f   : > { %v6690_v8 = vadd.f32 %v3938_v56, %v3910_v41 }
 0x241   : > { %v3943_v34 = vpop.f32.mrf.mxu0 }
 0x242   : > { %v6694_v22 = vpop.f32.mrf.mxu2 }
 0x245   : > { %v3962_v29 = vpop.f32.mrf.mxu1  ;;  %v3916_v14 = vpop.f32.mrf.mxu3 }
 0x246   : > { %v3963_v11 = vadd.f32 %v3962_v29, %v6686_v60  ;;  %v3883_v60 = vadd.f32 %v6694_v22, %v6684_v58 }
 0x249   : > { %v3945_v13 = vpop.f32.mrf.mxu0 }
 0x24a   : > { %v3885_v62 = vpop.f32.mrf.mxu2 }
 0x24b   : > { %v3886_v57 = vadd.f32 %v3885_v62, %v3857_v33 }
 0x24d   : > { %v3964_v43 = vpop.f32.mrf.mxu1  ;;  %v4101_v27 = vpop.f32.mrf.mxu3  ;;  %v3915_v51 = vadd.f32 %v3914_v2, %v3886_v57 }
 0x24e   : > { %v4102_v24 = vadd.f32 %v6701_v45, %v4101_v27 }
 0x24f   : > { %v3944_v19 = vadd.f32 %v3943_v34, %v3915_v51 }
 0x251   : > { %v3957_v9 = vpop.f32.mrf.mxu0 }
 0x252   : > { %v3887_v23 = vpop.f32.mrf.mxu2  ;;  %v3958_v42 = vadd.f32 %v3957_v9, %v3929_v21  ;;  %v3936_v21 = vadd.f32 %v6680_v5, %v3907_v3  ;;  %v3912_v5 = vadd.f32 %v6692_v1, %v3883_v60 }
 0x253   : > { %v3888_v26 = vadd.f32 %v3887_v23, %v3859_v15 }
 0x254   : > { %v3965_v0 = vadd.f32 %v3964_v43, %v3936_v21  ;;  %v3941_v9 = vadd.f32 %v6688_v20, %v3912_v5 }
 0x255   : > { %v6696_v46 = vpop.f32.mrf.mxu1  ;;  %v3917_v40 = vadd.f32 %v3916_v14, %v3888_v26  ;;  %v4103_v28 = vpop.f32.mrf.mxu3 }
 0x256   : > { %v4104_v4 = vadd.f32 %v6701_v45, %v4103_v28  ;;  %v3968_v43 = vadd.f32 %v6696_v46, %v6690_v8 }
 0x257   : > { %v3946_v54 = vadd.f32 %v3945_v13, %v3917_v40 }
 0x259   : > { %v3959_v18 = vpop.f32.mrf.mxu0 }
 0x25a   : > { %v4086_v61 = vpop.f32.mrf.mxu2  ;;  %v3960_v38 = vadd.f32 %v3959_v18, %v3931_v39 }
 0x25b   : > { %v4087_v7 = vadd.f32 %v6701_v45, %v4086_v61 }
 0x25d   : > { %v3969_v47 = vpop.f32.mrf.mxu1  ;;  %v4106_v36 = vadd.f32 %v4087_v7, %v3958_v42 }
 0x25e   : > { %v3970_v61 = vadd.f32 %v3969_v47, %v3941_v9 }
 0x25f   : > { %v4114_v63 = vmax.f32 %v4106_v36, 0.0 }
 0x262   : > { %v4088_v53 = vpop.f32.mrf.mxu2 }
 0x263   : > { %v4089_v35 = vadd.f32 %v6701_v45, %v4088_v53 }
 0x265   : > { %v3972_v30 = vpop.f32.mrf.mxu1  ;;  %v4107_v6 = vadd.f32 %v4089_v35, %v3960_v38 }
 0x266   : > { %v3973_v32 = vadd.f32 %v3972_v30, %v3944_v19 }
 0x267   : > { %v4115_v50 = vmax.f32 %v4107_v6, 0.0 }
 0x268   : > { %v4112_v56 = vadd.f32 %v4102_v24, %v3973_v32 }
 0x269   : > { %v5538_v52 = vpack.c.bf16 %v4115_v50, %v4114_v63 }
 0x26a   : > { %v4091_v37 = vpop.f32.mrf.mxu2  ;;  %v4120_v31 = vmax.f32 %v4112_v56, 0.0 }
 0x26b   : > { %5539 = vst [vmem:[%s6711_s30] sm:$0xff] %v5538_v52   ;;  %v4092_v16 = vadd.f32 %v6701_v45, %v4091_v37 }
 0x26d   : > { %v3974_v55 = vpop.f32.mrf.mxu1  ;;  %v4108_v41 = vadd.f32 %v4092_v16, %v3963_v11 }
 0x26e   : > { %v3975_v59 = vadd.f32 %v3974_v55, %v3946_v54 }
 0x26f   : > { %v4116_v2 = vmax.f32 %v4108_v41, 0.0 }
 0x270   : > { %v4113_v49 = vadd.f32 %v4104_v4, %v3975_v59 }
 0x272   : > { %v4121_v10 = vmax.f32 %v4113_v49, 0.0  ;;  %v4093_v48 = vpop.f32.mrf.mxu2 }
 0x273   : > { %v4094_v34 = vadd.f32 %v6701_v45, %v4093_v48 }
 0x274   : > { %v5553_v62 = vpack.c.bf16 %v4121_v10, %v4120_v31 }
 0x275   : > { %v4109_v17 = vadd.f32 %v4094_v34, %v3965_v0 }
 0x276   : > { %5557 = vst [vmem:[%s6711_s30 + $0x18] sm:$0xff] %v5553_v62  }
 0x277   : > { %v4117_v13 = vmax.f32 %v4109_v17, 0.0 }
 0x279   : > { %v5543_v29 = vpack.c.bf16 %v4117_v13, %v4116_v2 }
 0x27a   : > { %v4096_v23 = vpop.f32.mrf.mxu2 }
 0x27b   : > { %5555 = vst [vmem:[%s6711_s30 + $0x8] sm:$0xff] %v5543_v29   ;;  %v4097_v14 = vadd.f32 %v6701_v45, %v4096_v23 }
 0x27d   : > { %v4110_v33 = vadd.f32 %v4097_v14, %v3968_v43 }
 0x27f   : > { %v4118_v22 = vmax.f32 %v4110_v33, 0.0 }
 0x282   : > { %v4098_v44 = vpop.f32.mrf.mxu2 }
 0x283   : > { %v4099_v58 = vadd.f32 %v6701_v45, %v4098_v44 }
 0x285   : > { %v4111_v1 = vadd.f32 %v4099_v58, %v3970_v61 }
 0x287   : > { %v4119_v12 = vmax.f32 %v4111_v1, 0.0 }
 0x289   : > { %v5548_v8 = vpack.c.bf16 %v4119_v12, %v4118_v22 }
 0x28b   : > { %5556 = vst [vmem:[%s6711_s30 + $0x10] sm:$0xff] %v5548_v8  }
 0x28c   : > { %5714 = shalt.err (!%p5711_p9)
}
 0x28d   : > { %s5775_s21 = smov 64   ;;  %s5776_s30 = smov 4  }
 0x28e   : > { %5587 = dma.vmem_to_hbm [thread:$0]  (%p5857_p4), %s4153_s15, 512, %s4155_s27, %s4139_s16, %s5775_s21, %s5775_s21, %s5776_s30  }
 0x28f PF: > { %p5599_p10 = scmp.ge.s32.totalorder %s5769_s29, 2  ;;  %s4169_s10 = sand.u32 1, %s5749_s24  }
 0x290   : > { %s4170_s12 = scalar_lea.sflag [#allocation7], %s4169_s10 }
 0x291   : > { %p5594_p11 = pnand %p5599_p10, %p5864_p8 }
 0x293   : > { %p5595_p12 = pneg %p5594_p11 }
 0x295   : > { %5744 = dma.done.wait (%p5595_p12), %s4170_s12, 512  }
 0x296   : > { %5746 = vsyncadd (%p5595_p12), %s4170_s12, 4294966784  ;;  %s21_s29 = sadd.s32 1, %s5769_s29   ;;  %s6790_s24 = smov %s5753_s25 }
 0x297   : > { %p18_p13 = scmp.ge.s32.totalorder %s21_s29, 4   ;;  %s6791_s25 = smov %s5757_s26 }
 0x298   : > { %s6792_s26 = smov %s5870_s14  ;;  %s6793_s27 = smov %s5765_s28 }
 0x299   : > { %s6794_s28 = smov %s6796_s9  ;;  %20 = sbr.rel (!%p18_p13) target bundleno = 5 (0x5), region = 110 }
 0x29e   :  { %4176 = vsyncpa [#allocation6], 1 }
 0x29f   :  { %4178 = vsyncpa [#allocation6 + $0x1], 1 }
 0x2a0   :  { %4179 = vsyncpa [#allocation7], 1 }
 0x2a1   :  { %4181 = vsyncpa [#allocation7 + $0x1], 1 }

// kernel: tpu_custom_call.1
= control target key start
LH: loop header
LB: loop body
LE: loop exit
PB: predicated region body
PF: predicated region fallthrough
CT: control target
= control target key end

     0   :  { %12 = vsyncpa [#allocation6], 0  ;;  %s6770_s0 = inlined_call_operand.vmem [shape: bf16[8,9,9,128], index: 0, kind: input, shape index: {}]   ;;  %s6771_s1 = inlined_call_operand.vmem [shape: bf16[1152,128], index: 1, kind: input, shape index: {}]   ;;  %s6772_s2 = inlined_call_operand.vmem [shape: f32[1,128], index: 2, kind: input, shape index: {}]   ;;  %s6773_s3 = inlined_call_operand.hbm [shape: bf16[1152,128], index: 3, kind: input, shape index: {}]   ;;  %s6774_s4 = inlined_call_operand.vmem [shape: f32[1,128], index: 4, kind: input, shape index: {}]   ;;  %s6775_s5 = inlined_call_operand.vmem [shape: bf16[128,128], index: 5, kind: input, shape index: {}]   ;;  %s6776_s6 = inlined_call_operand.vmem [shape: f32[1,128], index: 6, kind: input, shape index: {}]   ;;  %s6777_s7 = inlined_call_operand.hbm [shape: bf16[2,64,128], index: 7, kind: output, shape index: {}]  }
   0x1   :  { %13 = vsyncpa [#allocation7], 0 }
   0x2   :  { %15 = vsyncpa [#allocation7 + $0x1], 0  ;;  %s5817_s24 = smov 0   ;;  %s5819_s25 = smov 0  }
   0x3   :  { %s5821_s26 = smov 0   ;;  %s5823_s27 = smov 0  }
   0x4   :  { %s5825_s28 = smov 0   ;;  %s5827_s29 = smov 0  }
   0x5 LB: > { %s4280_s30 = sadd.s32 4294967295, %s5769_s29   ;;  %s4281_s8 = sadd.s32 4294967294, %s5769_s29   ;;  %s5769_s29 = sphi %s5827_s29, %s21_s29   ;;  %s5765_s28 = sphi %s5825_s28, %s6794_s28   ;;  %s5761_s27 = sphi %s5823_s27, %s6793_s27   ;;  %s5757_s26 = sphi %s5821_s26, %s6792_s26   ;;  %s5753_s25 = sphi %s5819_s25, %s6791_s25   ;;  %s5749_s24 = sphi %s5817_s24, %s6790_s24  }
   0x6   : > { %s33_s9 = sadd.s32 1, %s5765_s28  ;;  %s214_s10 = sadd.s32 1, %s5757_s26 }
   0x7   : > { %p35_p0 = scmp.ge.s32.totalorder %s33_s9, 2  ;;  %p224_p1 = scmp.ne.s32.totalorder %s5757_s26, %s5753_s25 }
   0x8   : > { %p225_p2 = scmp.eq.s32.totalorder %s4280_s30, 1  ;;  %p230_p3 = scmp.ne.s32.totalorder %s5753_s25, %s5749_s24 }
   0x9   : > { %s6796_s9 = smov (%p35_p0, %s33_s9), 0  ;;  %p231_p5 = scmp.eq.s32.totalorder %s4281_s8, 1 }
   0xa   : > { %p5857_p4 = por %p225_p2, %p224_p1  ;;  %s209_s12 = ssub.s32 %s5765_s28, %s6796_s9 }
   0xb   : > { %p4282_p6 = scmp.ge.s32.totalorder %s5769_s29, 1  ;;  %p212_p7 = scmp.eq.s32.totalorder %s209_s12, 0 }
   0xc   : > { %p5864_p8 = por %p231_p5, %p230_p3  ;;  %p238_p9 = scmp.lt.s32.totalorder %s5769_s29, 3 }
   0xd   : > { %s5870_s14 = scalar_select %p212_p7, %s5757_s26, %s214_s10  }
   0xe   : > { %p239_p10 = pnand %p4282_p6, %p238_p9  ;;  %p5597_p11 = scmp.eq.s32.totalorder %s4280_s30, 0 }
   0xf   : > { %s257_s17 = sshll.u32 %s6773_s3, 4  ;;  %s5771_s18 = smov [#allocation5]   ;;  %s258_s17 = int_to_ptr.hbm [resolvable:$true] %s257_s17 }
  0x10   : > { %p5589_p12 = pneg %p239_p10  ;;  %s259_s19 = sshll.u32 %s5771_s18, 4  ;;  %s260_s19 = int_to_ptr.vmem [resolvable:$true] %s259_s19 }
  0x11   : > { %s5772_s20 = smov 64   ;;  %s5773_s21 = smov 4  }
  0x12   : > { %p5590_p13 = pnand %p5597_p11, %p5589_p12  ;;  %304 = sbr.rel (%p239_p10) target bundleno = 655 (0x28f), region = 48 }
  0x14   : > { %5592 = dma.hbm_to_vmem [thread:$0]  (!%p5590_p13), %s258_s17, 9216, %s260_s19, [#allocation6], %s5772_s20, %s5772_s20, %s5773_s21  }
  0x17   : > { %5740 = dma.done.wait (%p5597_p11), [#allocation6], 9216  }
  0x18   : > { %5742 = vsyncadd (%p5597_p11), [#allocation6], 4294958080  ;;  %s4291_s22 = sshll.u32 %s5761_s27, 2  ;;  %v5349_v0 = vld [vmem:[%s6771_s1 + $0x38] sm:$0xff]  ;;  %v5348_v3 = vld [vmem:[%s6771_s1 + $0x30] sm:$0xff]  ;;  %vm375_vm3 = vcmask 1040384  }
  0x19   : > { %p349_p0 = scmp.lt.s32.totalorder %s4291_s22, 7  ;;  %v5357_v1 = vld [vmem:[%s6771_s1 + $0x78] sm:$0xff]  ;;  %1780 = vmatpush.bf16.msra.mxu0 %v5349_v0  ;;  %5558 = vmatpush.bf16.msra.mxu3 %v5349_v0  ;;  %v5356_v4 = vld [vmem:[%s6771_s1 + $0x70] sm:$0xff]  ;;  %v5347_v6 = vld [vmem:[%s6771_s1 + $0x28] sm:$0xff]  ;;  %vm489_vm0 = vsmask.f32 3328 }
  0x1a   : > { %v5365_v2 = vld [vmem:[%s6771_s1 + $0xb8] sm:$0xff]  ;;  %1809 = vmatpush.bf16.msra.mxu1 %v5357_v1  ;;  %v5364_v5 = vld [vmem:[%s6771_s1 + $0xb0] sm:$0xff]  ;;  %v5355_v7 = vld [vmem:[%s6771_s1 + $0x68] sm:$0xff]  ;;  %vm490_vm1 = vsmask.f32 7440  ;;  %vm2380_vm8 = vcmask 1042432  }
  0x1b   : > { %s6798_s22 = smov (!%p349_p0, %s4291_s22), 7  ;;  %1838 = vmatpush.bf16.msra.mxu2 %v5365_v2  ;;  %v5363_v8 = vld [vmem:[%s6771_s1 + $0xa8] sm:$0xff]  ;;  %v5346_v9 = vld [vmem:[%s6771_s1 + $0x20] sm:$0xff]  ;;  %v5345_v28 = vld [vmem:[%s6771_s1 + $0x18] sm:$0xff]  ;;  %vm376_vm4 = vsmask.f32 256 }
  0x1c   : > { %s5582_s23 = smul.u32 72, %s6798_s22  ;;  %v5354_v13 = vld [vmem:[%s6771_s1 + $0x60] sm:$0xff]  ;;  %v5353_v31 = vld [vmem:[%s6771_s1 + $0x58] sm:$0xff]  ;;  %vm5938_vm2 = vmor %vm489_vm0, %vm490_vm1  ;;  %vm408_vm6 = vsmask.f32 7938  ;;  %vm2381_vm9 = vcmask 1046532  }
  0x1d   : > { %1781 = vmatpush.bf16.msra.mxu0 %v5348_v3  ;;  %5559 = vmatpush.bf16.msra.mxu3 %v5348_v3  ;;  %v5362_v14 = vld [vmem:[%s6771_s1 + $0xa0] sm:$0xff]  ;;  %v5361_v32 = vld [vmem:[%s6771_s1 + $0x98] sm:$0xff]  ;;  %v5344_v40 = vld [vmem:[%s6771_s1 + $0x10] sm:$0xff]  ;;  %vm2138_vm11 = vcmask 1043456   ;;  %s345_s21 = sand.u32 1, %s5753_s25   ;;  %s5534_s8 = sshll.u32 %s5761_s27, 5 }
  0x1e   : > { %1810 = vmatpush.bf16.msra.mxu1 %v5356_v4  ;;  %s5906_s22 = scalar_lea.vmem %s6770_s0, %s5582_s23  ;;  %v5352_v43 = vld [vmem:[%s6771_s1 + $0x50] sm:$0xff]  ;;  %v5343_v46 = vld [vmem:[%s6771_s1 + $0x8] sm:$0xff]  ;;  %v5342_v58 = vld [vmem:[%s6771_s1] sm:$0xff]  ;;  %s4290_s23 = sshll.u32 %s345_s21, 5 }
  0x1f   : > { %1839 = vmatpush.bf16.msra.mxu2 %v5364_v5  ;;  %v440_v10 = vld [vmem:[%s5906_s22] sm:$0xf]  ;;  %v441_v11 = vld [vmem:[%s5906_s22 + $0x8] sm:$0xf]  ;;  %v4294_v17 = vld [vmem:[%s5906_s22 + $0x50] sm:$0xf]  ;;  %s4151_s12 = scalar_lea.hbm %s6777_s7, %s5534_s8 }
  0x20   : > { %v444_v12 = vld [vmem:[%s5906_s22 + $0x20] sm:$0xf]  ;;  %448 = vst [vmem:[#allocation3] sm:$0xf] %v440_v10  ;;  %v445_v15 = vld [vmem:[%s5906_s22 + $0x28] sm:$0xf]  ;;  %vm6317_vm5 = vmand %vm375_vm3, %vm376_vm4 }
  0x21   : > { %v4293_v16 = vld [vmem:[%s5906_s22 + $0x48] sm:$0xf]  ;;  %1782 = vmatpush.bf16.msra.mxu0 %v5347_v6  ;;  %5560 = vmatpush.bf16.msra.mxu3 %v5347_v6  ;;  %449 = vst [vmem:[#allocation3 + $0x24] sm:$0xf] %v441_v11  ;;  %v473_v18 = vld [vmem:[%s5906_s22] sm:$0xf]  ;;  %vm6324_vm7 = vmand %vm375_vm3, %vm408_vm6 }
  0x22   : > { %1811 = vmatpush.bf16.msra.mxu1 %v5355_v7  ;;  %452 = vst [vmem:[#allocation3 + $0x90] sm:$0xf] %v444_v12  ;;  %v474_v19 = vld [vmem:[%s5906_s22 + $0x4] sm:$0x1]  ;;  %v475_v20 = vld [vmem:[%s5906_s22 + $0x8] sm:$0xf]  ;;  %vm6379_vm10 = vmor %vm2380_vm8, %vm2381_vm9 }
  0x23   : > { %1840 = vmatpush.bf16.msra.mxu2 %v5363_v8  ;;  %453 = vst [vmem:[#allocation3 + $0xb4] sm:$0xf] %v445_v15  ;;  %v476_v21 = vld [vmem:[%s5906_s22 + $0xc] sm:$0x1]  ;;  %v493_v22 = vshrl.u32 %v473_v18, 16  ;;  %v496_v23 = vshll.u32 %v473_v18, 16  ;;  %vm6414_vm12 = vmand %vm2138_vm11, %vm408_vm6 }
  0x24   : > { %465 = vst [vmem:[#allocation3 + $0x4] sm:$0xf] %v4293_v16  ;;  %v502_v24 = vshll.u32 %v474_v19, 16  ;;  %v507_v25 = vshrl.u32 %v475_v20, 16  ;;  %v510_v26 = vshll.u32 %v475_v20, 16  ;;  %v516_v27 = vshll.u32 %v476_v21, 16 }
  0x25   : > { %1783 = vmatpush.bf16.msra.mxu0 %v5346_v9  ;;  %5561 = vmatpush.bf16.msra.mxu3 %v5346_v9  ;;  %466 = vst [vmem:[#allocation3 + $0x28] sm:$0xf] %v4294_v17  ;;  %v495_v29 = vrot.slane %v493_v22, 4  ;;  %v498_v30 = vrot.slane %v496_v23, 5  ;;  %v442_v42 = vld [vmem:[%s5906_s22 + $0x10] sm:$0xf] }
  0x26   : > { %1812 = vmatpush.bf16.msra.mxu1 %v5354_v13  ;;  %v509_v33 = vrot.slane %v507_v25, 4  ;;  %v512_v34 = vrot.slane %v510_v26, 5  ;;  %v504_v36 = vrot.slane %v502_v24, 5  ;;  %v518_v39 = vrot.slane %v516_v27, 5  ;;  %v5360_v44 = vld [vmem:[%s6771_s1 + $0x90] sm:$0xff]  ;;  %v5351_v49 = vld [vmem:[%s6771_s1 + $0x48] sm:$0xff] }
  0x27   : > { %1841 = vmatpush.bf16.msra.mxu2 %v5362_v14  ;;  %v499_v35 = vor.u32 %v498_v30, %v495_v29  ;;  %v443_v48 = vld [vmem:[%s5906_s22 + $0x18] sm:$0xf]  ;;  %450 = vst [vmem:[#allocation3 + $0x48] sm:$0xf] %v442_v42  ;;  %v5359_v50 = vld [vmem:[%s6771_s1 + $0x88] sm:$0xff]  ;;  %v5350_v1 = vld [vmem:[%s6771_s1 + $0x40] sm:$0xff] }
  0x28   : > { %v513_v38 = vor.u32 %v512_v34, %v509_v33  ;;  %v446_v52 = vld [vmem:[%s5906_s22 + $0x30] sm:$0xf]  ;;  %v447_v53 = vld [vmem:[%s5906_s22 + $0x38] sm:$0xf]  ;;  %v4296_v55 = vld [vmem:[%s5906_s22 + $0x60] sm:$0xf] }
  0x29   : > { %1784 = vmatpush.bf16.msra.mxu0 %v5345_v28  ;;  %5562 = vmatpush.bf16.msra.mxu3 %v5345_v28  ;;  %v500_v41 = vrot.slane %v499_v35, 4  ;;  %v4295_v54 = vld [vmem:[%s5906_s22 + $0x58] sm:$0xf]  ;;  %451 = vst [vmem:[#allocation3 + $0x6c] sm:$0xf] %v443_v48  ;;  %v5358_v2 = vld [vmem:[%s6771_s1 + $0x80] sm:$0xff] }
  0x2a   : > { %1813 = vmatpush.bf16.msra.mxu1 %v5353_v31  ;;  %v514_v45 = vrot.slane %v513_v38, 4  ;;  %v477_v56 = vld [vmem:[%s5906_s22 + $0x10] sm:$0xf]  ;;  %v478_v57 = vld [vmem:[%s5906_s22 + $0x14] sm:$0x1]  ;;  %v5373_v14 = vld [vmem:[%s6771_s1 + $0xf8] sm:$0xff] }
  0x2b   : > { %1842 = vmatpush.bf16.msra.mxu2 %v5361_v32  ;;  %v505_v47 = vsel %vm5938_vm2, %v500_v41, %v504_v36  ;;  %v4367_v59 = vld [vmem:[#allocation3] sm:$0xf]  ;;  %v5310_v60 = vld [vmem:[#allocation3 + $0x20] sm:$0xf0]  ;;  %v4439_v61 = vld [vmem:[#allocation3 + $0x90] sm:$0xf] }
  0x2c   : > { %v519_v51 = vsel %vm5938_vm2, %v514_v45, %v518_v39  ;;  %612 = vst [vmem:[#allocation3 + $0x8] sm:$0xf] %v505_v47  ;;  %v5328_v62 = vld [vmem:[#allocation3 + $0xb0] sm:$0xf0]  ;;  %v479_v63 = vld [vmem:[%s5906_s22 + $0x18] sm:$0xf]  ;;  %v4368_v18 = vor.u32 %v5310_v60, %v4367_v59 }
  0x2d   : > { %1785 = vmatpush.bf16.msra.mxu0 %v5344_v40  ;;  %5563 = vmatpush.bf16.msra.mxu3 %v5344_v40  ;;  %613 = vst [vmem:[#allocation3 + $0x2c] sm:$0xf] %v519_v51  ;;  %v480_v0 = vld [vmem:[%s5906_s22 + $0x1c] sm:$0x1]  ;;  %v521_v3 = vshrl.u32 %v477_v56, 16  ;;  %v524_v4 = vshll.u32 %v477_v56, 16  ;;  %v4440_v19 = vor.u32 %v5328_v62, %v4439_v61 }
  0x2e   : > { %1814 = vmatpush.bf16.msra.mxu1 %v5352_v43  ;;  %454 = vst [vmem:[#allocation3 + $0xd8] sm:$0xf] %v446_v52  ;;  %v530_v5 = vshll.u32 %v478_v57, 16  ;;  %v535_v6 = vshrl.u32 %v479_v63, 16  ;;  %v5306_v7 = vld [vmem:[#allocation3 + $0x4] sm:$0xf] }
  0x2f   : > { %1843 = vmatpush.bf16.msra.mxu2 %v5360_v44  ;;  %455 = vst [vmem:[#allocation3 + $0xfc] sm:$0xf] %v447_v53  ;;  %v538_v8 = vshll.u32 %v479_v63, 16  ;;  %v544_v9 = vshll.u32 %v480_v0, 16  ;;  %v4369_v10 = vld [vmem:[#allocation3 + $0x24] sm:$0xf0] }
  0x30   : > { %467 = vst [vmem:[#allocation3 + $0x4c] sm:$0xf] %v4295_v54  ;;  %v523_v11 = vrot.slane %v521_v3, 4  ;;  %v526_v12 = vrot.slane %v524_v4, 5  ;;  %v5381_v15 = vld [vmem:[%s6771_s1 + $0x138] sm:$0xff]  ;;  %v537_v16 = vrot.slane %v535_v6, 4  ;;  %v4372_v23 = vor.u32 %v5306_v7, %v4369_v10 }
  0x31   : > { %1786 = vmatpush.bf16.msra.mxu0 %v5343_v46  ;;  %5564 = vmatpush.bf16.msra.mxu3 %v5343_v46  ;;  %468 = vst [vmem:[#allocation3 + $0x70] sm:$0xf] %v4296_v55  ;;  %v540_v17 = vrot.slane %v538_v8, 5  ;;  %v532_v22 = vrot.slane %v530_v5, 5  ;;  %v546_v26 = vrot.slane %v544_v9, 5  ;;  %v5397_v28 = vld [vmem:[%s6771_s1 + $0x1b8] sm:$0xff] }
  0x32   : > { %1815 = vmatpush.bf16.msra.mxu1 %v5351_v49  ;;  %v527_v21 = vor.u32 %v526_v12, %v523_v11  ;;  %v4297_v29 = vld [vmem:[%s5906_s22 + $0x68] sm:$0xf]  ;;  %v5372_v30 = vld [vmem:[%s6771_s1 + $0xf0] sm:$0xff]  ;;  %v481_v35 = vld [vmem:[%s5906_s22 + $0x20] sm:$0xf]  ;;  %s6711_s30 = scalar_lea.vmem [#allocation8], %s4290_s23 }
  0x33   : > { %1844 = vmatpush.bf16.msra.mxu2 %v5359_v50  ;;  %v4375_v13 = vld [vmem:[#allocation3 + $0x8] sm:$0xf]  ;;  %v541_v25 = vor.u32 %v540_v17, %v537_v16  ;;  %v5380_v31 = vld [vmem:[%s6771_s1 + $0x130] sm:$0xff]  ;;  %469 = vst [vmem:[#allocation3 + $0x94] sm:$0xf] %v4297_v29  ;;  %v5371_v36 = vld [vmem:[%s6771_s1 + $0xe8] sm:$0xff] }
  0x34   : > { %v5311_v20 = vld [vmem:[#allocation3 + $0x28] sm:$0xf0]  ;;  %v528_v27 = vrot.slane %v527_v21, 4  ;;  %v4298_v34 = vld [vmem:[%s5906_s22 + $0x70] sm:$0xf]  ;;  %v5379_v38 = vld [vmem:[%s6771_s1 + $0x128] sm:$0xff] }
  0x35   : > { %1787 = vmatpush.bf16.msra.mxu0 %v5342_v58  ;;  %5565 = vmatpush.bf16.msra.mxu3 %v5342_v58  ;;  %v4376_v24 = vor.u32 %v5311_v20, %v4375_v13  ;;  %v542_v32 = vrot.slane %v541_v25, 4  ;;  %v482_v40 = vld [vmem:[%s5906_s22 + $0x24] sm:$0x1]  ;;  %v483_v41 = vld [vmem:[%s5906_s22 + $0x28] sm:$0xf]  ;;  %v549_v43 = vshrl.u32 %v481_v35, 16 }
  0x36   : > { %1816 = vmatpush.bf16.msra.mxu1 %v5350_v1  ;;  %v533_v33 = vsel %vm5938_vm2, %v528_v27, %v532_v22  ;;  %v484_v42 = vld [vmem:[%s5906_s22 + $0x2c] sm:$0x1]  ;;  %470 = vst [vmem:[#allocation3 + $0xb8] sm:$0xf] %v4298_v34  ;;  %v552_v44 = vshll.u32 %v481_v35, 16  ;;  %v558_v45 = vshll.u32 %v482_v40, 16 }
  0x37   : > { %1845 = vmatpush.bf16.msra.mxu2 %v5358_v2  ;;  %v547_v39 = vsel %vm5938_vm2, %v542_v32, %v546_v26  ;;  %614 = vst [vmem:[#allocation3 + $0x50] sm:$0xf] %v533_v33  ;;  %v563_v46 = vshrl.u32 %v483_v41, 16  ;;  %v566_v47 = vshll.u32 %v483_v41, 16  ;;  %v572_v48 = vshll.u32 %v484_v42, 16  ;;  %v5370_v54 = vld [vmem:[%s6771_s1 + $0xe0] sm:$0xff] }
  0x38   : > { %1788 = vmatmul.bf16.vlgmr.msra.gmra.mxu0 %v4368_v18  ;;  %1798 = vmatmul.bf16.vlgmr.msra.gmra.mxu3 %v4440_v19  ;;  %615 = vst [vmem:[#allocation3 + $0x74] sm:$0xf] %v547_v39  ;;  %v4301_v49 = vld [vmem:[%s5906_s22 + $0x90] sm:$0xf]  ;;  %v4302_v50 = vld [vmem:[%s5906_s22 + $0x98] sm:$0xf] }
  0x39   : > { %1867 = vmatpush.bf16.msrb.mxu3 %v5373_v14  ;;  %1896 = vmatpush.bf16.msrb.mxu0 %v5381_v15  ;;  %v551_v51 = vrot.slane %v549_v43, 4  ;;  %v554_v52 = vrot.slane %v552_v44, 5  ;;  %v565_v53 = vrot.slane %v563_v46, 4  ;;  %629 = vst [vmem:[#allocation3 + $0xc] sm:$0xf] %v4301_v49  ;;  %v568_v55 = vrot.slane %v566_v47, 5 }
  0x3a   : > { %1817 = vmatmul.bf16.vlgmr.msra.gmra.mxu1 %v4372_v23  ;;  %1846 = vmatmul.bf16.vlgmr.msra.gmra.mxu2 %v4376_v24  ;;  %630 = vst [vmem:[#allocation3 + $0x30] sm:$0xf] %v4302_v50  ;;  %v4309_v56 = vld [vmem:[%s5906_s22 + $0xd8] sm:$0xf]  ;;  %v5378_v57 = vld [vmem:[%s6771_s1 + $0x120] sm:$0xff]  ;;  %v560_v62 = vrot.slane %v558_v45, 5 }
  0x3b   : > { %1954 = vmatpush.bf16.msrb.mxu2 %v5397_v28  ;;  %v4403_v58 = vld [vmem:[#allocation3 + $0x48] sm:$0xf]  ;;  %v5319_v59 = vld [vmem:[#allocation3 + $0x68] sm:$0xf0]  ;;  %v4475_v60 = vld [vmem:[#allocation3 + $0xd8] sm:$0xf]  ;;  %v555_v61 = vor.u32 %v554_v52, %v551_v51  ;;  %v569_v1 = vor.u32 %v568_v55, %v565_v53 }
  0x3c   : > { %v4310_v63 = vld [vmem:[%s5906_s22 + $0xe0] sm:$0xf]  ;;  %646 = vst [vmem:[#allocation3 + $0x10] sm:$0xf] %v4309_v56  ;;  %v5337_v0 = vld [vmem:[#allocation3 + $0xf8] sm:$0xf0]  ;;  %v4404_v15 = vor.u32 %v5319_v59, %v4403_v58 }
  0x3d   : > { %1868 = vmatpush.bf16.msrb.mxu3 %v5372_v30  ;;  %1897 = vmatpush.bf16.msrb.mxu0 %v5380_v31  ;;  %v574_v2 = vrot.slane %v572_v48, 5  ;;  %647 = vst [vmem:[#allocation3 + $0x34] sm:$0xf] %v4310_v63  ;;  %v5389_v3 = vld [vmem:[%s6771_s1 + $0x178] sm:$0xff]  ;;  %v4405_v5 = vld [vmem:[#allocation3 + $0x6c] sm:$0xf0]  ;;  %v4476_v16 = vor.u32 %v5337_v0, %v4475_v60 }
  0x3e   : > { %v5315_v4 = vld [vmem:[#allocation3 + $0x4c] sm:$0xf]  ;;  %v556_v6 = vrot.slane %v555_v61, 4  ;;  %v5396_v7 = vld [vmem:[%s6771_s1 + $0x1b0] sm:$0xff]  ;;  %v4411_v8 = vld [vmem:[#allocation3 + $0x50] sm:$0xf]  ;;  %1925 = vmatpush.bf16.msrb.mxu1 %v5389_v3 }
  0x3f   : > { %v5320_v9 = vld [vmem:[#allocation3 + $0x70] sm:$0xf0]  ;;  %v570_v10 = vrot.slane %v569_v1, 4  ;;  %v5388_v11 = vld [vmem:[%s6771_s1 + $0x170] sm:$0xff]  ;;  %v5369_v12 = vld [vmem:[%s6771_s1 + $0xd8] sm:$0xff]  ;;  %1955 = vmatpush.bf16.msrb.mxu2 %v5396_v7  ;;  %v4408_v18 = vor.u32 %v5315_v4, %v4405_v5  ;;  %s4152_s15 = sshll.u32 %s6711_s30, 4  ;;  %s4153_s15 = int_to_ptr.vmem [resolvable:$true] %s4152_s15 }
  0x40   : > { %v5377_v13 = vld [vmem:[%s6771_s1 + $0x118] sm:$0xff]  ;;  %v561_v14 = vsel %vm5938_vm2, %v556_v6, %v560_v62  ;;  %v4412_v19 = vor.u32 %v5320_v9, %v4411_v8  ;;  %v5387_v21 = vld [vmem:[%s6771_s1 + $0x168] sm:$0xff]  ;;  %v4300_v23 = vld [vmem:[%s5906_s22 + $0x80] sm:$0xf]  ;;  %s4154_s27 = sshll.u32 %s4151_s12, 4  ;;  %s4139_s16 = scalar_lea.sflag [#allocation7], %s345_s21  ;;  %s4155_s27 = int_to_ptr.hbm [resolvable:$true] %s4154_s27 }
  0x41   : > { %1869 = vmatpush.bf16.msrb.mxu3 %v5371_v36  ;;  %1898 = vmatpush.bf16.msrb.mxu0 %v5379_v38  ;;  %v575_v17 = vsel %vm5938_vm2, %v570_v10, %v574_v2  ;;  %616 = vst [vmem:[#allocation3 + $0x98] sm:$0xf] %v561_v14  ;;  %v4299_v20 = vld [vmem:[%s5906_s22 + $0x78] sm:$0xf]  ;;  %v5395_v22 = vld [vmem:[%s6771_s1 + $0x1a8] sm:$0xff]  ;;  %v5368_v24 = vld [vmem:[%s6771_s1 + $0xd0] sm:$0xff] }
  0x42   : > { %617 = vst [vmem:[#allocation3 + $0xbc] sm:$0xf] %v575_v17  ;;  %1926 = vmatpush.bf16.msrb.mxu1 %v5388_v11  ;;  %v5376_v25 = vld [vmem:[%s6771_s1 + $0x110] sm:$0xff]  ;;  %v5386_v27 = vld [vmem:[%s6771_s1 + $0x160] sm:$0xff]  ;;  %v487_v30 = vld [vmem:[%s5906_s22 + $0x38] sm:$0xf] }
  0x43   : > { %471 = vst [vmem:[#allocation3 + $0xdc] sm:$0xf] %v4299_v20  ;;  %v485_v26 = vld [vmem:[%s5906_s22 + $0x30] sm:$0xf]  ;;  %v5394_v28 = vld [vmem:[%s6771_s1 + $0x1a0] sm:$0xff]  ;;  %v591_v35 = vshrl.u32 %v487_v30, 16  ;;  %1956 = vmatpush.bf16.msrb.mxu2 %v5395_v22 }
  0x44   : > { %472 = vst [vmem:[#allocation3 + $0x100] sm:$0xf] %v4300_v23  ;;  %v486_v29 = vld [vmem:[%s5906_s22 + $0x34] sm:$0x1]  ;;  %v488_v31 = vld [vmem:[%s5906_s22 + $0x3c] sm:$0x1] }
  0x45   : > { %1870 = vmatpush.bf16.msrb.mxu3 %v5370_v54  ;;  %1899 = vmatpush.bf16.msrb.mxu0 %v5378_v57  ;;  %v577_v32 = vshrl.u32 %v485_v26, 16  ;;  %v580_v33 = vshll.u32 %v485_v26, 16  ;;  %v586_v34 = vshll.u32 %v486_v29, 16  ;;  %v4303_v36 = vld [vmem:[%s5906_s22 + $0xa0] sm:$0xf]  ;;  %v594_v38 = vshll.u32 %v487_v30, 16 }
  0x46   : > { %1927 = vmatpush.bf16.msrb.mxu1 %v5387_v21  ;;  %v600_v39 = vshll.u32 %v488_v31, 16  ;;  %v4304_v40 = vld [vmem:[%s5906_s22 + $0xa8] sm:$0xf]  ;;  %631 = vst [vmem:[#allocation3 + $0x54] sm:$0xf] %v4303_v36  ;;  %v593_v45 = vrot.slane %v591_v35, 4 }
  0x47   : > { %v5367_v41 = vld [vmem:[%s6771_s1 + $0xc8] sm:$0xff]  ;;  %v579_v43 = vrot.slane %v577_v32, 4  ;;  %v582_v44 = vrot.slane %v580_v33, 5  ;;  %v596_v46 = vrot.slane %v594_v38, 5  ;;  %632 = vst [vmem:[#allocation3 + $0x78] sm:$0xf] %v4304_v40  ;;  %1957 = vmatpush.bf16.msrb.mxu2 %v5394_v28 }
  0x48   : > { %1793 = vmatmul.bf16.gmra.mxu0 %v4404_v15  ;;  %1803 = vmatmul.bf16.gmra.mxu3 %v4476_v16  ;;  %v5375_v42 = vld [vmem:[%s6771_s1 + $0x108] sm:$0xff]  ;;  %v588_v48 = vrot.slane %v586_v34, 5  ;;  %v4312_v50 = vld [vmem:[%s5906_s22 + $0xf0] sm:$0xf]  ;;  %v5366_v51 = vld [vmem:[%s6771_s1 + $0xc0] sm:$0xff]  ;;  %v602_v54 = vrot.slane %v600_v39, 5 }
  0x49   : > { %1871 = vmatpush.bf16.msrb.mxu3 %v5369_v12  ;;  %1900 = vmatpush.bf16.msrb.mxu0 %v5377_v13  ;;  %v583_v47 = vor.u32 %v582_v44, %v579_v43  ;;  %v4311_v49 = vld [vmem:[%s5906_s22 + $0xe8] sm:$0xf]  ;;  %v5374_v52 = vld [vmem:[%s6771_s1 + $0x100] sm:$0xff]  ;;  %v597_v53 = vor.u32 %v596_v46, %v593_v45  ;;  %v5307_v55 = vld [vmem:[#allocation3 + $0xc] sm:$0xf]  ;;  %s5701_s17 = sshra.s32 %s4155_s27, 4  ;;  %s5702_s17 = int_to_ptr.hbm [resolvable:$true] %s5701_s17 }
  0x4a   : > { %1822 = vmatmul.bf16.gmra.mxu1 %v4408_v18  ;;  %1851 = vmatmul.bf16.gmra.mxu2 %v4412_v19  ;;  %648 = vst [vmem:[#allocation3 + $0x58] sm:$0xf] %v4311_v49  ;;  %v5405_v56 = vld [vmem:[%s6771_s1 + $0x1f8] sm:$0xff]  ;;  %v5324_v60 = vld [vmem:[#allocation3 + $0x94] sm:$0xf]  ;;  %v5384_v7 = vld [vmem:[%s6771_s1 + $0x150] sm:$0xff]  ;;  %p5708_p5 = scmp.lt.s32.totalorder %s5702_s17, %s6777_s7 }
  0x4b   : > { %1928 = vmatpush.bf16.msrb.mxu1 %v5386_v27  ;;  %v584_v57 = vrot.slane %v583_v47, 4  ;;  %649 = vst [vmem:[#allocation3 + $0x7c] sm:$0xf] %v4312_v50  ;;  %v5385_v58 = vld [vmem:[%s6771_s1 + $0x158] sm:$0xff]  ;;  %v4441_v61 = vld [vmem:[#allocation3 + $0xb4] sm:$0xf0] }
  0x4c   : > { %v5393_v59 = vld [vmem:[%s6771_s1 + $0x198] sm:$0xff]  ;;  %v4377_v62 = vld [vmem:[#allocation3 + $0x2c] sm:$0xf0]  ;;  %v598_v1 = vrot.slane %v597_v53, 4  ;;  %v4447_v2 = vld [vmem:[#allocation3 + $0x98] sm:$0xf]  ;;  %v4444_v15 = vor.u32 %v5324_v60, %v4441_v61 }
  0x4d   : > { %1872 = vmatpush.bf16.msrb.mxu3 %v5368_v24  ;;  %1901 = vmatpush.bf16.msrb.mxu0 %v5376_v25  ;;  %v4383_v63 = vld [vmem:[#allocation3 + $0x10] sm:$0xf]  ;;  %v5413_v0 = vld [vmem:[%s6771_s1 + $0x238] sm:$0xff]  ;;  %v5329_v3 = vld [vmem:[#allocation3 + $0xb8] sm:$0xf0]  ;;  %v589_v5 = vsel %vm5938_vm2, %v584_v57, %v588_v48  ;;  %v4380_v11 = vor.u32 %v5307_v55, %v4377_v62  ;;  %s5703_s18 = scalar_lea.hbm %s5702_s17, 32 }
  0x4e   : > { %v5312_v4 = vld [vmem:[#allocation3 + $0x30] sm:$0xf0]  ;;  %v603_v6 = vsel %vm5938_vm2, %v598_v1, %v602_v54  ;;  %618 = vst [vmem:[#allocation3 + $0xe0] sm:$0xf] %v589_v5  ;;  %1958 = vmatpush.bf16.msrb.mxu2 %v5393_v59  ;;  %v5392_v8 = vld [vmem:[%s6771_s1 + $0x190] sm:$0xff]  ;;  %v4448_v16 = vor.u32 %v5329_v3, %v4447_v2  ;;  %v5383_v20 = vld [vmem:[%s6771_s1 + $0x148] sm:$0xff]  ;;  %p5704_p1 = scmp.ne.s32.totalorder %s5702_s17, %s5703_s18 }
  0x4f   : > { %1929 = vmatpush.bf16.msrb.mxu1 %v5385_v58  ;;  %v4305_v9 = vld [vmem:[%s5906_s22 + $0xb0] sm:$0xf]  ;;  %619 = vst [vmem:[#allocation3 + $0x104] sm:$0xf] %v603_v6  ;;  %v4306_v10 = vld [vmem:[%s5906_s22 + $0xb8] sm:$0xf]  ;;  %v4384_v12 = vor.u32 %v5312_v4, %v4383_v63 }
  0x50   : > { %633 = vst [vmem:[#allocation3 + $0x9c] sm:$0xf] %v4305_v9  ;;  %v4313_v13 = vld [vmem:[%s5906_s22 + $0xf8] sm:$0xf]  ;;  %v4314_v14 = vld [vmem:[%s5906_s22 + $0x100] sm:$0xf]  ;;  %p5705_p2 = pnand %p5704_p1, %p5857_p4 }
  0x51   : > { %1873 = vmatpush.bf16.msrb.mxu3 %v5367_v41  ;;  %1902 = vmatpush.bf16.msrb.mxu0 %v5375_v42  ;;  %v5404_v17 = vld [vmem:[%s6771_s1 + $0x1f0] sm:$0xff]  ;;  %634 = vst [vmem:[#allocation3 + $0xc0] sm:$0xf] %v4306_v10  ;;  %v5391_v21 = vld [vmem:[%s6771_s1 + $0x188] sm:$0xff]  ;;  %v4319_v23 = vld [vmem:[%s5906_s22 + $0x98] sm:$0xf] }
  0x52   : > { %v5412_v18 = vld [vmem:[%s6771_s1 + $0x230] sm:$0xff]  ;;  %1959 = vmatpush.bf16.msrb.mxu2 %v5392_v8  ;;  %650 = vst [vmem:[#allocation3 + $0xa0] sm:$0xf] %v4313_v13  ;;  %v4320_v24 = vld [vmem:[%s5906_s22 + $0x9c] sm:$0x1]  ;;  %v685_v28 = vshrl.u32 %v4319_v23, 16  ;;  %p5706_p3 = pneg %p5705_p2 }
  0x53   : > { %v4317_v19 = vld [vmem:[%s5906_s22 + $0x90] sm:$0xf]  ;;  %1930 = vmatpush.bf16.msrb.mxu1 %v5384_v7  ;;  %v4318_v22 = vld [vmem:[%s5906_s22 + $0x94] sm:$0x1]  ;;  %651 = vst [vmem:[#allocation3 + $0xc4] sm:$0xf] %v4314_v14 }
  0x54   : > { %v671_v25 = vshrl.u32 %v4317_v19, 16  ;;  %v674_v26 = vshll.u32 %v4317_v19, 16  ;;  %v680_v27 = vshll.u32 %v4318_v22, 16  ;;  %v4333_v29 = vld [vmem:[%s5906_s22 + $0x8] sm:$0xf]  ;;  %v688_v30 = vshll.u32 %v4319_v23, 16 }
  0x55   : > { %1874 = vmatpush.bf16.msrb.mxu3 %v5366_v51  ;;  %1903 = vmatpush.bf16.msrb.mxu0 %v5374_v52  ;;  %v694_v31 = vshll.u32 %v4320_v24, 16  ;;  %v4334_v32 = vld [vmem:[%s5906_s22 + $0x10] sm:$0xf]  ;;  %v5403_v33 = vld [vmem:[%s6771_s1 + $0x1e8] sm:$0xff]  ;;  %v687_v38 = vrot.slane %v685_v28, 4  ;;  %v5382_v39 = vld [vmem:[%s6771_s1 + $0x140] sm:$0xff] }
  0x56   : > { %v5411_v34 = vld [vmem:[%s6771_s1 + $0x228] sm:$0xff]  ;;  %v673_v35 = vrot.slane %v671_v25, 4  ;;  %v676_v36 = vrot.slane %v674_v26, 5  ;;  %1960 = vmatpush.bf16.msrb.mxu2 %v5391_v21  ;;  %v5390_v40 = vld [vmem:[%s6771_s1 + $0x180] sm:$0xff]  ;;  %v690_v41 = vrot.slane %v688_v30, 5  ;;  %v682_v43 = vrot.slane %v680_v27, 5 }
  0x57   : > { %1931 = vmatpush.bf16.msrb.mxu1 %v5383_v20  ;;  %807 = vst [vmem:[#allocation3 + $0x18] sm:$0xf] %v4333_v29  ;;  %v5402_v44 = vld [vmem:[%s6771_s1 + $0x1e0] sm:$0xff]  ;;  %v696_v46 = vrot.slane %v694_v31, 5  ;;  %v5333_v47 = vld [vmem:[#allocation3 + $0xdc] sm:$0xf] }
  0x58   : > { %1875 = vmatmul.bf16.vlgmr.msrb.gmra.mxu3 %v4380_v11  ;;  %1904 = vmatmul.bf16.vlgmr.msrb.gmra.mxu0 %v4384_v12  ;;  %v677_v42 = vor.u32 %v676_v36, %v673_v35  ;;  %808 = vst [vmem:[#allocation3 + $0x3c] sm:$0xf] %v4334_v32  ;;  %v691_v45 = vor.u32 %v690_v41, %v687_v38  ;;  %v4477_v48 = vld [vmem:[#allocation3 + $0xfc] sm:$0xf0]  ;;  %v5316_v49 = vld [vmem:[#allocation3 + $0x54] sm:$0xf] }
  0x59   : > { %1983 = vmatpush.bf16.msra.mxu3 %v5405_v56  ;;  %2012 = vmatpush.bf16.msra.mxu0 %v5413_v0  ;;  %v4413_v50 = vld [vmem:[#allocation3 + $0x74] sm:$0xf0]  ;;  %v5410_v52 = vld [vmem:[%s6771_s1 + $0x220] sm:$0xff]  ;;  %v5321_v55 = vld [vmem:[#allocation3 + $0x78] sm:$0xf0]  ;;  %v4480_v5 = vor.u32 %v5333_v47, %v4477_v48  ;;  %s5707_s23 = scalar_lea.hbm %s6777_s7, 64 }
  0x5a   : > { %1827 = vmatmul.bf16.gmra.mxu1 %v4444_v15  ;;  %1856 = vmatmul.bf16.gmra.mxu2 %v4448_v16  ;;  %v678_v51 = vrot.slane %v677_v42, 4  ;;  %v4307_v53 = vld [vmem:[%s5906_s22 + $0xc0] sm:$0xf]  ;;  %v4419_v54 = vld [vmem:[#allocation3 + $0x58] sm:$0xf]  ;;  %v692_v56 = vrot.slane %v691_v45, 4  ;;  %v4416_v6 = vor.u32 %v5316_v49, %v4413_v50  ;;  %p5709_p6 = scmp.lt.s32.totalorder %s5707_s23, %s5703_s18 }
  0x5b   : > { %1932 = vmatpush.bf16.msrb.mxu1 %v5382_v39  ;;  %1961 = vmatpush.bf16.msrb.mxu2 %v5390_v40  ;;  %v4308_v57 = vld [vmem:[%s5906_s22 + $0xc8] sm:$0xf]  ;;  %635 = vst [vmem:[#allocation3 + $0xe4] sm:$0xf] %v4307_v53  ;;  %v4483_v58 = vld [vmem:[#allocation3 + $0xe0] sm:$0xf]  ;;  %v4420_v8 = vor.u32 %v5321_v55, %v4419_v54 }
  0x5c   : > { %v5338_v59 = vld [vmem:[#allocation3 + $0x100] sm:$0xf0]  ;;  %v683_v60 = vsel %vm5938_vm2, %v678_v51, %v682_v43  ;;  %636 = vst [vmem:[#allocation3 + $0x108] sm:$0xf] %v4308_v57  ;;  %v4315_v61 = vld [vmem:[%s5906_s22 + $0x108] sm:$0xf]  ;;  %v697_v63 = vsel %vm5938_vm2, %v692_v56, %v696_v46  ;;  %p5710_p7 = por %p5709_p6, %p5708_p5 }
  0x5d   : > { %1984 = vmatpush.bf16.msra.mxu3 %v5404_v17  ;;  %2013 = vmatpush.bf16.msra.mxu0 %v5412_v18  ;;  %v4316_v62 = vld [vmem:[%s5906_s22 + $0x110] sm:$0xf]  ;;  %790 = vst [vmem:[#allocation3 + $0x14] sm:$0xf] %v683_v60  ;;  %v4321_v0 = vld [vmem:[%s5906_s22 + $0xa0] sm:$0xf]  ;;  %v4484_v12 = vor.u32 %v5338_v59, %v4483_v58 }
  0x5e   : > { %v4322_v1 = vld [vmem:[%s5906_s22 + $0xa4] sm:$0x1]  ;;  %791 = vst [vmem:[#allocation3 + $0x38] sm:$0xf] %v697_v63  ;;  %v5401_v2 = vld [vmem:[%s6771_s1 + $0x1d8] sm:$0xff]  ;;  %v699_v9 = vshrl.u32 %v4321_v0, 16  ;;  %p5711_p9 = pnand %p5710_p7, %p5706_p3 }
  0x5f   : > { %v5409_v3 = vld [vmem:[%s6771_s1 + $0x218] sm:$0xff]  ;;  %v4323_v4 = vld [vmem:[%s5906_s22 + $0xa8] sm:$0xf]  ;;  %652 = vst [vmem:[#allocation3 + $0xe8] sm:$0xf] %v4315_v61  ;;  %v702_v10 = vshll.u32 %v4321_v0, 16 }
  0x60   : > { %v4324_v7 = vld [vmem:[%s5906_s22 + $0xac] sm:$0x1]  ;;  %653 = vst [vmem:[#allocation3 + $0x10c] sm:$0xf] %v4316_v62  ;;  %v708_v11 = vshll.u32 %v4322_v1, 16  ;;  %v713_v13 = vshrl.u32 %v4323_v4, 16 }
  0x61   : > { %1985 = vmatpush.bf16.msra.mxu3 %v5403_v33  ;;  %2014 = vmatpush.bf16.msra.mxu0 %v5411_v34  ;;  %v716_v14 = vshll.u32 %v4323_v4, 16  ;;  %v722_v15 = vshll.u32 %v4324_v7, 16  ;;  %v4335_v16 = vld [vmem:[%s5906_s22 + $0x18] sm:$0xf]  ;;  %v5400_v17 = vld [vmem:[%s6771_s1 + $0x1d0] sm:$0xff]  ;;  %v701_v18 = vrot.slane %v699_v9, 4 }
  0x62   : > { %v704_v19 = vrot.slane %v702_v10, 5  ;;  %v715_v20 = vrot.slane %v713_v13, 4  ;;  %v710_v23 = vrot.slane %v708_v11, 5  ;;  %v4336_v24 = vld [vmem:[%s5906_s22 + $0x20] sm:$0xf]  ;;  %v5408_v27 = vld [vmem:[%s6771_s1 + $0x210] sm:$0xff] }
  0x63   : > { %v718_v21 = vrot.slane %v716_v14, 5  ;;  %809 = vst [vmem:[#allocation3 + $0x60] sm:$0xf] %v4335_v16  ;;  %v724_v26 = vrot.slane %v722_v15, 5  ;;  %v5399_v29 = vld [vmem:[%s6771_s1 + $0x1c8] sm:$0xff]  ;;  %v5398_v42 = vld [vmem:[%s6771_s1 + $0x1c0] sm:$0xff] }
  0x64   : > { %v705_v22 = vor.u32 %v704_v19, %v701_v18  ;;  %810 = vst [vmem:[#allocation3 + $0x84] sm:$0xf] %v4336_v24  ;;  %v5407_v31 = vld [vmem:[%s6771_s1 + $0x208] sm:$0xff]  ;;  %v4325_v32 = vld [vmem:[%s5906_s22 + $0xb0] sm:$0xf]  ;;  %v5406_v50 = vld [vmem:[%s6771_s1 + $0x200] sm:$0xff] }
  0x65   : > { %1986 = vmatpush.bf16.msra.mxu3 %v5402_v44  ;;  %2015 = vmatpush.bf16.msra.mxu0 %v5410_v52  ;;  %v719_v25 = vor.u32 %v718_v21, %v715_v20  ;;  %v4326_v34 = vld [vmem:[%s5906_s22 + $0xb4] sm:$0x1]  ;;  %v4327_v35 = vld [vmem:[%s5906_s22 + $0xb8] sm:$0xf]  ;;  %v4328_v36 = vld [vmem:[%s5906_s22 + $0xbc] sm:$0x1] }
  0x66   : > { %v706_v28 = vrot.slane %v705_v22, 4  ;;  %v727_v39 = vshrl.u32 %v4325_v32, 16  ;;  %v730_v40 = vshll.u32 %v4325_v32, 16  ;;  %v736_v41 = vshll.u32 %v4326_v34, 16  ;;  %v5325_v46 = vld [vmem:[#allocation3 + $0x9c] sm:$0xf] }
  0x67   : > { %v720_v30 = vrot.slane %v719_v25, 4  ;;  %v741_v43 = vshrl.u32 %v4327_v35, 16  ;;  %v744_v44 = vshll.u32 %v4327_v35, 16  ;;  %v750_v45 = vshll.u32 %v4328_v36, 16  ;;  %v4449_v47 = vld [vmem:[#allocation3 + $0xbc] sm:$0xf0] }
  0x68   : > { %1880 = vmatmul.bf16.gmra.mxu3 %v4416_v6  ;;  %1909 = vmatmul.bf16.gmra.mxu0 %v4420_v8  ;;  %v711_v33 = vsel %vm5938_vm2, %v706_v28, %v710_v23  ;;  %v4455_v48 = vld [vmem:[#allocation3 + $0xa0] sm:$0xf]  ;;  %v5330_v49 = vld [vmem:[#allocation3 + $0xc0] sm:$0xf0]  ;;  %v729_v51 = vrot.slane %v727_v39, 4  ;;  %v732_v52 = vrot.slane %v730_v40, 5  ;;  %v4452_v6 = vor.u32 %v5325_v46, %v4449_v47 }
  0x69   : > { %1987 = vmatpush.bf16.msra.mxu3 %v5401_v2  ;;  %2016 = vmatpush.bf16.msra.mxu0 %v5409_v3  ;;  %v725_v38 = vsel %vm5938_vm2, %v720_v30, %v724_v26  ;;  %792 = vst [vmem:[#allocation3 + $0x5c] sm:$0xf] %v711_v33  ;;  %v5308_v53 = vld [vmem:[#allocation3 + $0x14] sm:$0xf]  ;;  %v4385_v54 = vld [vmem:[#allocation3 + $0x34] sm:$0xf0]  ;;  %v4456_v7 = vor.u32 %v5330_v49, %v4455_v48 }
  0x6a   : > { %1832 = vmatmul.bf16.gmra.mxu1 %v4480_v5  ;;  %1861 = vmatmul.bf16.gmra.mxu2 %v4484_v12  ;;  %793 = vst [vmem:[#allocation3 + $0x80] sm:$0xf] %v725_v38  ;;  %v4391_v55 = vld [vmem:[#allocation3 + $0x18] sm:$0xf]  ;;  %v5313_v56 = vld [vmem:[#allocation3 + $0x38] sm:$0xf0]  ;;  %v733_v61 = vor.u32 %v732_v52, %v729_v51  ;;  %v4388_v11 = vor.u32 %v5308_v53, %v4385_v54 }
  0x6b   : > { %v738_v57 = vrot.slane %v736_v41, 5  ;;  %v743_v58 = vrot.slane %v741_v43, 4  ;;  %v746_v59 = vrot.slane %v744_v44, 5  ;;  %v752_v60 = vrot.slane %v750_v45, 5  ;;  %v4337_v62 = vld [vmem:[%s5906_s22 + $0x28] sm:$0xf] }
  0x6c   : > { %v4338_v63 = vld [vmem:[%s5906_s22 + $0x30] sm:$0xf]  ;;  %811 = vst [vmem:[#allocation3 + $0xa8] sm:$0xf] %v4337_v62  ;;  %v4342_v2 = vld [vmem:[%s5906_s22 + $0x58] sm:$0xf]  ;;  %v4392_v12 = vor.u32 %v5313_v56, %v4391_v55 }
  0x6d   : > { %1988 = vmatpush.bf16.msra.mxu3 %v5400_v17  ;;  %2017 = vmatpush.bf16.msra.mxu0 %v5408_v27  ;;  %v4341_v0 = vld [vmem:[%s5906_s22 + $0x50] sm:$0xf]  ;;  %v747_v1 = vor.u32 %v746_v59, %v743_v58  ;;  %v4349_v3 = vld [vmem:[%s5906_s22 + $0x8] sm:$0xf]  ;;  %v734_v4 = vrot.slane %v733_v61, 4 }
  0x6e   : > { %812 = vst [vmem:[#allocation3 + $0xcc] sm:$0xf] %v4338_v63  ;;  %v849_v5 = vshrl.u32 %v4349_v3, 16  ;;  %v4350_v9 = vld [vmem:[%s5906_s22 + $0xc] sm:$0x1]  ;;  %v852_v10 = vshll.u32 %v4349_v3, 16 }
  0x6f   : > { %v748_v8 = vrot.slane %v747_v1, 4  ;;  %824 = vst [vmem:[#allocation3 + $0x1c] sm:$0xf] %v4341_v0  ;;  %v739_v13 = vsel %vm5938_vm2, %v734_v4, %v738_v57  ;;  %v4351_v14 = vld [vmem:[%s5906_s22 + $0x10] sm:$0xf]  ;;  %v858_v19 = vshll.u32 %v4350_v9, 16 }
  0x70   : > { %825 = vst [vmem:[#allocation3 + $0x40] sm:$0xf] %v4342_v2  ;;  %v4352_v16 = vld [vmem:[%s5906_s22 + $0x14] sm:$0x1]  ;;  %v851_v17 = vrot.slane %v849_v5, 4  ;;  %v854_v18 = vrot.slane %v852_v10, 5 }
  0x71   : > { %1989 = vmatpush.bf16.msra.mxu3 %v5399_v29  ;;  %2018 = vmatpush.bf16.msra.mxu0 %v5407_v31  ;;  %v753_v15 = vsel %vm5938_vm2, %v748_v8, %v752_v60  ;;  %794 = vst [vmem:[#allocation3 + $0xa4] sm:$0xf] %v739_v13  ;;  %v863_v20 = vshrl.u32 %v4351_v14, 16  ;;  %v866_v21 = vshll.u32 %v4351_v14, 16  ;;  %v872_v22 = vshll.u32 %v4352_v16, 16 }
  0x72   : > { %795 = vst [vmem:[#allocation3 + $0xc8] sm:$0xf] %v753_v15  ;;  %v855_v23 = vor.u32 %v854_v18, %v851_v17  ;;  %v4329_v24 = vld [vmem:[%s5906_s22 + $0xc0] sm:$0xf]  ;;  %v860_v25 = vrot.slane %v858_v19, 5 }
  0x73   : > { %v865_v26 = vrot.slane %v863_v20, 4  ;;  %v868_v27 = vrot.slane %v866_v21, 5  ;;  %v4331_v28 = vld [vmem:[%s5906_s22 + $0xc8] sm:$0xf]  ;;  %v4330_v30 = vld [vmem:[%s5906_s22 + $0xc4] sm:$0x1] }
  0x74   : > { %v856_v29 = vrot.slane %v855_v23, 4  ;;  %v755_v31 = vshrl.u32 %v4329_v24, 16  ;;  %v874_v33 = vrot.slane %v872_v22, 5  ;;  %v4332_v34 = vld [vmem:[%s5906_s22 + $0xcc] sm:$0x1]  ;;  %v758_v35 = vshll.u32 %v4329_v24, 16 }
  0x75   : > { %1990 = vmatpush.bf16.msra.mxu3 %v5398_v42  ;;  %2019 = vmatpush.bf16.msra.mxu0 %v5406_v50  ;;  %v869_v32 = vor.u32 %v868_v27, %v865_v26  ;;  %v764_v36 = vshll.u32 %v4330_v30, 16  ;;  %v769_v40 = vshrl.u32 %v4331_v28, 16  ;;  %v772_v41 = vshll.u32 %v4331_v28, 16  ;;  %v5334_v42 = vld [vmem:[#allocation3 + $0xe4] sm:$0xf] }
  0x76   : > { %v861_v38 = vsel %vm5938_vm2, %v856_v29, %v860_v25  ;;  %v757_v39 = vrot.slane %v755_v31, 4  ;;  %v4485_v43 = vld [vmem:[#allocation3 + $0x104] sm:$0xf0]  ;;  %v760_v45 = vrot.slane %v758_v35, 5  ;;  %v5339_v48 = vld [vmem:[#allocation3 + $0x108] sm:$0xf0] }
  0x77   : > { %v870_v44 = vrot.slane %v869_v32, 4  ;;  %968 = vst [vmem:[#allocation3 + $0x20] sm:$0xf] %v861_v38  ;;  %v4353_v46 = vld [vmem:[%s5906_s22 + $0x18] sm:$0xf]  ;;  %v771_v49 = vrot.slane %v769_v40, 4  ;;  %v4488_v5 = vor.u32 %v5334_v42, %v4485_v43 }
  0x78   : > { %1885 = vmatmul.bf16.gmra.mxu3 %v4452_v6  ;;  %1914 = vmatmul.bf16.gmra.mxu0 %v4456_v7  ;;  %v4491_v47 = vld [vmem:[#allocation3 + $0xe8] sm:$0xf]  ;;  %v774_v50 = vrot.slane %v772_v41, 5  ;;  %v778_v51 = vshll.u32 %v4332_v34, 16  ;;  %v4427_v52 = vld [vmem:[#allocation3 + $0x60] sm:$0xf]  ;;  %v761_v55 = vor.u32 %v760_v45, %v757_v39 }
  0x79   : > { %v5322_v53 = vld [vmem:[#allocation3 + $0x80] sm:$0xf0]  ;;  %v875_v54 = vsel %vm5938_vm2, %v870_v44, %v874_v33  ;;  %v766_v56 = vrot.slane %v764_v36, 5  ;;  %v4339_v57 = vld [vmem:[%s5906_s22 + $0x38] sm:$0xf]  ;;  %v877_v0 = vshrl.u32 %v4353_v46, 16  ;;  %v4492_v9 = vor.u32 %v5339_v48, %v4491_v47 }
  0x7a   : > { %1933 = vmatmul.bf16.vlgmr.msrb.gmra.mxu1 %v4388_v11  ;;  %1962 = vmatmul.bf16.vlgmr.msrb.gmra.mxu2 %v4392_v12  ;;  %v4340_v58 = vld [vmem:[%s5906_s22 + $0x40] sm:$0xf]  ;;  %v5317_v59 = vld [vmem:[#allocation3 + $0x5c] sm:$0xf]  ;;  %v4421_v60 = vld [vmem:[#allocation3 + $0x7c] sm:$0xf0]  ;;  %v775_v61 = vor.u32 %v774_v50, %v771_v49  ;;  %v4428_v14 = vor.u32 %v5322_v53, %v4427_v52 }
  0x7b   : > { %969 = vst [vmem:[#allocation3 + $0x44] sm:$0xf] %v875_v54  ;;  %v780_v62 = vrot.slane %v778_v51, 5  ;;  %v4343_v63 = vld [vmem:[%s5906_s22 + $0x60] sm:$0xf]  ;;  %v762_v1 = vrot.slane %v761_v55, 4  ;;  %v4424_v18 = vor.u32 %v5317_v59, %v4421_v60 }
  0x7c   : > { %813 = vst [vmem:[#allocation3 + $0xf0] sm:$0xf] %v4339_v57  ;;  %v4344_v2 = vld [vmem:[%s5906_s22 + $0x68] sm:$0xf]  ;;  %v4354_v3 = vld [vmem:[%s5906_s22 + $0x1c] sm:$0x1] }
  0x7d   : > { %v880_v4 = vshll.u32 %v4353_v46, 16  ;;  %v776_v6 = vrot.slane %v775_v61, 4  ;;  %814 = vst [vmem:[#allocation3 + $0x114] sm:$0xf] %v4340_v58  ;;  %v4355_v7 = vld [vmem:[%s5906_s22 + $0x20] sm:$0xf]  ;;  %v767_v10 = vsel %vm5938_vm2, %v762_v1, %v766_v56 }
  0x7e   : > { %v879_v8 = vrot.slane %v877_v0, 4  ;;  %826 = vst [vmem:[#allocation3 + $0x64] sm:$0xf] %v4343_v63  ;;  %v4356_v11 = vld [vmem:[%s5906_s22 + $0x24] sm:$0x1]  ;;  %v886_v13 = vshll.u32 %v4354_v3, 16 }
  0x7f   : > { %v882_v12 = vrot.slane %v880_v4, 5  ;;  %v781_v15 = vsel %vm5938_vm2, %v776_v6, %v780_v62  ;;  %796 = vst [vmem:[#allocation3 + $0xec] sm:$0xf] %v767_v10  ;;  %v891_v16 = vshrl.u32 %v4355_v7, 16  ;;  %v894_v17 = vshll.u32 %v4355_v7, 16 }
  0x80   : > { %797 = vst [vmem:[#allocation3 + $0x110] sm:$0xf] %v781_v15  ;;  %v888_v20 = vrot.slane %v886_v13, 5  ;;  %v900_v21 = vshll.u32 %v4356_v11, 16  ;;  %v4357_v24 = vld [vmem:[%s5906_s22 + $0x28] sm:$0xf] }
  0x81   : > { %v883_v19 = vor.u32 %v882_v12, %v879_v8  ;;  %827 = vst [vmem:[#allocation3 + $0x88] sm:$0xf] %v4344_v2  ;;  %v893_v22 = vrot.slane %v891_v16, 4  ;;  %v896_v23 = vrot.slane %v894_v17, 5  ;;  %v905_v28 = vshrl.u32 %v4357_v24, 16 }
  0x82   : > { %v902_v27 = vrot.slane %v900_v21, 5  ;;  %v908_v29 = vshll.u32 %v4357_v24, 16  ;;  %v4358_v31 = vld [vmem:[%s5906_s22 + $0x2c] sm:$0x1]  ;;  %v4359_v32 = vld [vmem:[%s5906_s22 + $0x30] sm:$0xf] }
  0x83   : > { %v884_v25 = vrot.slane %v883_v19, 4  ;;  %v897_v26 = vor.u32 %v896_v23, %v893_v22  ;;  %v907_v34 = vrot.slane %v905_v28, 4  ;;  %v4360_v35 = vld [vmem:[%s5906_s22 + $0x34] sm:$0x1]  ;;  %v914_v38 = vshll.u32 %v4358_v31, 16 }
  0x84   : > { %v910_v36 = vrot.slane %v908_v29, 5  ;;  %v919_v40 = vshrl.u32 %v4359_v32, 16  ;;  %v922_v41 = vshll.u32 %v4359_v32, 16  ;;  %v928_v42 = vshll.u32 %v4360_v35, 16  ;;  %v4345_v45 = vld [vmem:[%s5906_s22 + $0x70] sm:$0xf] }
  0x85   : > { %v889_v30 = vsel %vm5938_vm2, %v884_v25, %v888_v20  ;;  %v898_v33 = vrot.slane %v897_v26, 4  ;;  %v916_v44 = vrot.slane %v914_v38, 5  ;;  %v4346_v46 = vld [vmem:[%s5906_s22 + $0x78] sm:$0xf]  ;;  %v5309_v49 = vld [vmem:[#allocation3 + $0x1c] sm:$0xf] }
  0x86   : > { %970 = vst [vmem:[#allocation3 + $0x68] sm:$0xf] %v889_v30  ;;  %v911_v43 = vor.u32 %v910_v36, %v907_v34  ;;  %v921_v47 = vrot.slane %v919_v40, 4  ;;  %v924_v48 = vrot.slane %v922_v41, 5  ;;  %v4463_v51 = vld [vmem:[#allocation3 + $0xa8] sm:$0xf] }
  0x87   : > { %v903_v39 = vsel %vm5938_vm2, %v898_v33, %v902_v27  ;;  %828 = vst [vmem:[#allocation3 + $0xac] sm:$0xf] %v4345_v45  ;;  %v5331_v52 = vld [vmem:[#allocation3 + $0xc8] sm:$0xf0]  ;;  %v4393_v53 = vld [vmem:[#allocation3 + $0x3c] sm:$0xf0] }
  0x88   : > { %1890 = vmatmul.bf16.gmra.mxu3 %v4488_v5  ;;  %1919 = vmatmul.bf16.gmra.mxu0 %v4492_v9  ;;  %971 = vst [vmem:[#allocation3 + $0x8c] sm:$0xf] %v903_v39  ;;  %v912_v50 = vrot.slane %v911_v43, 4  ;;  %v925_v54 = vor.u32 %v924_v48, %v921_v47  ;;  %v930_v55 = vrot.slane %v928_v42, 5  ;;  %v5326_v56 = vld [vmem:[#allocation3 + $0xa4] sm:$0xf]  ;;  %v4396_v62 = vor.u32 %v5309_v49, %v4393_v53 }
  0x89   : > { %829 = vst [vmem:[#allocation3 + $0xd0] sm:$0xf] %v4346_v46  ;;  %v4399_v57 = vld [vmem:[#allocation3 + $0x20] sm:$0xf]  ;;  %v5314_v58 = vld [vmem:[#allocation3 + $0x40] sm:$0xf0]  ;;  %v4464_v2 = vor.u32 %v5331_v52, %v4463_v51 }
  0x8a   : > { %1938 = vmatmul.bf16.gmra.mxu1 %v4424_v18  ;;  %1967 = vmatmul.bf16.gmra.mxu2 %v4428_v14  ;;  %v917_v59 = vsel %vm5938_vm2, %v912_v50, %v916_v44  ;;  %v4457_v60 = vld [vmem:[#allocation3 + $0xc4] sm:$0xf0]  ;;  %v926_v61 = vrot.slane %v925_v54, 4  ;;  %v4400_v63 = vor.u32 %v5314_v58, %v4399_v57  ;;  %v4363_v4 = vld [vmem:[%s5906_s22 + $0x40] sm:$0xf] }
  0x8b   : > { %972 = vst [vmem:[#allocation3 + $0xb0] sm:$0xf] %v917_v59  ;;  %v4460_v1 = vor.u32 %v5326_v56, %v4457_v60  ;;  %v4361_v3 = vld [vmem:[%s5906_s22 + $0x38] sm:$0xf]  ;;  %v947_v7 = vshrl.u32 %v4363_v4, 16  ;;  %v950_v8 = vshll.u32 %v4363_v4, 16 }
  0x8c   : > { %v931_v0 = vsel %vm5938_vm2, %v926_v61, %v930_v55  ;;  %v933_v5 = vshrl.u32 %v4361_v3, 16  ;;  %v936_v6 = vshll.u32 %v4361_v3, 16  ;;  %v4362_v12 = vld [vmem:[%s5906_s22 + $0x3c] sm:$0x1]  ;;  %v4364_v13 = vld [vmem:[%s5906_s22 + $0x44] sm:$0x1] }
  0x8d   : > { %973 = vst [vmem:[#allocation3 + $0xd4] sm:$0xf] %v931_v0  ;;  %v949_v11 = vrot.slane %v947_v7, 4  ;;  %v942_v15 = vshll.u32 %v4362_v12, 16  ;;  %v952_v16 = vrot.slane %v950_v8, 5  ;;  %v956_v17 = vshll.u32 %v4364_v13, 16 }
  0x8e   : > { %v935_v9 = vrot.slane %v933_v5, 4  ;;  %v938_v10 = vrot.slane %v936_v6, 5  ;;  %v4347_v22 = vld [vmem:[%s5906_s22 + $0x80] sm:$0xf]  ;;  %v4348_v23 = vld [vmem:[%s5906_s22 + $0x88] sm:$0xf] }
  0x8f   : > { %v944_v19 = vrot.slane %v942_v15, 5  ;;  %v953_v20 = vor.u32 %v952_v16, %v949_v11  ;;  %v958_v21 = vrot.slane %v956_v17, 5  ;;  %830 = vst [vmem:[#allocation3 + $0xf4] sm:$0xf] %v4347_v22  ;;  %v4499_v26 = vld [vmem:[#allocation3 + $0xf0] sm:$0xf] }
  0x90   : > { %v939_v14 = vor.u32 %v938_v10, %v935_v9  ;;  %v5340_v27 = vld [vmem:[#allocation3 + $0x110] sm:$0xf0]  ;;  %v5318_v28 = vld [vmem:[#allocation3 + $0x64] sm:$0xf]  ;;  %v4429_v29 = vld [vmem:[#allocation3 + $0x84] sm:$0xf0] }
  0x91   : > { %v954_v25 = vrot.slane %v953_v20, 4  ;;  %831 = vst [vmem:[#allocation3 + $0x118] sm:$0xf] %v4348_v23  ;;  %v4435_v31 = vld [vmem:[#allocation3 + $0x68] sm:$0xf]  ;;  %v4432_v35 = vor.u32 %v5318_v28, %v4429_v29  ;;  %v4500_v39 = vor.u32 %v5340_v27, %v4499_v26  ;;  %v5465_v12 = vld [vmem:[#allocation5 + $0x78] sm:$0xff] }
  0x92   : > { %v940_v18 = vrot.slane %v939_v14, 4  ;;  %v5323_v32 = vld [vmem:[#allocation3 + $0x88] sm:$0xf0]  ;;  %v4493_v34 = vld [vmem:[#allocation3 + $0x10c] sm:$0xf0]  ;;  %3745 = vmatpush.bf16.msra.mxu2 %v5465_v12  ;;  %v5457_v16 = vld [vmem:[#allocation5 + $0x38] sm:$0xff] }
  0x93   : > { %v959_v30 = vsel %vm5938_vm2, %v954_v25, %v958_v21  ;;  %v5335_v33 = vld [vmem:[#allocation3 + $0xec] sm:$0xf]  ;;  %v4436_v36 = vor.u32 %v5323_v32, %v4435_v31  ;;  %v4465_v41 = vld [vmem:[#allocation3 + $0xcc] sm:$0xf0]  ;;  %3716 = vmatpush.bf16.msra.mxu1 %v5457_v16  ;;  %v381_v28 = vld [vmem:[#allocation2 + $0x8] sm:$0x1] }
  0x94   : > { %v945_v24 = vsel %vm5938_vm2, %v940_v18, %v944_v19  ;;  %975 = vst [vmem:[#allocation3 + $0x11c] sm:$0xf] %v959_v30  ;;  %v4496_v38 = vor.u32 %v5335_v33, %v4493_v34  ;;  %v5327_v40 = vld [vmem:[#allocation3 + $0xac] sm:$0xf]  ;;  %v4471_v42 = vld [vmem:[#allocation3 + $0xb0] sm:$0xf] }
  0x95   : > { %974 = vst [vmem:[#allocation3 + $0xf8] sm:$0xf] %v945_v24  ;;  %v5332_v43 = vld [vmem:[#allocation3 + $0xd0] sm:$0xf0]  ;;  %v4468_v44 = vor.u32 %v5327_v40, %v4465_v41  ;;  %v5463_v23 = vld [vmem:[#allocation5 + $0x68] sm:$0xff]  ;;  %v5774_v29 = vmov 0  }
  0x96   : > { %v4472_v45 = vor.u32 %v5332_v43, %v4471_v42  ;;  %v5336_v52 = vld [vmem:[#allocation3 + $0xf4] sm:$0xf]  ;;  %370 = vst [vmem:[#allocation2] sm:$0xf] %v5774_v29  ;;  %v413_v31 = vld [vmem:[#allocation2 + $0xc] sm:$0x1] }
  0x97   : > { %v5464_v17 = vld [vmem:[#allocation5 + $0x70] sm:$0xff]  ;;  %371 = vst [vmem:[#allocation2 + $0x4] sm:$0x1] %v5774_v29  ;;  %v382_v32 = vsel %vm6317_vm5, 0, %v381_v28  ;;  %v414_v34 = vsel %vm6324_vm7, 0, %v413_v31  ;;  %v5455_v41 = vld [vmem:[#allocation5 + $0x28] sm:$0xff] }
  0x98   : > { %1991 = vmatmul.bf16.vlgmr.msra.gmra.mxu3 %v4396_v62  ;;  %2020 = vmatmul.bf16.vlgmr.msra.gmra.mxu0 %v4400_v63  ;;  %v4501_v53 = vld [vmem:[#allocation3 + $0x114] sm:$0xf0]  ;;  %v5456_v22 = vld [vmem:[#allocation5 + $0x30] sm:$0xff]  ;;  %374 = vst [vmem:[#allocation2 + $0x4c] sm:$0x1] %v5774_v29  ;;  %v5470_v31 = vld [vmem:[#allocation5 + $0xa0] sm:$0xff] }
  0x99   : > { %v4504_v58 = vor.u32 %v5336_v52, %v4501_v53  ;;  %3746 = vmatpush.bf16.msra.mxu2 %v5464_v17  ;;  %3717 = vmatpush.bf16.msra.mxu1 %v5456_v22  ;;  %383 = vst [vmem:[#allocation2 + $0x8] sm:$0x1] %v382_v32  ;;  %v5481_v42 = vld [vmem:[#allocation5 + $0xf8] sm:$0xff]  ;;  %v6339_v43 = vld [vmem:[%s6772_s2] ss:$0 sm:$0xff]  ;;  %v5454_v17 = vld [vmem:[#allocation5 + $0x20] sm:$0xff] }
  0x9a   : > { %1943 = vmatmul.bf16.gmra.mxu1 %v4460_v1  ;;  %1972 = vmatmul.bf16.gmra.mxu2 %v4464_v2  ;;  %415 = vst [vmem:[#allocation2 + $0xc] sm:$0x1] %v414_v34  ;;  %v5471_v22 = vld [vmem:[#allocation5 + $0xa8] sm:$0xff]  ;;  %v5480_v28 = vld [vmem:[#allocation5 + $0xf0] sm:$0xff] }
  0x9b   : > { %v5341_v55 = vld [vmem:[#allocation3 + $0x118] sm:$0xf0]  ;;  %373 = vst [vmem:[#allocation2 + $0x48] sm:$0xf] %v5774_v29  ;;  %3803 = vmatpush.bf16.msrb.mxu0 %v5481_v42 }
  0x9c   : > { %v4507_v54 = vld [vmem:[#allocation3 + $0xf8] sm:$0xf] }
  0x9d   : > { %v4508_v59 = vor.u32 %v5341_v55, %v4507_v54  ;;  %3747 = vmatpush.bf16.msra.mxu2 %v5463_v23  ;;  %3718 = vmatpush.bf16.msra.mxu1 %v5455_v41 }
  0x9f   : > { %v437_v53 = vld [vmem:[#allocation2 + $0x4c] sm:$0x1]  ;;  %3804 = vmatpush.bf16.msrb.mxu0 %v5480_v28 }
  0xa0   : > { %v438_v55 = vsel %vm6324_vm7, 0, %v437_v53  ;;  %v387_v53 = vld [vmem:[#allocation2 + $0x18] sm:$0x1] }
  0xa1   : > { %439 = vst [vmem:[#allocation2 + $0x4c] sm:$0x1] %v438_v55  ;;  %3719 = vmatpush.bf16.msra.mxu1 %v5454_v17  ;;  %v5452_v55 = vld [vmem:[#allocation5 + $0x10] sm:$0xff] }
  0xa8   : > { %1996 = vmatmul.bf16.gmra.mxu3 %v4432_v35  ;;  %2025 = vmatmul.bf16.gmra.mxu0 %v4436_v36  ;;  %v5473_v35 = vld [vmem:[#allocation5 + $0xb8] sm:$0xff] }
  0xa9   : > { %3774 = vmatpush.bf16.msrb.mxu3 %v5473_v35  ;;  %v5453_v35 = vld [vmem:[#allocation5 + $0x18] sm:$0xff] }
  0xaa   : > { %1948 = vmatmul.bf16.gmra.mxu1 %v4496_v38  ;;  %1977 = vmatmul.bf16.gmra.mxu2 %v4500_v39  ;;  %v5472_v39 = vld [vmem:[#allocation5 + $0xb0] sm:$0xff] }
  0xab   : > { %3720 = vmatpush.bf16.msra.mxu1 %v5453_v35  ;;  %v5461_v35 = vld [vmem:[#allocation5 + $0x58] sm:$0xff] }
  0xad   : > { %3775 = vmatpush.bf16.msrb.mxu3 %v5472_v39  ;;  %v5479_v39 = vld [vmem:[#allocation5 + $0xe8] sm:$0xff] }
  0xae   : > { %3805 = vmatpush.bf16.msrb.mxu0 %v5479_v39 }
  0xaf   : > { %3721 = vmatpush.bf16.msra.mxu1 %v5452_v55 }
  0xb1   : > { %3776 = vmatpush.bf16.msrb.mxu3 %v5471_v22 }
  0xb5   : > { %v6247_v46 = vpop.f32.mrf.mxu0  ;;  %3777 = vmatpush.bf16.msrb.mxu3 %v5470_v31  ;;  %v2348_v31 = vld [vmem:[#allocation2] sm:$0xe] }
  0xb6   : > { %v1790_v54 = vadd.f32 %v6339_v43, %v6247_v46  ;;  %v378_v46 = vld [vmem:[#allocation2] sm:$0x1] }
  0xb7   : > { %v6249_v47 = vpop.f32.mrf.mxu1  ;;  %v379_v32 = vsel %vm6317_vm5, 0, %v378_v46 }
  0xb8   : > { %2001 = vmatmul.bf16.gmra.mxu3 %v4468_v44  ;;  %2030 = vmatmul.bf16.gmra.mxu0 %v4472_v45  ;;  %v410_v45 = vld [vmem:[#allocation2 + $0x4] sm:$0x1]  ;;  %v1819_v29 = vadd.f32 %v6249_v47, %v1790_v54  ;;  %380 = vst [vmem:[#allocation2] sm:$0x1] %v379_v32  ;;  %v5469_v47 = vld [vmem:[#allocation5 + $0x98] sm:$0xff] }
  0xb9   : > { %v411_v52 = vsel %vm6324_vm7, 0, %v410_v45  ;;  %v419_v54 = vld [vmem:[#allocation2 + $0x1c] sm:$0x1]  ;;  %3778 = vmatpush.bf16.msrb.mxu3 %v5469_v47 }
  0xba   : > { %412 = vst [vmem:[#allocation2 + $0x4] sm:$0x1] %v411_v52 }
  0xbb   : > { %v6251_v48 = vpop.f32.mrf.mxu3 }
  0xbd   : > { %v6253_v49 = vpop.f32.mrf.mxu2  ;;  %v6255_v50 = vpop.f32.mrf.mxu0 }
  0xbe   : > { %v1848_v42 = vadd.f32 %v6253_v49, %v1819_v29  ;;  %v1792_v52 = vadd.f32 %v6339_v43, %v6255_v50  ;;  %v420_v49 = vsel %vm6324_vm7, 0, %v419_v54  ;;  %v5468_v50 = vld [vmem:[#allocation5 + $0x90] sm:$0xff]  ;;  %v5477_v29 = vld [vmem:[#allocation5 + $0xd8] sm:$0xff] }
  0xbf   : > { %v6257_v51 = vpop.f32.mrf.mxu1  ;;  %421 = vst [vmem:[#allocation2 + $0x1c] sm:$0x1] %v420_v49  ;;  %v2188_v22 = vld [vmem:[#allocation2] sm:$0xf]  ;;  %3779 = vmatpush.bf16.msrb.mxu3 %v5468_v50 }
  0xc0   : > { %v1821_v28 = vadd.f32 %v6257_v51, %v1792_v52  ;;  %2196 = vst [vmem:[#allocation4] sm:$0xf] %v2188_v22  ;;  %v2204_v54 = vld [vmem:[#allocation2] sm:$0xf] }
  0xc1   : > { %v2349_v39 = vld [vmem:[#allocation2 + $0x4] sm:$0x1]  ;;  %v2221_v49 = vshrl.u32 %v2204_v54, 16 }
  0xc2   : > { %v2385_v52 = vrot.slane %v2349_v39, 5  ;;  %v2224_v39 = vshll.u32 %v2204_v54, 16 }
  0xc3   : > { %v6259_v56 = vpop.f32.mrf.mxu3 }
  0xc5   : > { %v6261_v57 = vpop.f32.mrf.mxu2  ;;  %v6263_v60 = vpop.f32.mrf.mxu0 }
  0xc6   : > { %v1850_v47 = vadd.f32 %v6261_v57, %v1821_v28  ;;  %v422_v57 = vld [vmem:[#allocation2 + $0x24] sm:$0x1] }
  0xc7   : > { %v6265_v61 = vpop.f32.mrf.mxu1  ;;  %v5460_v28 = vld [vmem:[#allocation5 + $0x50] sm:$0xff]  ;;  %v423_v50 = vsel %vm6324_vm7, 0, %v422_v57 }
  0xc8   : > { %2006 = vmatmul.bf16.gmra.mxu3 %v4504_v58  ;;  %2035 = vmatmul.bf16.gmra.mxu0 %v4508_v59  ;;  %v384_v58 = vld [vmem:[#allocation2 + $0x10] sm:$0x1]  ;;  %v416_v59 = vld [vmem:[#allocation2 + $0x14] sm:$0x1]  ;;  %424 = vst [vmem:[#allocation2 + $0x24] sm:$0x1] %v423_v50 }
  0xc9   : > { %v385_v12 = vsel %vm6317_vm5, 0, %v384_v58  ;;  %v417_v16 = vsel %vm6324_vm7, 0, %v416_v59  ;;  %v5462_v59 = vld [vmem:[#allocation5 + $0x60] sm:$0xff] }
  0xca   : > { %386 = vst [vmem:[#allocation2 + $0x10] sm:$0x1] %v385_v12  ;;  %v388_v12 = vsel %vm6317_vm5, 0, %v387_v53  ;;  %3748 = vmatpush.bf16.msra.mxu2 %v5462_v59  ;;  %v1795_v53 = vadd.f32 %v6339_v43, %v6263_v60  ;;  %v5450_v60 = vld [vmem:[#allocation5] sm:$0xff] }
  0xcb   : > { %v6267_v62 = vpop.f32.mrf.mxu3  ;;  %418 = vst [vmem:[#allocation2 + $0x14] sm:$0x1] %v417_v16  ;;  %v5478_v16 = vld [vmem:[#allocation5 + $0xe0] sm:$0xff] }
  0xcc   : > { %389 = vst [vmem:[#allocation2 + $0x18] sm:$0x1] %v388_v12  ;;  %3806 = vmatpush.bf16.msrb.mxu0 %v5478_v16  ;;  %v390_v12 = vld [vmem:[#allocation2 + $0x20] sm:$0x1] }
  0xcd   : > { %v6269_v63 = vpop.f32.mrf.mxu2  ;;  %v6271_v0 = vpop.f32.mrf.mxu0 }
  0xce   : > { %3749 = vmatpush.bf16.msra.mxu2 %v5461_v35 }
  0xcf   : > { %v6273_v1 = vpop.f32.mrf.mxu1 }
  0xd0   : > { %3807 = vmatpush.bf16.msrb.mxu0 %v5477_v29 }
  0xd2   : > { %3750 = vmatpush.bf16.msra.mxu2 %v5460_v28 }
  0xd3   : > { %v6275_v2 = vpop.f32.mrf.mxu3 }
  0xd5   : > { %v6277_v3 = vpop.f32.mrf.mxu2  ;;  %v6279_v4 = vpop.f32.mrf.mxu0 }
  0xd7   : > { %v6283_v6 = vpop.f32.mrf.mxu1 }
  0xdb   : > { %v6281_v5 = vpop.f32.mrf.mxu3 }
  0xdc   : > { %v1877_v58 = vadd.f32 %v6281_v5, %v1848_v42  ;;  %v5451_v5 = vld [vmem:[#allocation5 + $0x8] sm:$0xff]  ;;  %v4797_v42 = vrot.slane %v2348_v31, 9  ;;  %v5476_v31 = vld [vmem:[#allocation5 + $0xd0] sm:$0xff] }
  0xdd   : > { %v6285_v7 = vpop.f32.mrf.mxu0  ;;  %v6287_v8 = vpop.f32.mrf.mxu2  ;;  %3722 = vmatpush.bf16.msra.mxu1 %v5451_v5  ;;  %v1824_v5 = vadd.f32 %v6265_v61, %v1795_v53  ;;  %3808 = vmatpush.bf16.msrb.mxu0 %v5476_v31  ;;  %v5475_v61 = vld [vmem:[#allocation5 + $0xc8] sm:$0xff]  ;;  %v2226_v53 = vrot.slane %v2224_v39, 5 }
  0xde   : > { %v1906_v32 = vadd.f32 %v6279_v4, %v1877_v58  ;;  %v5467_v4 = vld [vmem:[#allocation5 + $0x88] sm:$0xff] }
  0xdf   : > { %v6293_v11 = vpop.f32.mrf.mxu1  ;;  %3780 = vmatpush.bf16.msrb.mxu3 %v5467_v4 }
  0xe1   : > { %3723 = vmatpush.bf16.msra.mxu1 %v5450_v60  ;;  %3809 = vmatpush.bf16.msrb.mxu0 %v5475_v61  ;;  %v5512_v61 = vld [vmem:[#allocation5 + $0x1f0] sm:$0xff] }
  0xe3   : > { %v6289_v9 = vpop.f32.mrf.mxu3 }
  0xe4   : > { %v1879_v58 = vadd.f32 %v6289_v9, %v1850_v47  ;;  %v2386_v9 = vsel %vm6379_vm10, %v4797_v42, %v2385_v52  ;;  %v5459_v52 = vld [vmem:[#allocation5 + $0x48] sm:$0xff] }
  0xe5   : > { %v6291_v10 = vpop.f32.mrf.mxu0  ;;  %v6295_v13 = vpop.f32.mrf.mxu2  ;;  %2423 = vst [vmem:[#allocation4 + $0x8] sm:$0xf] %v2386_v9  ;;  %3751 = vmatpush.bf16.msra.mxu2 %v5459_v52 }
  0xe6   : > { %v1908_v47 = vadd.f32 %v6285_v7, %v1879_v58  ;;  %v1797_v7 = vadd.f32 %v6339_v43, %v6271_v0  ;;  %v5474_v0 = vld [vmem:[#allocation5 + $0xc0] sm:$0xff] }
  0xe7   : > { %v6301_v18 = vpop.f32.mrf.mxu1  ;;  %3810 = vmatpush.bf16.msrb.mxu0 %v5474_v0 }
  0xeb   : > { %v6297_v14 = vpop.f32.mrf.mxu3 }
  0xed   : > { %v6299_v15 = vpop.f32.mrf.mxu0  ;;  %v6303_v19 = vpop.f32.mrf.mxu2 }
  0xef   : > { %v6309_v24 = vpop.f32.mrf.mxu1 }
  0xf3   : > { %v6305_v20 = vpop.f32.mrf.mxu3 }
  0xf5   : > { %v6307_v21 = vpop.f32.mrf.mxu0  ;;  %v6313_v26 = vpop.f32.mrf.mxu2 }
  0xf7   : > { %v6332_v38 = vpop.f32.mrf.mxu1 }
  0xf8   : > { %v1935_v55 = vadd.f32 %v6332_v38, %v1906_v32  ;;  %v391_v38 = vsel %vm6317_vm5, 0, %v390_v12  ;;  %v2205_v32 = vld [vmem:[#allocation2 + $0x4] sm:$0x1]  ;;  %v5466_v12 = vld [vmem:[#allocation5 + $0x80] sm:$0xff] }
  0xf9   : > { %392 = vst [vmem:[#allocation2 + $0x20] sm:$0x1] %v391_v38  ;;  %v2230_v57 = vshll.u32 %v2205_v32, 16  ;;  %v1853_v38 = vadd.f32 %v6269_v63, %v1824_v5  ;;  %3781 = vmatpush.bf16.msrb.mxu3 %v5466_v12 }
  0xfb   : > { %v6311_v25 = vpop.f32.mrf.mxu3  ;;  %v2232_v4 = vrot.slane %v2230_v57, 5  ;;  %v1882_v58 = vadd.f32 %v6297_v14, %v1853_v38  ;;  %v2143_v38 = vld [vmem:[#allocation2 + $0xc] sm:$0x1] }
  0xfd   : > { %v6315_v27 = vpop.f32.mrf.mxu0  ;;  %v6341_v44 = vpop.f32.mrf.mxu2 }
  0xfe   : > { %v1964_v16 = vadd.f32 %v6341_v44, %v1935_v55  ;;  %v2223_v44 = vrot.slane %v2221_v49, 4  ;;  %v425_v49 = vld [vmem:[#allocation2 + $0x2c] sm:$0x1] }
  0xff   : > { %v6360_v41 = vpop.f32.mrf.mxu1 }
 0x100   : > { %v2227_v54 = vor.u32 %v2226_v53, %v2223_v44  ;;  %v1826_v44 = vadd.f32 %v6273_v1, %v1797_v7  ;;  %v2140_v53 = vld [vmem:[#allocation2 + $0x8] sm:$0xf] }
 0x102   : > { %v2228_v9 = vrot.slane %v2227_v54, 4  ;;  %v1855_v52 = vadd.f32 %v6277_v3, %v1826_v44  ;;  %v2149_v44 = vld [vmem:[#allocation2 + $0x14] sm:$0x1] }
 0x103   : > { %v6330_v36 = vpop.f32.mrf.mxu3 }
 0x105   : > { %v6334_v40 = vpop.f32.mrf.mxu0  ;;  %v6363_v45 = vpop.f32.mrf.mxu2 }
 0x107   : > { %v6384_v59 = vpop.f32.mrf.mxu1 }
 0x10b   : > { %v6353_v23 = vpop.f32.mrf.mxu3 }
 0x10d   : > { %v6358_v34 = vpop.f32.mrf.mxu0  ;;  %v6388_v22 = vpop.f32.mrf.mxu2 }
 0x10f   : > { %v1941_v50 = vpop.f32.mrf.mxu1 }
 0x113   : > { %v6372_v17 = vpop.f32.mrf.mxu3 }
 0x115   : > { %v2021_v46 = vpop.f32.mrf.mxu0  ;;  %v1970_v32 = vpop.f32.mrf.mxu2 }
 0x11b   : > { %v1992_v29 = vpop.f32.mrf.mxu3 }
 0x11c   : > { %v1993_v35 = vadd.f32 %v1992_v29, %v1964_v16  ;;  %v1937_v16 = vadd.f32 %v6360_v41, %v1908_v47  ;;  %v426_v41 = vsel %vm6324_vm7, 0, %v425_v49  ;;  %v5458_v29 = vld [vmem:[#allocation5 + $0x40] sm:$0xff]  ;;  %v1911_v47 = vadd.f32 %v6291_v10, %v1882_v58 }
 0x11d   : > { %v2023_v55 = vpop.f32.mrf.mxu0  ;;  %427 = vst [vmem:[#allocation2 + $0x2c] sm:$0x1] %v426_v41  ;;  %3752 = vmatpush.bf16.msra.mxu2 %v5458_v29  ;;  %v1800_v58 = vadd.f32 %v6339_v43, %v6251_v48 }
 0x11e   : > { %v2022_v42 = vadd.f32 %v2021_v46, %v1993_v35  ;;  %v1966_v60 = vadd.f32 %v6363_v45, %v1937_v16  ;;  %v393_v46 = vld [vmem:[#allocation2 + $0x28] sm:$0x1]  ;;  %v2233_v35 = vsel %vm5938_vm2, %v2228_v9, %v2232_v4  ;;  %v1940_v1 = vadd.f32 %v6384_v59, %v1911_v47  ;;  %v396_v59 = vld [vmem:[#allocation2 + $0x30] sm:$0x1]  ;;  %v428_v9 = vld [vmem:[#allocation2 + $0x34] sm:$0x1] }
 0x11f   : > { %v394_v63 = vsel %vm6317_vm5, 0, %v393_v46  ;;  %2340 = vst [vmem:[#allocation4 + $0x4] sm:$0xf] %v2233_v35  ;;  %v1884_v4 = vadd.f32 %v6305_v20, %v1855_v52  ;;  %v1944_v46 = vpop.f32.mrf.mxu1  ;;  %v397_v20 = vsel %vm6317_vm5, 0, %v396_v59  ;;  %v2146_v35 = vld [vmem:[#allocation2 + $0x10] sm:$0xf]  ;;  %v1805_v59 = vadd.f32 %v6339_v43, %v6267_v62 }
 0x120   : > { %v2041_v28 = vmax.f32 %v2022_v42, 0.0  ;;  %395 = vst [vmem:[#allocation2 + $0x28] sm:$0x1] %v394_v63  ;;  %v1969_v10 = vadd.f32 %v6388_v22, %v1940_v1  ;;  %v1829_v22 = vadd.f32 %v6283_v6, %v1800_v58 }
 0x121   : > { %v1913_v63 = vadd.f32 %v6299_v15, %v1884_v4  ;;  %398 = vst [vmem:[#allocation2 + $0x30] sm:$0x1] %v397_v20  ;;  %v1834_v62 = vadd.f32 %v6301_v18, %v1805_v59 }
 0x122   : > { %v2049_v31 = vpack.c.bf16 %v2041_v28, %v2041_v28 }
 0x123   : > { %v1994_v5 = vpop.f32.mrf.mxu3  ;;  %v1942_v47 = vadd.f32 %v1941_v50, %v1913_v63 }
 0x124   : > { %v2058_v14 = vshrl.u32 %v2049_v31, 16  ;;  %v1995_v45 = vadd.f32 %v1994_v5, %v1966_v60  ;;  %v2061_v57 = vshll.u32 %v2049_v31, 16  ;;  %v1973_v5 = vpop.f32.mrf.mxu2 }
 0x125   : > { %v2026_v39 = vpop.f32.mrf.mxu0 }
 0x126   : > { %v2060_v12 = vrot.slane %v2058_v14, 7  ;;  %v2024_v42 = vadd.f32 %v2023_v55, %v1995_v45  ;;  %v429_v14 = vsel %vm6324_vm7, 0, %v428_v9  ;;  %v1858_v45 = vadd.f32 %v6287_v8, %v1829_v22 }
 0x127   : > { %430 = vst [vmem:[#allocation2 + $0x34] sm:$0x1] %v429_v14  ;;  %v1802_v8 = vadd.f32 %v6339_v43, %v6259_v56 }
 0x128   : > { %v2063_v16 = vor.u32 %v2061_v57, %v2060_v12  ;;  %v2064_v28 = vrot.slane %v2060_v12, 4  ;;  %v2042_v54 = vmax.f32 %v2024_v42, 0.0  ;;  %v1887_v15 = vadd.f32 %v6311_v25, %v1858_v45 }
 0x129   : > { %v1971_v42 = vadd.f32 %v1970_v32, %v1942_v47  ;;  %v1831_v25 = vadd.f32 %v6293_v11, %v1802_v8  ;;  %v4823_v47 = vld [vmem:[#allocation4] sm:$0xf] }
 0x12a   : > { %v2141_v55 = vsel %vm6414_vm12, %v2063_v16, %v2140_v53  ;;  %v2144_v3 = vsel %vm6317_vm5, %v2064_v28, %v2143_v38  ;;  %v2050_v7 = vpack.c.bf16 %v2042_v54, %v2042_v54  ;;  %v1916_v32 = vadd.f32 %v6307_v21, %v1887_v15 }
 0x12b   : > { %2142 = vst [vmem:[#allocation2 + $0x8] sm:$0xf] %v2141_v55  ;;  %v1997_v60 = vpop.f32.mrf.mxu3  ;;  %v1860_v11 = vadd.f32 %v6295_v13, %v1831_v25 }
 0x12c   : > { %2145 = vst [vmem:[#allocation2 + $0xc] sm:$0x1] %v2144_v3  ;;  %v2066_v49 = vshrl.u32 %v2050_v7, 16  ;;  %v1998_v31 = vadd.f32 %v1997_v60, %v1969_v10  ;;  %v2069_v48 = vshll.u32 %v2050_v7, 16  ;;  %v6443_v10 = vpop.f32.mrf.mxu1  ;;  %v2152_v3 = vld [vmem:[#allocation2 + $0x18] sm:$0xf]  ;;  %v1945_v21 = vadd.f32 %v1944_v46, %v1916_v32  ;;  %v6450_v9 = vpop.f32.mrf.mxu2 }
 0x12d   : > { %v2028_v41 = vpop.f32.mrf.mxu0  ;;  %v5497_v60 = vld [vmem:[#allocation5 + $0x178] sm:$0xff] }
 0x12e   : > { %v2068_v29 = vrot.slane %v2066_v49, 7  ;;  %v2027_v0 = vadd.f32 %v2026_v39, %v1998_v31  ;;  %v1807_v49 = vadd.f32 %v6339_v43, %v6275_v2  ;;  %v2155_v31 = vld [vmem:[#allocation2 + $0x1c] sm:$0x1]  ;;  %3861 = vmatpush.bf16.msrb.mxu2 %v5497_v60  ;;  %v1889_v2 = vadd.f32 %v6330_v36, %v1860_v11 }
 0x12f   : > { %v1974_v14 = vadd.f32 %v1973_v5, %v1945_v21 }
 0x130   : > { %v2071_v12 = vor.u32 %v2069_v48, %v2068_v29  ;;  %v2072_v6 = vrot.slane %v2068_v29, 4  ;;  %v2043_v57 = vmax.f32 %v2027_v0, 0.0  ;;  %v1836_v36 = vadd.f32 %v6309_v24, %v1807_v49  ;;  %v399_v24 = vld [vmem:[#allocation2 + $0x38] sm:$0x1] }
 0x132   : > { %v2147_v52 = vsel %vm6414_vm12, %v2071_v12, %v2146_v35  ;;  %v2150_v39 = vsel %vm6317_vm5, %v2072_v6, %v2149_v44  ;;  %v2051_v53 = vpack.c.bf16 %v2043_v57, %v2043_v57  ;;  %v2189_v38 = vld [vmem:[#allocation2 + $0x8] sm:$0xf]  ;;  %v1863_v6 = vadd.f32 %v6303_v19, %v1834_v62 }
 0x133   : > { %2148 = vst [vmem:[#allocation2 + $0x10] sm:$0xf] %v2147_v52  ;;  %v1999_v1 = vpop.f32.mrf.mxu3  ;;  %v2350_v28 = vld [vmem:[#allocation2 + $0x8] sm:$0xe]  ;;  %v2351_v4 = vld [vmem:[#allocation2 + $0xc] sm:$0x1] }
 0x134   : > { %2151 = vst [vmem:[#allocation2 + $0x14] sm:$0x1] %v2150_v39  ;;  %v2074_v50 = vshrl.u32 %v2051_v53, 16  ;;  %v2000_v16 = vadd.f32 %v1999_v1, %v1971_v42  ;;  %v2077_v54 = vshll.u32 %v2051_v53, 16  ;;  %v4798_v58 = vrot.slane %v2350_v28, 9  ;;  %v1949_v60 = vpop.f32.mrf.mxu1 }
 0x135   : > { %2197 = vst [vmem:[#allocation4 + $0x24] sm:$0xf] %v2189_v38  ;;  %v2389_v56 = vrot.slane %v2351_v4, 5  ;;  %v2031_v20 = vpop.f32.mrf.mxu0  ;;  %v2431_v22 = vld [vmem:[#allocation2 + $0x8] sm:$0xf]  ;;  %v1892_v19 = vadd.f32 %v6353_v23, %v1863_v6  ;;  %v1918_v28 = vadd.f32 %v6315_v27, %v1889_v2  ;;  %v5496_v4 = vld [vmem:[#allocation5 + $0x170] sm:$0xff] }
 0x136   : > { %v2076_v55 = vrot.slane %v2074_v50, 7  ;;  %v2029_v7 = vadd.f32 %v2028_v41, %v2000_v16  ;;  %v2206_v63 = vld [vmem:[#allocation2 + $0x8] sm:$0xf]  ;;  %2439 = vst [vmem:[#allocation4 + $0xc] sm:$0xf] %v2431_v22  ;;  %3862 = vmatpush.bf16.msrb.mxu2 %v5496_v4 }
 0x137   : > { %v2390_v0 = vsel %vm6379_vm10, %v4798_v58, %v2389_v56  ;;  %v2207_v13 = vld [vmem:[#allocation2 + $0xc] sm:$0x1]  ;;  %v2235_v43 = vshrl.u32 %v2206_v63, 16  ;;  %v2238_v46 = vshll.u32 %v2206_v63, 16  ;;  %v6461_v57 = vld [vmem:[#allocation2 + $0x8] sm:$0xf]  ;;  %v1947_v23 = vadd.f32 %v6443_v10, %v1918_v28  ;;  %v1978_v10 = vpop.f32.mrf.mxu2 }
 0x138   : > { %v2079_v29 = vor.u32 %v2077_v54, %v2076_v55  ;;  %v2080_v41 = vrot.slane %v2076_v55, 4  ;;  %v2044_v48 = vmax.f32 %v2029_v7, 0.0  ;;  %2424 = vst [vmem:[#allocation4 + $0x2c] sm:$0xf] %v2390_v0  ;;  %v4831_v52 = vld [vmem:[#allocation4 + $0x8] sm:$0xf] }
 0x139   : > { %v2244_v39 = vshll.u32 %v2207_v13, 16  ;;  %v2158_v38 = vld [vmem:[#allocation2 + $0x20] sm:$0xf]  ;;  %v2237_v1 = vrot.slane %v2235_v43, 4  ;;  %v2240_v50 = vrot.slane %v2238_v46, 5  ;;  %v5489_v16 = vld [vmem:[#allocation5 + $0x138] sm:$0xff] }
 0x13a   : > { %v2153_v45 = vsel %vm6414_vm12, %v2079_v29, %v2152_v3  ;;  %v2156_v35 = vsel %vm6317_vm5, %v2080_v41, %v2155_v31  ;;  %v2052_v44 = vpack.c.bf16 %v2044_v48, %v2044_v48  ;;  %v2432_v12 = vld [vmem:[#allocation2 + $0x10] sm:$0xf]  ;;  %v431_v54 = vld [vmem:[#allocation2 + $0x3c] sm:$0x1]  ;;  %v2464_v55 = vshrl.u32 %v6461_v57, 16  ;;  %3832 = vmatpush.bf16.msrb.mxu1 %v5489_v16 }
 0x13b   : > { %2154 = vst [vmem:[#allocation2 + $0x18] sm:$0xf] %v2153_v45  ;;  %v2002_v18 = vpop.f32.mrf.mxu3  ;;  %v2161_v3 = vld [vmem:[#allocation2 + $0x24] sm:$0x1]  ;;  %v2241_v7 = vor.u32 %v2240_v50, %v2237_v1  ;;  %v400_v58 = vsel %vm6317_vm5, 0, %v399_v24  ;;  %v432_v56 = vsel %vm6324_vm7, 0, %v431_v54  ;;  %v1976_v29 = vadd.f32 %v6450_v9, %v1947_v23 }
 0x13c   : > { %2157 = vst [vmem:[#allocation2 + $0x1c] sm:$0x1] %v2156_v35  ;;  %v2082_v15 = vshrl.u32 %v2052_v44, 16  ;;  %v2003_v5 = vadd.f32 %v2002_v18, %v1974_v14  ;;  %v5418_v42 = vld [vmem:[#allocation4 + $0x20] sm:$0xf0]  ;;  %v2085_v53 = vshll.u32 %v2052_v44, 16  ;;  %v1865_v45 = vadd.f32 %v6313_v26, %v1836_v36 }
 0x13d   : > { %v4824_v8 = vor.u32 %v5418_v42, %v4823_v47  ;;  %2440 = vst [vmem:[#allocation4 + $0x30] sm:$0xf] %v2432_v12  ;;  %v2467_v21 = vshll.u32 %v6461_v57, 16  ;;  %v2033_v31 = vpop.f32.mrf.mxu0  ;;  %v2242_v22 = vrot.slane %v2241_v7, 4  ;;  %v2246_v63 = vrot.slane %v2244_v39, 5  ;;  %v1951_v7 = vpop.f32.mrf.mxu1 }
 0x13e   : > { %v2084_v25 = vrot.slane %v2082_v15, 7  ;;  %v2032_v32 = vadd.f32 %v2031_v20, %v2003_v5  ;;  %401 = vst [vmem:[#allocation2 + $0x38] sm:$0x1] %v400_v58  ;;  %v6474_v41 = vld [vmem:[#allocation2 + $0x10] sm:$0xf]  ;;  %v6483_v35 = vrot.slane %v2464_v55, 4  ;;  %v1921_v57 = vadd.f32 %v6334_v40, %v1892_v19 }
 0x13f   : > { %3724 = vmatmul.bf16.vlgmr.msra.gmra.mxu1 %v4824_v8  ;;  %v5419_v11 = vld [vmem:[#allocation4 + $0x28] sm:$0xf0]  ;;  %433 = vst [vmem:[#allocation2 + $0x3c] sm:$0x1] %v432_v56  ;;  %v2190_v13 = vld [vmem:[#allocation2 + $0x10] sm:$0xf]  ;;  %v2247_v46 = vsel %vm5938_vm2, %v2242_v22, %v2246_v63  ;;  %v1980_v63 = vpop.f32.mrf.mxu2 }
 0x140   : > { %v2087_v27 = vor.u32 %v2085_v53, %v2084_v25  ;;  %v2088_v59 = vrot.slane %v2084_v25, 4  ;;  %v2045_v49 = vmax.f32 %v2032_v32, 0.0  ;;  %v4832_v20 = vor.u32 %v5419_v11, %v4831_v52  ;;  %v5415_v2 = vld [vmem:[#allocation4 + $0xc] sm:$0xf]  ;;  %v2352_v9 = vld [vmem:[#allocation2 + $0x10] sm:$0xe] }
 0x141   : > { %v6485_v6 = vrot.slane %v2467_v21, 5  ;;  %v2164_v15 = vld [vmem:[#allocation2 + $0x28] sm:$0xf]  ;;  %v2167_v5 = vld [vmem:[#allocation2 + $0x2c] sm:$0x1]  ;;  %v4799_v36 = vrot.slane %v2352_v9, 9  ;;  %v1950_v50 = vadd.f32 %v1949_v60, %v1921_v57 }
 0x142   : > { %v2159_v48 = vsel %vm6414_vm12, %v2087_v27, %v2158_v38  ;;  %v2162_v0 = vsel %vm6317_vm5, %v2088_v59, %v2161_v3  ;;  %v2053_v62 = vpack.c.bf16 %v2045_v49, %v2045_v49  ;;  %3782 = vmatmul.bf16.vlgmr.msrb.gmra.mxu3 %v4832_v20  ;;  %v2191_v14 = vld [vmem:[#allocation2 + $0x18] sm:$0xf]  ;;  %2341 = vst [vmem:[#allocation4 + $0x28] sm:$0xf] %v2247_v46  ;;  %v2353_v52 = vld [vmem:[#allocation2 + $0x14] sm:$0x1] }
 0x143   : > { %2160 = vst [vmem:[#allocation2 + $0x20] sm:$0xf] %v2159_v48  ;;  %v2004_v43 = vpop.f32.mrf.mxu3  ;;  %v2354_v26 = vld [vmem:[#allocation2 + $0x18] sm:$0xe]  ;;  %v1894_v38 = vadd.f32 %v6372_v17, %v1865_v45  ;;  %v2478_v8 = vshrl.u32 %v6474_v41, 16  ;;  %v2481_v1 = vshll.u32 %v6474_v41, 16  ;;  %v1979_v24 = vadd.f32 %v1978_v10, %v1950_v50 }
 0x144   : > { %2163 = vst [vmem:[#allocation2 + $0x24] sm:$0x1] %v2162_v0  ;;  %v2090_v44 = vshrl.u32 %v2053_v62, 16  ;;  %v2005_v47 = vadd.f32 %v2004_v43, %v1976_v29  ;;  %v4833_v12 = vld [vmem:[#allocation4 + $0x2c] sm:$0xf0]  ;;  %v2093_v18 = vshll.u32 %v2053_v62, 16 }
 0x145   : > { %v4836_v42 = vor.u32 %v5415_v2, %v4833_v12  ;;  %2198 = vst [vmem:[#allocation4 + $0x48] sm:$0xf] %v2190_v13  ;;  %v2355_v40 = vld [vmem:[#allocation2 + $0x1c] sm:$0x1]  ;;  %v2393_v25 = vrot.slane %v2353_v52, 5  ;;  %v5488_v32 = vld [vmem:[#allocation5 + $0x130] sm:$0xff]  ;;  %v1923_v59 = vadd.f32 %v6358_v34, %v1894_v38  ;;  %v2036_v49 = vpop.f32.mrf.mxu0 }
 0x146   : > { %v2092_v39 = vrot.slane %v2090_v44, 7  ;;  %v2034_v53 = vadd.f32 %v2033_v31, %v2005_v47  ;;  %2199 = vst [vmem:[#allocation4 + $0x6c] sm:$0xf] %v2191_v14  ;;  %v4800_v54 = vrot.slane %v2354_v26, 9  ;;  %v2397_v4 = vrot.slane %v2355_v40, 5  ;;  %3833 = vmatpush.bf16.msrb.mxu1 %v5488_v32  ;;  %v5487_v32 = vld [vmem:[#allocation5 + $0x128] sm:$0xff] }
 0x147   : > { %3811 = vmatmul.bf16.vlgmr.msrb.gmra.mxu0 %v4836_v42  ;;  %v402_v55 = vld [vmem:[#allocation2 + $0x40] sm:$0x1]  ;;  %v434_v3 = vld [vmem:[#allocation2 + $0x44] sm:$0x1]  ;;  %v5414_v23 = vld [vmem:[#allocation4 + $0x4] sm:$0xf]  ;;  %v2394_v60 = vsel %vm6379_vm10, %v4799_v36, %v2393_v25  ;;  %v1952_v62 = vadd.f32 %v1951_v7, %v1923_v59 }
 0x148   : > { %v2095_v16 = vor.u32 %v2093_v18, %v2092_v39  ;;  %v2096_v19 = vrot.slane %v2092_v39, 4  ;;  %v2046_v28 = vmax.f32 %v2034_v53, 0.0  ;;  %v6497_v27 = vld [vmem:[#allocation2 + $0x10] sm:$0xf]  ;;  %v2398_v21 = vsel %vm6379_vm10, %v4800_v54, %v2397_v4  ;;  %v2433_v34 = vld [vmem:[#allocation2 + $0x18] sm:$0xf] }
 0x149   : > { %v403_v31 = vsel %vm6317_vm5, 0, %v402_v55  ;;  %v435_v20 = vsel %vm6324_vm7, 0, %v434_v3  ;;  %v2208_v22 = vld [vmem:[#allocation2 + $0x10] sm:$0xf]  ;;  %v4825_v48 = vld [vmem:[#allocation4 + $0x24] sm:$0xf0]  ;;  %v1981_v12 = vadd.f32 %v1980_v63, %v1952_v62 }
 0x14a   : > { %v2165_v17 = vsel %vm6414_vm12, %v2095_v16, %v2164_v15  ;;  %v2168_v58 = vsel %vm6317_vm5, %v2096_v19, %v2167_v5  ;;  %v2054_v56 = vpack.c.bf16 %v2046_v28, %v2046_v28  ;;  %v2170_v2 = vld [vmem:[#allocation2 + $0x30] sm:$0xf]  ;;  %v2173_v13 = vld [vmem:[#allocation2 + $0x34] sm:$0x1]  ;;  %v4828_v43 = vor.u32 %v5414_v23, %v4825_v48  ;;  %2425 = vst [vmem:[#allocation4 + $0x50] sm:$0xf] %v2394_v60 }
 0x14b   : > { %2166 = vst [vmem:[#allocation2 + $0x28] sm:$0xf] %v2165_v17  ;;  %v2007_v11 = vpop.f32.mrf.mxu3  ;;  %v2434_v14 = vld [vmem:[#allocation2 + $0x20] sm:$0xf]  ;;  %v2209_v9 = vld [vmem:[#allocation2 + $0x14] sm:$0x1]  ;;  %3834 = vmatpush.bf16.msrb.mxu1 %v5487_v32 }
 0x14c   : > { %2169 = vst [vmem:[#allocation2 + $0x2c] sm:$0x1] %v2168_v58  ;;  %v2098_v29 = vshrl.u32 %v2054_v56, 16  ;;  %v2101_v10 = vshll.u32 %v2054_v56, 16  ;;  %v2008_v0 = vadd.f32 %v2007_v11, %v1979_v24  ;;  %v4859_v46 = vld [vmem:[#allocation4 + $0x48] sm:$0xf]  ;;  %3753 = vmatmul.bf16.vlgmr.msra.gmra.mxu2 %v4828_v43 }
 0x14d   : > { %v5427_v33 = vld [vmem:[#allocation4 + $0x68] sm:$0xf0]  ;;  %2426 = vst [vmem:[#allocation4 + $0x74] sm:$0xf] %v2398_v21  ;;  %v2249_v47 = vshrl.u32 %v2208_v22, 16  ;;  %v2705_v5 = vshrl.u32 %v6497_v27, 16 }
 0x14e   : > { %v2100_v45 = vrot.slane %v2098_v29, 7  ;;  %v2037_v44 = vadd.f32 %v2036_v49, %v2008_v0  ;;  %v4860_v57 = vor.u32 %v5427_v33, %v4859_v46  ;;  %404 = vst [vmem:[#allocation2 + $0x40] sm:$0x1] %v403_v31  ;;  %v2210_v18 = vld [vmem:[#allocation2 + $0x18] sm:$0xf]  ;;  %v2252_v36 = vshll.u32 %v2208_v22, 16  ;;  %v2038_v49 = vpop.f32.mrf.mxu0 }
 0x14f   : > { %v2211_v15 = vld [vmem:[#allocation2 + $0x1c] sm:$0x1]  ;;  %436 = vst [vmem:[#allocation2 + $0x44] sm:$0x1] %v435_v20  ;;  %v2251_v26 = vrot.slane %v2249_v47, 4  ;;  %v2263_v38 = vshrl.u32 %v2210_v18, 16 }
 0x150   : > { %v2103_v42 = vor.u32 %v2101_v10, %v2100_v45  ;;  %v2104_v52 = vrot.slane %v2100_v45, 4  ;;  %v2047_v39 = vmax.f32 %v2037_v44, 0.0  ;;  %v5495_v53 = vld [vmem:[#allocation5 + $0x168] sm:$0xff]  ;;  %3729 = vmatmul.bf16.gmra.mxu1 %v4860_v57  ;;  %2441 = vst [vmem:[#allocation4 + $0x54] sm:$0xf] %v2433_v34  ;;  %v2266_v50 = vshll.u32 %v2210_v18, 16 }
 0x151   : > { %v6507_v40 = vld [vmem:[#allocation2 + $0x18] sm:$0xf]  ;;  %2442 = vst [vmem:[#allocation4 + $0x78] sm:$0xf] %v2434_v14  ;;  %v2258_v25 = vshll.u32 %v2209_v9, 16  ;;  %3863 = vmatpush.bf16.msrb.mxu2 %v5495_v53  ;;  %v2254_v54 = vrot.slane %v2252_v36, 5 }
 0x152   : > { %v2171_v16 = vsel %vm6414_vm12, %v2103_v42, %v2170_v2  ;;  %v2174_v19 = vsel %vm6317_vm5, %v2104_v52, %v2173_v13  ;;  %v2055_v28 = vpack.c.bf16 %v2047_v39, %v2047_v39  ;;  %v2265_v4 = vrot.slane %v2263_v38, 4  ;;  %v4867_v58 = vld [vmem:[#allocation4 + $0x50] sm:$0xf]  ;;  %v2176_v60 = vld [vmem:[#allocation2 + $0x38] sm:$0xf]  ;;  %v5494_v22 = vld [vmem:[#allocation5 + $0x160] sm:$0xff] }
 0x153   : > { %2172 = vst [vmem:[#allocation2 + $0x30] sm:$0xf] %v2171_v16  ;;  %v2009_v24 = vpop.f32.mrf.mxu3  ;;  %v2268_v55 = vrot.slane %v2266_v50, 5  ;;  %v2272_v3 = vshll.u32 %v2211_v15, 16  ;;  %v2708_v7 = vshll.u32 %v6497_v27, 16  ;;  %v2719_v23 = vshrl.u32 %v6507_v40, 16 }
 0x154   : > { %2175 = vst [vmem:[#allocation2 + $0x34] sm:$0x1] %v2174_v19  ;;  %v2106_v17 = vshrl.u32 %v2055_v28, 16  ;;  %v2010_v56 = vadd.f32 %v2009_v24, %v1981_v12  ;;  %v2179_v59 = vld [vmem:[#allocation2 + $0x3c] sm:$0x1]  ;;  %v2255_v21 = vor.u32 %v2254_v54, %v2251_v26  ;;  %v2109_v29 = vshll.u32 %v2055_v28, 16 }
 0x155   : > { %v5428_v11 = vld [vmem:[#allocation4 + $0x70] sm:$0xf0]  ;;  %v2269_v31 = vor.u32 %v2268_v55, %v2265_v4  ;;  %v2192_v20 = vld [vmem:[#allocation2 + $0x20] sm:$0xf]  ;;  %v2193_v0 = vld [vmem:[#allocation2 + $0x28] sm:$0xf]  ;;  %3864 = vmatpush.bf16.msrb.mxu2 %v5494_v22 }
 0x156   : > { %v2108_v63 = vrot.slane %v2106_v17, 7  ;;  %v4868_v10 = vor.u32 %v5428_v11, %v4867_v58  ;;  %v2039_v48 = vadd.f32 %v2038_v49, %v2010_v56  ;;  %v5505_v34 = vld [vmem:[#allocation5 + $0x1b8] sm:$0xff]  ;;  %v2256_v62 = vrot.slane %v2255_v21, 4  ;;  %2200 = vst [vmem:[#allocation4 + $0x90] sm:$0xf] %v2192_v20  ;;  %v5486_v28 = vld [vmem:[#allocation5 + $0x120] sm:$0xff] }
 0x157   : > { %v2260_v2 = vrot.slane %v2258_v25, 5  ;;  %v2270_v13 = vrot.slane %v2269_v31, 4  ;;  %v2274_v43 = vrot.slane %v2272_v3, 5  ;;  %v5424_v45 = vld [vmem:[#allocation4 + $0x54] sm:$0xf]  ;;  %3890 = vmatpush.bf16.msra.mxu3 %v5505_v34  ;;  %3835 = vmatpush.bf16.msrb.mxu1 %v5486_v28  ;;  %v5493_v56 = vld [vmem:[#allocation5 + $0x158] sm:$0xff] }
 0x158   : > { %v2111_v46 = vor.u32 %v2109_v29, %v2108_v63  ;;  %v2112_v14 = vrot.slane %v2108_v63, 4  ;;  %3787 = vmatmul.bf16.gmra.mxu3 %v4868_v10  ;;  %v2048_v9 = vmax.f32 %v2039_v48, 0.0  ;;  %2201 = vst [vmem:[#allocation4 + $0xb4] sm:$0xf] %v2193_v0  ;;  %v4869_v44 = vld [vmem:[#allocation4 + $0x74] sm:$0xf0] }
 0x159   : > { %v2261_v33 = vsel %vm5938_vm2, %v2256_v62, %v2260_v2  ;;  %v2275_v47 = vsel %vm5938_vm2, %v2270_v13, %v2274_v43  ;;  %v2356_v12 = vld [vmem:[#allocation2 + $0x20] sm:$0xe]  ;;  %v2357_v57 = vld [vmem:[#allocation2 + $0x24] sm:$0x1]  ;;  %v4872_v52 = vor.u32 %v5424_v45, %v4869_v44  ;;  %v2358_v39 = vld [vmem:[#allocation2 + $0x28] sm:$0xe]  ;;  %3865 = vmatpush.bf16.msrb.mxu2 %v5493_v56 }
 0x15a   : > { %v2177_v18 = vsel %vm6414_vm12, %v2111_v46, %v2176_v60  ;;  %v2180_v15 = vsel %vm6317_vm5, %v2112_v14, %v2179_v59  ;;  %v2056_v42 = vpack.c.bf16 %v2048_v9, %v2048_v9  ;;  %2342 = vst [vmem:[#allocation4 + $0x4c] sm:$0xf] %v2261_v33  ;;  %v2359_v53 = vld [vmem:[#allocation2 + $0x2c] sm:$0x1]  ;;  %v4801_v26 = vrot.slane %v2356_v12, 9  ;;  %v5504_v25 = vld [vmem:[#allocation5 + $0x1b0] sm:$0xff] }
 0x15b   : > { %2178 = vst [vmem:[#allocation2 + $0x38] sm:$0xf] %v2177_v18  ;;  %v2401_v36 = vrot.slane %v2357_v57, 5  ;;  %v4802_v38 = vrot.slane %v2358_v39, 9  ;;  %v2405_v50 = vrot.slane %v2359_v53, 5  ;;  %3816 = vmatmul.bf16.gmra.mxu0 %v4872_v52  ;;  %3891 = vmatpush.bf16.msra.mxu3 %v5504_v25  ;;  %v6529_v22 = vrot.slane %v2719_v23, 4 }
 0x15c   : > { %2181 = vst [vmem:[#allocation2 + $0x3c] sm:$0x1] %v2180_v15  ;;  %v2114_v16 = vshrl.u32 %v2056_v42, 16  ;;  %v2117_v19 = vshll.u32 %v2056_v42, 16  ;;  %v2182_v32 = vld [vmem:[#allocation2 + $0x40] sm:$0xf] }
 0x15d   : > { %v2185_v24 = vld [vmem:[#allocation2 + $0x44] sm:$0x1]  ;;  %2343 = vst [vmem:[#allocation4 + $0x70] sm:$0xf] %v2275_v47  ;;  %v2402_v54 = vsel %vm6379_vm10, %v4801_v26, %v2401_v36  ;;  %v2406_v4 = vsel %vm6379_vm10, %v4802_v38, %v2405_v50  ;;  %v2435_v55 = vld [vmem:[#allocation2 + $0x28] sm:$0xf] }
 0x15e   : > { %v2436_v3 = vld [vmem:[#allocation2 + $0x30] sm:$0xf]  ;;  %v2116_v17 = vrot.slane %v2114_v16, 7  ;;  %v4895_v58 = vld [vmem:[#allocation4 + $0x90] sm:$0xf]  ;;  %v2722_v63 = vshll.u32 %v6507_v40, 16 }
 0x15f   : > { %2427 = vst [vmem:[#allocation4 + $0x98] sm:$0xf] %v2402_v54  ;;  %v5436_v60 = vld [vmem:[#allocation4 + $0xb0] sm:$0xf0]  ;;  %v2212_v59 = vld [vmem:[#allocation2 + $0x20] sm:$0xf] }
 0x160   : > { %2428 = vst [vmem:[#allocation4 + $0xbc] sm:$0xf] %v2406_v4  ;;  %v2119_v49 = vor.u32 %v2117_v19, %v2116_v17  ;;  %v2120_v11 = vrot.slane %v2116_v17, 4  ;;  %v4896_v21 = vor.u32 %v5436_v60, %v4895_v58  ;;  %v2213_v31 = vld [vmem:[#allocation2 + $0x24] sm:$0x1]  ;;  %v2277_v20 = vshrl.u32 %v2212_v59, 16 }
 0x161   : > { %2443 = vst [vmem:[#allocation4 + $0x9c] sm:$0xf] %v2435_v55  ;;  %v2214_v29 = vld [vmem:[#allocation2 + $0x28] sm:$0xf]  ;;  %v5423_v0 = vld [vmem:[#allocation4 + $0x4c] sm:$0xf] }
 0x162   : > { %2444 = vst [vmem:[#allocation4 + $0xc0] sm:$0xf] %v2436_v3  ;;  %v2183_v10 = vsel %vm6414_vm12, %v2119_v49, %v2182_v32  ;;  %v2186_v48 = vsel %vm6317_vm5, %v2120_v11, %v2185_v24  ;;  %3734 = vmatmul.bf16.gmra.mxu1 %v4896_v21  ;;  %v2215_v34 = vld [vmem:[#allocation2 + $0x2c] sm:$0x1]  ;;  %v2279_v62 = vrot.slane %v2277_v20, 4  ;;  %v2280_v2 = vshll.u32 %v2212_v59, 16 }
 0x163   : > { %v5513_v13 = vld [vmem:[#allocation5 + $0x1f8] sm:$0xff]  ;;  %v5503_v43 = vld [vmem:[#allocation5 + $0x1a8] sm:$0xff]  ;;  %2184 = vst [vmem:[#allocation2 + $0x40] sm:$0xf] %v2183_v10  ;;  %v2286_v23 = vshll.u32 %v2213_v31, 16  ;;  %v2291_v46 = vshrl.u32 %v2214_v29, 16 }
 0x164   : > { %v2294_v14 = vshll.u32 %v2214_v29, 16  ;;  %v2300_v9 = vshll.u32 %v2215_v34, 16  ;;  %2187 = vst [vmem:[#allocation2 + $0x44] sm:$0x1] %v2186_v48  ;;  %v4861_v45 = vld [vmem:[#allocation4 + $0x6c] sm:$0xf0]  ;;  %3919 = vmatpush.bf16.msra.mxu0 %v5513_v13  ;;  %3892 = vmatpush.bf16.msra.mxu3 %v5503_v43 }
 0x165   : > { %v2282_v44 = vrot.slane %v2280_v2, 5  ;;  %v4864_v33 = vor.u32 %v5423_v0, %v4861_v45  ;;  %v2288_v12 = vrot.slane %v2286_v23, 5  ;;  %v2293_v57 = vrot.slane %v2291_v46, 4  ;;  %v5485_v15 = vld [vmem:[#allocation5 + $0x118] sm:$0xff]  ;;  %v2194_v53 = vld [vmem:[#allocation2 + $0x30] sm:$0xf] }
 0x166   : > { %v4903_v47 = vld [vmem:[#allocation4 + $0x98] sm:$0xf]  ;;  %v2296_v18 = vrot.slane %v2294_v14, 5  ;;  %v2302_v39 = vrot.slane %v2300_v9, 5  ;;  %v5502_v26 = vld [vmem:[#allocation5 + $0x1a0] sm:$0xff]  ;;  %3836 = vmatpush.bf16.msrb.mxu1 %v5485_v15  ;;  %v5492_v25 = vld [vmem:[#allocation5 + $0x150] sm:$0xff] }
 0x167   : > { %v5437_v42 = vld [vmem:[#allocation4 + $0xb8] sm:$0xf0]  ;;  %v2283_v52 = vor.u32 %v2282_v44, %v2279_v62  ;;  %3758 = vmatmul.bf16.gmra.mxu2 %v4864_v33  ;;  %v2195_v16 = vld [vmem:[#allocation2 + $0x38] sm:$0xf]  ;;  %2202 = vst [vmem:[#allocation4 + $0xd8] sm:$0xf] %v2194_v53 }
 0x168   : > { %v4904_v36 = vor.u32 %v5437_v42, %v4903_v47  ;;  %v5433_v38 = vld [vmem:[#allocation4 + $0x9c] sm:$0xf]  ;;  %v2297_v50 = vor.u32 %v2296_v18, %v2293_v57  ;;  %3920 = vmatpush.bf16.msra.mxu0 %v5512_v61  ;;  %2203 = vst [vmem:[#allocation4 + $0xfc] sm:$0xf] %v2195_v16  ;;  %3893 = vmatpush.bf16.msra.mxu3 %v5502_v26  ;;  %v5511_v54 = vld [vmem:[#allocation5 + $0x1e8] sm:$0xff]  ;;  %v5484_v31 = vld [vmem:[#allocation5 + $0x110] sm:$0xff] }
 0x169   : > { %v4905_v19 = vld [vmem:[#allocation4 + $0xbc] sm:$0xf0]  ;;  %v2284_v28 = vrot.slane %v2283_v52, 4  ;;  %v2361_v55 = vld [vmem:[#allocation2 + $0x34] sm:$0x1]  ;;  %3866 = vmatpush.bf16.msrb.mxu2 %v5492_v25  ;;  %v5501_v21 = vld [vmem:[#allocation5 + $0x198] sm:$0xff]  ;;  %v2470_v61 = vor.u32 %v6485_v6, %v6483_v35 }
 0x16a   : > { %3792 = vmatmul.bf16.gmra.mxu3 %v4904_v36  ;;  %v4908_v32 = vor.u32 %v5433_v38, %v4905_v19  ;;  %v2298_v24 = vrot.slane %v2297_v50, 4  ;;  %v2360_v4 = vld [vmem:[#allocation2 + $0x30] sm:$0xe]  ;;  %v2362_v17 = vld [vmem:[#allocation2 + $0x38] sm:$0xe]  ;;  %v2409_v60 = vrot.slane %v2361_v55, 5  ;;  %3837 = vmatpush.bf16.msrb.mxu1 %v5484_v31 }
 0x16b   : > { %v2289_v3 = vsel %vm5938_vm2, %v2284_v28, %v2288_v12  ;;  %v2363_v58 = vld [vmem:[#allocation2 + $0x3c] sm:$0x1]  ;;  %v4803_v56 = vrot.slane %v2360_v4, 9  ;;  %v4804_v49 = vrot.slane %v2362_v17, 9  ;;  %v5510_v29 = vld [vmem:[#allocation5 + $0x1e0] sm:$0xff]  ;;  %v5500_v48 = vld [vmem:[#allocation5 + $0x190] sm:$0xff] }
 0x16c   : > { %v2303_v59 = vsel %vm5938_vm2, %v2298_v24, %v2302_v39  ;;  %2344 = vst [vmem:[#allocation4 + $0x94] sm:$0xf] %v2289_v3  ;;  %v2413_v11 = vrot.slane %v2363_v58, 5  ;;  %3821 = vmatmul.bf16.gmra.mxu0 %v4908_v32  ;;  %v2437_v10 = vld [vmem:[#allocation2 + $0x38] sm:$0xf]  ;;  %3894 = vmatpush.bf16.msra.mxu3 %v5501_v21  ;;  %v6548_v33 = vrot.slane %v2722_v63, 5 }
 0x16d   : > { %2345 = vst [vmem:[#allocation4 + $0xb8] sm:$0xf] %v2303_v59  ;;  %v2410_v20 = vsel %vm6379_vm10, %v4803_v56, %v2409_v60  ;;  %3921 = vmatpush.bf16.msra.mxu0 %v5511_v54  ;;  %v2438_v34 = vld [vmem:[#allocation2 + $0x40] sm:$0xf]  ;;  %v2216_v62 = vld [vmem:[#allocation2 + $0x30] sm:$0xf] }
 0x16e   : > { %v2414_v0 = vsel %vm6379_vm10, %v4804_v49, %v2413_v11  ;;  %2429 = vst [vmem:[#allocation4 + $0xe0] sm:$0xf] %v2410_v20  ;;  %v4931_v2 = vld [vmem:[#allocation4 + $0xd8] sm:$0xf]  ;;  %v2217_v13 = vld [vmem:[#allocation2 + $0x34] sm:$0x1]  ;;  %v2725_v56 = vor.u32 %v6548_v33, %v6529_v22 }
 0x16f   : > { %2430 = vst [vmem:[#allocation4 + $0x104] sm:$0xf] %v2414_v0  ;;  %v2448_v43 = vld [vmem:[#allocation2 + $0xc] sm:$0x1]  ;;  %v2218_v46 = vld [vmem:[#allocation2 + $0x38] sm:$0xf] }
 0x170   : > { %v5445_v23 = vld [vmem:[#allocation4 + $0xf8] sm:$0xf0]  ;;  %2445 = vst [vmem:[#allocation4 + $0xe4] sm:$0xf] %v2437_v10  ;;  %v2219_v9 = vld [vmem:[#allocation2 + $0x3c] sm:$0x1]  ;;  %3895 = vmatpush.bf16.msra.mxu3 %v5500_v48 }
 0x171   : > { %v4932_v14 = vor.u32 %v5445_v23, %v4931_v2  ;;  %2446 = vst [vmem:[#allocation4 + $0x108] sm:$0xf] %v2438_v34  ;;  %v2305_v45 = vshrl.u32 %v2216_v62, 16  ;;  %v2308_v44 = vshll.u32 %v2216_v62, 16  ;;  %3922 = vmatpush.bf16.msra.mxu0 %v5510_v29  ;;  %v2314_v47 = vshll.u32 %v2217_v13, 16  ;;  %v5483_v18 = vld [vmem:[#allocation5 + $0x108] sm:$0xff] }
 0x172   : > { %v2319_v12 = vshrl.u32 %v2218_v46, 16  ;;  %v2322_v57 = vshll.u32 %v2218_v46, 16  ;;  %v5491_v15 = vld [vmem:[#allocation5 + $0x148] sm:$0xff]  ;;  %v5509_v53 = vld [vmem:[#allocation5 + $0x1d8] sm:$0xff]  ;;  %v2328_v40 = vshll.u32 %v2219_v9, 16  ;;  %3838 = vmatpush.bf16.msrb.mxu1 %v5483_v18  ;;  %v5482_v19 = vld [vmem:[#allocation5 + $0x100] sm:$0xff] }
 0x173   : > { %v5432_v42 = vld [vmem:[#allocation4 + $0x94] sm:$0xf]  ;;  %3739 = vmatmul.bf16.gmra.mxu1 %v4932_v14  ;;  %v2307_v52 = vrot.slane %v2305_v45, 4  ;;  %v2310_v39 = vrot.slane %v2308_v44, 5  ;;  %v5499_v26 = vld [vmem:[#allocation5 + $0x188] sm:$0xff]  ;;  %v2316_v38 = vrot.slane %v2314_v47, 5  ;;  %3867 = vmatpush.bf16.msrb.mxu2 %v5491_v15 }
 0x174   : > { %v4897_v36 = vld [vmem:[#allocation4 + $0xb4] sm:$0xf0]  ;;  %v2321_v35 = vrot.slane %v2319_v12, 4  ;;  %v2324_v6 = vrot.slane %v2322_v57, 5  ;;  %v5508_v28 = vld [vmem:[#allocation5 + $0x1d0] sm:$0xff]  ;;  %v2471_v25 = vrot.slane %v2470_v61, 4  ;;  %3896 = vmatpush.bf16.msra.mxu3 %v5499_v26 }
 0x175   : > { %v4900_v63 = vor.u32 %v5432_v42, %v4897_v36  ;;  %v4939_v50 = vld [vmem:[#allocation4 + $0xe0] sm:$0xf]  ;;  %v2311_v16 = vor.u32 %v2310_v39, %v2307_v52  ;;  %v2473_v32 = vshll.u32 %v2448_v43, 16  ;;  %v6550_v24 = vld [vmem:[#allocation2 + $0x8] sm:$0xe]  ;;  %3923 = vmatpush.bf16.msra.mxu0 %v5509_v53  ;;  %v2480_v17 = vrot.slane %v2478_v8, 4 }
 0x176   : > { %v2691_v54 = vld [vmem:[#allocation2 + $0x1c] sm:$0x1]  ;;  %v5446_v4 = vld [vmem:[#allocation4 + $0x100] sm:$0xf0]  ;;  %v2325_v55 = vor.u32 %v2324_v6, %v2321_v35  ;;  %v2483_v58 = vrot.slane %v2481_v1, 5  ;;  %v2330_v10 = vrot.slane %v2328_v40, 5  ;;  %3839 = vmatpush.bf16.msrb.mxu1 %v5482_v19 }
 0x177   : > { %v2450_v3 = vld [vmem:[#allocation2 + $0x14] sm:$0x1]  ;;  %v4940_v60 = vor.u32 %v5446_v4, %v4939_v50  ;;  %v2312_v49 = vrot.slane %v2311_v16, 4  ;;  %v2475_v11 = vrot.slane %v2473_v32, 5  ;;  %3763 = vmatmul.bf16.gmra.mxu2 %v4900_v63  ;;  %v2707_v41 = vrot.slane %v2705_v5, 4  ;;  %v5507_v62 = vld [vmem:[#allocation5 + $0x1c8] sm:$0xff] }
 0x178   : > { %v5442_v59 = vld [vmem:[#allocation4 + $0xe4] sm:$0xf]  ;;  %v2487_v21 = vshll.u32 %v2450_v3, 16  ;;  %v4941_v20 = vld [vmem:[#allocation4 + $0x104] sm:$0xf0]  ;;  %v2326_v29 = vrot.slane %v2325_v55, 4  ;;  %v2484_v48 = vor.u32 %v2483_v58, %v2480_v17 }
 0x179   : > { %v5498_v31 = vld [vmem:[#allocation5 + $0x180] sm:$0xff]  ;;  %v4944_v8 = vor.u32 %v5442_v59, %v4941_v20  ;;  %v2317_v1 = vsel %vm5938_vm2, %v2312_v49, %v2316_v38  ;;  %v2476_v22 = vsel %vm5938_vm2, %v2471_v25, %v2475_v11  ;;  %3924 = vmatpush.bf16.msra.mxu0 %v5508_v28  ;;  %v2673_v23 = vld [vmem:[#allocation2 + $0x18] sm:$0xf]  ;;  %v2710_v5 = vrot.slane %v2708_v7, 5  ;;  %v2592_v12 = vld [vmem:[#allocation2 + $0xc] sm:$0x1] }
 0x17a   : > { %v5490_v0 = vld [vmem:[#allocation5 + $0x140] sm:$0xff]  ;;  %v2489_v34 = vrot.slane %v2487_v21, 5  ;;  %3797 = vmatmul.bf16.gmra.mxu3 %v4940_v60  ;;  %v2331_v13 = vsel %vm5938_vm2, %v2326_v29, %v2330_v10  ;;  %2346 = vst [vmem:[#allocation4 + $0xdc] sm:$0xf] %v2317_v1  ;;  %v2485_v43 = vrot.slane %v2484_v48, 4  ;;  %v2726_v9 = vrot.slane %v2725_v56, 4 }
 0x17b   : > { %v2672_v2 = vld [vmem:[#allocation2 + $0x10] sm:$0xf]  ;;  %v2689_v46 = vld [vmem:[#allocation2 + $0x14] sm:$0x1]  ;;  %2347 = vst [vmem:[#allocation4 + $0x100] sm:$0xf] %v2331_v13  ;;  %3897 = vmatpush.bf16.msra.mxu3 %v5498_v31  ;;  %3868 = vmatpush.bf16.msrb.mxu2 %v5490_v0  ;;  %v2711_v47 = vor.u32 %v2710_v5, %v2707_v41 }
 0x17c   : > { %v2714_v14 = vshll.u32 %v2689_v46, 16  ;;  %v2728_v45 = vshll.u32 %v2691_v54, 16  ;;  %v4805_v44 = vrot.slane %v6550_v24, 9  ;;  %v2490_v61 = vsel %vm5938_vm2, %v2485_v43, %v2489_v34  ;;  %2583 = vst [vmem:[#allocation4 + $0x10] sm:$0xf] %v2476_v22  ;;  %v5506_v33 = vld [vmem:[#allocation5 + $0x1c0] sm:$0xff]  ;;  %3826 = vmatmul.bf16.gmra.mxu0 %v4944_v8 }
 0x17d   : > { %v2593_v57 = vld [vmem:[#allocation2 + $0x10] sm:$0xe]  ;;  %2584 = vst [vmem:[#allocation4 + $0x34] sm:$0xf] %v2490_v61  ;;  %v2594_v18 = vld [vmem:[#allocation2 + $0x14] sm:$0x1]  ;;  %3925 = vmatpush.bf16.msra.mxu0 %v5507_v62 }
 0x17e   : > { %v2716_v27 = vrot.slane %v2714_v14, 5  ;;  %v2730_v7 = vrot.slane %v2728_v45, 5  ;;  %2680 = vst [vmem:[#allocation4 + $0x18] sm:$0xf] %v2672_v2  ;;  %v2712_v15 = vrot.slane %v2711_v47, 4  ;;  %v2625_v42 = vrot.slane %v2592_v12, 5 }
 0x17f   : > { %v4806_v52 = vrot.slane %v2593_v57, 9  ;;  %v2629_v39 = vrot.slane %v2594_v18, 5  ;;  %2681 = vst [vmem:[#allocation4 + $0x3c] sm:$0xf] %v2673_v23  ;;  %v5533_v26 = vld [vmem:[%s6775_s5 + $0x38] sm:$0xff]  ;;  %v5521_v36 = vld [vmem:[#allocation5 + $0x238] sm:$0xff] }
 0x180   : > { %v2731_v53 = vsel %vm5938_vm2, %v2726_v9, %v2730_v7  ;;  %v2451_v38 = vld [vmem:[#allocation2 + $0x18] sm:$0xf]  ;;  %v2717_v35 = vsel %vm5938_vm2, %v2712_v15, %v2716_v27  ;;  %v2626_v6 = vsel %vm6379_vm10, %v4805_v44, %v2625_v42  ;;  %v2452_v63 = vld [vmem:[#allocation2 + $0x1c] sm:$0x1]  ;;  %v2453_v50 = vld [vmem:[#allocation2 + $0x20] sm:$0xf]  ;;  %4077 = vmatpush.bf16.msra.mxu2 %v5533_v26  ;;  %5566 = vmatpush.bf16.msra.mxu1 %v5521_v36 }
 0x181   : > { %2825 = vst [vmem:[#allocation4 + $0x40] sm:$0xf] %v2731_v53  ;;  %v2630_v40 = vsel %vm6379_vm10, %v4806_v52, %v2629_v39  ;;  %v5441_v16 = vld [vmem:[#allocation4 + $0xdc] sm:$0xf]  ;;  %v2454_v19 = vld [vmem:[#allocation2 + $0x24] sm:$0x1]  ;;  %3926 = vmatpush.bf16.msra.mxu0 %v5506_v33  ;;  %5574 = vmatpush.bf16.msrb.mxu3 %v5533_v26 }
 0x182   : > { %2824 = vst [vmem:[#allocation4 + $0x1c] sm:$0xf] %v2717_v35  ;;  %v4933_v28 = vld [vmem:[#allocation4 + $0xfc] sm:$0xf0]  ;;  %v2492_v25 = vshrl.u32 %v2451_v38, 16  ;;  %v2495_v32 = vshll.u32 %v2451_v38, 16 }
 0x183   : > { %2663 = vst [vmem:[#allocation4 + $0x14] sm:$0xf] %v2626_v6  ;;  %v4839_v24 = vld [vmem:[#allocation4 + $0x10] sm:$0xf]  ;;  %v2501_v54 = vshll.u32 %v2452_v63, 16  ;;  %v2506_v4 = vshrl.u32 %v2453_v50, 16  ;;  %v4936_v55 = vor.u32 %v5441_v16, %v4933_v28 }
 0x184   : > { %2664 = vst [vmem:[#allocation4 + $0x38] sm:$0xf] %v2630_v40  ;;  %v5420_v3 = vld [vmem:[#allocation4 + $0x30] sm:$0xf0]  ;;  %v2494_v17 = vrot.slane %v2492_v25, 4  ;;  %v2497_v58 = vrot.slane %v2495_v32, 5 }
 0x185   : > { %3948 = vmatpush.bf16.msrb.mxu0 %v5521_v36  ;;  %v2509_v56 = vshll.u32 %v2453_v50, 16  ;;  %v4840_v60 = vor.u32 %v5420_v3, %v4839_v24  ;;  %v4847_v59 = vld [vmem:[#allocation4 + $0x18] sm:$0xf]  ;;  %v2508_v49 = vrot.slane %v2506_v4, 4  ;;  %v2515_v11 = vshll.u32 %v2454_v19, 16  ;;  %v5532_v21 = vld [vmem:[%s6775_s5 + $0x30] sm:$0xff] }
 0x186   : > { %v5520_v31 = vld [vmem:[#allocation5 + $0x230] sm:$0xff]  ;;  %v5421_v20 = vld [vmem:[#allocation4 + $0x38] sm:$0xf0]  ;;  %v2498_v29 = vor.u32 %v2497_v58, %v2494_v17  ;;  %v2503_v0 = vrot.slane %v2501_v54, 5  ;;  %4078 = vmatpush.bf16.msra.mxu2 %v5532_v21  ;;  %v2675_v41 = vld [vmem:[#allocation2 + $0x28] sm:$0xf]  ;;  %5575 = vmatpush.bf16.msrb.mxu3 %v5532_v21 }
 0x187   : > { %v2511_v10 = vrot.slane %v2509_v56, 5  ;;  %v2674_v48 = vld [vmem:[#allocation2 + $0x20] sm:$0xf]  ;;  %3840 = vmatmul.bf16.vlgmr.msrb.gmra.mxu1 %v4840_v60  ;;  %3768 = vmatmul.bf16.gmra.mxu2 %v4936_v55  ;;  %v4848_v8 = vor.u32 %v5421_v20, %v4847_v59  ;;  %2683 = vst [vmem:[#allocation4 + $0x84] sm:$0xf] %v2675_v41  ;;  %v5531_v62 = vld [vmem:[%s6775_s5 + $0x28] sm:$0xff] }
 0x188   : > { %2682 = vst [vmem:[#allocation4 + $0x60] sm:$0xf] %v2674_v48  ;;  %v4849_v1 = vld [vmem:[#allocation4 + $0x3c] sm:$0xf0]  ;;  %v2499_v22 = vrot.slane %v2498_v29, 4  ;;  %5567 = vmatpush.bf16.msra.mxu1 %v5520_v31  ;;  %v2517_v2 = vrot.slane %v2515_v11, 5 }
 0x189   : > { %v2512_v34 = vor.u32 %v2511_v10, %v2508_v49  ;;  %v2692_v13 = vld [vmem:[#allocation2 + $0x20] sm:$0xf]  ;;  %v2693_v43 = vld [vmem:[#allocation2 + $0x24] sm:$0x1]  ;;  %3949 = vmatpush.bf16.msrb.mxu0 %v5520_v31  ;;  %v5417_v23 = vld [vmem:[#allocation4 + $0x1c] sm:$0xf] }
 0x18a   : > { %3898 = vmatmul.bf16.vlgmr.msra.gmra.mxu3 %v4848_v8  ;;  %v2504_v46 = vsel %vm5938_vm2, %v2499_v22, %v2503_v0  ;;  %v2694_v14 = vld [vmem:[#allocation2 + $0x28] sm:$0xf]  ;;  %v2733_v9 = vshrl.u32 %v2692_v13, 16  ;;  %v4852_v45 = vor.u32 %v5417_v23, %v4849_v1  ;;  %v2695_v44 = vld [vmem:[#allocation2 + $0x2c] sm:$0x1]  ;;  %v2736_v61 = vshll.u32 %v2692_v13, 16  ;;  %4079 = vmatpush.bf16.msra.mxu2 %v5531_v62 }
 0x18b   : > { %v2513_v5 = vrot.slane %v2512_v34, 4  ;;  %2585 = vst [vmem:[#allocation4 + $0x58] sm:$0xf] %v2504_v46  ;;  %v2742_v33 = vshll.u32 %v2693_v43, 16  ;;  %v2747_v57 = vshrl.u32 %v2694_v14, 16  ;;  %v2750_v27 = vshll.u32 %v2694_v14, 16  ;;  %5576 = vmatpush.bf16.msrb.mxu3 %v5531_v62 }
 0x18c   : > { %v2735_v12 = vrot.slane %v2733_v9, 4  ;;  %v2595_v7 = vld [vmem:[#allocation2 + $0x18] sm:$0xe]  ;;  %3927 = vmatmul.bf16.vlgmr.msra.gmra.mxu0 %v4852_v45  ;;  %v2738_v15 = vrot.slane %v2736_v61, 5  ;;  %v2756_v42 = vshll.u32 %v2695_v44, 16  ;;  %v5530_v28 = vld [vmem:[%s6775_s5 + $0x20] sm:$0xff] }
 0x18d   : > { %v2518_v47 = vsel %vm5938_vm2, %v2513_v5, %v2517_v2  ;;  %v5519_v18 = vld [vmem:[#allocation5 + $0x228] sm:$0xff]  ;;  %v4807_v52 = vrot.slane %v2595_v7, 9  ;;  %v2749_v39 = vrot.slane %v2747_v57, 4  ;;  %v2752_v53 = vrot.slane %v2750_v27, 5  ;;  %v2597_v6 = vld [vmem:[#allocation2 + $0x20] sm:$0xe] }
 0x18e   : > { %2586 = vst [vmem:[#allocation4 + $0x7c] sm:$0xf] %v2518_v47  ;;  %v2596_v26 = vld [vmem:[#allocation2 + $0x1c] sm:$0x1]  ;;  %5568 = vmatpush.bf16.msra.mxu1 %v5519_v18  ;;  %3950 = vmatpush.bf16.msrb.mxu0 %v5519_v18  ;;  %v2739_v36 = vor.u32 %v2738_v15, %v2735_v12  ;;  %v2744_v38 = vrot.slane %v2742_v33, 5  ;;  %v2758_v35 = vrot.slane %v2756_v42, 5 }
 0x18f   : > { %v2633_v40 = vrot.slane %v2596_v26, 5  ;;  %v2753_v63 = vor.u32 %v2752_v53, %v2749_v39  ;;  %v2598_v50 = vld [vmem:[#allocation2 + $0x24] sm:$0x1]  ;;  %v4808_v16 = vrot.slane %v2597_v6, 9  ;;  %v2455_v19 = vld [vmem:[#allocation2 + $0x28] sm:$0xf]  ;;  %4080 = vmatpush.bf16.msra.mxu2 %v5530_v28  ;;  %5577 = vmatpush.bf16.msrb.mxu3 %v5530_v28 }
 0x190   : > { %v4841_v25 = vld [vmem:[#allocation4 + $0x34] sm:$0xf0]  ;;  %v2740_v32 = vrot.slane %v2739_v36, 4  ;;  %v2637_v54 = vrot.slane %v2598_v50, 5  ;;  %v2456_v4 = vld [vmem:[#allocation2 + $0x2c] sm:$0x1] }
 0x191   : > { %v2634_v24 = vsel %vm6379_vm10, %v4807_v52, %v2633_v40  ;;  %v2457_v55 = vld [vmem:[#allocation2 + $0x30] sm:$0xf]  ;;  %v2754_v17 = vrot.slane %v2753_v63, 4  ;;  %v2520_v58 = vshrl.u32 %v2455_v19, 16  ;;  %v5416_v56 = vld [vmem:[#allocation4 + $0x14] sm:$0xf] }
 0x192   : > { %v4875_v3 = vld [vmem:[#allocation4 + $0x58] sm:$0xf]  ;;  %2665 = vst [vmem:[#allocation4 + $0x5c] sm:$0xf] %v2634_v24  ;;  %v5430_v60 = vld [vmem:[#allocation4 + $0x80] sm:$0xf0]  ;;  %v2745_v59 = vsel %vm5938_vm2, %v2740_v32, %v2744_v38  ;;  %v2638_v49 = vsel %vm6379_vm10, %v4808_v16, %v2637_v54  ;;  %v4844_v62 = vor.u32 %v5416_v56, %v4841_v25 }
 0x193   : > { %v2458_v11 = vld [vmem:[#allocation2 + $0x34] sm:$0x1]  ;;  %v2523_v21 = vshll.u32 %v2455_v19, 16  ;;  %v2529_v31 = vshll.u32 %v2456_v4, 16  ;;  %v2676_v20 = vld [vmem:[#allocation2 + $0x30] sm:$0xf]  ;;  %v2759_v10 = vsel %vm5938_vm2, %v2754_v17, %v2758_v35 }
 0x194   : > { %2826 = vst [vmem:[#allocation4 + $0x64] sm:$0xf] %v2745_v59  ;;  %v2522_v48 = vrot.slane %v2520_v58, 4  ;;  %v2534_v0 = vshrl.u32 %v2457_v55, 16  ;;  %v4883_v8 = vld [vmem:[#allocation4 + $0x60] sm:$0xf] }
 0x195   : > { %v5429_v29 = vld [vmem:[#allocation4 + $0x78] sm:$0xf0]  ;;  %2827 = vst [vmem:[#allocation4 + $0x88] sm:$0xf] %v2759_v10  ;;  %v2525_v1 = vrot.slane %v2523_v21, 5  ;;  %v2537_v22 = vshll.u32 %v2457_v55, 16  ;;  %v4884_v14 = vor.u32 %v5430_v60, %v4883_v8 }
 0x196   : > { %v4876_v41 = vor.u32 %v5429_v29, %v4875_v3  ;;  %v5518_v34 = vld [vmem:[#allocation5 + $0x220] sm:$0xff]  ;;  %2666 = vst [vmem:[#allocation4 + $0x80] sm:$0xf] %v2638_v49  ;;  %v2536_v2 = vrot.slane %v2534_v0, 4  ;;  %v2543_v13 = vshll.u32 %v2458_v11, 16  ;;  %v2531_v9 = vrot.slane %v2529_v31, 5 }
 0x197   : > { %v2677_v43 = vld [vmem:[#allocation2 + $0x38] sm:$0xf]  ;;  %v2526_v23 = vor.u32 %v2525_v1, %v2522_v48  ;;  %v2539_v46 = vrot.slane %v2537_v22, 5  ;;  %2684 = vst [vmem:[#allocation4 + $0xa8] sm:$0xf] %v2676_v20  ;;  %3951 = vmatpush.bf16.msrb.mxu0 %v5518_v34  ;;  %3869 = vmatmul.bf16.vlgmr.msrb.gmra.mxu2 %v4844_v62  ;;  %v5517_v28 = vld [vmem:[#allocation5 + $0x218] sm:$0xff] }
 0x198   : > { %3845 = vmatmul.bf16.gmra.mxu1 %v4876_v41  ;;  %v2696_v5 = vld [vmem:[#allocation2 + $0x30] sm:$0xf]  ;;  %2685 = vst [vmem:[#allocation4 + $0xcc] sm:$0xf] %v2677_v43  ;;  %v2697_v45 = vld [vmem:[#allocation2 + $0x34] sm:$0x1] }
 0x199   : > { %5569 = vmatpush.bf16.msra.mxu1 %v5518_v34  ;;  %v2761_v44 = vshrl.u32 %v2696_v5, 16  ;;  %v2527_v61 = vrot.slane %v2526_v23, 4  ;;  %v2540_v33 = vor.u32 %v2539_v46, %v2536_v2  ;;  %v2545_v47 = vrot.slane %v2543_v13, 5  ;;  %v2698_v12 = vld [vmem:[#allocation2 + $0x38] sm:$0xf]  ;;  %v5528_v3 = vld [vmem:[%s6775_s5 + $0x10] sm:$0xff] }
 0x19a   : > { %v2764_v57 = vshll.u32 %v2696_v5, 16  ;;  %3903 = vmatmul.bf16.gmra.mxu3 %v4884_v14  ;;  %v2699_v27 = vld [vmem:[#allocation2 + $0x3c] sm:$0x1]  ;;  %v2770_v18 = vshll.u32 %v2697_v45, 16  ;;  %v2775_v15 = vshrl.u32 %v2698_v12, 16  ;;  %v2778_v42 = vshll.u32 %v2698_v12, 16 }
 0x19b   : > { %v2763_v7 = vrot.slane %v2761_v44, 4  ;;  %v5426_v52 = vld [vmem:[#allocation4 + $0x64] sm:$0xf]  ;;  %v2532_v39 = vsel %vm5938_vm2, %v2527_v61, %v2531_v9  ;;  %v2541_v53 = vrot.slane %v2540_v33, 4  ;;  %v2784_v36 = vshll.u32 %v2699_v27, 16  ;;  %v5529_v38 = vld [vmem:[%s6775_s5 + $0x18] sm:$0xff]  ;;  %3952 = vmatpush.bf16.msrb.mxu0 %v5517_v28 }
 0x19c   : > { %v2766_v26 = vrot.slane %v2764_v57, 5  ;;  %v4885_v35 = vld [vmem:[#allocation4 + $0x84] sm:$0xf0]  ;;  %2587 = vst [vmem:[#allocation4 + $0xa0] sm:$0xf] %v2532_v39  ;;  %v2777_v6 = vrot.slane %v2775_v15, 4  ;;  %4081 = vmatpush.bf16.msra.mxu2 %v5529_v38  ;;  %5578 = vmatpush.bf16.msrb.mxu3 %v5529_v38 }
 0x19d   : > { %v4888_v40 = vor.u32 %v5426_v52, %v4885_v35  ;;  %v2546_v63 = vsel %vm5938_vm2, %v2541_v53, %v2545_v47  ;;  %v2780_v16 = vrot.slane %v2778_v42, 5  ;;  %v2599_v19 = vld [vmem:[#allocation2 + $0x28] sm:$0xe]  ;;  %v2772_v24 = vrot.slane %v2770_v18, 5  ;;  %v2600_v55 = vld [vmem:[#allocation2 + $0x2c] sm:$0x1]  ;;  %5570 = vmatpush.bf16.msra.mxu1 %v5517_v28 }
 0x19e   : > { %v2767_v50 = vor.u32 %v2766_v26, %v2763_v7  ;;  %2588 = vst [vmem:[#allocation4 + $0xc4] sm:$0xf] %v2546_v63  ;;  %v4809_v25 = vrot.slane %v2599_v19, 9  ;;  %v2786_v4 = vrot.slane %v2784_v36, 5  ;;  %v4877_v17 = vld [vmem:[#allocation4 + $0x7c] sm:$0xf0] }
 0x19f   : > { %3932 = vmatmul.bf16.gmra.mxu0 %v4888_v40  ;;  %v2781_v54 = vor.u32 %v2780_v16, %v2777_v6  ;;  %v2601_v58 = vld [vmem:[#allocation2 + $0x30] sm:$0xe]  ;;  %v2602_v56 = vld [vmem:[#allocation2 + $0x34] sm:$0x1]  ;;  %v2641_v60 = vrot.slane %v2600_v55, 5  ;;  %v5516_v59 = vld [vmem:[#allocation5 + $0x210] sm:$0xff] }
 0x1a0   : > { %v2768_v32 = vrot.slane %v2767_v50, 4  ;;  %v4810_v21 = vrot.slane %v2601_v58, 9  ;;  %v2645_v31 = vrot.slane %v2602_v56, 5  ;;  %v2459_v20 = vld [vmem:[#allocation2 + $0x38] sm:$0xf]  ;;  %4082 = vmatpush.bf16.msra.mxu2 %v5528_v3  ;;  %5579 = vmatpush.bf16.msrb.mxu3 %v5528_v3 }
 0x1a1   : > { %v2782_v11 = vrot.slane %v2781_v54, 4  ;;  %v5425_v29 = vld [vmem:[#allocation4 + $0x5c] sm:$0xf]  ;;  %v2642_v10 = vsel %vm6379_vm10, %v4809_v25, %v2641_v60  ;;  %v2460_v48 = vld [vmem:[#allocation2 + $0x3c] sm:$0x1]  ;;  %5571 = vmatpush.bf16.msra.mxu1 %v5516_v59  ;;  %v2548_v62 = vshrl.u32 %v2459_v20, 16  ;;  %3953 = vmatpush.bf16.msrb.mxu0 %v5516_v59 }
 0x1a2   : > { %v2773_v49 = vsel %vm5938_vm2, %v2768_v32, %v2772_v24  ;;  %v2461_v0 = vld [vmem:[#allocation2 + $0x40] sm:$0xf]  ;;  %v5439_v8 = vld [vmem:[#allocation4 + $0xc8] sm:$0xf0]  ;;  %v2646_v22 = vsel %vm6379_vm10, %v4810_v21, %v2645_v31  ;;  %2667 = vst [vmem:[#allocation4 + $0xa4] sm:$0xf] %v2642_v10  ;;  %v4880_v43 = vor.u32 %v5425_v29, %v4877_v17 }
 0x1a3   : > { %2828 = vst [vmem:[#allocation4 + $0xac] sm:$0xf] %v2773_v49  ;;  %v4911_v41 = vld [vmem:[#allocation4 + $0xa0] sm:$0xf]  ;;  %v2787_v1 = vsel %vm5938_vm2, %v2782_v11, %v2786_v4  ;;  %v2462_v34 = vld [vmem:[#allocation2 + $0x44] sm:$0x1] }
 0x1a4   : > { %2829 = vst [vmem:[#allocation4 + $0xd0] sm:$0xf] %v2787_v1  ;;  %v2551_v2 = vshll.u32 %v2459_v20, 16  ;;  %v2562_v13 = vshrl.u32 %v2461_v0, 16  ;;  %v4919_v46 = vld [vmem:[#allocation4 + $0xa8] sm:$0xf] }
 0x1a5   : > { %v5438_v23 = vld [vmem:[#allocation4 + $0xc0] sm:$0xf0]  ;;  %2668 = vst [vmem:[#allocation4 + $0xc8] sm:$0xf] %v2646_v22  ;;  %v2565_v5 = vshll.u32 %v2461_v0, 16  ;;  %v2550_v9 = vrot.slane %v2548_v62, 4  ;;  %v4920_v7 = vor.u32 %v5439_v8, %v4919_v46 }
 0x1a6   : > { %v4912_v14 = vor.u32 %v5438_v23, %v4911_v41  ;;  %v2553_v45 = vrot.slane %v2551_v2, 5  ;;  %v2557_v44 = vshll.u32 %v2460_v48, 16  ;;  %v405_v61 = vld [vmem:[#allocation2 + $0x48] sm:$0x1]  ;;  %v2564_v33 = vrot.slane %v2562_v13, 4  ;;  %v5515_v1 = vld [vmem:[#allocation5 + $0x208] sm:$0xff] }
 0x1a7   : > { %v2567_v47 = vrot.slane %v2565_v5, 5  ;;  %v2571_v12 = vshll.u32 %v2462_v34, 16  ;;  %v406_v57 = vsel %vm6317_vm5, 0, %v405_v61  ;;  %v2678_v27 = vld [vmem:[#allocation2 + $0x40] sm:$0xf]  ;;  %3874 = vmatmul.bf16.gmra.mxu2 %v4880_v43  ;;  %v5527_v22 = vld [vmem:[%s6775_s5 + $0x8] sm:$0xff]  ;;  %5572 = vmatpush.bf16.msra.mxu1 %v5515_v1 }
 0x1a8   : > { %3850 = vmatmul.bf16.gmra.mxu1 %v4912_v14  ;;  %v2554_v18 = vor.u32 %v2553_v45, %v2550_v9  ;;  %407 = vst [vmem:[#allocation2 + $0x48] sm:$0x1] %v406_v57  ;;  %v2700_v15 = vld [vmem:[#allocation2 + $0x40] sm:$0xf]  ;;  %v2701_v52 = vld [vmem:[#allocation2 + $0x44] sm:$0x1]  ;;  %4083 = vmatpush.bf16.msra.mxu2 %v5527_v22 }
 0x1a9   : > { %v2568_v42 = vor.u32 %v2567_v47, %v2564_v33  ;;  %2686 = vst [vmem:[#allocation4 + $0xf0] sm:$0xf] %v2678_v27  ;;  %v2559_v26 = vrot.slane %v2557_v44, 5  ;;  %v2789_v36 = vshrl.u32 %v2700_v15, 16  ;;  %v2792_v38 = vshll.u32 %v2700_v15, 16  ;;  %v5514_v13 = vld [vmem:[#allocation5 + $0x200] sm:$0xff]  ;;  %3954 = vmatpush.bf16.msrb.mxu0 %v5515_v1  ;;  %5580 = vmatpush.bf16.msrb.mxu3 %v5527_v22 }
 0x1aa   : > { %3908 = vmatmul.bf16.gmra.mxu3 %v4920_v7  ;;  %v5435_v39 = vld [vmem:[#allocation4 + $0xac] sm:$0xf]  ;;  %v2555_v53 = vrot.slane %v2554_v18, 4  ;;  %v2573_v30 = vrot.slane %v2571_v12, 5  ;;  %v2603_v40 = vld [vmem:[#allocation2 + $0x38] sm:$0xe] }
 0x1ab   : > { %v4921_v35 = vld [vmem:[#allocation4 + $0xcc] sm:$0xf0]  ;;  %v2569_v6 = vrot.slane %v2568_v42, 4  ;;  %v2791_v50 = vrot.slane %v2789_v36, 4  ;;  %v2794_v16 = vrot.slane %v2792_v38, 5  ;;  %v2798_v19 = vshll.u32 %v2701_v52, 16  ;;  %5573 = vmatpush.bf16.msra.mxu1 %v5514_v13 }
 0x1ac   : > { %v2560_v63 = vsel %vm5938_vm2, %v2555_v53, %v2559_v26  ;;  %v2604_v28 = vld [vmem:[#allocation2 + $0x3c] sm:$0x1]  ;;  %v2836_v25 = vld [vmem:[#allocation2 + $0x20] sm:$0xe]  ;;  %v6625_v32 = vld [vmem:[#allocation2 + $0x28] sm:$0xe]  ;;  %v4924_v24 = vor.u32 %v5435_v39, %v4921_v35 }
 0x1ad   : > { %v2574_v54 = vsel %vm5938_vm2, %v2569_v6, %v2573_v30  ;;  %2589 = vst [vmem:[#allocation4 + $0xe8] sm:$0xf] %v2560_v63  ;;  %v2703_v4 = vld [vmem:[#allocation2 + $0x4c] sm:$0x1]  ;;  %v2605_v55 = vld [vmem:[#allocation2 + $0x40] sm:$0xe]  ;;  %v2795_v3 = vor.u32 %v2794_v16, %v2791_v50  ;;  %3955 = vmatpush.bf16.msrb.mxu0 %v5514_v13 }
 0x1ae   : > { %2590 = vst [vmem:[#allocation4 + $0x10c] sm:$0xf] %v2574_v54  ;;  %v2606_v17 = vld [vmem:[#allocation2 + $0x44] sm:$0x1]  ;;  %v4811_v58 = vrot.slane %v2603_v40, 9  ;;  %v2649_v56 = vrot.slane %v2604_v28, 5 }
 0x1af   : > { %3937 = vmatmul.bf16.gmra.mxu0 %v4924_v24  ;;  %v2679_v60 = vld [vmem:[#allocation2 + $0x48] sm:$0xf]  ;;  %v4812_v49 = vrot.slane %v2605_v55, 9  ;;  %v2653_v11 = vrot.slane %v2606_v17, 5  ;;  %v4913_v21 = vld [vmem:[#allocation4 + $0xc4] sm:$0xf0] }
 0x1b0   : > { %v2702_v59 = vld [vmem:[#allocation2 + $0x48] sm:$0xf]  ;;  %2687 = vst [vmem:[#allocation4 + $0x114] sm:$0xf] %v2679_v60  ;;  %v2796_v31 = vrot.slane %v2795_v3, 4  ;;  %v2800_v20 = vrot.slane %v2798_v19, 5  ;;  %v2650_v10 = vsel %vm6379_vm10, %v4811_v58, %v2649_v56 }
 0x1b1   : > { %v2803_v29 = vshrl.u32 %v2702_v59, 16  ;;  %v2834_v48 = vld [vmem:[#allocation2 + $0x18] sm:$0xe]  ;;  %v2806_v0 = vshll.u32 %v2702_v59, 16  ;;  %v2812_v41 = vshll.u32 %v2703_v4, 16  ;;  %v2654_v8 = vsel %vm6379_vm10, %v4812_v49, %v2653_v11  ;;  %v5526_v9 = vld [vmem:[%s6775_s5] sm:$0xff] }
 0x1b2   : > { %2669 = vst [vmem:[#allocation4 + $0xec] sm:$0xf] %v2650_v10  ;;  %v5434_v34 = vld [vmem:[#allocation4 + $0xa4] sm:$0xf]  ;;  %v2801_v62 = vsel %vm5938_vm2, %v2796_v31, %v2800_v20  ;;  %v4815_v43 = vrot.slane %v2836_v25, 9  ;;  %v4816_v23 = vrot.slane %v6625_v32, 9  ;;  %4084 = vmatpush.bf16.msra.mxu2 %v5526_v9  ;;  %5581 = vmatpush.bf16.msrb.mxu3 %v5526_v9 }
 0x1b3   : > { %v2805_v2 = vrot.slane %v2803_v29, 4  ;;  %2670 = vst [vmem:[#allocation4 + $0x110] sm:$0xf] %v2654_v8  ;;  %v4955_v46 = vld [vmem:[#allocation4 + $0xf0] sm:$0xf]  ;;  %v2808_v5 = vrot.slane %v2806_v0, 5  ;;  %v4916_v33 = vor.u32 %v5434_v34, %v4913_v21 }
 0x1b4   : > { %2830 = vst [vmem:[#allocation4 + $0xf4] sm:$0xf] %v2801_v62  ;;  %v2837_v14 = vld [vmem:[#allocation2 + $0x24] sm:$0x1]  ;;  %v4947_v45 = vld [vmem:[#allocation4 + $0xe8] sm:$0xf] }
 0x1b5   : > { %v2839_v44 = vld [vmem:[#allocation2 + $0x2c] sm:$0x1]  ;;  %v2874_v61 = vrot.slane %v2837_v14, 5  ;;  %v5447_v47 = vld [vmem:[#allocation4 + $0x108] sm:$0xf0]  ;;  %v2809_v12 = vor.u32 %v2808_v5, %v2805_v2  ;;  %v2814_v57 = vrot.slane %v2812_v41, 5 }
 0x1b6   : > { %v2878_v27 = vrot.slane %v2839_v44, 5  ;;  %v2832_v7 = vld [vmem:[#allocation2 + $0x10] sm:$0xe]  ;;  %v4948_v18 = vor.u32 %v5447_v47, %v4947_v45  ;;  %v2833_v42 = vld [vmem:[#allocation2 + $0x14] sm:$0x1]  ;;  %v4814_v53 = vrot.slane %v2834_v48, 9 }
 0x1b7   : > { %v2875_v15 = vsel %vm6379_vm10, %v4815_v43, %v2874_v61  ;;  %v2835_v52 = vld [vmem:[#allocation2 + $0x1c] sm:$0x1]  ;;  %v4813_v39 = vrot.slane %v2832_v7, 9  ;;  %v5448_v26 = vld [vmem:[#allocation4 + $0x110] sm:$0xf0]  ;;  %v2810_v36 = vrot.slane %v2809_v12, 4  ;;  %3879 = vmatmul.bf16.gmra.mxu2 %v4916_v33 }
 0x1b8   : > { %v2879_v38 = vsel %vm6379_vm10, %v4816_v23, %v2878_v27  ;;  %2906 = vst [vmem:[#allocation4 + $0x68] sm:$0xf] %v2875_v15  ;;  %v2866_v35 = vrot.slane %v2833_v42, 5  ;;  %3855 = vmatmul.bf16.gmra.mxu1 %v4948_v18  ;;  %v4956_v6 = vor.u32 %v5448_v26, %v4955_v46  ;;  %v2870_v30 = vrot.slane %v2835_v52, 5  ;;  %v2840_v16 = vld [vmem:[#allocation2 + $0x30] sm:$0xe] }
 0x1b9   : > { %2907 = vst [vmem:[#allocation4 + $0x8c] sm:$0xf] %v2879_v38  ;;  %v2815_v40 = vsel %vm5938_vm2, %v2810_v36, %v2814_v57  ;;  %v2841_v19 = vld [vmem:[#allocation2 + $0x34] sm:$0x1]  ;;  %v2842_v28 = vld [vmem:[#allocation2 + $0x38] sm:$0xe] }
 0x1ba   : > { %v2867_v63 = vsel %vm6379_vm10, %v4813_v39, %v2866_v35  ;;  %3913 = vmatmul.bf16.gmra.mxu3 %v4956_v6  ;;  %2831 = vst [vmem:[#allocation4 + $0x118] sm:$0xf] %v2815_v40  ;;  %v2871_v50 = vsel %vm6379_vm10, %v4814_v53, %v2870_v30  ;;  %v2843_v25 = vld [vmem:[#allocation2 + $0x3c] sm:$0x1]  ;;  %v4817_v32 = vrot.slane %v2840_v16, 9  ;;  %v2882_v24 = vrot.slane %v2841_v19, 5 }
 0x1bb   : > { %2904 = vst [vmem:[#allocation4 + $0x20] sm:$0xf] %v2867_v63  ;;  %v4818_v54 = vrot.slane %v2842_v28, 9  ;;  %v2886_v4 = vrot.slane %v2843_v25, 5  ;;  %v5444_v3 = vld [vmem:[#allocation4 + $0xf4] sm:$0xf] }
 0x1bc   : > { %2905 = vst [vmem:[#allocation4 + $0x44] sm:$0xf] %v2871_v50  ;;  %v3725_v37 = vpop.f32.mrf.mxu1  ;;  %v2883_v55 = vsel %vm6379_vm10, %v4817_v32, %v2882_v24  ;;  %v4949_v60 = vld [vmem:[#allocation4 + $0x10c] sm:$0xf0]  ;;  %v5443_v49 = vld [vmem:[#allocation4 + $0xec] sm:$0xf] }
 0x1bd   : > { %v2887_v17 = vsel %vm6379_vm10, %v4818_v54, %v2886_v4  ;;  %2908 = vst [vmem:[#allocation4 + $0xb0] sm:$0xf] %v2883_v55  ;;  %v4952_v31 = vor.u32 %v5443_v49, %v4949_v60  ;;  %v2844_v10 = vld [vmem:[#allocation2 + $0x40] sm:$0xe]  ;;  %v2845_v48 = vld [vmem:[#allocation2 + $0x44] sm:$0x1] }
 0x1be   : > { %2909 = vst [vmem:[#allocation4 + $0xd4] sm:$0xf] %v2887_v17  ;;  %v5267_v41 = vld [vmem:[#allocation3 + $0xe8] sm:$0xf]  ;;  %v5525_v8 = vld [vmem:[#allocation3 + $0x108] sm:$0xf0] }
 0x1bf   : > { %v4891_v11 = vld [vmem:[#allocation4 + $0x68] sm:$0xf]  ;;  %v2846_v1 = vld [vmem:[#allocation2 + $0x48] sm:$0xe]  ;;  %v5268_v22 = vor.u32 %v5525_v8, %v5267_v41  ;;  %v2847_v34 = vld [vmem:[#allocation2 + $0x4c] sm:$0x1] }
 0x1c0   : > { %v5431_v59 = vld [vmem:[#allocation4 + $0x88] sm:$0xf0]  ;;  %v4819_v62 = vrot.slane %v2844_v10, 9  ;;  %v2890_v2 = vrot.slane %v2845_v48, 5  ;;  %v4820_v13 = vrot.slane %v2846_v1, 9  ;;  %v2894_v43 = vrot.slane %v2847_v34, 5 }
 0x1c1   : > { %v4957_v58 = vld [vmem:[#allocation4 + $0x114] sm:$0xf0]  ;;  %v4892_v20 = vor.u32 %v5431_v59, %v4891_v11  ;;  %v6665_v5 = vld [vmem:[%s6774_s4] ss:$0 sm:$0xff]  ;;  %v5522_v33 = vld [vmem:[#allocation3 + $0x30] sm:$0xf0] }
 0x1c2   : > { %v4960_v56 = vor.u32 %v5444_v3, %v4957_v58  ;;  %v2891_v23 = vsel %vm6379_vm10, %v4819_v62, %v2890_v2  ;;  %v2895_v46 = vsel %vm6379_vm10, %v4820_v13, %v2894_v43  ;;  %v4855_v44 = vld [vmem:[#allocation4 + $0x20] sm:$0xf]  ;;  %v5255_v61 = vld [vmem:[#allocation3 + $0x10] sm:$0xf]  ;;  %v3726_v47 = vadd.f32 %v6665_v5, %v3725_v37  ;;  %v5259_v40 = vld [vmem:[#allocation3 + $0x58] sm:$0xf] }
 0x1c3   : > { %2910 = vst [vmem:[#allocation4 + $0xf8] sm:$0xf] %v2891_v23  ;;  %v5422_v14 = vld [vmem:[#allocation4 + $0x40] sm:$0xf0]  ;;  %v5256_v7 = vor.u32 %v5522_v33, %v5255_v61  ;;  %v5523_v63 = vld [vmem:[#allocation3 + $0x78] sm:$0xf0] }
 0x1c4   : > { %3942 = vmatmul.bf16.gmra.mxu0 %v4960_v56  ;;  %v3727_v21 = vpop.f32.mrf.mxu1  ;;  %v6656_v29 = vpop.f32.mrf.mxu0  ;;  %2911 = vst [vmem:[#allocation4 + $0x11c] sm:$0xf] %v2895_v46  ;;  %v4856_v12 = vor.u32 %v5422_v14, %v4855_v44  ;;  %v4927_v15 = vld [vmem:[#allocation4 + $0xb0] sm:$0xf]  ;;  %v5260_v28 = vor.u32 %v5523_v63, %v5259_v40  ;;  %v5263_v60 = vld [vmem:[#allocation3 + $0xa0] sm:$0xf] }
 0x1c5   : > { %v3783_v0 = vpop.f32.mrf.mxu3  ;;  %v5440_v51 = vld [vmem:[#allocation4 + $0xd0] sm:$0xf0]  ;;  %v3728_v53 = vadd.f32 %v6665_v5, %v3727_v21  ;;  %v5524_v59 = vld [vmem:[#allocation3 + $0xc0] sm:$0xf0] }
 0x1c6   : > { %v4928_v52 = vor.u32 %v5440_v51, %v4927_v15 }
 0x1c7   : > { %3884 = vmatmul.bf16.gmra.mxu2 %v4952_v31 }
 0x1c8   : > { %3961 = vmatmul.bf16.vlgmr.msra.gmra.mxu1 %v4892_v20  ;;  %v5264_v20 = vor.u32 %v5524_v59, %v5263_v60 }
 0x1ca   : > { %4100 = vmatmul.bf16.vlgmr.msrb.gmra.mxu3 %v5268_v22  ;;  %v4963_v16 = vld [vmem:[#allocation4 + $0xf8] sm:$0xf] }
 0x1cb   : > { %v5449_v19 = vld [vmem:[#allocation4 + $0x118] sm:$0xf0] }
 0x1cc   : > { %v3814_v45 = vpop.f32.mrf.mxu0  ;;  %v4964_v32 = vor.u32 %v5449_v19, %v4963_v16 }
 0x1cd   : > { %v3730_v9 = vpop.f32.mrf.mxu1  ;;  %v3785_v57 = vpop.f32.mrf.mxu3 }
 0x1ce   : > { %v3731_v37 = vadd.f32 %v6665_v5, %v3730_v9 }
 0x1cf   : > { %v3754_v27 = vpop.f32.mrf.mxu2 }
 0x1d0   : > { %v3755_v18 = vadd.f32 %v3754_v27, %v3726_v47 }
 0x1d2   : > { %v3784_v42 = vadd.f32 %v3783_v0, %v3755_v18 }
 0x1d4   : > { %3956 = vmatmul.bf16.vlgmr.msrb.gmra.mxu0 %v4856_v12  ;;  %v3813_v58 = vadd.f32 %v6656_v29, %v3784_v42 }
 0x1d5   : > { %v3732_v39 = vpop.f32.mrf.mxu1 }
 0x1d6   : > { %v3733_v49 = vadd.f32 %v6665_v5, %v3732_v39 }
 0x1d7   : > { %4085 = vmatmul.bf16.vlgmr.msra.gmra.mxu2 %v5256_v7  ;;  %v3756_v36 = vpop.f32.mrf.mxu2 }
 0x1d8   : > { %3966 = vmatmul.bf16.gmra.mxu1 %v4928_v52  ;;  %v3817_v26 = vpop.f32.mrf.mxu0  ;;  %v3757_v38 = vadd.f32 %v3756_v36, %v3728_v53 }
 0x1da   : > { %v3786_v6 = vadd.f32 %v3785_v57, %v3757_v38 }
 0x1db   : > { %v3788_v35 = vpop.f32.mrf.mxu3 }
 0x1dc   : > { %v3815_v0 = vadd.f32 %v3814_v45, %v3786_v6 }
 0x1df   : > { %v3735_v30 = vpop.f32.mrf.mxu1 }
 0x1e0   : > { %v3819_v50 = vpop.f32.mrf.mxu0  ;;  %v3736_v41 = vadd.f32 %v6665_v5, %v3735_v30 }
 0x1e3   : > { %v3790_v25 = vpop.f32.mrf.mxu3 }
 0x1e7   : > { %4090 = vmatmul.bf16.gmra.mxu2 %v5260_v28  ;;  %v3737_v24 = vpop.f32.mrf.mxu1 }
 0x1e8   : > { %3971 = vmatmul.bf16.gmra.mxu1 %v4964_v32  ;;  %v3738_v13 = vadd.f32 %v6665_v5, %v3737_v24 }
 0x1e9   : > { %v3822_v54 = vpop.f32.mrf.mxu0 }
 0x1ea   : > { %v3759_v4 = vpop.f32.mrf.mxu2 }
 0x1eb   : > { %v3760_v55 = vadd.f32 %v3759_v4, %v3731_v37 }
 0x1ed   : > { %v3793_v3 = vpop.f32.mrf.mxu3  ;;  %v3789_v17 = vadd.f32 %v3788_v35, %v3760_v55 }
 0x1ef   : > { %v3818_v2 = vadd.f32 %v3817_v26, %v3789_v17 }
 0x1f0   : > { %v3740_v56 = vpop.f32.mrf.mxu1 }
 0x1f1   : > { %v3824_v11 = vpop.f32.mrf.mxu0  ;;  %v3741_v33 = vadd.f32 %v6665_v5, %v3740_v56 }
 0x1f2   : > { %v3761_v21 = vpop.f32.mrf.mxu2 }
 0x1f3   : > { %v3762_v31 = vadd.f32 %v3761_v21, %v3733_v49 }
 0x1f5   : > { %v3795_v10 = vpop.f32.mrf.mxu3  ;;  %v3791_v48 = vadd.f32 %v3790_v25, %v3762_v31 }
 0x1f7   : > { %4095 = vmatmul.bf16.gmra.mxu2 %v5264_v20  ;;  %v3820_v45 = vadd.f32 %v3819_v50, %v3791_v48 }
 0x1f8   : > { %v3742_v8 = vpop.f32.mrf.mxu1 }
 0x1f9   : > { %v3827_v1 = vpop.f32.mrf.mxu0  ;;  %v3743_v42 = vadd.f32 %v6665_v5, %v3742_v8 }
 0x1fa   : > { %v3764_v22 = vpop.f32.mrf.mxu2 }
 0x1fb   : > { %v3765_v34 = vadd.f32 %v3764_v22, %v3736_v41 }
 0x1fd   : > { %v3798_v29 = vpop.f32.mrf.mxu3  ;;  %v3794_v62 = vadd.f32 %v3793_v3, %v3765_v34 }
 0x1ff   : > { %v3823_v18 = vadd.f32 %v3822_v54, %v3794_v62 }
 0x201   : > { %v3829_v43 = vpop.f32.mrf.mxu0 }
 0x202   : > { %v3766_v23 = vpop.f32.mrf.mxu2 }
 0x203   : > { %v3767_v46 = vadd.f32 %v3766_v23, %v3738_v13 }
 0x204   : > { %v3841_v14 = vpop.f32.mrf.mxu1 }
 0x205   : > { %v3842_v9 = vadd.f32 %v3841_v14, %v3813_v58  ;;  %v3796_v44 = vadd.f32 %v3795_v10, %v3767_v46  ;;  %v3800_v61 = vpop.f32.mrf.mxu3 }
 0x207   : > { %v3825_v35 = vadd.f32 %v3824_v11, %v3796_v44 }
 0x209   : > { %v3928_v47 = vpop.f32.mrf.mxu0 }
 0x20a   : > { %v3769_v12 = vpop.f32.mrf.mxu2 }
 0x20b   : > { %v3770_v57 = vadd.f32 %v3769_v12, %v3741_v33 }
 0x20c   : > { %v3843_v27 = vpop.f32.mrf.mxu1 }
 0x20d   : > { %v3844_v51 = vadd.f32 %v3843_v27, %v3815_v0  ;;  %v3799_v7 = vadd.f32 %v3798_v29, %v3770_v57  ;;  %v3899_v15 = vpop.f32.mrf.mxu3 }
 0x20f   : > { %v3828_v19 = vadd.f32 %v3827_v1, %v3799_v7 }
 0x211   : > { %v6676_v52 = vpop.f32.mrf.mxu0 }
 0x212   : > { %v3771_v39 = vpop.f32.mrf.mxu2 }
 0x213   : > { %v3772_v53 = vadd.f32 %v3771_v39, %v3743_v42 }
 0x215   : > { %v3846_v26 = vpop.f32.mrf.mxu1  ;;  %v3801_v38 = vadd.f32 %v3800_v61, %v3772_v53  ;;  %v3901_v6 = vpop.f32.mrf.mxu3 }
 0x216   : > { %v3847_v36 = vadd.f32 %v3846_v26, %v3818_v2 }
 0x217   : > { %v3830_v37 = vadd.f32 %v3829_v43, %v3801_v38 }
 0x21a   : > { %v3870_v30 = vpop.f32.mrf.mxu2 }
 0x21b   : > { %v3871_v40 = vadd.f32 %v3870_v30, %v3842_v9 }
 0x21c   : > { %v3933_v50 = vpop.f32.mrf.mxu0 }
 0x21d   : > { %v3848_v63 = vpop.f32.mrf.mxu1  ;;  %v3904_v25 = vpop.f32.mrf.mxu3  ;;  %v3900_v59 = vadd.f32 %v3899_v15, %v3871_v40 }
 0x21e   : > { %v6678_v16 = vadd.f32 %v3848_v63, %v3820_v45  ;;  %v6701_v45 = vld [vmem:[%s6776_s6] ss:$0 sm:$0xff] }
 0x21f   : > { %v3929_v21 = vadd.f32 %v3928_v47, %v3900_v59 }
 0x222   : > { %v3872_v28 = vpop.f32.mrf.mxu2 }
 0x223   : > { %v3873_v44 = vadd.f32 %v3872_v28, %v3844_v51 }
 0x224   : > { %v6680_v5 = vpop.f32.mrf.mxu0 }
 0x225   : > { %v3851_v32 = vpop.f32.mrf.mxu1  ;;  %v6682_v17 = vpop.f32.mrf.mxu3  ;;  %v3902_v12 = vadd.f32 %v3901_v6, %v3873_v44 }
 0x226   : > { %v3852_v24 = vadd.f32 %v3851_v32, %v3823_v18 }
 0x227   : > { %v3931_v39 = vadd.f32 %v6676_v52, %v3902_v12 }
 0x22a   : > { %v3875_v54 = vpop.f32.mrf.mxu2 }
 0x22b   : > { %v3876_v4 = vadd.f32 %v3875_v54, %v3847_v36 }
 0x22c   : > { %v3938_v56 = vpop.f32.mrf.mxu0 }
 0x22d   : > { %v3853_v55 = vpop.f32.mrf.mxu1  ;;  %v3905_v3 = vadd.f32 %v3904_v25, %v3876_v4  ;;  %v3909_v31 = vpop.f32.mrf.mxu3 }
 0x22e   : > { %v6684_v58 = vadd.f32 %v3853_v55, %v3825_v35 }
 0x22f   : > { %v6686_v60 = vadd.f32 %v3933_v50, %v3905_v3 }
 0x232   : > { %v3877_v49 = vpop.f32.mrf.mxu2 }
 0x233   : > { %v3878_v25 = vadd.f32 %v3877_v49, %v6678_v16 }
 0x234   : > { %v6688_v20 = vpop.f32.mrf.mxu0 }
 0x235   : > { %v3856_v11 = vpop.f32.mrf.mxu1  ;;  %v6692_v1 = vpop.f32.mrf.mxu3  ;;  %v3907_v3 = vadd.f32 %v6682_v17, %v3878_v25 }
 0x236   : > { %v3857_v33 = vadd.f32 %v3856_v11, %v3828_v19 }
 0x23a   : > { %v3880_v10 = vpop.f32.mrf.mxu2 }
 0x23b   : > { %v3881_v48 = vadd.f32 %v3880_v10, %v3852_v24 }
 0x23d   : > { %v3858_v0 = vpop.f32.mrf.mxu1  ;;  %v3910_v41 = vadd.f32 %v3909_v31, %v3881_v48  ;;  %v3914_v2 = vpop.f32.mrf.mxu3 }
 0x23e   : > { %v3859_v15 = vadd.f32 %v3858_v0, %v3830_v37 }
 0x23f   : > { %v6690_v8 = vadd.f32 %v3938_v56, %v3910_v41 }
 0x241   : > { %v3943_v34 = vpop.f32.mrf.mxu0 }
 0x242   : > { %v6694_v22 = vpop.f32.mrf.mxu2 }
 0x245   : > { %v3962_v29 = vpop.f32.mrf.mxu1  ;;  %v3916_v14 = vpop.f32.mrf.mxu3 }
 0x246   : > { %v3963_v11 = vadd.f32 %v3962_v29, %v6686_v60  ;;  %v3883_v60 = vadd.f32 %v6694_v22, %v6684_v58 }
 0x249   : > { %v3945_v13 = vpop.f32.mrf.mxu0 }
 0x24a   : > { %v3885_v62 = vpop.f32.mrf.mxu2 }
 0x24b   : > { %v3886_v57 = vadd.f32 %v3885_v62, %v3857_v33 }
 0x24d   : > { %v3964_v43 = vpop.f32.mrf.mxu1  ;;  %v4101_v27 = vpop.f32.mrf.mxu3  ;;  %v3915_v51 = vadd.f32 %v3914_v2, %v3886_v57 }
 0x24e   : > { %v4102_v24 = vadd.f32 %v6701_v45, %v4101_v27 }
 0x24f   : > { %v3944_v19 = vadd.f32 %v3943_v34, %v3915_v51 }
 0x251   : > { %v3957_v9 = vpop.f32.mrf.mxu0 }
 0x252   : > { %v3887_v23 = vpop.f32.mrf.mxu2  ;;  %v3958_v42 = vadd.f32 %v3957_v9, %v3929_v21  ;;  %v3936_v21 = vadd.f32 %v6680_v5, %v3907_v3  ;;  %v3912_v5 = vadd.f32 %v6692_v1, %v3883_v60 }
 0x253   : > { %v3888_v26 = vadd.f32 %v3887_v23, %v3859_v15 }
 0x254   : > { %v3965_v0 = vadd.f32 %v3964_v43, %v3936_v21  ;;  %v3941_v9 = vadd.f32 %v6688_v20, %v3912_v5 }
 0x255   : > { %v6696_v46 = vpop.f32.mrf.mxu1  ;;  %v3917_v40 = vadd.f32 %v3916_v14, %v3888_v26  ;;  %v4103_v28 = vpop.f32.mrf.mxu3 }
 0x256   : > { %v4104_v4 = vadd.f32 %v6701_v45, %v4103_v28  ;;  %v3968_v43 = vadd.f32 %v6696_v46, %v6690_v8 }
 0x257   : > { %v3946_v54 = vadd.f32 %v3945_v13, %v3917_v40 }
 0x259   : > { %v3959_v18 = vpop.f32.mrf.mxu0 }
 0x25a   : > { %v4086_v61 = vpop.f32.mrf.mxu2  ;;  %v3960_v38 = vadd.f32 %v3959_v18, %v3931_v39 }
 0x25b   : > { %v4087_v7 = vadd.f32 %v6701_v45, %v4086_v61 }
 0x25d   : > { %v3969_v47 = vpop.f32.mrf.mxu1  ;;  %v4106_v36 = vadd.f32 %v4087_v7, %v3958_v42 }
 0x25e   : > { %v3970_v61 = vadd.f32 %v3969_v47, %v3941_v9 }
 0x25f   : > { %v4114_v63 = vmax.f32 %v4106_v36, 0.0 }
 0x262   : > { %v4088_v53 = vpop.f32.mrf.mxu2 }
 0x263   : > { %v4089_v35 = vadd.f32 %v6701_v45, %v4088_v53 }
 0x265   : > { %v3972_v30 = vpop.f32.mrf.mxu1  ;;  %v4107_v6 = vadd.f32 %v4089_v35, %v3960_v38 }
 0x266   : > { %v3973_v32 = vadd.f32 %v3972_v30, %v3944_v19 }
 0x267   : > { %v4115_v50 = vmax.f32 %v4107_v6, 0.0 }
 0x268   : > { %v4112_v56 = vadd.f32 %v4102_v24, %v3973_v32 }
 0x269   : > { %v5538_v52 = vpack.c.bf16 %v4115_v50, %v4114_v63 }
 0x26a   : > { %v4091_v37 = vpop.f32.mrf.mxu2  ;;  %v4120_v31 = vmax.f32 %v4112_v56, 0.0 }
 0x26b   : > { %5539 = vst [vmem:[%s6711_s30] sm:$0xff] %v5538_v52   ;;  %v4092_v16 = vadd.f32 %v6701_v45, %v4091_v37 }
 0x26d   : > { %v3974_v55 = vpop.f32.mrf.mxu1  ;;  %v4108_v41 = vadd.f32 %v4092_v16, %v3963_v11 }
 0x26e   : > { %v3975_v59 = vadd.f32 %v3974_v55, %v3946_v54 }
 0x26f   : > { %v4116_v2 = vmax.f32 %v4108_v41, 0.0 }
 0x270   : > { %v4113_v49 = vadd.f32 %v4104_v4, %v3975_v59 }
 0x272   : > { %v4121_v10 = vmax.f32 %v4113_v49, 0.0  ;;  %v4093_v48 = vpop.f32.mrf.mxu2 }
 0x273   : > { %v4094_v34 = vadd.f32 %v6701_v45, %v4093_v48 }
 0x274   : > { %v5553_v62 = vpack.c.bf16 %v4121_v10, %v4120_v31 }
 0x275   : > { %v4109_v17 = vadd.f32 %v4094_v34, %v3965_v0 }
 0x276   : > { %5557 = vst [vmem:[%s6711_s30 + $0x18] sm:$0xff] %v5553_v62  }
 0x277   : > { %v4117_v13 = vmax.f32 %v4109_v17, 0.0 }
 0x279   : > { %v5543_v29 = vpack.c.bf16 %v4117_v13, %v4116_v2 }
 0x27a   : > { %v4096_v23 = vpop.f32.mrf.mxu2 }
 0x27b   : > { %5555 = vst [vmem:[%s6711_s30 + $0x8] sm:$0xff] %v5543_v29   ;;  %v4097_v14 = vadd.f32 %v6701_v45, %v4096_v23 }
 0x27d   : > { %v4110_v33 = vadd.f32 %v4097_v14, %v3968_v43 }
 0x27f   : > { %v4118_v22 = vmax.f32 %v4110_v33, 0.0 }
 0x282   : > { %v4098_v44 = vpop.f32.mrf.mxu2 }
 0x283   : > { %v4099_v58 = vadd.f32 %v6701_v45, %v4098_v44 }
 0x285   : > { %v4111_v1 = vadd.f32 %v4099_v58, %v3970_v61 }
 0x287   : > { %v4119_v12 = vmax.f32 %v4111_v1, 0.0 }
 0x289   : > { %v5548_v8 = vpack.c.bf16 %v4119_v12, %v4118_v22 }
 0x28b   : > { %5556 = vst [vmem:[%s6711_s30 + $0x10] sm:$0xff] %v5548_v8  }
 0x28c   : > { %5714 = shalt.err (!%p5711_p9)
}
 0x28d   : > { %s5775_s21 = smov 64   ;;  %s5776_s30 = smov 4  }
 0x28e   : > { %5587 = dma.vmem_to_hbm [thread:$0]  (%p5857_p4), %s4153_s15, 512, %s4155_s27, %s4139_s16, %s5775_s21, %s5775_s21, %s5776_s30  }
 0x28f PF: > { %p5599_p10 = scmp.ge.s32.totalorder %s5769_s29, 2  ;;  %s4169_s10 = sand.u32 1, %s5749_s24  }
 0x290   : > { %s4170_s12 = scalar_lea.sflag [#allocation7], %s4169_s10 }
 0x291   : > { %p5594_p11 = pnand %p5599_p10, %p5864_p8 }
 0x293   : > { %p5595_p12 = pneg %p5594_p11 }
 0x295   : > { %5744 = dma.done.wait (%p5595_p12), %s4170_s12, 512  }
 0x296   : > { %5746 = vsyncadd (%p5595_p12), %s4170_s12, 4294966784  ;;  %s21_s29 = sadd.s32 1, %s5769_s29   ;;  %s6790_s24 = smov %s5753_s25 }
 0x297   : > { %p18_p13 = scmp.ge.s32.totalorder %s21_s29, 4   ;;  %s6791_s25 = smov %s5757_s26 }
 0x298   : > { %s6792_s26 = smov %s5870_s14  ;;  %s6793_s27 = smov %s5765_s28 }
 0x299   : > { %s6794_s28 = smov %s6796_s9  ;;  %20 = sbr.rel (!%p18_p13) target bundleno = 5 (0x5), region = 110 }
 0x29e   :  { %4176 = vsyncpa [#allocation6], 1 }
 0x29f   :  { %4178 = vsyncpa [#allocation6 + $0x1], 1 }
 0x2a0   :  { %4179 = vsyncpa [#allocation7], 1 }
 0x2a1   :  { %4181 = vsyncpa [#allocation7 + $0x1], 1 }

</bundles_post_ra>
